<compile_context>
chip_gen: v6e
topology: v6e:2x2x1
jax: 0.10.0
libtpu: 0.0.40
codegen_flags: <defaults>
</compile_context>

<pallas_src>
import functools
import numpy as np

import jax
import jax.numpy as jnp
from jax import lax
from jax.experimental import pallas as pl
from jax.experimental.pallas import tpu as pltpu

# ---- static geometry for the 111x111 input case (AdaptiveAvgPool2d(6) == identity) ----
# conv1: 111 -(11x11 s4 p2)-> 27 ; pool1: 27 -(3x3 s2)-> 13
# conv2: 13  -(5x5  s1 p2)-> 13 ; pool2: 13 -(3x3 s2)-> 6 ; flatten: 16*6*6 = 576
XW1 = 1024   # phase-decomposed conv1 input row width (flat 29x29 = 841, zero-padded)
M1  = 896    # conv1 output working width (flat, row stride 29; valid 27x27)
CM1 = 826    # pool1 column-max working width
WM1 = 768    # pool1 window-max working width
P1W = 384    # conv2 input width (flat, row stride 17 = 13 + 2*2 zero pad; valid 17x17=289)
M2  = 256    # conv2 output working width (flat, row stride 17; valid 13x13)
CM2 = 226    # pool2 column-max working width
WM2 = 192    # pool2 window-max working width (head weight laid out against this)
K1  = 9 * 48   # conv1 stacked contraction dim
K2  = 25 * 4   # conv2 stacked contraction dim (no Cin padding)


# ------------------------------ fused Pallas kernel ------------------------------

def _fused_forward_kernel(x_ref, w1_ref, b1_ref, s1_ref, w2_ref, b2_ref,
                          wfc_ref, fcb_ref, lng_ref, lnb_ref, anc_ref,
                          o_ref,
                          rhs1_s, wm1_s, p1_s, rhs2_s, y2_s, hfeat_s,
                          *, G, lmd, ln_eps, cos_eps):
    f32 = jnp.float32

    # -------- conv1 + ReLU + separable maxpool1, one stacked-K matmul per image ----------
    for g in range(G):
        slot = g % 2                                   # double-buffered RHS scratch
        for t in range(9):                             # build (432, M1) stacked RHS
            qh, qw = divmod(t, 3)
            sh = 29 * qh + qw
            rhs1_s[slot, t * 48:(t + 1) * 48, :] = x_ref[g, :, sh:sh + M1]
        y = jnp.dot(w1_ref[...], rhs1_s[slot, :, :], preferred_element_type=f32)
        y = jnp.maximum(y + b1_ref[...], 0.0)          # (8, M1)
        # separable 3x3/s2 max-pool: column max then row max (4 maxes, not 8)
        cm = jnp.maximum(jnp.maximum(y[:, 0:CM1], y[:, 1:CM1 + 1]), y[:, 2:CM1 + 2])
        wm = jnp.maximum(jnp.maximum(cm[:, 0:WM1], cm[:, 29:29 + WM1]),
                         cm[:, 58:58 + WM1])
        wm1_s[g * 4:(g + 1) * 4, :] = wm[0:4, :]       # only the 4 real channels

    # -------- pool1 stride-2 subsample + conv2 zero-pad: ONE batched selection matmul ----
    p1_s[...] = jnp.dot(wm1_s[...], s1_ref[...], preferred_element_type=f32)

    # -------- conv2 + ReLU: one stacked-K matmul over all G images (lane-batched) --------
    for g in range(G):
        for t in range(25):
            kh, kw = divmod(t, 5)
            sh = 17 * kh + kw
            rhs2_s[t * 4:(t + 1) * 4, g * M2:(g + 1) * M2] = \
                p1_s[g * 4:(g + 1) * 4, sh:sh + M2]
    y2 = jnp.dot(w2_ref[...], rhs2_s[...], preferred_element_type=f32)
    y2_s[...] = jnp.maximum(y2 + b2_ref[...], 0.0)     # (16, G*M2)

    # -------- separable maxpool2 + corner-turn into (G, 16*WM2) head features ------------
    for g in range(G):
        seg = y2_s[:, g * M2: g * M2 + CM2 + 2]        # (16, 228)
        cm = jnp.maximum(jnp.maximum(seg[:, 0:CM2], seg[:, 1:CM2 + 1]),
                         seg[:, 2:CM2 + 2])
        wm = jnp.maximum(jnp.maximum(cm[:, 0:WM2], cm[:, 17:17 + WM2]),
                         cm[:, 34:34 + WM2])           # (16, WM2)
        for c in range(16):
            hfeat_s[g:g + 1, c * WM2:(c + 1) * WM2] = wm[c:c + 1, :]

    # -------- head: (pool2 subsample + Flatten + Linear) as ONE matmul, M = G ------------
    z = jnp.dot(hfeat_s[...], wfc_ref[...], preferred_element_type=f32) + fcb_ref[...]

    # Sigmoid (stable tanh form -> EUP), LayerNorm, cosine similarity vs pre-normed anchors.
    sig = 0.5 * (jnp.tanh(0.5 * z) + 1.0)
    mu = jnp.mean(sig, axis=-1, keepdims=True)
    var = jnp.mean((sig - mu) ** 2, axis=-1, keepdims=True)
    h = (sig - mu) * lax.rsqrt(var + ln_eps) * lng_ref[...] + lnb_ref[...]

    dots = jnp.dot(h, anc_ref[...], preferred_element_type=f32)     # (G, NCP)
    hn = jnp.sqrt(jnp.sum(h * h, axis=-1, keepdims=True))
    o_ref[...] = (dots / jnp.maximum(hn, cos_eps)) * lmd             # lane-dense store


# ------------------------------ one-time parameter prep ------------------------------

def prepare_params(params):
    """Re-layout / pad all weights ONCE (not per forward)."""
    f32 = jnp.float32

    # conv1: (4,3,11,11) -> pad kernel to 12x12 -> per-tap (qh,qw) matrices over the 48
    # phase channels (ci, rh, rw), then stack the 9 taps along K -> (8, 432).
    w1 = params["conv1_w"]
    w1p = jnp.zeros((4, 3, 12, 12), f32).at[:, :, :11, :11].set(w1)
    w1p = w1p.reshape(4, 3, 3, 4, 3, 4).transpose(2, 4, 0, 1, 3, 5)   # (qh,qw,co,ci,rh,rw)
    w1taps = jnp.pad(w1p.reshape(9, 4, 48), ((0, 0), (0, 4), (0, 0)))  # Cout 4 -> 8
    w1stack = w1taps.transpose(1, 0, 2).reshape(8, K1)                 # [co, t*48+cidx]
    b1p = jnp.pad(params["conv1_b"], (0, 4)).reshape(8, 1)

    # conv2: (16,4,5,5) -> taps stacked along K with NO Cin padding -> (16, 100),
    # column index = (kh*5+kw)*4 + ci.
    w2stack = params["conv2_w"].transpose(0, 2, 3, 1).reshape(16, K2)
    b2p = params["conv2_b"].reshape(16, 1)

    # pool1 stride-2 subsample + re-pad selection matrix: src flat (row stride 29) ->
    # dst flat (row stride 17, 13x13 data at offset (2,2), zeros in the padding ring).
    s1 = np.zeros((WM1, P1W), np.float32)
    for i in range(13):
        for j in range(13):
            s1[58 * i + 2 * j, 17 * (i + 2) + (j + 2)] = 1.0
    s1 = jnp.asarray(s1)

    # FC weight folded with pool2 subsample + torch Flatten (c*36 + i*6 + j ordering),
    # stacked so the head is a single (G, 16*WM2) @ (16*WM2, E) matmul:
    # wfc_stack[c*192 + (34*i + 2*j), e] = fc_w[e, c*36 + i*6 + j], zeros elsewhere.
    fc_w = params["fc_w"]                                  # (E, 576), torch (out, in)
    E = fc_w.shape[0]
    fc_resh = fc_w.reshape(E, 16, 6, 6).transpose(1, 2, 3, 0).reshape(16, 36, E)
    p_idx = (34 * np.arange(6)[:, None] + 2 * np.arange(6)[None, :]).reshape(-1)
    wfc = jnp.zeros((16, WM2, E), f32).at[:, p_idx, :].set(fc_resh)
    wfc_stack = wfc.reshape(16 * WM2, E)                   # (3072, E)

    # Pre-normalized anchors (torch-style eps clamp is data-independent), transposed and
    # lane-padded to a multiple of 128 classes for an unmasked output store.
    anc = params["anchors"][0]                             # (n_cls, E)
    n_cls = anc.shape[0]
    an = jnp.sqrt(jnp.sum(anc * anc, axis=-1, keepdims=True))
    anc_hat = (anc / jnp.maximum(an, 1e-8)).T              # (E, n_cls)
    ncp = ((n_cls + 127) // 128) * 128
    anc_pad = jnp.zeros((E, ncp), f32).at[:, :n_cls].set(anc_hat)

    return dict(w1stack=w1stack, b1p=b1p, s1=s1, w2stack=w2stack, b2p=b2p,
                wfc_stack=wfc_stack,
                fc_b=params["fc_b"].reshape(1, E),
                ln_g=params["ln_g"].reshape(1, E),
                ln_b=params["ln_b"].reshape(1, E),
                anc_hat=anc_pad)


def _phase_decompose_input(x):
    """Space-to-depth by the conv1 stride: (B,3,111,111) -> (B,48,1024) flat phases.
    Pure pad/reshape/transpose (single ingest transpose, no data duplication)."""
    B = x.shape[0]
    xp = jnp.pad(x, ((0, 0), (0, 0), (2, 3), (2, 3)))               # (B,3,116,116)
    xp = xp.reshape(B, 3, 29, 4, 29, 4).transpose(0, 1, 3, 5, 2, 4)  # (B,3,4,4,29,29)
    xp = xp.reshape(B, 48, 841)
    return jnp.pad(xp, ((0, 0), (0, 0), (0, XW1 - 841)))             # (B,48,1024)


# ------------------------------ full network forward ------------------------------

def init_params(key, n_cls, embedding_dim=64):
    ks = jax.random.split(key, 6)
    return dict(
        conv1_w=0.05 * jax.random.normal(ks[0], (4, 3, 11, 11), jnp.float32),
        conv1_b=0.05 * jax.random.normal(ks[1], (4,), jnp.float32),
        conv2_w=0.05 * jax.random.normal(ks[2], (16, 4, 5, 5), jnp.float32),
        conv2_b=0.05 * jax.random.normal(ks[3], (16,), jnp.float32),
        fc_w=0.05 * jax.random.normal(ks[4], (embedding_dim, 576), jnp.float32),
        fc_b=jnp.zeros((embedding_dim,), jnp.float32),
        ln_g=jnp.ones((embedding_dim,), jnp.float32),
        ln_b=jnp.zeros((embedding_dim,), jnp.float32),
        anchors=jax.random.uniform(ks[5], (1, n_cls, embedding_dim), jnp.float32) - 0.5,
    )


def network_forward(prepped, x, n_cls, lmd=3.0):
    # TODO(synk): inputs whose feature map is not already 6x6 before AdaptiveAvgPool2d(6)
    # (i.e. anything other than 111x111-class sizes) would need the general adaptive-pool
    # path; this fused kernel specializes to the identity-pool case.
    assert x.shape[1:] == (3, 111, 111), "kernel is specialized to 3x111x111 inputs"
    B = x.shape[0]
    E = prepped["fc_b"].shape[1]
    NCP = prepped["anc_hat"].shape[1]

    G = min(8, B)                           # images per grid step (tunable, G<=8 here)
    B_pad = ((B + G - 1) // G) * G

    xph = _phase_decompose_input(x)
    if B_pad != B:
        xph = jnp.pad(xph, ((0, B_pad - B), (0, 0), (0, 0)))

    kernel = functools.partial(_fused_forward_kernel, G=G, lmd=float(lmd),
                               ln_eps=1e-5, cos_eps=1e-8)
    out = pl.pallas_call(
        kernel,
        out_shape=jax.ShapeDtypeStruct((B_pad, NCP), jnp.float32),
        grid=(B_pad // G,),
        in_specs=[
            pl.BlockSpec((G, 48, XW1), lambda b: (b, 0, 0)),   # per-step input block
            pl.BlockSpec((8, K1), lambda b: (0, 0)),           # conv1 stacked weight
            pl.BlockSpec((8, 1), lambda b: (0, 0)),            # conv1 bias
            pl.BlockSpec((WM1, P1W), lambda b: (0, 0)),        # pool1 selection matrix
            pl.BlockSpec((16, K2), lambda b: (0, 0)),          # conv2 stacked weight
            pl.BlockSpec((16, 1), lambda b: (0, 0)),           # conv2 bias
            pl.BlockSpec((16 * WM2, E), lambda b: (0, 0)),     # folded+stacked FC weight
            pl.BlockSpec((1, E), lambda b: (0, 0)),            # fc bias
            pl.BlockSpec((1, E), lambda b: (0, 0)),            # LN gamma
            pl.BlockSpec((1, E), lambda b: (0, 0)),            # LN beta
            pl.BlockSpec((E, NCP), lambda b: (0, 0)),          # pre-normalized anchors^T
        ],
        out_specs=pl.BlockSpec((G, NCP), lambda b: (b, 0)),
        scratch_shapes=[
            pltpu.VMEM((2, K1, M1), jnp.float32),      # conv1 stacked RHS (double-buffered)
            pltpu.VMEM((G * 4, WM1), jnp.float32),     # pool1 output, images on sublanes
            pltpu.VMEM((G * 4, P1W), jnp.float32),     # conv2 input (re-padded)
            pltpu.VMEM((K2, G * M2), jnp.float32),     # conv2 stacked RHS (lane-batched)
            pltpu.VMEM((16, G * M2), jnp.float32),     # conv2 output
            pltpu.VMEM((G, 16 * WM2), jnp.float32),    # head features (G, 3072)
        ],
        compiler_params=pltpu.CompilerParams(
            dimension_semantics=("parallel",),
            vmem_limit_bytes=32 * 1024 * 1024),
    )(xph, prepped["w1stack"], prepped["b1p"], prepped["s1"],
      prepped["w2stack"], prepped["b2p"], prepped["wfc_stack"],
      prepped["fc_b"], prepped["ln_g"], prepped["ln_b"], prepped["anc_hat"])
    return out[:B, :n_cls]


if __name__ == "__main__":
    key = jax.random.PRNGKey(0)
    kx, kp = jax.random.split(key)
    n_cls = 10
    # 111 -> conv1: 27 -> pool1: 13 -> conv2: 13 -> pool2: 6 -> flatten 16*6*6 = 576
    x = jax.random.normal(kx, (2, 3, 111, 111), jnp.float32)
    params = init_params(kp, n_cls)
    prepped = prepare_params(params)          # one-time weight re-layout / padding

    fwd = jax.jit(network_forward, static_argnums=(2,))
    out = jax.block_until_ready(fwd(prepped, x, n_cls))
    assert out.shape == (2, n_cls) and out.dtype == jnp.float32
    print("KERNEL_OK")
</pallas_src>

<mosaic_0001>
module attributes {stable_mosaic.version = 11 : i64} {
  func.func @_fused_forward_kernel(%arg0: i32, %arg1: memref<2x48x1024xf32, #tpu.memory_space<vmem>>, %arg2: memref<8x432xf32, #tpu.memory_space<vmem>>, %arg3: memref<8x1xf32, #tpu.memory_space<vmem>>, %arg4: memref<768x384xf32, #tpu.memory_space<vmem>>, %arg5: memref<16x100xf32, #tpu.memory_space<vmem>>, %arg6: memref<16x1xf32, #tpu.memory_space<vmem>>, %arg7: memref<3072x64xf32, #tpu.memory_space<vmem>>, %arg8: memref<1x64xf32, #tpu.memory_space<vmem>>, %arg9: memref<1x64xf32, #tpu.memory_space<vmem>>, %arg10: memref<1x64xf32, #tpu.memory_space<vmem>>, %arg11: memref<64x128xf32, #tpu.memory_space<vmem>>, %arg12: memref<2x128xf32, #tpu.memory_space<vmem>>, %arg13: memref<2x432x896xf32, #tpu.memory_space<vmem>>, %arg14: memref<8x768xf32, #tpu.memory_space<vmem>>, %arg15: memref<8x384xf32, #tpu.memory_space<vmem>>, %arg16: memref<100x512xf32, #tpu.memory_space<vmem>>, %arg17: memref<16x512xf32, #tpu.memory_space<vmem>>, %arg18: memref<2x3072xf32, #tpu.memory_space<vmem>>) attributes {dimension_semantics = [#tpu.dimension_semantics<parallel>], iteration_bounds = array<i64: 1>, scalar_prefetch = 0 : i64, scratch_operands = 6 : i64, tpu.core_type = #tpu.core_type<tc>, window_params = [{transform_indices = @transform_0, window_bounds = array<i64: 2, 48, 1024>}, {pipeline_mode = #tpu.pipeline_mode<synchronous>, transform_indices = @transform_1, window_bounds = array<i64: 8, 432>}, {pipeline_mode = #tpu.pipeline_mode<synchronous>, transform_indices = @transform_2, window_bounds = array<i64: 8, 1>}, {pipeline_mode = #tpu.pipeline_mode<synchronous>, transform_indices = @transform_3, window_bounds = array<i64: 768, 384>}, {pipeline_mode = #tpu.pipeline_mode<synchronous>, transform_indices = @transform_4, window_bounds = array<i64: 16, 100>}, {pipeline_mode = #tpu.pipeline_mode<synchronous>, transform_indices = @transform_5, window_bounds = array<i64: 16, 1>}, {pipeline_mode = #tpu.pipeline_mode<synchronous>, transform_indices = @transform_6, window_bounds = array<i64: 3072, 64>}, {pipeline_mode = #tpu.pipeline_mode<synchronous>, transform_indices = @transform_7, window_bounds = array<i64: 1, 64>}, {pipeline_mode = #tpu.pipeline_mode<synchronous>, transform_indices = @transform_8, window_bounds = array<i64: 1, 64>}, {pipeline_mode = #tpu.pipeline_mode<synchronous>, transform_indices = @transform_9, window_bounds = array<i64: 1, 64>}, {pipeline_mode = #tpu.pipeline_mode<synchronous>, transform_indices = @transform_10, window_bounds = array<i64: 64, 128>}, {transform_indices = @transform_11, window_bounds = array<i64: 2, 128>}]} {
    %c0 = arith.constant 0 : index
    %c0_0 = arith.constant 0 : index
    %c0_1 = arith.constant 0 : index
    %0 = vector.load %arg1[%c0, %c0_0, %c0_1] : memref<2x48x1024xf32, #tpu.memory_space<vmem>>, vector<1x48x896xf32>
    %1 = vector.shape_cast %0 : vector<1x48x896xf32> to vector<48x896xf32>
    %c0_2 = arith.constant 0 : index
    %c0_3 = arith.constant 0 : index
    %c0_4 = arith.constant 0 : index
    %2 = vector.load %arg13[%c0_2, %c0_3, %c0_4] : memref<2x432x896xf32, #tpu.memory_space<vmem>>, vector<1x48x896xf32>
    %3 = vector.shape_cast %2 : vector<1x48x896xf32> to vector<48x896xf32>
    %4 = vector.shape_cast %1 : vector<48x896xf32> to vector<1x48x896xf32>
    tpu.vector_store %arg13[%c0_2, %c0_3, %c0_4], %4 {strides = array<i32>} : memref<2x432x896xf32, #tpu.memory_space<vmem>>, vector<1x48x896xf32>,
    %c0_5 = arith.constant 0 : index
    %c0_6 = arith.constant 0 : index
    %c1 = arith.constant 1 : index
    %5 = vector.load %arg1[%c0_5, %c0_6, %c1] : memref<2x48x1024xf32, #tpu.memory_space<vmem>>, vector<1x48x896xf32>
    %6 = vector.shape_cast %5 : vector<1x48x896xf32> to vector<48x896xf32>
    %c0_7 = arith.constant 0 : index
    %c48 = arith.constant 48 : index
    %c0_8 = arith.constant 0 : index
    %7 = vector.load %arg13[%c0_7, %c48, %c0_8] : memref<2x432x896xf32, #tpu.memory_space<vmem>>, vector<1x48x896xf32>
    %8 = vector.shape_cast %7 : vector<1x48x896xf32> to vector<48x896xf32>
    %9 = vector.shape_cast %6 : vector<48x896xf32> to vector<1x48x896xf32>
    tpu.vector_store %arg13[%c0_7, %c48, %c0_8], %9 {strides = array<i32>} : memref<2x432x896xf32, #tpu.memory_space<vmem>>, vector<1x48x896xf32>,
    %c0_9 = arith.constant 0 : index
    %c0_10 = arith.constant 0 : index
    %c2 = arith.constant 2 : index
    %10 = vector.load %arg1[%c0_9, %c0_10, %c2] : memref<2x48x1024xf32, #tpu.memory_space<vmem>>, vector<1x48x896xf32>
    %11 = vector.shape_cast %10 : vector<1x48x896xf32> to vector<48x896xf32>
    %c0_11 = arith.constant 0 : index
    %c96 = arith.constant 96 : index
    %c0_12 = arith.constant 0 : index
    %12 = vector.load %arg13[%c0_11, %c96, %c0_12] : memref<2x432x896xf32, #tpu.memory_space<vmem>>, vector<1x48x896xf32>
    %13 = vector.shape_cast %12 : vector<1x48x896xf32> to vector<48x896xf32>
    %14 = vector.shape_cast %11 : vector<48x896xf32> to vector<1x48x896xf32>
    tpu.vector_store %arg13[%c0_11, %c96, %c0_12], %14 {strides = array<i32>} : memref<2x432x896xf32, #tpu.memory_space<vmem>>, vector<1x48x896xf32>,
    %c0_13 = arith.constant 0 : index
    %c0_14 = arith.constant 0 : index
    %c29 = arith.constant 29 : index
    %15 = vector.load %arg1[%c0_13, %c0_14, %c29] : memref<2x48x1024xf32, #tpu.memory_space<vmem>>, vector<1x48x896xf32>
    %16 = vector.shape_cast %15 : vector<1x48x896xf32> to vector<48x896xf32>
    %c0_15 = arith.constant 0 : index
    %c144 = arith.constant 144 : index
    %c0_16 = arith.constant 0 : index
    %17 = vector.load %arg13[%c0_15, %c144, %c0_16] : memref<2x432x896xf32, #tpu.memory_space<vmem>>, vector<1x48x896xf32>
    %18 = vector.shape_cast %17 : vector<1x48x896xf32> to vector<48x896xf32>
    %19 = vector.shape_cast %16 : vector<48x896xf32> to vector<1x48x896xf32>
    tpu.vector_store %arg13[%c0_15, %c144, %c0_16], %19 {strides = array<i32>} : memref<2x432x896xf32, #tpu.memory_space<vmem>>, vector<1x48x896xf32>,
    %c0_17 = arith.constant 0 : index
    %c0_18 = arith.constant 0 : index
    %c30 = arith.constant 30 : index
    %20 = vector.load %arg1[%c0_17, %c0_18, %c30] : memref<2x48x1024xf32, #tpu.memory_space<vmem>>, vector<1x48x896xf32>
    %21 = vector.shape_cast %20 : vector<1x48x896xf32> to vector<48x896xf32>
    %c0_19 = arith.constant 0 : index
    %c192 = arith.constant 192 : index
    %c0_20 = arith.constant 0 : index
    %22 = vector.load %arg13[%c0_19, %c192, %c0_20] : memref<2x432x896xf32, #tpu.memory_space<vmem>>, vector<1x48x896xf32>
    %23 = vector.shape_cast %22 : vector<1x48x896xf32> to vector<48x896xf32>
    %24 = vector.shape_cast %21 : vector<48x896xf32> to vector<1x48x896xf32>
    tpu.vector_store %arg13[%c0_19, %c192, %c0_20], %24 {strides = array<i32>} : memref<2x432x896xf32, #tpu.memory_space<vmem>>, vector<1x48x896xf32>,
    %c0_21 = arith.constant 0 : index
    %c0_22 = arith.constant 0 : index
    %c31 = arith.constant 31 : index
    %25 = vector.load %arg1[%c0_21, %c0_22, %c31] : memref<2x48x1024xf32, #tpu.memory_space<vmem>>, vector<1x48x896xf32>
    %26 = vector.shape_cast %25 : vector<1x48x896xf32> to vector<48x896xf32>
    %c0_23 = arith.constant 0 : index
    %c240 = arith.constant 240 : index
    %c0_24 = arith.constant 0 : index
    %27 = vector.load %arg13[%c0_23, %c240, %c0_24] : memref<2x432x896xf32, #tpu.memory_space<vmem>>, vector<1x48x896xf32>
    %28 = vector.shape_cast %27 : vector<1x48x896xf32> to vector<48x896xf32>
    %29 = vector.shape_cast %26 : vector<48x896xf32> to vector<1x48x896xf32>
    tpu.vector_store %arg13[%c0_23, %c240, %c0_24], %29 {strides = array<i32>} : memref<2x432x896xf32, #tpu.memory_space<vmem>>, vector<1x48x896xf32>,
    %c0_25 = arith.constant 0 : index
    %c0_26 = arith.constant 0 : index
    %c58 = arith.constant 58 : index
    %30 = vector.load %arg1[%c0_25, %c0_26, %c58] : memref<2x48x1024xf32, #tpu.memory_space<vmem>>, vector<1x48x896xf32>
    %31 = vector.shape_cast %30 : vector<1x48x896xf32> to vector<48x896xf32>
    %c0_27 = arith.constant 0 : index
    %c288 = arith.constant 288 : index
    %c0_28 = arith.constant 0 : index
    %32 = vector.load %arg13[%c0_27, %c288, %c0_28] : memref<2x432x896xf32, #tpu.memory_space<vmem>>, vector<1x48x896xf32>
    %33 = vector.shape_cast %32 : vector<1x48x896xf32> to vector<48x896xf32>
    %34 = vector.shape_cast %31 : vector<48x896xf32> to vector<1x48x896xf32>
    tpu.vector_store %arg13[%c0_27, %c288, %c0_28], %34 {strides = array<i32>} : memref<2x432x896xf32, #tpu.memory_space<vmem>>, vector<1x48x896xf32>,
    %c0_29 = arith.constant 0 : index
    %c0_30 = arith.constant 0 : index
    %c59 = arith.constant 59 : index
    %35 = vector.load %arg1[%c0_29, %c0_30, %c59] : memref<2x48x1024xf32, #tpu.memory_space<vmem>>, vector<1x48x896xf32>
    %36 = vector.shape_cast %35 : vector<1x48x896xf32> to vector<48x896xf32>
    %c0_31 = arith.constant 0 : index
    %c336 = arith.constant 336 : index
    %c0_32 = arith.constant 0 : index
    %37 = vector.load %arg13[%c0_31, %c336, %c0_32] : memref<2x432x896xf32, #tpu.memory_space<vmem>>, vector<1x48x896xf32>
    %38 = vector.shape_cast %37 : vector<1x48x896xf32> to vector<48x896xf32>
    %39 = vector.shape_cast %36 : vector<48x896xf32> to vector<1x48x896xf32>
    tpu.vector_store %arg13[%c0_31, %c336, %c0_32], %39 {strides = array<i32>} : memref<2x432x896xf32, #tpu.memory_space<vmem>>, vector<1x48x896xf32>,
    %c0_33 = arith.constant 0 : index
    %c0_34 = arith.constant 0 : index
    %c60 = arith.constant 60 : index
    %40 = vector.load %arg1[%c0_33, %c0_34, %c60] : memref<2x48x1024xf32, #tpu.memory_space<vmem>>, vector<1x48x896xf32>
    %41 = vector.shape_cast %40 : vector<1x48x896xf32> to vector<48x896xf32>
    %c0_35 = arith.constant 0 : index
    %c384 = arith.constant 384 : index
    %c0_36 = arith.constant 0 : index
    %42 = vector.load %arg13[%c0_35, %c384, %c0_36] : memref<2x432x896xf32, #tpu.memory_space<vmem>>, vector<1x48x896xf32>
    %43 = vector.shape_cast %42 : vector<1x48x896xf32> to vector<48x896xf32>
    %44 = vector.shape_cast %41 : vector<48x896xf32> to vector<1x48x896xf32>
    tpu.vector_store %arg13[%c0_35, %c384, %c0_36], %44 {strides = array<i32>} : memref<2x432x896xf32, #tpu.memory_space<vmem>>, vector<1x48x896xf32>,
    %c0_37 = arith.constant 0 : index
    %c0_38 = arith.constant 0 : index
    %45 = vector.load %arg2[%c0_37, %c0_38] : memref<8x432xf32, #tpu.memory_space<vmem>>, vector<8x432xf32>
    %c0_39 = arith.constant 0 : index
    %c0_40 = arith.constant 0 : index
    %c0_41 = arith.constant 0 : index
    %46 = vector.load %arg13[%c0_39, %c0_40, %c0_41] : memref<2x432x896xf32, #tpu.memory_space<vmem>>, vector<1x432x896xf32>
    %47 = vector.shape_cast %46 : vector<1x432x896xf32> to vector<432x896xf32>
    %cst = arith.constant dense<0.000000e+00> : vector<8x896xf32>
    %48 = tpu.matmul %45, %47, %cst {dimension_numbers = #tpu.dot_dimension_numbers<[1], [0], [0], [1], [0, 0, 1, 1], [], []>} : vector<8x432xf32>, vector<432x896xf32>, vector<8x896xf32> -> vector<8x896xf32>
    %c0_42 = arith.constant 0 : index
    %c0_43 = arith.constant 0 : index
    %49 = vector.load %arg3[%c0_42, %c0_43] : memref<8x1xf32, #tpu.memory_space<vmem>>, vector<8x1xf32>
    %50 = vector.broadcast %49 : vector<8x1xf32> to vector<8x896xf32>
    %51 = arith.addf %48, %50 : vector<8x896xf32>
    %cst_44 = arith.constant 0.000000e+00 : f32
    %52 = vector.broadcast %cst_44 : f32 to vector<8x896xf32>
    %53 = arith.maximumf %51, %52 : vector<8x896xf32>
    %54 = vector.extract_strided_slice %53 {offsets = [0, 0], sizes = [8, 826], strides = [1, 1]} : vector<8x896xf32> to vector<8x826xf32>
    %55 = vector.extract_strided_slice %53 {offsets = [0, 1], sizes = [8, 826], strides = [1, 1]} : vector<8x896xf32> to vector<8x826xf32>
    %56 = arith.maximumf %54, %55 : vector<8x826xf32>
    %57 = vector.extract_strided_slice %53 {offsets = [0, 2], sizes = [8, 826], strides = [1, 1]} : vector<8x896xf32> to vector<8x826xf32>
    %58 = arith.maximumf %56, %57 : vector<8x826xf32>
    %59 = vector.extract_strided_slice %58 {offsets = [0, 0], sizes = [8, 768], strides = [1, 1]} : vector<8x826xf32> to vector<8x768xf32>
    %60 = vector.extract_strided_slice %58 {offsets = [0, 29], sizes = [8, 768], strides = [1, 1]} : vector<8x826xf32> to vector<8x768xf32>
    %61 = arith.maximumf %59, %60 : vector<8x768xf32>
    %62 = vector.extract_strided_slice %58 {offsets = [0, 58], sizes = [8, 768], strides = [1, 1]} : vector<8x826xf32> to vector<8x768xf32>
    %63 = arith.maximumf %61, %62 : vector<8x768xf32>
    %64 = vector.extract_strided_slice %63 {offsets = [0, 0], sizes = [4, 768], strides = [1, 1]} : vector<8x768xf32> to vector<4x768xf32>
    %c0_45 = arith.constant 0 : index
    %c0_46 = arith.constant 0 : index
    %65 = vector.load %arg14[%c0_45, %c0_46] : memref<8x768xf32, #tpu.memory_space<vmem>>, vector<4x768xf32>
    tpu.vector_store %arg14[%c0_45, %c0_46], %64 {strides = array<i32>} : memref<8x768xf32, #tpu.memory_space<vmem>>, vector<4x768xf32>,
    %c1_47 = arith.constant 1 : index
    %c0_48 = arith.constant 0 : index
    %c0_49 = arith.constant 0 : index
    %66 = vector.load %arg1[%c1_47, %c0_48, %c0_49] : memref<2x48x1024xf32, #tpu.memory_space<vmem>>, vector<1x48x896xf32>
    %67 = vector.shape_cast %66 : vector<1x48x896xf32> to vector<48x896xf32>
    %c1_50 = arith.constant 1 : index
    %c0_51 = arith.constant 0 : index
    %c0_52 = arith.constant 0 : index
    %68 = vector.load %arg13[%c1_50, %c0_51, %c0_52] : memref<2x432x896xf32, #tpu.memory_space<vmem>>, vector<1x48x896xf32>
    %69 = vector.shape_cast %68 : vector<1x48x896xf32> to vector<48x896xf32>
    %70 = vector.shape_cast %67 : vector<48x896xf32> to vector<1x48x896xf32>
    tpu.vector_store %arg13[%c1_50, %c0_51, %c0_52], %70 {strides = array<i32>} : memref<2x432x896xf32, #tpu.memory_space<vmem>>, vector<1x48x896xf32>,
    %c1_53 = arith.constant 1 : index
    %c0_54 = arith.constant 0 : index
    %c1_55 = arith.constant 1 : index
    %71 = vector.load %arg1[%c1_53, %c0_54, %c1_55] : memref<2x48x1024xf32, #tpu.memory_space<vmem>>, vector<1x48x896xf32>
    %72 = vector.shape_cast %71 : vector<1x48x896xf32> to vector<48x896xf32>
    %c1_56 = arith.constant 1 : index
    %c48_57 = arith.constant 48 : index
    %c0_58 = arith.constant 0 : index
    %73 = vector.load %arg13[%c1_56, %c48_57, %c0_58] : memref<2x432x896xf32, #tpu.memory_space<vmem>>, vector<1x48x896xf32>
    %74 = vector.shape_cast %73 : vector<1x48x896xf32> to vector<48x896xf32>
    %75 = vector.shape_cast %72 : vector<48x896xf32> to vector<1x48x896xf32>
    tpu.vector_store %arg13[%c1_56, %c48_57, %c0_58], %75 {strides = array<i32>} : memref<2x432x896xf32, #tpu.memory_space<vmem>>, vector<1x48x896xf32>,
    %c1_59 = arith.constant 1 : index
    %c0_60 = arith.constant 0 : index
    %c2_61 = arith.constant 2 : index
    %76 = vector.load %arg1[%c1_59, %c0_60, %c2_61] : memref<2x48x1024xf32, #tpu.memory_space<vmem>>, vector<1x48x896xf32>
    %77 = vector.shape_cast %76 : vector<1x48x896xf32> to vector<48x896xf32>
    %c1_62 = arith.constant 1 : index
    %c96_63 = arith.constant 96 : index
    %c0_64 = arith.constant 0 : index
    %78 = vector.load %arg13[%c1_62, %c96_63, %c0_64] : memref<2x432x896xf32, #tpu.memory_space<vmem>>, vector<1x48x896xf32>
    %79 = vector.shape_cast %78 : vector<1x48x896xf32> to vector<48x896xf32>
    %80 = vector.shape_cast %77 : vector<48x896xf32> to vector<1x48x896xf32>
    tpu.vector_store %arg13[%c1_62, %c96_63, %c0_64], %80 {strides = array<i32>} : memref<2x432x896xf32, #tpu.memory_space<vmem>>, vector<1x48x896xf32>,
    %c1_65 = arith.constant 1 : index
    %c0_66 = arith.constant 0 : index
    %c29_67 = arith.constant 29 : index
    %81 = vector.load %arg1[%c1_65, %c0_66, %c29_67] : memref<2x48x1024xf32, #tpu.memory_space<vmem>>, vector<1x48x896xf32>
    %82 = vector.shape_cast %81 : vector<1x48x896xf32> to vector<48x896xf32>
    %c1_68 = arith.constant 1 : index
    %c144_69 = arith.constant 144 : index
    %c0_70 = arith.constant 0 : index
    %83 = vector.load %arg13[%c1_68, %c144_69, %c0_70] : memref<2x432x896xf32, #tpu.memory_space<vmem>>, vector<1x48x896xf32>
    %84 = vector.shape_cast %83 : vector<1x48x896xf32> to vector<48x896xf32>
    %85 = vector.shape_cast %82 : vector<48x896xf32> to vector<1x48x896xf32>
    tpu.vector_store %arg13[%c1_68, %c144_69, %c0_70], %85 {strides = array<i32>} : memref<2x432x896xf32, #tpu.memory_space<vmem>>, vector<1x48x896xf32>,
    %c1_71 = arith.constant 1 : index
    %c0_72 = arith.constant 0 : index
    %c30_73 = arith.constant 30 : index
    %86 = vector.load %arg1[%c1_71, %c0_72, %c30_73] : memref<2x48x1024xf32, #tpu.memory_space<vmem>>, vector<1x48x896xf32>
    %87 = vector.shape_cast %86 : vector<1x48x896xf32> to vector<48x896xf32>
    %c1_74 = arith.constant 1 : index
    %c192_75 = arith.constant 192 : index
    %c0_76 = arith.constant 0 : index
    %88 = vector.load %arg13[%c1_74, %c192_75, %c0_76] : memref<2x432x896xf32, #tpu.memory_space<vmem>>, vector<1x48x896xf32>
    %89 = vector.shape_cast %88 : vector<1x48x896xf32> to vector<48x896xf32>
    %90 = vector.shape_cast %87 : vector<48x896xf32> to vector<1x48x896xf32>
    tpu.vector_store %arg13[%c1_74, %c192_75, %c0_76], %90 {strides = array<i32>} : memref<2x432x896xf32, #tpu.memory_space<vmem>>, vector<1x48x896xf32>,
    %c1_77 = arith.constant 1 : index
    %c0_78 = arith.constant 0 : index
    %c31_79 = arith.constant 31 : index
    %91 = vector.load %arg1[%c1_77, %c0_78, %c31_79] : memref<2x48x1024xf32, #tpu.memory_space<vmem>>, vector<1x48x896xf32>
    %92 = vector.shape_cast %91 : vector<1x48x896xf32> to vector<48x896xf32>
    %c1_80 = arith.constant 1 : index
    %c240_81 = arith.constant 240 : index
    %c0_82 = arith.constant 0 : index
    %93 = vector.load %arg13[%c1_80, %c240_81, %c0_82] : memref<2x432x896xf32, #tpu.memory_space<vmem>>, vector<1x48x896xf32>
    %94 = vector.shape_cast %93 : vector<1x48x896xf32> to vector<48x896xf32>
    %95 = vector.shape_cast %92 : vector<48x896xf32> to vector<1x48x896xf32>
    tpu.vector_store %arg13[%c1_80, %c240_81, %c0_82], %95 {strides = array<i32>} : memref<2x432x896xf32, #tpu.memory_space<vmem>>, vector<1x48x896xf32>,
    %c1_83 = arith.constant 1 : index
    %c0_84 = arith.constant 0 : index
    %c58_85 = arith.constant 58 : index
    %96 = vector.load %arg1[%c1_83, %c0_84, %c58_85] : memref<2x48x1024xf32, #tpu.memory_space<vmem>>, vector<1x48x896xf32>
    %97 = vector.shape_cast %96 : vector<1x48x896xf32> to vector<48x896xf32>
    %c1_86 = arith.constant 1 : index
    %c288_87 = arith.constant 288 : index
    %c0_88 = arith.constant 0 : index
    %98 = vector.load %arg13[%c1_86, %c288_87, %c0_88] : memref<2x432x896xf32, #tpu.memory_space<vmem>>, vector<1x48x896xf32>
    %99 = vector.shape_cast %98 : vector<1x48x896xf32> to vector<48x896xf32>
    %100 = vector.shape_cast %97 : vector<48x896xf32> to vector<1x48x896xf32>
    tpu.vector_store %arg13[%c1_86, %c288_87, %c0_88], %100 {strides = array<i32>} : memref<2x432x896xf32, #tpu.memory_space<vmem>>, vector<1x48x896xf32>,
    %c1_89 = arith.constant 1 : index
    %c0_90 = arith.constant 0 : index
    %c59_91 = arith.constant 59 : index
    %101 = vector.load %arg1[%c1_89, %c0_90, %c59_91] : memref<2x48x1024xf32, #tpu.memory_space<vmem>>, vector<1x48x896xf32>
    %102 = vector.shape_cast %101 : vector<1x48x896xf32> to vector<48x896xf32>
    %c1_92 = arith.constant 1 : index
    %c336_93 = arith.constant 336 : index
    %c0_94 = arith.constant 0 : index
    %103 = vector.load %arg13[%c1_92, %c336_93, %c0_94] : memref<2x432x896xf32, #tpu.memory_space<vmem>>, vector<1x48x896xf32>
    %104 = vector.shape_cast %103 : vector<1x48x896xf32> to vector<48x896xf32>
    %105 = vector.shape_cast %102 : vector<48x896xf32> to vector<1x48x896xf32>
    tpu.vector_store %arg13[%c1_92, %c336_93, %c0_94], %105 {strides = array<i32>} : memref<2x432x896xf32, #tpu.memory_space<vmem>>, vector<1x48x896xf32>,
    %c1_95 = arith.constant 1 : index
    %c0_96 = arith.constant 0 : index
    %c60_97 = arith.constant 60 : index
    %106 = vector.load %arg1[%c1_95, %c0_96, %c60_97] : memref<2x48x1024xf32, #tpu.memory_space<vmem>>, vector<1x48x896xf32>
    %107 = vector.shape_cast %106 : vector<1x48x896xf32> to vector<48x896xf32>
    %c1_98 = arith.constant 1 : index
    %c384_99 = arith.constant 384 : index
    %c0_100 = arith.constant 0 : index
    %108 = vector.load %arg13[%c1_98, %c384_99, %c0_100] : memref<2x432x896xf32, #tpu.memory_space<vmem>>, vector<1x48x896xf32>
    %109 = vector.shape_cast %108 : vector<1x48x896xf32> to vector<48x896xf32>
    %110 = vector.shape_cast %107 : vector<48x896xf32> to vector<1x48x896xf32>
    tpu.vector_store %arg13[%c1_98, %c384_99, %c0_100], %110 {strides = array<i32>} : memref<2x432x896xf32, #tpu.memory_space<vmem>>, vector<1x48x896xf32>,
    %c0_101 = arith.constant 0 : index
    %c0_102 = arith.constant 0 : index
    %111 = vector.load %arg2[%c0_101, %c0_102] : memref<8x432xf32, #tpu.memory_space<vmem>>, vector<8x432xf32>
    %c1_103 = arith.constant 1 : index
    %c0_104 = arith.constant 0 : index
    %c0_105 = arith.constant 0 : index
    %112 = vector.load %arg13[%c1_103, %c0_104, %c0_105] : memref<2x432x896xf32, #tpu.memory_space<vmem>>, vector<1x432x896xf32>
    %113 = vector.shape_cast %112 : vector<1x432x896xf32> to vector<432x896xf32>
    %cst_106 = arith.constant dense<0.000000e+00> : vector<8x896xf32>
    %114 = tpu.matmul %111, %113, %cst_106 {dimension_numbers = #tpu.dot_dimension_numbers<[1], [0], [0], [1], [0, 0, 1, 1], [], []>} : vector<8x432xf32>, vector<432x896xf32>, vector<8x896xf32> -> vector<8x896xf32>
    %c0_107 = arith.constant 0 : index
    %c0_108 = arith.constant 0 : index
    %115 = vector.load %arg3[%c0_107, %c0_108] : memref<8x1xf32, #tpu.memory_space<vmem>>, vector<8x1xf32>
    %116 = vector.broadcast %115 : vector<8x1xf32> to vector<8x896xf32>
    %117 = arith.addf %114, %116 : vector<8x896xf32>
    %cst_109 = arith.constant 0.000000e+00 : f32
    %118 = vector.broadcast %cst_109 : f32 to vector<8x896xf32>
    %119 = arith.maximumf %117, %118 : vector<8x896xf32>
    %120 = vector.extract_strided_slice %119 {offsets = [0, 0], sizes = [8, 826], strides = [1, 1]} : vector<8x896xf32> to vector<8x826xf32>
    %121 = vector.extract_strided_slice %119 {offsets = [0, 1], sizes = [8, 826], strides = [1, 1]} : vector<8x896xf32> to vector<8x826xf32>
    %122 = arith.maximumf %120, %121 : vector<8x826xf32>
    %123 = vector.extract_strided_slice %119 {offsets = [0, 2], sizes = [8, 826], strides = [1, 1]} : vector<8x896xf32> to vector<8x826xf32>
    %124 = arith.maximumf %122, %123 : vector<8x826xf32>
    %125 = vector.extract_strided_slice %124 {offsets = [0, 0], sizes = [8, 768], strides = [1, 1]} : vector<8x826xf32> to vector<8x768xf32>
    %126 = vector.extract_strided_slice %124 {offsets = [0, 29], sizes = [8, 768], strides = [1, 1]} : vector<8x826xf32> to vector<8x768xf32>
    %127 = arith.maximumf %125, %126 : vector<8x768xf32>
    %128 = vector.extract_strided_slice %124 {offsets = [0, 58], sizes = [8, 768], strides = [1, 1]} : vector<8x826xf32> to vector<8x768xf32>
    %129 = arith.maximumf %127, %128 : vector<8x768xf32>
    %130 = vector.extract_strided_slice %129 {offsets = [0, 0], sizes = [4, 768], strides = [1, 1]} : vector<8x768xf32> to vector<4x768xf32>
    %c4 = arith.constant 4 : index
    %c0_110 = arith.constant 0 : index
    %131 = vector.load %arg14[%c4, %c0_110] : memref<8x768xf32, #tpu.memory_space<vmem>>, vector<4x768xf32>
    tpu.vector_store %arg14[%c4, %c0_110], %130 {strides = array<i32>} : memref<8x768xf32, #tpu.memory_space<vmem>>, vector<4x768xf32>,
    %c0_111 = arith.constant 0 : index
    %c0_112 = arith.constant 0 : index
    %132 = vector.load %arg14[%c0_111, %c0_112] : memref<8x768xf32, #tpu.memory_space<vmem>>, vector<8x768xf32>
    %c0_113 = arith.constant 0 : index
    %c0_114 = arith.constant 0 : index
    %133 = vector.load %arg4[%c0_113, %c0_114] : memref<768x384xf32, #tpu.memory_space<vmem>>, vector<768x384xf32>
    %cst_115 = arith.constant dense<0.000000e+00> : vector<8x384xf32>
    %134 = tpu.matmul %132, %133, %cst_115 {dimension_numbers = #tpu.dot_dimension_numbers<[1], [0], [0], [1], [0, 0, 1, 1], [], []>} : vector<8x768xf32>, vector<768x384xf32>, vector<8x384xf32> -> vector<8x384xf32>
    %c0_116 = arith.constant 0 : index
    %c0_117 = arith.constant 0 : index
    %135 = vector.load %arg15[%c0_116, %c0_117] : memref<8x384xf32, #tpu.memory_space<vmem>>, vector<8x384xf32>
    tpu.vector_store %arg15[%c0_116, %c0_117], %134 {strides = array<i32>} : memref<8x384xf32, #tpu.memory_space<vmem>>, vector<8x384xf32>,
    %c0_118 = arith.constant 0 : index
    %c0_119 = arith.constant 0 : index
    %136 = vector.load %arg15[%c0_118, %c0_119] : memref<8x384xf32, #tpu.memory_space<vmem>>, vector<4x256xf32>
    %c0_120 = arith.constant 0 : index
    %c0_121 = arith.constant 0 : index
    %137 = vector.load %arg16[%c0_120, %c0_121] : memref<100x512xf32, #tpu.memory_space<vmem>>, vector<4x256xf32>
    tpu.vector_store %arg16[%c0_120, %c0_121], %136 {strides = array<i32>} : memref<100x512xf32, #tpu.memory_space<vmem>>, vector<4x256xf32>,
    %c0_122 = arith.constant 0 : index
    %c1_123 = arith.constant 1 : index
    %138 = vector.load %arg15[%c0_122, %c1_123] : memref<8x384xf32, #tpu.memory_space<vmem>>, vector<4x256xf32>
    %c4_124 = arith.constant 4 : index
    %c0_125 = arith.constant 0 : index
    %139 = vector.load %arg16[%c4_124, %c0_125] : memref<100x512xf32, #tpu.memory_space<vmem>>, vector<4x256xf32>
    tpu.vector_store %arg16[%c4_124, %c0_125], %138 {strides = array<i32>} : memref<100x512xf32, #tpu.memory_space<vmem>>, vector<4x256xf32>,
    %c0_126 = arith.constant 0 : index
    %c2_127 = arith.constant 2 : index
    %140 = vector.load %arg15[%c0_126, %c2_127] : memref<8x384xf32, #tpu.memory_space<vmem>>, vector<4x256xf32>
    %c8 = arith.constant 8 : index
    %c0_128 = arith.constant 0 : index
    %141 = vector.load %arg16[%c8, %c0_128] : memref<100x512xf32, #tpu.memory_space<vmem>>, vector<4x256xf32>
    tpu.vector_store %arg16[%c8, %c0_128], %140 {strides = array<i32>} : memref<100x512xf32, #tpu.memory_space<vmem>>, vector<4x256xf32>,
    %c0_129 = arith.constant 0 : index
    %c3 = arith.constant 3 : index
    %142 = vector.load %arg15[%c0_129, %c3] : memref<8x384xf32, #tpu.memory_space<vmem>>, vector<4x256xf32>
    %c12 = arith.constant 12 : index
    %c0_130 = arith.constant 0 : index
    %143 = vector.load %arg16[%c12, %c0_130] : memref<100x512xf32, #tpu.memory_space<vmem>>, vector<4x256xf32>
    tpu.vector_store %arg16[%c12, %c0_130], %142 {strides = array<i32>} : memref<100x512xf32, #tpu.memory_space<vmem>>, vector<4x256xf32>,
    %c0_131 = arith.constant 0 : index
    %c4_132 = arith.constant 4 : index
    %144 = vector.load %arg15[%c0_131, %c4_132] : memref<8x384xf32, #tpu.memory_space<vmem>>, vector<4x256xf32>
    %c16 = arith.constant 16 : index
    %c0_133 = arith.constant 0 : index
    %145 = vector.load %arg16[%c16, %c0_133] : memref<100x512xf32, #tpu.memory_space<vmem>>, vector<4x256xf32>
    tpu.vector_store %arg16[%c16, %c0_133], %144 {strides = array<i32>} : memref<100x512xf32, #tpu.memory_space<vmem>>, vector<4x256xf32>,
    %c0_134 = arith.constant 0 : index
    %c17 = arith.constant 17 : index
    %146 = vector.load %arg15[%c0_134, %c17] : memref<8x384xf32, #tpu.memory_space<vmem>>, vector<4x256xf32>
    %c20 = arith.constant 20 : index
    %c0_135 = arith.constant 0 : index
    %147 = vector.load %arg16[%c20, %c0_135] : memref<100x512xf32, #tpu.memory_space<vmem>>, vector<4x256xf32>
    tpu.vector_store %arg16[%c20, %c0_135], %146 {strides = array<i32>} : memref<100x512xf32, #tpu.memory_space<vmem>>, vector<4x256xf32>,
    %c0_136 = arith.constant 0 : index
    %c18 = arith.constant 18 : index
    %148 = vector.load %arg15[%c0_136, %c18] : memref<8x384xf32, #tpu.memory_space<vmem>>, vector<4x256xf32>
    %c24 = arith.constant 24 : index
    %c0_137 = arith.constant 0 : index
    %149 = vector.load %arg16[%c24, %c0_137] : memref<100x512xf32, #tpu.memory_space<vmem>>, vector<4x256xf32>
    tpu.vector_store %arg16[%c24, %c0_137], %148 {strides = array<i32>} : memref<100x512xf32, #tpu.memory_space<vmem>>, vector<4x256xf32>,
    %c0_138 = arith.constant 0 : index
    %c19 = arith.constant 19 : index
    %150 = vector.load %arg15[%c0_138, %c19] : memref<8x384xf32, #tpu.memory_space<vmem>>, vector<4x256xf32>
    %c28 = arith.constant 28 : index
    %c0_139 = arith.constant 0 : index
    %151 = vector.load %arg16[%c28, %c0_139] : memref<100x512xf32, #tpu.memory_space<vmem>>, vector<4x256xf32>
    tpu.vector_store %arg16[%c28, %c0_139], %150 {strides = array<i32>} : memref<100x512xf32, #tpu.memory_space<vmem>>, vector<4x256xf32>,
    %c0_140 = arith.constant 0 : index
    %c20_141 = arith.constant 20 : index
    %152 = vector.load %arg15[%c0_140, %c20_141] : memref<8x384xf32, #tpu.memory_space<vmem>>, vector<4x256xf32>
    %c32 = arith.constant 32 : index
    %c0_142 = arith.constant 0 : index
    %153 = vector.load %arg16[%c32, %c0_142] : memref<100x512xf32, #tpu.memory_space<vmem>>, vector<4x256xf32>
    tpu.vector_store %arg16[%c32, %c0_142], %152 {strides = array<i32>} : memref<100x512xf32, #tpu.memory_space<vmem>>, vector<4x256xf32>,
    %c0_143 = arith.constant 0 : index
    %c21 = arith.constant 21 : index
    %154 = vector.load %arg15[%c0_143, %c21] : memref<8x384xf32, #tpu.memory_space<vmem>>, vector<4x256xf32>
    %c36 = arith.constant 36 : index
    %c0_144 = arith.constant 0 : index
    %155 = vector.load %arg16[%c36, %c0_144] : memref<100x512xf32, #tpu.memory_space<vmem>>, vector<4x256xf32>
    tpu.vector_store %arg16[%c36, %c0_144], %154 {strides = array<i32>} : memref<100x512xf32, #tpu.memory_space<vmem>>, vector<4x256xf32>,
    %c0_145 = arith.constant 0 : index
    %c34 = arith.constant 34 : index
    %156 = vector.load %arg15[%c0_145, %c34] : memref<8x384xf32, #tpu.memory_space<vmem>>, vector<4x256xf32>
    %c40 = arith.constant 40 : index
    %c0_146 = arith.constant 0 : index
    %157 = vector.load %arg16[%c40, %c0_146] : memref<100x512xf32, #tpu.memory_space<vmem>>, vector<4x256xf32>
    tpu.vector_store %arg16[%c40, %c0_146], %156 {strides = array<i32>} : memref<100x512xf32, #tpu.memory_space<vmem>>, vector<4x256xf32>,
    %c0_147 = arith.constant 0 : index
    %c35 = arith.constant 35 : index
    %158 = vector.load %arg15[%c0_147, %c35] : memref<8x384xf32, #tpu.memory_space<vmem>>, vector<4x256xf32>
    %c44 = arith.constant 44 : index
    %c0_148 = arith.constant 0 : index
    %159 = vector.load %arg16[%c44, %c0_148] : memref<100x512xf32, #tpu.memory_space<vmem>>, vector<4x256xf32>
    tpu.vector_store %arg16[%c44, %c0_148], %158 {strides = array<i32>} : memref<100x512xf32, #tpu.memory_space<vmem>>, vector<4x256xf32>,
    %c0_149 = arith.constant 0 : index
    %c36_150 = arith.constant 36 : index
    %160 = vector.load %arg15[%c0_149, %c36_150] : memref<8x384xf32, #tpu.memory_space<vmem>>, vector<4x256xf32>
    %c48_151 = arith.constant 48 : index
    %c0_152 = arith.constant 0 : index
    %161 = vector.load %arg16[%c48_151, %c0_152] : memref<100x512xf32, #tpu.memory_space<vmem>>, vector<4x256xf32>
    tpu.vector_store %arg16[%c48_151, %c0_152], %160 {strides = array<i32>} : memref<100x512xf32, #tpu.memory_space<vmem>>, vector<4x256xf32>,
    %c0_153 = arith.constant 0 : index
    %c37 = arith.constant 37 : index
    %162 = vector.load %arg15[%c0_153, %c37] : memref<8x384xf32, #tpu.memory_space<vmem>>, vector<4x256xf32>
    %c52 = arith.constant 52 : index
    %c0_154 = arith.constant 0 : index
    %163 = vector.load %arg16[%c52, %c0_154] : memref<100x512xf32, #tpu.memory_space<vmem>>, vector<4x256xf32>
    tpu.vector_store %arg16[%c52, %c0_154], %162 {strides = array<i32>} : memref<100x512xf32, #tpu.memory_space<vmem>>, vector<4x256xf32>,
    %c0_155 = arith.constant 0 : index
    %c38 = arith.constant 38 : index
    %164 = vector.load %arg15[%c0_155, %c38] : memref<8x384xf32, #tpu.memory_space<vmem>>, vector<4x256xf32>
    %c56 = arith.constant 56 : index
    %c0_156 = arith.constant 0 : index
    %165 = vector.load %arg16[%c56, %c0_156] : memref<100x512xf32, #tpu.memory_space<vmem>>, vector<4x256xf32>
    tpu.vector_store %arg16[%c56, %c0_156], %164 {strides = array<i32>} : memref<100x512xf32, #tpu.memory_space<vmem>>, vector<4x256xf32>,
    %c0_157 = arith.constant 0 : index
    %c51 = arith.constant 51 : index
    %166 = vector.load %arg15[%c0_157, %c51] : memref<8x384xf32, #tpu.memory_space<vmem>>, vector<4x256xf32>
    %c60_158 = arith.constant 60 : index
    %c0_159 = arith.constant 0 : index
    %167 = vector.load %arg16[%c60_158, %c0_159] : memref<100x512xf32, #tpu.memory_space<vmem>>, vector<4x256xf32>
    tpu.vector_store %arg16[%c60_158, %c0_159], %166 {strides = array<i32>} : memref<100x512xf32, #tpu.memory_space<vmem>>, vector<4x256xf32>,
    %c0_160 = arith.constant 0 : index
    %c52_161 = arith.constant 52 : index
    %168 = vector.load %arg15[%c0_160, %c52_161] : memref<8x384xf32, #tpu.memory_space<vmem>>, vector<4x256xf32>
    %c64 = arith.constant 64 : index
    %c0_162 = arith.constant 0 : index
    %169 = vector.load %arg16[%c64, %c0_162] : memref<100x512xf32, #tpu.memory_space<vmem>>, vector<4x256xf32>
    tpu.vector_store %arg16[%c64, %c0_162], %168 {strides = array<i32>} : memref<100x512xf32, #tpu.memory_space<vmem>>, vector<4x256xf32>,
    %c0_163 = arith.constant 0 : index
    %c53 = arith.constant 53 : index
    %170 = vector.load %arg15[%c0_163, %c53] : memref<8x384xf32, #tpu.memory_space<vmem>>, vector<4x256xf32>
    %c68 = arith.constant 68 : index
    %c0_164 = arith.constant 0 : index
    %171 = vector.load %arg16[%c68, %c0_164] : memref<100x512xf32, #tpu.memory_space<vmem>>, vector<4x256xf32>
    tpu.vector_store %arg16[%c68, %c0_164], %170 {strides = array<i32>} : memref<100x512xf32, #tpu.memory_space<vmem>>, vector<4x256xf32>,
    %c0_165 = arith.constant 0 : index
    %c54 = arith.constant 54 : index
    %172 = vector.load %arg15[%c0_165, %c54] : memref<8x384xf32, #tpu.memory_space<vmem>>, vector<4x256xf32>
    %c72 = arith.constant 72 : index
    %c0_166 = arith.constant 0 : index
    %173 = vector.load %arg16[%c72, %c0_166] : memref<100x512xf32, #tpu.memory_space<vmem>>, vector<4x256xf32>
    tpu.vector_store %arg16[%c72, %c0_166], %172 {strides = array<i32>} : memref<100x512xf32, #tpu.memory_space<vmem>>, vector<4x256xf32>,
    %c0_167 = arith.constant 0 : index
    %c55 = arith.constant 55 : index
    %174 = vector.load %arg15[%c0_167, %c55] : memref<8x384xf32, #tpu.memory_space<vmem>>, vector<4x256xf32>
    %c76 = arith.constant 76 : index
    %c0_168 = arith.constant 0 : index
    %175 = vector.load %arg16[%c76, %c0_168] : memref<100x512xf32, #tpu.memory_space<vmem>>, vector<4x256xf32>
    tpu.vector_store %arg16[%c76, %c0_168], %174 {strides = array<i32>} : memref<100x512xf32, #tpu.memory_space<vmem>>, vector<4x256xf32>,
    %c0_169 = arith.constant 0 : index
    %c68_170 = arith.constant 68 : index
    %176 = vector.load %arg15[%c0_169, %c68_170] : memref<8x384xf32, #tpu.memory_space<vmem>>, vector<4x256xf32>
    %c80 = arith.constant 80 : index
    %c0_171 = arith.constant 0 : index
    %177 = vector.load %arg16[%c80, %c0_171] : memref<100x512xf32, #tpu.memory_space<vmem>>, vector<4x256xf32>
    tpu.vector_store %arg16[%c80, %c0_171], %176 {strides = array<i32>} : memref<100x512xf32, #tpu.memory_space<vmem>>, vector<4x256xf32>,
    %c0_172 = arith.constant 0 : index
    %c69 = arith.constant 69 : index
    %178 = vector.load %arg15[%c0_172, %c69] : memref<8x384xf32, #tpu.memory_space<vmem>>, vector<4x256xf32>
    %c84 = arith.constant 84 : index
    %c0_173 = arith.constant 0 : index
    %179 = vector.load %arg16[%c84, %c0_173] : memref<100x512xf32, #tpu.memory_space<vmem>>, vector<4x256xf32>
    tpu.vector_store %arg16[%c84, %c0_173], %178 {strides = array<i32>} : memref<100x512xf32, #tpu.memory_space<vmem>>, vector<4x256xf32>,
    %c0_174 = arith.constant 0 : index
    %c70 = arith.constant 70 : index
    %180 = vector.load %arg15[%c0_174, %c70] : memref<8x384xf32, #tpu.memory_space<vmem>>, vector<4x256xf32>
    %c88 = arith.constant 88 : index
    %c0_175 = arith.constant 0 : index
    %181 = vector.load %arg16[%c88, %c0_175] : memref<100x512xf32, #tpu.memory_space<vmem>>, vector<4x256xf32>
    tpu.vector_store %arg16[%c88, %c0_175], %180 {strides = array<i32>} : memref<100x512xf32, #tpu.memory_space<vmem>>, vector<4x256xf32>,
    %c0_176 = arith.constant 0 : index
    %c71 = arith.constant 71 : index
    %182 = vector.load %arg15[%c0_176, %c71] : memref<8x384xf32, #tpu.memory_space<vmem>>, vector<4x256xf32>
    %c92 = arith.constant 92 : index
    %c0_177 = arith.constant 0 : index
    %183 = vector.load %arg16[%c92, %c0_177] : memref<100x512xf32, #tpu.memory_space<vmem>>, vector<4x256xf32>
    tpu.vector_store %arg16[%c92, %c0_177], %182 {strides = array<i32>} : memref<100x512xf32, #tpu.memory_space<vmem>>, vector<4x256xf32>,
    %c0_178 = arith.constant 0 : index
    %c72_179 = arith.constant 72 : index
    %184 = vector.load %arg15[%c0_178, %c72_179] : memref<8x384xf32, #tpu.memory_space<vmem>>, vector<4x256xf32>
    %c96_180 = arith.constant 96 : index
    %c0_181 = arith.constant 0 : index
    %185 = vector.load %arg16[%c96_180, %c0_181] : memref<100x512xf32, #tpu.memory_space<vmem>>, vector<4x256xf32>
    tpu.vector_store %arg16[%c96_180, %c0_181], %184 {strides = array<i32>} : memref<100x512xf32, #tpu.memory_space<vmem>>, vector<4x256xf32>,
    %c4_182 = arith.constant 4 : index
    %c0_183 = arith.constant 0 : index
    %186 = vector.load %arg15[%c4_182, %c0_183] : memref<8x384xf32, #tpu.memory_space<vmem>>, vector<4x256xf32>
    %c0_184 = arith.constant 0 : index
    %c256 = arith.constant 256 : index
    %187 = vector.load %arg16[%c0_184, %c256] : memref<100x512xf32, #tpu.memory_space<vmem>>, vector<4x256xf32>
    tpu.vector_store %arg16[%c0_184, %c256], %186 {strides = array<i32>} : memref<100x512xf32, #tpu.memory_space<vmem>>, vector<4x256xf32>,
    %c4_185 = arith.constant 4 : index
    %c1_186 = arith.constant 1 : index
    %188 = vector.load %arg15[%c4_185, %c1_186] : memref<8x384xf32, #tpu.memory_space<vmem>>, vector<4x256xf32>
    %c4_187 = arith.constant 4 : index
    %c256_188 = arith.constant 256 : index
    %189 = vector.load %arg16[%c4_187, %c256_188] : memref<100x512xf32, #tpu.memory_space<vmem>>, vector<4x256xf32>
    tpu.vector_store %arg16[%c4_187, %c256_188], %188 {strides = array<i32>} : memref<100x512xf32, #tpu.memory_space<vmem>>, vector<4x256xf32>,
    %c4_189 = arith.constant 4 : index
    %c2_190 = arith.constant 2 : index
    %190 = vector.load %arg15[%c4_189, %c2_190] : memref<8x384xf32, #tpu.memory_space<vmem>>, vector<4x256xf32>
    %c8_191 = arith.constant 8 : index
    %c256_192 = arith.constant 256 : index
    %191 = vector.load %arg16[%c8_191, %c256_192] : memref<100x512xf32, #tpu.memory_space<vmem>>, vector<4x256xf32>
    tpu.vector_store %arg16[%c8_191, %c256_192], %190 {strides = array<i32>} : memref<100x512xf32, #tpu.memory_space<vmem>>, vector<4x256xf32>,
    %c4_193 = arith.constant 4 : index
    %c3_194 = arith.constant 3 : index
    %192 = vector.load %arg15[%c4_193, %c3_194] : memref<8x384xf32, #tpu.memory_space<vmem>>, vector<4x256xf32>
    %c12_195 = arith.constant 12 : index
    %c256_196 = arith.constant 256 : index
    %193 = vector.load %arg16[%c12_195, %c256_196] : memref<100x512xf32, #tpu.memory_space<vmem>>, vector<4x256xf32>
    tpu.vector_store %arg16[%c12_195, %c256_196], %192 {strides = array<i32>} : memref<100x512xf32, #tpu.memory_space<vmem>>, vector<4x256xf32>,
    %c4_197 = arith.constant 4 : index
    %c4_198 = arith.constant 4 : index
    %194 = vector.load %arg15[%c4_197, %c4_198] : memref<8x384xf32, #tpu.memory_space<vmem>>, vector<4x256xf32>
    %c16_199 = arith.constant 16 : index
    %c256_200 = arith.constant 256 : index
    %195 = vector.load %arg16[%c16_199, %c256_200] : memref<100x512xf32, #tpu.memory_space<vmem>>, vector<4x256xf32>
    tpu.vector_store %arg16[%c16_199, %c256_200], %194 {strides = array<i32>} : memref<100x512xf32, #tpu.memory_space<vmem>>, vector<4x256xf32>,
    %c4_201 = arith.constant 4 : index
    %c17_202 = arith.constant 17 : index
    %196 = vector.load %arg15[%c4_201, %c17_202] : memref<8x384xf32, #tpu.memory_space<vmem>>, vector<4x256xf32>
    %c20_203 = arith.constant 20 : index
    %c256_204 = arith.constant 256 : index
    %197 = vector.load %arg16[%c20_203, %c256_204] : memref<100x512xf32, #tpu.memory_space<vmem>>, vector<4x256xf32>
    tpu.vector_store %arg16[%c20_203, %c256_204], %196 {strides = array<i32>} : memref<100x512xf32, #tpu.memory_space<vmem>>, vector<4x256xf32>,
    %c4_205 = arith.constant 4 : index
    %c18_206 = arith.constant 18 : index
    %198 = vector.load %arg15[%c4_205, %c18_206] : memref<8x384xf32, #tpu.memory_space<vmem>>, vector<4x256xf32>
    %c24_207 = arith.constant 24 : index
    %c256_208 = arith.constant 256 : index
    %199 = vector.load %arg16[%c24_207, %c256_208] : memref<100x512xf32, #tpu.memory_space<vmem>>, vector<4x256xf32>
    tpu.vector_store %arg16[%c24_207, %c256_208], %198 {strides = array<i32>} : memref<100x512xf32, #tpu.memory_space<vmem>>, vector<4x256xf32>,
    %c4_209 = arith.constant 4 : index
    %c19_210 = arith.constant 19 : index
    %200 = vector.load %arg15[%c4_209, %c19_210] : memref<8x384xf32, #tpu.memory_space<vmem>>, vector<4x256xf32>
    %c28_211 = arith.constant 28 : index
    %c256_212 = arith.constant 256 : index
    %201 = vector.load %arg16[%c28_211, %c256_212] : memref<100x512xf32, #tpu.memory_space<vmem>>, vector<4x256xf32>
    tpu.vector_store %arg16[%c28_211, %c256_212], %200 {strides = array<i32>} : memref<100x512xf32, #tpu.memory_space<vmem>>, vector<4x256xf32>,
    %c4_213 = arith.constant 4 : index
    %c20_214 = arith.constant 20 : index
    %202 = vector.load %arg15[%c4_213, %c20_214] : memref<8x384xf32, #tpu.memory_space<vmem>>, vector<4x256xf32>
    %c32_215 = arith.constant 32 : index
    %c256_216 = arith.constant 256 : index
    %203 = vector.load %arg16[%c32_215, %c256_216] : memref<100x512xf32, #tpu.memory_space<vmem>>, vector<4x256xf32>
    tpu.vector_store %arg16[%c32_215, %c256_216], %202 {strides = array<i32>} : memref<100x512xf32, #tpu.memory_space<vmem>>, vector<4x256xf32>,
    %c4_217 = arith.constant 4 : index
    %c21_218 = arith.constant 21 : index
    %204 = vector.load %arg15[%c4_217, %c21_218] : memref<8x384xf32, #tpu.memory_space<vmem>>, vector<4x256xf32>
    %c36_219 = arith.constant 36 : index
    %c256_220 = arith.constant 256 : index
    %205 = vector.load %arg16[%c36_219, %c256_220] : memref<100x512xf32, #tpu.memory_space<vmem>>, vector<4x256xf32>
    tpu.vector_store %arg16[%c36_219, %c256_220], %204 {strides = array<i32>} : memref<100x512xf32, #tpu.memory_space<vmem>>, vector<4x256xf32>,
    %c4_221 = arith.constant 4 : index
    %c34_222 = arith.constant 34 : index
    %206 = vector.load %arg15[%c4_221, %c34_222] : memref<8x384xf32, #tpu.memory_space<vmem>>, vector<4x256xf32>
    %c40_223 = arith.constant 40 : index
    %c256_224 = arith.constant 256 : index
    %207 = vector.load %arg16[%c40_223, %c256_224] : memref<100x512xf32, #tpu.memory_space<vmem>>, vector<4x256xf32>
    tpu.vector_store %arg16[%c40_223, %c256_224], %206 {strides = array<i32>} : memref<100x512xf32, #tpu.memory_space<vmem>>, vector<4x256xf32>,
    %c4_225 = arith.constant 4 : index
    %c35_226 = arith.constant 35 : index
    %208 = vector.load %arg15[%c4_225, %c35_226] : memref<8x384xf32, #tpu.memory_space<vmem>>, vector<4x256xf32>
    %c44_227 = arith.constant 44 : index
    %c256_228 = arith.constant 256 : index
    %209 = vector.load %arg16[%c44_227, %c256_228] : memref<100x512xf32, #tpu.memory_space<vmem>>, vector<4x256xf32>
    tpu.vector_store %arg16[%c44_227, %c256_228], %208 {strides = array<i32>} : memref<100x512xf32, #tpu.memory_space<vmem>>, vector<4x256xf32>,
    %c4_229 = arith.constant 4 : index
    %c36_230 = arith.constant 36 : index
    %210 = vector.load %arg15[%c4_229, %c36_230] : memref<8x384xf32, #tpu.memory_space<vmem>>, vector<4x256xf32>
    %c48_231 = arith.constant 48 : index
    %c256_232 = arith.constant 256 : index
    %211 = vector.load %arg16[%c48_231, %c256_232] : memref<100x512xf32, #tpu.memory_space<vmem>>, vector<4x256xf32>
    tpu.vector_store %arg16[%c48_231, %c256_232], %210 {strides = array<i32>} : memref<100x512xf32, #tpu.memory_space<vmem>>, vector<4x256xf32>,
    %c4_233 = arith.constant 4 : index
    %c37_234 = arith.constant 37 : index
    %212 = vector.load %arg15[%c4_233, %c37_234] : memref<8x384xf32, #tpu.memory_space<vmem>>, vector<4x256xf32>
    %c52_235 = arith.constant 52 : index
    %c256_236 = arith.constant 256 : index
    %213 = vector.load %arg16[%c52_235, %c256_236] : memref<100x512xf32, #tpu.memory_space<vmem>>, vector<4x256xf32>
    tpu.vector_store %arg16[%c52_235, %c256_236], %212 {strides = array<i32>} : memref<100x512xf32, #tpu.memory_space<vmem>>, vector<4x256xf32>,
    %c4_237 = arith.constant 4 : index
    %c38_238 = arith.constant 38 : index
    %214 = vector.load %arg15[%c4_237, %c38_238] : memref<8x384xf32, #tpu.memory_space<vmem>>, vector<4x256xf32>
    %c56_239 = arith.constant 56 : index
    %c256_240 = arith.constant 256 : index
    %215 = vector.load %arg16[%c56_239, %c256_240] : memref<100x512xf32, #tpu.memory_space<vmem>>, vector<4x256xf32>
    tpu.vector_store %arg16[%c56_239, %c256_240], %214 {strides = array<i32>} : memref<100x512xf32, #tpu.memory_space<vmem>>, vector<4x256xf32>,
    %c4_241 = arith.constant 4 : index
    %c51_242 = arith.constant 51 : index
    %216 = vector.load %arg15[%c4_241, %c51_242] : memref<8x384xf32, #tpu.memory_space<vmem>>, vector<4x256xf32>
    %c60_243 = arith.constant 60 : index
    %c256_244 = arith.constant 256 : index
    %217 = vector.load %arg16[%c60_243, %c256_244] : memref<100x512xf32, #tpu.memory_space<vmem>>, vector<4x256xf32>
    tpu.vector_store %arg16[%c60_243, %c256_244], %216 {strides = array<i32>} : memref<100x512xf32, #tpu.memory_space<vmem>>, vector<4x256xf32>,
    %c4_245 = arith.constant 4 : index
    %c52_246 = arith.constant 52 : index
    %218 = vector.load %arg15[%c4_245, %c52_246] : memref<8x384xf32, #tpu.memory_space<vmem>>, vector<4x256xf32>
    %c64_247 = arith.constant 64 : index
    %c256_248 = arith.constant 256 : index
    %219 = vector.load %arg16[%c64_247, %c256_248] : memref<100x512xf32, #tpu.memory_space<vmem>>, vector<4x256xf32>
    tpu.vector_store %arg16[%c64_247, %c256_248], %218 {strides = array<i32>} : memref<100x512xf32, #tpu.memory_space<vmem>>, vector<4x256xf32>,
    %c4_249 = arith.constant 4 : index
    %c53_250 = arith.constant 53 : index
    %220 = vector.load %arg15[%c4_249, %c53_250] : memref<8x384xf32, #tpu.memory_space<vmem>>, vector<4x256xf32>
    %c68_251 = arith.constant 68 : index
    %c256_252 = arith.constant 256 : index
    %221 = vector.load %arg16[%c68_251, %c256_252] : memref<100x512xf32, #tpu.memory_space<vmem>>, vector<4x256xf32>
    tpu.vector_store %arg16[%c68_251, %c256_252], %220 {strides = array<i32>} : memref<100x512xf32, #tpu.memory_space<vmem>>, vector<4x256xf32>,
    %c4_253 = arith.constant 4 : index
    %c54_254 = arith.constant 54 : index
    %222 = vector.load %arg15[%c4_253, %c54_254] : memref<8x384xf32, #tpu.memory_space<vmem>>, vector<4x256xf32>
    %c72_255 = arith.constant 72 : index
    %c256_256 = arith.constant 256 : index
    %223 = vector.load %arg16[%c72_255, %c256_256] : memref<100x512xf32, #tpu.memory_space<vmem>>, vector<4x256xf32>
    tpu.vector_store %arg16[%c72_255, %c256_256], %222 {strides = array<i32>} : memref<100x512xf32, #tpu.memory_space<vmem>>, vector<4x256xf32>,
    %c4_257 = arith.constant 4 : index
    %c55_258 = arith.constant 55 : index
    %224 = vector.load %arg15[%c4_257, %c55_258] : memref<8x384xf32, #tpu.memory_space<vmem>>, vector<4x256xf32>
    %c76_259 = arith.constant 76 : index
    %c256_260 = arith.constant 256 : index
    %225 = vector.load %arg16[%c76_259, %c256_260] : memref<100x512xf32, #tpu.memory_space<vmem>>, vector<4x256xf32>
    tpu.vector_store %arg16[%c76_259, %c256_260], %224 {strides = array<i32>} : memref<100x512xf32, #tpu.memory_space<vmem>>, vector<4x256xf32>,
    %c4_261 = arith.constant 4 : index
    %c68_262 = arith.constant 68 : index
    %226 = vector.load %arg15[%c4_261, %c68_262] : memref<8x384xf32, #tpu.memory_space<vmem>>, vector<4x256xf32>
    %c80_263 = arith.constant 80 : index
    %c256_264 = arith.constant 256 : index
    %227 = vector.load %arg16[%c80_263, %c256_264] : memref<100x512xf32, #tpu.memory_space<vmem>>, vector<4x256xf32>
    tpu.vector_store %arg16[%c80_263, %c256_264], %226 {strides = array<i32>} : memref<100x512xf32, #tpu.memory_space<vmem>>, vector<4x256xf32>,
    %c4_265 = arith.constant 4 : index
    %c69_266 = arith.constant 69 : index
    %228 = vector.load %arg15[%c4_265, %c69_266] : memref<8x384xf32, #tpu.memory_space<vmem>>, vector<4x256xf32>
    %c84_267 = arith.constant 84 : index
    %c256_268 = arith.constant 256 : index
    %229 = vector.load %arg16[%c84_267, %c256_268] : memref<100x512xf32, #tpu.memory_space<vmem>>, vector<4x256xf32>
    tpu.vector_store %arg16[%c84_267, %c256_268], %228 {strides = array<i32>} : memref<100x512xf32, #tpu.memory_space<vmem>>, vector<4x256xf32>,
    %c4_269 = arith.constant 4 : index
    %c70_270 = arith.constant 70 : index
    %230 = vector.load %arg15[%c4_269, %c70_270] : memref<8x384xf32, #tpu.memory_space<vmem>>, vector<4x256xf32>
    %c88_271 = arith.constant 88 : index
    %c256_272 = arith.constant 256 : index
    %231 = vector.load %arg16[%c88_271, %c256_272] : memref<100x512xf32, #tpu.memory_space<vmem>>, vector<4x256xf32>
    tpu.vector_store %arg16[%c88_271, %c256_272], %230 {strides = array<i32>} : memref<100x512xf32, #tpu.memory_space<vmem>>, vector<4x256xf32>,
    %c4_273 = arith.constant 4 : index
    %c71_274 = arith.constant 71 : index
    %232 = vector.load %arg15[%c4_273, %c71_274] : memref<8x384xf32, #tpu.memory_space<vmem>>, vector<4x256xf32>
    %c92_275 = arith.constant 92 : index
    %c256_276 = arith.constant 256 : index
    %233 = vector.load %arg16[%c92_275, %c256_276] : memref<100x512xf32, #tpu.memory_space<vmem>>, vector<4x256xf32>
    tpu.vector_store %arg16[%c92_275, %c256_276], %232 {strides = array<i32>} : memref<100x512xf32, #tpu.memory_space<vmem>>, vector<4x256xf32>,
    %c4_277 = arith.constant 4 : index
    %c72_278 = arith.constant 72 : index
    %234 = vector.load %arg15[%c4_277, %c72_278] : memref<8x384xf32, #tpu.memory_space<vmem>>, vector<4x256xf32>
    %c96_279 = arith.constant 96 : index
    %c256_280 = arith.constant 256 : index
    %235 = vector.load %arg16[%c96_279, %c256_280] : memref<100x512xf32, #tpu.memory_space<vmem>>, vector<4x256xf32>
    tpu.vector_store %arg16[%c96_279, %c256_280], %234 {strides = array<i32>} : memref<100x512xf32, #tpu.memory_space<vmem>>, vector<4x256xf32>,
    %c0_281 = arith.constant 0 : index
    %c0_282 = arith.constant 0 : index
    %236 = vector.load %arg5[%c0_281, %c0_282] : memref<16x100xf32, #tpu.memory_space<vmem>>, vector<16x100xf32>
    %c0_283 = arith.constant 0 : index
    %c0_284 = arith.constant 0 : index
    %237 = vector.load %arg16[%c0_283, %c0_284] : memref<100x512xf32, #tpu.memory_space<vmem>>, vector<100x512xf32>
    %cst_285 = arith.constant dense<0.000000e+00> : vector<16x512xf32>
    %238 = tpu.matmul %236, %237, %cst_285 {dimension_numbers = #tpu.dot_dimension_numbers<[1], [0], [0], [1], [0, 0, 1, 1], [], []>} : vector<16x100xf32>, vector<100x512xf32>, vector<16x512xf32> -> vector<16x512xf32>
    %c0_286 = arith.constant 0 : index
    %c0_287 = arith.constant 0 : index
    %239 = vector.load %arg6[%c0_286, %c0_287] : memref<16x1xf32, #tpu.memory_space<vmem>>, vector<16x1xf32>
    %240 = vector.broadcast %239 : vector<16x1xf32> to vector<16x512xf32>
    %241 = arith.addf %238, %240 : vector<16x512xf32>
    %cst_288 = arith.constant 0.000000e+00 : f32
    %242 = vector.broadcast %cst_288 : f32 to vector<16x512xf32>
    %243 = arith.maximumf %241, %242 : vector<16x512xf32>
    %c0_289 = arith.constant 0 : index
    %c0_290 = arith.constant 0 : index
    %244 = vector.load %arg17[%c0_289, %c0_290] : memref<16x512xf32, #tpu.memory_space<vmem>>, vector<16x512xf32>
    tpu.vector_store %arg17[%c0_289, %c0_290], %243 {strides = array<i32>} : memref<16x512xf32, #tpu.memory_space<vmem>>, vector<16x512xf32>,
    %c0_291 = arith.constant 0 : index
    %c0_292 = arith.constant 0 : index
    %245 = vector.load %arg17[%c0_291, %c0_292] : memref<16x512xf32, #tpu.memory_space<vmem>>, vector<16x228xf32>
    %246 = vector.extract_strided_slice %245 {offsets = [0, 0], sizes = [16, 226], strides = [1, 1]} : vector<16x228xf32> to vector<16x226xf32>
    %247 = vector.extract_strided_slice %245 {offsets = [0, 1], sizes = [16, 226], strides = [1, 1]} : vector<16x228xf32> to vector<16x226xf32>
    %248 = arith.maximumf %246, %247 : vector<16x226xf32>
    %249 = vector.extract_strided_slice %245 {offsets = [0, 2], sizes = [16, 226], strides = [1, 1]} : vector<16x228xf32> to vector<16x226xf32>
    %250 = arith.maximumf %248, %249 : vector<16x226xf32>
    %251 = vector.extract_strided_slice %250 {offsets = [0, 0], sizes = [16, 192], strides = [1, 1]} : vector<16x226xf32> to vector<16x192xf32>
    %252 = vector.extract_strided_slice %250 {offsets = [0, 17], sizes = [16, 192], strides = [1, 1]} : vector<16x226xf32> to vector<16x192xf32>
    %253 = arith.maximumf %251, %252 : vector<16x192xf32>
    %254 = vector.extract_strided_slice %250 {offsets = [0, 34], sizes = [16, 192], strides = [1, 1]} : vector<16x226xf32> to vector<16x192xf32>
    %255 = arith.maximumf %253, %254 : vector<16x192xf32>
    %256 = vector.extract_strided_slice %255 {offsets = [0, 0], sizes = [1, 192], strides = [1, 1]} : vector<16x192xf32> to vector<1x192xf32>
    %c0_293 = arith.constant 0 : index
    %c0_294 = arith.constant 0 : index
    %257 = vector.load %arg18[%c0_293, %c0_294] : memref<2x3072xf32, #tpu.memory_space<vmem>>, vector<1x192xf32>
    tpu.vector_store %arg18[%c0_293, %c0_294], %256 {strides = array<i32>} : memref<2x3072xf32, #tpu.memory_space<vmem>>, vector<1x192xf32>,
    %258 = vector.extract_strided_slice %255 {offsets = [1, 0], sizes = [1, 192], strides = [1, 1]} : vector<16x192xf32> to vector<1x192xf32>
    %c0_295 = arith.constant 0 : index
    %c192_296 = arith.constant 192 : index
    %259 = vector.load %arg18[%c0_295, %c192_296] : memref<2x3072xf32, #tpu.memory_space<vmem>>, vector<1x192xf32>
    tpu.vector_store %arg18[%c0_295, %c192_296], %258 {strides = array<i32>} : memref<2x3072xf32, #tpu.memory_space<vmem>>, vector<1x192xf32>,
    %260 = vector.extract_strided_slice %255 {offsets = [2, 0], sizes = [1, 192], strides = [1, 1]} : vector<16x192xf32> to vector<1x192xf32>
    %c0_297 = arith.constant 0 : index
    %c384_298 = arith.constant 384 : index
    %261 = vector.load %arg18[%c0_297, %c384_298] : memref<2x3072xf32, #tpu.memory_space<vmem>>, vector<1x192xf32>
    tpu.vector_store %arg18[%c0_297, %c384_298], %260 {strides = array<i32>} : memref<2x3072xf32, #tpu.memory_space<vmem>>, vector<1x192xf32>,
    %262 = vector.extract_strided_slice %255 {offsets = [3, 0], sizes = [1, 192], strides = [1, 1]} : vector<16x192xf32> to vector<1x192xf32>
    %c0_299 = arith.constant 0 : index
    %c576 = arith.constant 576 : index
    %263 = vector.load %arg18[%c0_299, %c576] : memref<2x3072xf32, #tpu.memory_space<vmem>>, vector<1x192xf32>
    tpu.vector_store %arg18[%c0_299, %c576], %262 {strides = array<i32>} : memref<2x3072xf32, #tpu.memory_space<vmem>>, vector<1x192xf32>,
    %264 = vector.extract_strided_slice %255 {offsets = [4, 0], sizes = [1, 192], strides = [1, 1]} : vector<16x192xf32> to vector<1x192xf32>
    %c0_300 = arith.constant 0 : index
    %c768 = arith.constant 768 : index
    %265 = vector.load %arg18[%c0_300, %c768] : memref<2x3072xf32, #tpu.memory_space<vmem>>, vector<1x192xf32>
    tpu.vector_store %arg18[%c0_300, %c768], %264 {strides = array<i32>} : memref<2x3072xf32, #tpu.memory_space<vmem>>, vector<1x192xf32>,
    %266 = vector.extract_strided_slice %255 {offsets = [5, 0], sizes = [1, 192], strides = [1, 1]} : vector<16x192xf32> to vector<1x192xf32>
    %c0_301 = arith.constant 0 : index
    %c960 = arith.constant 960 : index
    %267 = vector.load %arg18[%c0_301, %c960] : memref<2x3072xf32, #tpu.memory_space<vmem>>, vector<1x192xf32>
    tpu.vector_store %arg18[%c0_301, %c960], %266 {strides = array<i32>} : memref<2x3072xf32, #tpu.memory_space<vmem>>, vector<1x192xf32>,
    %268 = vector.extract_strided_slice %255 {offsets = [6, 0], sizes = [1, 192], strides = [1, 1]} : vector<16x192xf32> to vector<1x192xf32>
    %c0_302 = arith.constant 0 : index
    %c1152 = arith.constant 1152 : index
    %269 = vector.load %arg18[%c0_302, %c1152] : memref<2x3072xf32, #tpu.memory_space<vmem>>, vector<1x192xf32>
    tpu.vector_store %arg18[%c0_302, %c1152], %268 {strides = array<i32>} : memref<2x3072xf32, #tpu.memory_space<vmem>>, vector<1x192xf32>,
    %270 = vector.extract_strided_slice %255 {offsets = [7, 0], sizes = [1, 192], strides = [1, 1]} : vector<16x192xf32> to vector<1x192xf32>
    %c0_303 = arith.constant 0 : index
    %c1344 = arith.constant 1344 : index
    %271 = vector.load %arg18[%c0_303, %c1344] : memref<2x3072xf32, #tpu.memory_space<vmem>>, vector<1x192xf32>
    tpu.vector_store %arg18[%c0_303, %c1344], %270 {strides = array<i32>} : memref<2x3072xf32, #tpu.memory_space<vmem>>, vector<1x192xf32>,
    %272 = vector.extract_strided_slice %255 {offsets = [8, 0], sizes = [1, 192], strides = [1, 1]} : vector<16x192xf32> to vector<1x192xf32>
    %c0_304 = arith.constant 0 : index
    %c1536 = arith.constant 1536 : index
    %273 = vector.load %arg18[%c0_304, %c1536] : memref<2x3072xf32, #tpu.memory_space<vmem>>, vector<1x192xf32>
    tpu.vector_store %arg18[%c0_304, %c1536], %272 {strides = array<i32>} : memref<2x3072xf32, #tpu.memory_space<vmem>>, vector<1x192xf32>,
    %274 = vector.extract_strided_slice %255 {offsets = [9, 0], sizes = [1, 192], strides = [1, 1]} : vector<16x192xf32> to vector<1x192xf32>
    %c0_305 = arith.constant 0 : index
    %c1728 = arith.constant 1728 : index
    %275 = vector.load %arg18[%c0_305, %c1728] : memref<2x3072xf32, #tpu.memory_space<vmem>>, vector<1x192xf32>
    tpu.vector_store %arg18[%c0_305, %c1728], %274 {strides = array<i32>} : memref<2x3072xf32, #tpu.memory_space<vmem>>, vector<1x192xf32>,
    %276 = vector.extract_strided_slice %255 {offsets = [10, 0], sizes = [1, 192], strides = [1, 1]} : vector<16x192xf32> to vector<1x192xf32>
    %c0_306 = arith.constant 0 : index
    %c1920 = arith.constant 1920 : index
    %277 = vector.load %arg18[%c0_306, %c1920] : memref<2x3072xf32, #tpu.memory_space<vmem>>, vector<1x192xf32>
    tpu.vector_store %arg18[%c0_306, %c1920], %276 {strides = array<i32>} : memref<2x3072xf32, #tpu.memory_space<vmem>>, vector<1x192xf32>,
    %278 = vector.extract_strided_slice %255 {offsets = [11, 0], sizes = [1, 192], strides = [1, 1]} : vector<16x192xf32> to vector<1x192xf32>
    %c0_307 = arith.constant 0 : index
    %c2112 = arith.constant 2112 : index
    %279 = vector.load %arg18[%c0_307, %c2112] : memref<2x3072xf32, #tpu.memory_space<vmem>>, vector<1x192xf32>
    tpu.vector_store %arg18[%c0_307, %c2112], %278 {strides = array<i32>} : memref<2x3072xf32, #tpu.memory_space<vmem>>, vector<1x192xf32>,
    %280 = vector.extract_strided_slice %255 {offsets = [12, 0], sizes = [1, 192], strides = [1, 1]} : vector<16x192xf32> to vector<1x192xf32>
    %c0_308 = arith.constant 0 : index
    %c2304 = arith.constant 2304 : index
    %281 = vector.load %arg18[%c0_308, %c2304] : memref<2x3072xf32, #tpu.memory_space<vmem>>, vector<1x192xf32>
    tpu.vector_store %arg18[%c0_308, %c2304], %280 {strides = array<i32>} : memref<2x3072xf32, #tpu.memory_space<vmem>>, vector<1x192xf32>,
    %282 = vector.extract_strided_slice %255 {offsets = [13, 0], sizes = [1, 192], strides = [1, 1]} : vector<16x192xf32> to vector<1x192xf32>
    %c0_309 = arith.constant 0 : index
    %c2496 = arith.constant 2496 : index
    %283 = vector.load %arg18[%c0_309, %c2496] : memref<2x3072xf32, #tpu.memory_space<vmem>>, vector<1x192xf32>
    tpu.vector_store %arg18[%c0_309, %c2496], %282 {strides = array<i32>} : memref<2x3072xf32, #tpu.memory_space<vmem>>, vector<1x192xf32>,
    %284 = vector.extract_strided_slice %255 {offsets = [14, 0], sizes = [1, 192], strides = [1, 1]} : vector<16x192xf32> to vector<1x192xf32>
    %c0_310 = arith.constant 0 : index
    %c2688 = arith.constant 2688 : index
    %285 = vector.load %arg18[%c0_310, %c2688] : memref<2x3072xf32, #tpu.memory_space<vmem>>, vector<1x192xf32>
    tpu.vector_store %arg18[%c0_310, %c2688], %284 {strides = array<i32>} : memref<2x3072xf32, #tpu.memory_space<vmem>>, vector<1x192xf32>,
    %286 = vector.extract_strided_slice %255 {offsets = [15, 0], sizes = [1, 192], strides = [1, 1]} : vector<16x192xf32> to vector<1x192xf32>
    %c0_311 = arith.constant 0 : index
    %c2880 = arith.constant 2880 : index
    %287 = vector.load %arg18[%c0_311, %c2880] : memref<2x3072xf32, #tpu.memory_space<vmem>>, vector<1x192xf32>
    tpu.vector_store %arg18[%c0_311, %c2880], %286 {strides = array<i32>} : memref<2x3072xf32, #tpu.memory_space<vmem>>, vector<1x192xf32>,
    %c0_312 = arith.constant 0 : index
    %c256_313 = arith.constant 256 : index
    %288 = vector.load %arg17[%c0_312, %c256_313] : memref<16x512xf32, #tpu.memory_space<vmem>>, vector<16x228xf32>
    %289 = vector.extract_strided_slice %288 {offsets = [0, 0], sizes = [16, 226], strides = [1, 1]} : vector<16x228xf32> to vector<16x226xf32>
    %290 = vector.extract_strided_slice %288 {offsets = [0, 1], sizes = [16, 226], strides = [1, 1]} : vector<16x228xf32> to vector<16x226xf32>
    %291 = arith.maximumf %289, %290 : vector<16x226xf32>
    %292 = vector.extract_strided_slice %288 {offsets = [0, 2], sizes = [16, 226], strides = [1, 1]} : vector<16x228xf32> to vector<16x226xf32>
    %293 = arith.maximumf %291, %292 : vector<16x226xf32>
    %294 = vector.extract_strided_slice %293 {offsets = [0, 0], sizes = [16, 192], strides = [1, 1]} : vector<16x226xf32> to vector<16x192xf32>
    %295 = vector.extract_strided_slice %293 {offsets = [0, 17], sizes = [16, 192], strides = [1, 1]} : vector<16x226xf32> to vector<16x192xf32>
    %296 = arith.maximumf %294, %295 : vector<16x192xf32>
    %297 = vector.extract_strided_slice %293 {offsets = [0, 34], sizes = [16, 192], strides = [1, 1]} : vector<16x226xf32> to vector<16x192xf32>
    %298 = arith.maximumf %296, %297 : vector<16x192xf32>
    %299 = vector.extract_strided_slice %298 {offsets = [0, 0], sizes = [1, 192], strides = [1, 1]} : vector<16x192xf32> to vector<1x192xf32>
    %c1_314 = arith.constant 1 : index
    %c0_315 = arith.constant 0 : index
    %300 = vector.load %arg18[%c1_314, %c0_315] : memref<2x3072xf32, #tpu.memory_space<vmem>>, vector<1x192xf32>
    tpu.vector_store %arg18[%c1_314, %c0_315], %299 {strides = array<i32>} : memref<2x3072xf32, #tpu.memory_space<vmem>>, vector<1x192xf32>,
    %301 = vector.extract_strided_slice %298 {offsets = [1, 0], sizes = [1, 192], strides = [1, 1]} : vector<16x192xf32> to vector<1x192xf32>
    %c1_316 = arith.constant 1 : index
    %c192_317 = arith.constant 192 : index
    %302 = vector.load %arg18[%c1_316, %c192_317] : memref<2x3072xf32, #tpu.memory_space<vmem>>, vector<1x192xf32>
    tpu.vector_store %arg18[%c1_316, %c192_317], %301 {strides = array<i32>} : memref<2x3072xf32, #tpu.memory_space<vmem>>, vector<1x192xf32>,
    %303 = vector.extract_strided_slice %298 {offsets = [2, 0], sizes = [1, 192], strides = [1, 1]} : vector<16x192xf32> to vector<1x192xf32>
    %c1_318 = arith.constant 1 : index
    %c384_319 = arith.constant 384 : index
    %304 = vector.load %arg18[%c1_318, %c384_319] : memref<2x3072xf32, #tpu.memory_space<vmem>>, vector<1x192xf32>
    tpu.vector_store %arg18[%c1_318, %c384_319], %303 {strides = array<i32>} : memref<2x3072xf32, #tpu.memory_space<vmem>>, vector<1x192xf32>,
    %305 = vector.extract_strided_slice %298 {offsets = [3, 0], sizes = [1, 192], strides = [1, 1]} : vector<16x192xf32> to vector<1x192xf32>
    %c1_320 = arith.constant 1 : index
    %c576_321 = arith.constant 576 : index
    %306 = vector.load %arg18[%c1_320, %c576_321] : memref<2x3072xf32, #tpu.memory_space<vmem>>, vector<1x192xf32>
    tpu.vector_store %arg18[%c1_320, %c576_321], %305 {strides = array<i32>} : memref<2x3072xf32, #tpu.memory_space<vmem>>, vector<1x192xf32>,
    %307 = vector.extract_strided_slice %298 {offsets = [4, 0], sizes = [1, 192], strides = [1, 1]} : vector<16x192xf32> to vector<1x192xf32>
    %c1_322 = arith.constant 1 : index
    %c768_323 = arith.constant 768 : index
    %308 = vector.load %arg18[%c1_322, %c768_323] : memref<2x3072xf32, #tpu.memory_space<vmem>>, vector<1x192xf32>
    tpu.vector_store %arg18[%c1_322, %c768_323], %307 {strides = array<i32>} : memref<2x3072xf32, #tpu.memory_space<vmem>>, vector<1x192xf32>,
    %309 = vector.extract_strided_slice %298 {offsets = [5, 0], sizes = [1, 192], strides = [1, 1]} : vector<16x192xf32> to vector<1x192xf32>
    %c1_324 = arith.constant 1 : index
    %c960_325 = arith.constant 960 : index
    %310 = vector.load %arg18[%c1_324, %c960_325] : memref<2x3072xf32, #tpu.memory_space<vmem>>, vector<1x192xf32>
    tpu.vector_store %arg18[%c1_324, %c960_325], %309 {strides = array<i32>} : memref<2x3072xf32, #tpu.memory_space<vmem>>, vector<1x192xf32>,
    %311 = vector.extract_strided_slice %298 {offsets = [6, 0], sizes = [1, 192], strides = [1, 1]} : vector<16x192xf32> to vector<1x192xf32>
    %c1_326 = arith.constant 1 : index
    %c1152_327 = arith.constant 1152 : index
    %312 = vector.load %arg18[%c1_326, %c1152_327] : memref<2x3072xf32, #tpu.memory_space<vmem>>, vector<1x192xf32>
    tpu.vector_store %arg18[%c1_326, %c1152_327], %311 {strides = array<i32>} : memref<2x3072xf32, #tpu.memory_space<vmem>>, vector<1x192xf32>,
    %313 = vector.extract_strided_slice %298 {offsets = [7, 0], sizes = [1, 192], strides = [1, 1]} : vector<16x192xf32> to vector<1x192xf32>
    %c1_328 = arith.constant 1 : index
    %c1344_329 = arith.constant 1344 : index
    %314 = vector.load %arg18[%c1_328, %c1344_329] : memref<2x3072xf32, #tpu.memory_space<vmem>>, vector<1x192xf32>
    tpu.vector_store %arg18[%c1_328, %c1344_329], %313 {strides = array<i32>} : memref<2x3072xf32, #tpu.memory_space<vmem>>, vector<1x192xf32>,
    %315 = vector.extract_strided_slice %298 {offsets = [8, 0], sizes = [1, 192], strides = [1, 1]} : vector<16x192xf32> to vector<1x192xf32>
    %c1_330 = arith.constant 1 : index
    %c1536_331 = arith.constant 1536 : index
    %316 = vector.load %arg18[%c1_330, %c1536_331] : memref<2x3072xf32, #tpu.memory_space<vmem>>, vector<1x192xf32>
    tpu.vector_store %arg18[%c1_330, %c1536_331], %315 {strides = array<i32>} : memref<2x3072xf32, #tpu.memory_space<vmem>>, vector<1x192xf32>,
    %317 = vector.extract_strided_slice %298 {offsets = [9, 0], sizes = [1, 192], strides = [1, 1]} : vector<16x192xf32> to vector<1x192xf32>
    %c1_332 = arith.constant 1 : index
    %c1728_333 = arith.constant 1728 : index
    %318 = vector.load %arg18[%c1_332, %c1728_333] : memref<2x3072xf32, #tpu.memory_space<vmem>>, vector<1x192xf32>
    tpu.vector_store %arg18[%c1_332, %c1728_333], %317 {strides = array<i32>} : memref<2x3072xf32, #tpu.memory_space<vmem>>, vector<1x192xf32>,
    %319 = vector.extract_strided_slice %298 {offsets = [10, 0], sizes = [1, 192], strides = [1, 1]} : vector<16x192xf32> to vector<1x192xf32>
    %c1_334 = arith.constant 1 : index
    %c1920_335 = arith.constant 1920 : index
    %320 = vector.load %arg18[%c1_334, %c1920_335] : memref<2x3072xf32, #tpu.memory_space<vmem>>, vector<1x192xf32>
    tpu.vector_store %arg18[%c1_334, %c1920_335], %319 {strides = array<i32>} : memref<2x3072xf32, #tpu.memory_space<vmem>>, vector<1x192xf32>,
    %321 = vector.extract_strided_slice %298 {offsets = [11, 0], sizes = [1, 192], strides = [1, 1]} : vector<16x192xf32> to vector<1x192xf32>
    %c1_336 = arith.constant 1 : index
    %c2112_337 = arith.constant 2112 : index
    %322 = vector.load %arg18[%c1_336, %c2112_337] : memref<2x3072xf32, #tpu.memory_space<vmem>>, vector<1x192xf32>
    tpu.vector_store %arg18[%c1_336, %c2112_337], %321 {strides = array<i32>} : memref<2x3072xf32, #tpu.memory_space<vmem>>, vector<1x192xf32>,
    %323 = vector.extract_strided_slice %298 {offsets = [12, 0], sizes = [1, 192], strides = [1, 1]} : vector<16x192xf32> to vector<1x192xf32>
    %c1_338 = arith.constant 1 : index
    %c2304_339 = arith.constant 2304 : index
    %324 = vector.load %arg18[%c1_338, %c2304_339] : memref<2x3072xf32, #tpu.memory_space<vmem>>, vector<1x192xf32>
    tpu.vector_store %arg18[%c1_338, %c2304_339], %323 {strides = array<i32>} : memref<2x3072xf32, #tpu.memory_space<vmem>>, vector<1x192xf32>,
    %325 = vector.extract_strided_slice %298 {offsets = [13, 0], sizes = [1, 192], strides = [1, 1]} : vector<16x192xf32> to vector<1x192xf32>
    %c1_340 = arith.constant 1 : index
    %c2496_341 = arith.constant 2496 : index
    %326 = vector.load %arg18[%c1_340, %c2496_341] : memref<2x3072xf32, #tpu.memory_space<vmem>>, vector<1x192xf32>
    tpu.vector_store %arg18[%c1_340, %c2496_341], %325 {strides = array<i32>} : memref<2x3072xf32, #tpu.memory_space<vmem>>, vector<1x192xf32>,
    %327 = vector.extract_strided_slice %298 {offsets = [14, 0], sizes = [1, 192], strides = [1, 1]} : vector<16x192xf32> to vector<1x192xf32>
    %c1_342 = arith.constant 1 : index
    %c2688_343 = arith.constant 2688 : index
    %328 = vector.load %arg18[%c1_342, %c2688_343] : memref<2x3072xf32, #tpu.memory_space<vmem>>, vector<1x192xf32>
    tpu.vector_store %arg18[%c1_342, %c2688_343], %327 {strides = array<i32>} : memref<2x3072xf32, #tpu.memory_space<vmem>>, vector<1x192xf32>,
    %329 = vector.extract_strided_slice %298 {offsets = [15, 0], sizes = [1, 192], strides = [1, 1]} : vector<16x192xf32> to vector<1x192xf32>
    %c1_344 = arith.constant 1 : index
    %c2880_345 = arith.constant 2880 : index
    %330 = vector.load %arg18[%c1_344, %c2880_345] : memref<2x3072xf32, #tpu.memory_space<vmem>>, vector<1x192xf32>
    tpu.vector_store %arg18[%c1_344, %c2880_345], %329 {strides = array<i32>} : memref<2x3072xf32, #tpu.memory_space<vmem>>, vector<1x192xf32>,
    %c0_346 = arith.constant 0 : index
    %c0_347 = arith.constant 0 : index
    %331 = vector.load %arg18[%c0_346, %c0_347] : memref<2x3072xf32, #tpu.memory_space<vmem>>, vector<2x3072xf32>
    %c0_348 = arith.constant 0 : index
    %c0_349 = arith.constant 0 : index
    %332 = vector.load %arg7[%c0_348, %c0_349] : memref<3072x64xf32, #tpu.memory_space<vmem>>, vector<3072x64xf32>
    %cst_350 = arith.constant dense<0.000000e+00> : vector<2x64xf32>
    %333 = tpu.matmul %331, %332, %cst_350 {dimension_numbers = #tpu.dot_dimension_numbers<[1], [0], [0], [1], [0, 0, 1, 1], [], []>} : vector<2x3072xf32>, vector<3072x64xf32>, vector<2x64xf32> -> vector<2x64xf32>
    %c0_351 = arith.constant 0 : index
    %c0_352 = arith.constant 0 : index
    %334 = vector.load %arg8[%c0_351, %c0_352] : memref<1x64xf32, #tpu.memory_space<vmem>>, vector<1x64xf32>
    %335 = vector.broadcast %334 : vector<1x64xf32> to vector<2x64xf32>
    %336 = arith.addf %333, %335 : vector<2x64xf32>
    %cst_353 = arith.constant 5.000000e-01 : f32
    %337 = vector.broadcast %cst_353 : f32 to vector<2x64xf32>
    %338 = arith.mulf %337, %336 : vector<2x64xf32>
    %339 = math.tanh %338 : vector<2x64xf32>
    %cst_354 = arith.constant 1.000000e+00 : f32
    %340 = vector.broadcast %cst_354 : f32 to vector<2x64xf32>
    %341 = arith.addf %339, %340 : vector<2x64xf32>
    %cst_355 = arith.constant 5.000000e-01 : f32
    %342 = vector.broadcast %cst_355 : f32 to vector<2x64xf32>
    %343 = arith.mulf %342, %341 : vector<2x64xf32>
    %cst_356 = arith.constant dense<0.000000e+00> : vector<2xf32>
    %344 = vector.multi_reduction <add>, %343, %cst_356 [1] : vector<2x64xf32> to vector<2xf32>
    %345 = vector.shape_cast %344 : vector<2xf32> to vector<2x1xf32>
    %cst_357 = arith.constant 6.400000e+01 : f32
    %346 = vector.broadcast %cst_357 : f32 to vector<2x1xf32>
    %347 = arith.divf %345, %346 : vector<2x1xf32>
    %348 = vector.broadcast %347 : vector<2x1xf32> to vector<2x64xf32>
    %349 = arith.subf %343, %348 : vector<2x64xf32>
    %350 = arith.mulf %349, %349 : vector<2x64xf32>
    %cst_358 = arith.constant dense<0.000000e+00> : vector<2xf32>
    %351 = vector.multi_reduction <add>, %350, %cst_358 [1] : vector<2x64xf32> to vector<2xf32>
    %352 = vector.shape_cast %351 : vector<2xf32> to vector<2x1xf32>
    %cst_359 = arith.constant 6.400000e+01 : f32
    %353 = vector.broadcast %cst_359 : f32 to vector<2x1xf32>
    %354 = arith.divf %352, %353 : vector<2x1xf32>
    %355 = vector.broadcast %347 : vector<2x1xf32> to vector<2x64xf32>
    %356 = arith.subf %343, %355 : vector<2x64xf32>
    %cst_360 = arith.constant 9.99999974E-6 : f32
    %357 = vector.broadcast %cst_360 : f32 to vector<2x1xf32>
    %358 = arith.addf %354, %357 : vector<2x1xf32>
    %359 = math.rsqrt %358 : vector<2x1xf32>
    %360 = vector.broadcast %359 : vector<2x1xf32> to vector<2x64xf32>
    %361 = arith.mulf %356, %360 : vector<2x64xf32>
    %c0_361 = arith.constant 0 : index
    %c0_362 = arith.constant 0 : index
    %362 = vector.load %arg9[%c0_361, %c0_362] : memref<1x64xf32, #tpu.memory_space<vmem>>, vector<1x64xf32>
    %363 = vector.broadcast %362 : vector<1x64xf32> to vector<2x64xf32>
    %364 = arith.mulf %361, %363 : vector<2x64xf32>
    %c0_363 = arith.constant 0 : index
    %c0_364 = arith.constant 0 : index
    %365 = vector.load %arg10[%c0_363, %c0_364] : memref<1x64xf32, #tpu.memory_space<vmem>>, vector<1x64xf32>
    %366 = vector.broadcast %365 : vector<1x64xf32> to vector<2x64xf32>
    %367 = arith.addf %364, %366 : vector<2x64xf32>
    %c0_365 = arith.constant 0 : index
    %c0_366 = arith.constant 0 : index
    %368 = vector.load %arg11[%c0_365, %c0_366] : memref<64x128xf32, #tpu.memory_space<vmem>>, vector<64x128xf32>
    %cst_367 = arith.constant dense<0.000000e+00> : vector<2x128xf32>
    %369 = tpu.matmul %367, %368, %cst_367 {dimension_numbers = #tpu.dot_dimension_numbers<[1], [0], [0], [1], [0, 0, 1, 1], [], []>} : vector<2x64xf32>, vector<64x128xf32>, vector<2x128xf32> -> vector<2x128xf32>
    %370 = arith.mulf %367, %367 : vector<2x64xf32>
    %cst_368 = arith.constant dense<0.000000e+00> : vector<2xf32>
    %371 = vector.multi_reduction <add>, %370, %cst_368 [1] : vector<2x64xf32> to vector<2xf32>
    %372 = vector.shape_cast %371 : vector<2xf32> to vector<2x1xf32>
    %373 = math.sqrt %372 : vector<2x1xf32>
    %cst_369 = arith.constant 9.99999993E-9 : f32
    %374 = vector.broadcast %cst_369 : f32 to vector<2x1xf32>
    %375 = arith.maximumf %373, %374 : vector<2x1xf32>
    %376 = vector.broadcast %375 : vector<2x1xf32> to vector<2x128xf32>
    %377 = arith.divf %369, %376 : vector<2x128xf32>
    %cst_370 = arith.constant 3.000000e+00 : f32
    %378 = vector.broadcast %cst_370 : f32 to vector<2x128xf32>
    %379 = arith.mulf %377, %378 : vector<2x128xf32>
    %c0_371 = arith.constant 0 : index
    %c0_372 = arith.constant 0 : index
    %380 = vector.load %arg12[%c0_371, %c0_372] : memref<2x128xf32, #tpu.memory_space<vmem>>, vector<2x128xf32>
    tpu.vector_store %arg12[%c0_371, %c0_372], %379 {strides = array<i32>} : memref<2x128xf32, #tpu.memory_space<vmem>>, vector<2x128xf32>,
    return
  }
  func.func @transform_0(%arg0: i32) -> (i32, i32, i32) {
    %c0_i32 = arith.constant 0 : i32
    %c0_i32_0 = arith.constant 0 : i32
    %c0_i32_1 = arith.constant 0 : i32
    return %arg0, %c0_i32, %c0_i32_0 : i32, i32, i32
  }
  func.func @transform_1(%arg0: i32) -> (i32, i32) {
    %c0_i32 = arith.constant 0 : i32
    %c0_i32_0 = arith.constant 0 : i32
    %c0_i32_1 = arith.constant 0 : i32
    return %c0_i32, %c0_i32_0 : i32, i32
  }
  func.func @transform_2(%arg0: i32) -> (i32, i32) {
    %c0_i32 = arith.constant 0 : i32
    %c0_i32_0 = arith.constant 0 : i32
    %c0_i32_1 = arith.constant 0 : i32
    return %c0_i32, %c0_i32_0 : i32, i32
  }
  func.func @transform_3(%arg0: i32) -> (i32, i32) {
    %c0_i32 = arith.constant 0 : i32
    %c0_i32_0 = arith.constant 0 : i32
    %c0_i32_1 = arith.constant 0 : i32
    return %c0_i32, %c0_i32_0 : i32, i32
  }
  func.func @transform_4(%arg0: i32) -> (i32, i32) {
    %c0_i32 = arith.constant 0 : i32
    %c0_i32_0 = arith.constant 0 : i32
    %c0_i32_1 = arith.constant 0 : i32
    return %c0_i32, %c0_i32_0 : i32, i32
  }
  func.func @transform_5(%arg0: i32) -> (i32, i32) {
    %c0_i32 = arith.constant 0 : i32
    %c0_i32_0 = arith.constant 0 : i32
    %c0_i32_1 = arith.constant 0 : i32
    return %c0_i32, %c0_i32_0 : i32, i32
  }
  func.func @transform_6(%arg0: i32) -> (i32, i32) {
    %c0_i32 = arith.constant 0 : i32
    %c0_i32_0 = arith.constant 0 : i32
    %c0_i32_1 = arith.constant 0 : i32
    return %c0_i32, %c0_i32_0 : i32, i32
  }
  func.func @transform_7(%arg0: i32) -> (i32, i32) {
    %c0_i32 = arith.constant 0 : i32
    %c0_i32_0 = arith.constant 0 : i32
    %c0_i32_1 = arith.constant 0 : i32
    return %c0_i32, %c0_i32_0 : i32, i32
  }
  func.func @transform_8(%arg0: i32) -> (i32, i32) {
    %c0_i32 = arith.constant 0 : i32
    %c0_i32_0 = arith.constant 0 : i32
    %c0_i32_1 = arith.constant 0 : i32
    return %c0_i32, %c0_i32_0 : i32, i32
  }
  func.func @transform_9(%arg0: i32) -> (i32, i32) {
    %c0_i32 = arith.constant 0 : i32
    %c0_i32_0 = arith.constant 0 : i32
    %c0_i32_1 = arith.constant 0 : i32
    return %c0_i32, %c0_i32_0 : i32, i32
  }
  func.func @transform_10(%arg0: i32) -> (i32, i32) {
    %c0_i32 = arith.constant 0 : i32
    %c0_i32_0 = arith.constant 0 : i32
    %c0_i32_1 = arith.constant 0 : i32
    return %c0_i32, %c0_i32_0 : i32, i32
  }
  func.func @transform_11(%arg0: i32) -> (i32, i32) {
    %c0_i32 = arith.constant 0 : i32
    %c0_i32_0 = arith.constant 0 : i32
    return %arg0, %c0_i32 : i32, i32
  }
}

</mosaic_0001>

<bundles_post_ra>
// kernel: network_forward.1
= control target key start
LH: loop header
LB: loop body
LE: loop exit
PB: predicated region body
PF: predicated region fallthrough
CT: control target
= control target key end

     0   :  { %s12714_s21 = smov 126   ;;  %s20319_s0 = inlined_call_operand.vmem [shape: f32[2,48,1024], index: 0, kind: input, shape index: {}]   ;;  %s20320_s1 = inlined_call_operand.vmem [shape: f32[8,432], index: 1, kind: input, shape index: {}]   ;;  %s20321_s2 = inlined_call_operand.vmem [shape: f32[8,1], index: 2, kind: input, shape index: {}]   ;;  %s20322_s3 = inlined_call_operand.vmem [shape: f32[768,384], index: 3, kind: input, shape index: {}]   ;;  %s20323_s4 = inlined_call_operand.vmem [shape: f32[16,100], index: 4, kind: input, shape index: {}]   ;;  %s20324_s5 = inlined_call_operand.vmem [shape: f32[16,1], index: 5, kind: input, shape index: {}]   ;;  %s20325_s6 = inlined_call_operand.vmem [shape: f32[3072,64], index: 6, kind: input, shape index: {}]   ;;  %s20326_s7 = inlined_call_operand.vmem [shape: f32[1,64], index: 7, kind: input, shape index: {}]   ;;  %s20327_s8 = inlined_call_operand.vmem [shape: f32[1,64], index: 8, kind: input, shape index: {}]   ;;  %s20328_s9 = inlined_call_operand.vmem [shape: f32[1,64], index: 9, kind: input, shape index: {}]   ;;  %s20329_s10 = inlined_call_operand.vmem [shape: f32[64,128], index: 10, kind: input, shape index: {}]   ;;  %s20330_s11 = inlined_call_operand.hbm [shape: f32[2,128], index: 11, kind: output, shape index: {}]  }
   0x1   :  { %v12814_v0 = vld [vmem:[%s20319_s0 + $0xc8] sm:$0xff]  ;;  %v12819_v1 = vld [vmem:[%s20319_s0 + $0xc0] sm:$0xff]  ;;  %v12828_v2 = vld [vmem:[%s20319_s0 + $0xd0] sm:$0xff] }
   0x2   :  { %588 = vrot.lane.b32.xlu0 %v12814_v0, %s12714_s21  ;;  %586 = vrot.lane.b32.xlu1 %v12819_v1, %s12714_s21  ;;  %v12833_v3 = vld [vmem:[%s20319_s0 + $0x88] sm:$0xff]  ;;  %v12842_v4 = vld [vmem:[%s20319_s0 + $0x90] sm:$0xff] }
   0x3   :  { %v12847_v5 = vld [vmem:[%s20319_s0 + $0x80] sm:$0xff] }
   0x6   :  { %590 = vrot.lane.b32.xlu0 %v12828_v2, %s12714_s21  ;;  %572 = vrot.lane.b32.xlu1 %v12833_v3, %s12714_s21 }
   0x7   :  { %16 = vsyncpa [#allocation9], 0  ;;  %v12856_v6 = vld [vmem:[%s20319_s0 + $0x50] sm:$0xff]  ;;  %v12861_v7 = vld [vmem:[%s20319_s0 + $0x48] sm:$0xff]  ;;  %s12715_s28 = smov 127   ;;  %s12716_s18 = smov 69  }
   0x8   :  { %v12870_v8 = vld [vmem:[%s20319_s0 + $0x40] sm:$0xff]  ;;  %v12875_v9 = vld [vmem:[%s20319_s0 + $0x8] sm:$0xff]  ;;  %v12884_v10 = vld [vmem:[%s20319_s0 + $0x10] sm:$0xff]  ;;  %s12717_s19 = smov 70   ;;  %s12718_s20 = smov 97   ;;  %vm634_vm0 = vcmask 1031168  }
   0x9   :  { %v12889_v11 = vld [vmem:[%s20319_s0] sm:$0xff]  ;;  %v12898_v12 = vld [vmem:[%s20319_s0 + $0x150] sm:$0xff]  ;;  %v12903_v13 = vld [vmem:[%s20319_s0 + $0x148] sm:$0xff]  ;;  %s12719_s22 = smov 98   ;;  %vm315_vm1 = vcmask 1039360   ;;  %vm2229_vm2 = vcmask 564224  }
   0xa   :  { %574 = vrot.lane.b32.xlu0 %v12842_v4, %s12714_s21  ;;  %570 = vrot.lane.b32.xlu1 %v12847_v5, %s12714_s21  ;;  %v12912_v14 = vld [vmem:[%s20319_s0 + $0x140] sm:$0xff]  ;;  %v12917_v15 = vld [vmem:[%s20319_s0 + $0x108] sm:$0xff]  ;;  %s12720_s23 = smov 99   ;;  %vm1910_vm3 = vcmask 572416   ;;  %s12721_s24 = smov 68   ;;  %vm1591_vm4 = vcmask 793600  }
   0xb   :  { %v12926_v16 = vld [vmem:[%s20319_s0 + $0x110] sm:$0xff]  ;;  %v12931_v17 = vld [vmem:[%s20319_s0 + $0x100] sm:$0xff]  ;;  %vm1272_vm5 = vcmask 801792   ;;  %vm3063_vm6 = vcmask 392192   ;;  %vm953_vm7 = vcmask 809984   ;;  %vm2548_vm8 = vcmask 556032  }
   0xc   :  { %s12730_s16 = smov 73   ;;  %s12732_s17 = smov 75   ;;  %vm8763_vm9 = vcmask 457728   ;;  %vm8722_vm10 = vcmask 474112   ;;  %vm9321_vm11 = vcmask 1043456   ;;  %vm8744_vm12 = vcmask 465920  }
   0xd   :  { %s12734_s25 = smov 77   ;;  %s12735_s26 = smov 92   ;;  %vm8681_vm13 = vcmask 490496   ;;  %vm8703_vm14 = vcmask 482304   ;;  %vm8640_vm15 = vcmask 605184  }
   0xe   :  { %558 = vrot.lane.b32.xlu1 %v12856_v6, %s12714_s21  ;;  %556 = vrot.lane.b32.xlu0 %v12861_v7, %s12714_s21  ;;  %s12736_s27 = smov 91   ;;  %s12737_s29 = smov 94  }
   0xf   :  { %s12738_s30 = smov 93   ;;  %s12739_s12 = smov 108  }
  0x10   :  { %s12741_s13 = smov 110   ;;  %s12742_s14 = smov 109  }
  0x11   :  { %s12743_s15 = smov 124  }
  0x12   :  { %554 = vrot.lane.b32.xlu0 %v12870_v8, %s12714_s21  ;;  %540 = vrot.lane.b32.xlu1 %v12875_v9, %s12714_s21 }
  0x16   :  { %542 = vrot.lane.b32.xlu0 %v12884_v10, %s12714_s21  ;;  %538 = vrot.lane.b32.xlu1 %v12889_v11, %s12714_s21 }
  0x1a   :  { %303 = vrot.lane.b32.xlu1 %v12898_v12, %s12715_s28  ;;  %301 = vrot.lane.b32.xlu0 %v12903_v13, %s12715_s28 }
  0x1e   :  { %299 = vrot.lane.b32.xlu0 %v12912_v14, %s12715_s28  ;;  %285 = vrot.lane.b32.xlu1 %v12917_v15, %s12715_s28 }
  0x22   :  { %287 = vrot.lane.b32.xlu0 %v12926_v16, %s12715_s28  ;;  %283 = vrot.lane.b32.xlu1 %v12931_v17, %s12715_s28 }
  0x26   :  { %271 = vrot.lane.b32.xlu1 %v12828_v2, %s12715_s28  ;;  %269 = vrot.lane.b32.xlu0 %v12814_v0, %s12715_s28 }
  0x2a   :  { %267 = vrot.lane.b32.xlu0 %v12819_v1, %s12715_s28  ;;  %253 = vrot.lane.b32.xlu1 %v12833_v3, %s12715_s28 }
  0x2e   :  { %255 = vrot.lane.b32.xlu0 %v12842_v4, %s12715_s28  ;;  %251 = vrot.lane.b32.xlu1 %v12847_v5, %s12715_s28 }
  0x32   :  { %239 = vrot.lane.b32.xlu1 %v12856_v6, %s12715_s28  ;;  %237 = vrot.lane.b32.xlu0 %v12861_v7, %s12715_s28 }
  0x36   :  { %235 = vrot.lane.b32.xlu0 %v12870_v8, %s12715_s28  ;;  %221 = vrot.lane.b32.xlu1 %v12875_v9, %s12715_s28 }
  0x3a   :  { %223 = vrot.lane.b32.xlu0 %v12884_v10, %s12715_s28  ;;  %2215 = vrot.lane.b32.xlu1 %v12903_v13, %s12716_s18 }
  0x3e   :  { %2217 = vrot.lane.b32.xlu0 %v12898_v12, %s12716_s18  ;;  %219 = vrot.lane.b32.xlu1 %v12889_v11, %s12715_s28 }
  0x42   :  { %2213 = vrot.lane.b32.xlu0 %v12912_v14, %s12716_s18  ;;  %2199 = vrot.lane.b32.xlu1 %v12917_v15, %s12716_s18 }
  0x46   :  { %2201 = vrot.lane.b32.xlu0 %v12926_v16, %s12716_s18  ;;  %2197 = vrot.lane.b32.xlu1 %v12931_v17, %s12716_s18 }
  0x4a   :  { %2183 = vrot.lane.b32.xlu0 %v12814_v0, %s12716_s18  ;;  %2185 = vrot.lane.b32.xlu1 %v12828_v2, %s12716_s18 }
  0x4e   :  { %2181 = vrot.lane.b32.xlu0 %v12819_v1, %s12716_s18  ;;  %2167 = vrot.lane.b32.xlu1 %v12833_v3, %s12716_s18 }
  0x52   :  { %2169 = vrot.lane.b32.xlu0 %v12842_v4, %s12716_s18  ;;  %2165 = vrot.lane.b32.xlu1 %v12847_v5, %s12716_s18 }
  0x56   :  { %2151 = vrot.lane.b32.xlu0 %v12861_v7, %s12716_s18  ;;  %2153 = vrot.lane.b32.xlu1 %v12856_v6, %s12716_s18 }
  0x5a   :  { %2149 = vrot.lane.b32.xlu0 %v12870_v8, %s12716_s18  ;;  %2135 = vrot.lane.b32.xlu1 %v12875_v9, %s12716_s18 }
  0x5e   :  { %2137 = vrot.lane.b32.xlu0 %v12884_v10, %s12716_s18  ;;  %2133 = vrot.lane.b32.xlu1 %v12889_v11, %s12716_s18 }
  0x62   :  { %1896 = vrot.lane.b32.xlu0 %v12903_v13, %s12717_s19  ;;  %1898 = vrot.lane.b32.xlu1 %v12898_v12, %s12717_s19 }
  0x66   :  { %1894 = vrot.lane.b32.xlu0 %v12912_v14, %s12717_s19  ;;  %1513 = vrot.lane.b32.xlu1 %v12861_v7, %s12718_s20 }
  0x6a   :  { %1515 = vrot.lane.b32.xlu0 %v12856_v6, %s12718_s20  ;;  %1880 = vrot.lane.b32.xlu1 %v12917_v15, %s12717_s19 }
  0x6e   :  { %1882 = vrot.lane.b32.xlu0 %v12926_v16, %s12717_s19  ;;  %1511 = vrot.lane.b32.xlu1 %v12870_v8, %s12718_s20 }
  0x72   :  { %1878 = vrot.lane.b32.xlu0 %v12931_v17, %s12717_s19  ;;  %1497 = vrot.lane.b32.xlu1 %v12875_v9, %s12718_s20 }
  0x74   :  { %v589_v18 = vpop.permute.xlu0 %588  ;;  %v587_v19 = vpop.permute.xlu1 %586 }
  0x75   :  { %v656_v23 = vsel %vm634_vm0, %v587_v19, %v589_v18 }
  0x76   :  { %1499 = vrot.lane.b32.xlu0 %v12884_v10, %s12718_s20  ;;  %1864 = vrot.lane.b32.xlu1 %v12814_v0, %s12717_s19 }
  0x78   :  { %v13021_v20 = vpop.permute.xlu0 %590  ;;  %v573_v21 = vpop.permute.xlu1 %572 }
  0x79   :  { %v657_v22 = vsel %vm634_vm0, %v589_v18, %v13021_v20 }
  0x7a   :  { %3067 = vmatprep.subr.mxu0 %v657_v22  ;;  %1866 = vrot.lane.b32.xlu0 %v12828_v2, %s12717_s19 }
  0x7b   :  { %1495 = vrot.lane.b32.xlu1 %v12889_v11, %s12718_s20  ;;  %3068 = vmatpush1.msra.mxu0 %v656_v23 }
  0x7c   :  { %v13030_v24 = vpop.permute.xlu0 %574  ;;  %v571_v25 = vpop.permute.xlu1 %570 }
  0x7d   :  { %v650_v26 = vsel %vm634_vm0, %v573_v21, %v13030_v24  ;;  %v649_v27 = vsel %vm634_vm0, %v571_v25, %v573_v21 }
  0x7e   :  { %3069 = vmatprep.subr.mxu0 %v650_v26  ;;  %1862 = vrot.lane.b32.xlu0 %v12819_v1, %s12717_s19 }
  0x7f   :  { %1258 = vrot.lane.b32.xlu1 %v12903_v13, %s12719_s22  ;;  %3070 = vmatpush1.msra.mxu0 %v649_v27 }
  0x80   :  { %v13039_v28 = vpop.permute.xlu1 %558  ;;  %v557_v29 = vpop.permute.xlu0 %556 }
  0x81   :  { %v643_v30 = vsel %vm634_vm0, %v557_v29, %v13039_v28 }
  0x82   :  { %3071 = vmatprep.subr.mxu0 %v643_v30  ;;  %1260 = vrot.lane.b32.xlu0 %v12898_v12, %s12719_s22 }
  0x83   :  { %1848 = vrot.lane.b32.xlu1 %v12833_v3, %s12717_s19 }
  0x84   :  { %v555_v31 = vpop.permute.xlu0 %554  ;;  %v541_v32 = vpop.permute.xlu1 %540 }
  0x85   :  { %v642_v33 = vsel %vm634_vm0, %v555_v31, %v557_v29 }
  0x86   :  { %3072 = vmatpush1.msra.mxu0 %v642_v33  ;;  %1850 = vrot.lane.b32.xlu0 %v12842_v4, %s12717_s19 }
  0x87   :  { %1256 = vrot.lane.b32.xlu1 %v12912_v14, %s12719_s22 }
  0x88   :  { %v13052_v34 = vpop.permute.xlu0 %542  ;;  %v539_v35 = vpop.permute.xlu1 %538 }
  0x89   :  { %v636_v36 = vsel %vm634_vm0, %v541_v32, %v13052_v34  ;;  %v635_v37 = vsel %vm634_vm0, %v539_v35, %v541_v32 }
  0x8a   :  { %3073 = vmatprep.subr.mxu0 %v636_v36  ;;  %1846 = vrot.lane.b32.xlu0 %v12847_v5, %s12717_s19 }
  0x8b   :  { %1242 = vrot.lane.b32.xlu1 %v12917_v15, %s12719_s22  ;;  %3074 = vmatpush1.msra.mxu0 %v635_v37 }
  0x8c   :  { %v13061_v38 = vpop.permute.xlu1 %303  ;;  %v302_v39 = vpop.permute.xlu0 %301 }
  0x8d   :  { %v352_v40 = vsel %vm315_vm1, %v302_v39, %v13061_v38 }
  0x8e   :  { %3075 = vmatprep.subr.mxu0 %v352_v40  ;;  %1244 = vrot.lane.b32.xlu0 %v12926_v16, %s12719_s22 }
  0x8f   :  { %1832 = vrot.lane.b32.xlu1 %v12861_v7, %s12717_s19 }
  0x90   :  { %v300_v41 = vpop.permute.xlu0 %299  ;;  %v286_v42 = vpop.permute.xlu1 %285 }
  0x91   :  { %v351_v43 = vsel %vm315_vm1, %v300_v41, %v302_v39 }
  0x92   :  { %3076 = vmatpush1.msra.mxu0 %v351_v43  ;;  %1834 = vrot.lane.b32.xlu0 %v12856_v6, %s12717_s19 }
  0x93   :  { %1240 = vrot.lane.b32.xlu1 %v12931_v17, %s12719_s22 }
  0x94   :  { %v13074_v44 = vpop.permute.xlu0 %287  ;;  %v284_v45 = vpop.permute.xlu1 %283 }
  0x95   :  { %v345_v46 = vsel %vm315_vm1, %v286_v42, %v13074_v44  ;;  %v344_v47 = vsel %vm315_vm1, %v284_v45, %v286_v42 }
  0x96   :  { %3077 = vmatprep.subr.mxu0 %v345_v46  ;;  %1830 = vrot.lane.b32.xlu0 %v12870_v8, %s12717_s19 }
  0x97   :  { %1226 = vrot.lane.b32.xlu1 %v12814_v0, %s12719_s22  ;;  %3078 = vmatpush1.msra.mxu0 %v344_v47 }
  0x98   :  { %v13083_v48 = vpop.permute.xlu1 %271  ;;  %v270_v49 = vpop.permute.xlu0 %269 }
  0x99   :  { %v338_v50 = vsel %vm315_vm1, %v270_v49, %v13083_v48 }
  0x9a   :  { %3079 = vmatprep.subr.mxu0 %v338_v50  ;;  %1228 = vrot.lane.b32.xlu0 %v12828_v2, %s12719_s22 }
  0x9b   :  { %1816 = vrot.lane.b32.xlu1 %v12875_v9, %s12717_s19 }
  0x9c   :  { %v268_v51 = vpop.permute.xlu0 %267  ;;  %v254_v52 = vpop.permute.xlu1 %253 }
  0x9d   :  { %v337_v53 = vsel %vm315_vm1, %v268_v51, %v270_v49 }
  0x9e   :  { %3080 = vmatpush1.msra.mxu0 %v337_v53  ;;  %1818 = vrot.lane.b32.xlu0 %v12884_v10, %s12717_s19 }
  0x9f   :  { %1224 = vrot.lane.b32.xlu1 %v12819_v1, %s12719_s22 }
  0xa0   :  { %v13096_v54 = vpop.permute.xlu0 %255  ;;  %v252_v55 = vpop.permute.xlu1 %251 }
  0xa1   :  { %v331_v56 = vsel %vm315_vm1, %v254_v52, %v13096_v54  ;;  %v330_v57 = vsel %vm315_vm1, %v252_v55, %v254_v52 }
  0xa2   :  { %3081 = vmatprep.subr.mxu0 %v331_v56  ;;  %1814 = vrot.lane.b32.xlu0 %v12889_v11, %s12717_s19 }
  0xa3   :  { %1210 = vrot.lane.b32.xlu1 %v12833_v3, %s12719_s22  ;;  %3082 = vmatpush1.msra.mxu0 %v330_v57 }
  0xa4   :  { %v13105_v58 = vpop.permute.xlu1 %239  ;;  %v238_v59 = vpop.permute.xlu0 %237 }
  0xa5   :  { %v324_v60 = vsel %vm315_vm1, %v238_v59, %v13105_v58 }
  0xa6   :  { %3083 = vmatprep.subr.mxu0 %v324_v60  ;;  %1212 = vrot.lane.b32.xlu0 %v12842_v4, %s12719_s22 }
  0xa7   :  { %1577 = vrot.lane.b32.xlu1 %v12903_v13, %s12718_s20 }
  0xa8   :  { %v236_v61 = vpop.permute.xlu0 %235  ;;  %v222_v62 = vpop.permute.xlu1 %221 }
  0xa9   :  { %v323_v63 = vsel %vm315_vm1, %v236_v61, %v238_v59 }
  0xaa   :  { %3084 = vmatpush1.msra.mxu0 %v323_v63  ;;  %1579 = vrot.lane.b32.xlu0 %v12898_v12, %s12718_s20 }
  0xab   :  { %1208 = vrot.lane.b32.xlu1 %v12847_v5, %s12719_s22 }
  0xac   :  { %v13118_v18 = vpop.permute.xlu0 %223  ;;  %v2216_v19 = vpop.permute.xlu1 %2215 }
  0xad   :  { %v317_v21 = vsel %vm315_vm1, %v222_v62, %v13118_v18 }
  0xae   :  { %1575 = vrot.lane.b32.xlu0 %v12912_v14, %s12718_s20  ;;  %3085 = vmatprep.subr.mxu0 %v317_v21 }
  0xaf   :  { %1194 = vrot.lane.b32.xlu1 %v12861_v7, %s12719_s22 }
  0xb0   :  { %v13126_v22 = vpop.permute.xlu0 %2217  ;;  %v220_v23 = vpop.permute.xlu1 %219 }
  0xb1   :  { %v2266_v25 = vsel %vm2229_vm2, %v2216_v19, %v13126_v22  ;;  %v316_v26 = vsel %vm315_vm1, %v220_v23, %v222_v62 }
  0xb2   :  { %1196 = vrot.lane.b32.xlu0 %v12856_v6, %s12719_s22  ;;  %3138 = vmatprep.subr.mxu1 %v2266_v25 }
  0xb3   :  { %1561 = vrot.lane.b32.xlu1 %v12917_v15, %s12718_s20  ;;  %3086 = vmatpush1.msra.mxu0 %v316_v26 }
  0xb4   :  { %v2214_v27 = vpop.permute.xlu0 %2213  ;;  %v2200_v29 = vpop.permute.xlu1 %2199  ;;  %3087 = vmatprep.subr.mxu0 %v12903_v13 }
  0xb5   :  { %v2265_v30 = vsel %vm2229_vm2, %v2214_v27, %v2216_v19  ;;  %3088 = vmatpush1.msra.mxu0 %v12912_v14 }
  0xb6   :  { %1563 = vrot.lane.b32.xlu0 %v12926_v16, %s12718_s20  ;;  %3139 = vmatpush1.msra.mxu1 %v2265_v30 }
  0xb7   :  { %1192 = vrot.lane.b32.xlu1 %v12870_v8, %s12719_s22  ;;  %3089 = vmatprep.subr.mxu0 %v12917_v15 }
  0xb8   :  { %v13143_v31 = vpop.permute.xlu0 %2201  ;;  %v2198_v32 = vpop.permute.xlu1 %2197  ;;  %3090 = vmatpush1.msra.mxu0 %v12931_v17 }
  0xb9   :  { %v2259_v33 = vsel %vm2229_vm2, %v2200_v29, %v13143_v31  ;;  %v2258_v35 = vsel %vm2229_vm2, %v2198_v32, %v2200_v29  ;;  %3091 = vmatprep.subr.mxu0 %v12814_v0 }
  0xba   :  { %1559 = vrot.lane.b32.xlu0 %v12931_v17, %s12718_s20  ;;  %3140 = vmatprep.subr.mxu1 %v2259_v33 }
  0xbb   :  { %1178 = vrot.lane.b32.xlu1 %v12875_v9, %s12719_s22  ;;  %3141 = vmatpush1.msra.mxu1 %v2258_v35 }
  0xbc   :  { %v2184_v36 = vpop.permute.xlu0 %2183  ;;  %v13154_v37 = vpop.permute.xlu1 %2185  ;;  %3092 = vmatpush1.msra.mxu0 %v12819_v1 }
  0xbd   :  { %v2252_v39 = vsel %vm2229_vm2, %v2184_v36, %v13154_v37  ;;  %3093 = vmatprep.subr.mxu0 %v12833_v3 }
  0xbe   :  { %1180 = vrot.lane.b32.xlu0 %v12884_v10, %s12719_s22  ;;  %3142 = vmatprep.subr.mxu1 %v2252_v39 }
  0xbf   :  { %1545 = vrot.lane.b32.xlu1 %v12814_v0, %s12718_s20  ;;  %3094 = vmatpush1.msra.mxu0 %v12847_v5 }
  0xc0   :  { %v2182_v40 = vpop.permute.xlu0 %2181  ;;  %v2168_v41 = vpop.permute.xlu1 %2167  ;;  %3095 = vmatprep.subr.mxu0 %v12861_v7 }
  0xc1   :  { %v2251_v42 = vsel %vm2229_vm2, %v2182_v40, %v2184_v36  ;;  %3096 = vmatpush1.msra.mxu0 %v12870_v8 }
  0xc2   :  { %1547 = vrot.lane.b32.xlu0 %v12828_v2, %s12718_s20  ;;  %3143 = vmatpush1.msra.mxu1 %v2251_v42 }
  0xc3   :  { %1176 = vrot.lane.b32.xlu1 %v12889_v11, %s12719_s22  ;;  %3097 = vmatprep.subr.mxu0 %v12875_v9 }
  0xc4   :  { %v13173_v43 = vpop.permute.xlu0 %2169  ;;  %v2166_v45 = vpop.permute.xlu1 %2165  ;;  %3098 = vmatpush1.msra.mxu0 %v12889_v11 }
  0xc5   :  { %v2245_v46 = vsel %vm2229_vm2, %v2168_v41, %v13173_v43  ;;  %v2244_v47 = vsel %vm2229_vm2, %v2166_v45, %v2168_v41 }
  0xc6   :  { %1543 = vrot.lane.b32.xlu0 %v12819_v1, %s12718_s20  ;;  %3144 = vmatprep.subr.mxu1 %v2245_v46 }
  0xc7   :  { %939 = vrot.lane.b32.xlu1 %v12903_v13, %s12720_s23  ;;  %3145 = vmatpush1.msra.mxu1 %v2244_v47 }
  0xc8   :  { %v2152_v49 = vpop.permute.xlu0 %2151  ;;  %v13183_v50 = vpop.permute.xlu1 %2153 }
  0xc9   :  { %v2238_v51 = vsel %vm2229_vm2, %v2152_v49, %v13183_v50 }
  0xca   :  { %941 = vrot.lane.b32.xlu0 %v12898_v12, %s12720_s23  ;;  %3146 = vmatprep.subr.mxu1 %v2238_v51 }
  0xcb   :  { %1529 = vrot.lane.b32.xlu1 %v12833_v3, %s12718_s20 }
  0xcc   :  { %v2150_v52 = vpop.permute.xlu0 %2149  ;;  %v2136_v53 = vpop.permute.xlu1 %2135 }
  0xcd   :  { %v2237_v55 = vsel %vm2229_vm2, %v2150_v52, %v2152_v49 }
  0xce   :  { %1531 = vrot.lane.b32.xlu0 %v12842_v4, %s12718_s20  ;;  %3147 = vmatpush1.msra.mxu1 %v2237_v55 }
  0xcf   :  { %937 = vrot.lane.b32.xlu1 %v12912_v14, %s12720_s23 }
  0xd0   :  { %v13196_v56 = vpop.permute.xlu0 %2137  ;;  %v2134_v57 = vpop.permute.xlu1 %2133 }
  0xd1   :  { %v2231_v59 = vsel %vm2229_vm2, %v2136_v53, %v13196_v56  ;;  %v2230_v60 = vsel %vm2229_vm2, %v2134_v57, %v2136_v53 }
  0xd2   :  { %1527 = vrot.lane.b32.xlu0 %v12847_v5, %s12718_s20  ;;  %3148 = vmatprep.subr.mxu1 %v2231_v59 }
  0xd3   :  { %923 = vrot.lane.b32.xlu1 %v12917_v15, %s12720_s23  ;;  %3149 = vmatpush1.msra.mxu1 %v2230_v60 }
  0xd4   :  { %v1897_v61 = vpop.permute.xlu0 %1896  ;;  %v13205_v62 = vpop.permute.xlu1 %1898 }
  0xd5   :  { %v1947_v63 = vsel %vm1910_vm3, %v1897_v61, %v13205_v62 }
  0xd6   :  { %925 = vrot.lane.b32.xlu0 %v12926_v16, %s12720_s23  ;;  %3150 = vmatprep.subr.mxu1 %v1947_v63 }
  0xd7   :  { %2534 = vrot.lane.b32.xlu1 %v12903_v13, %s12721_s24 }
  0xd8   :  { %v1895_v19 = vpop.permute.xlu0 %1894  ;;  %v1514_v21 = vpop.permute.xlu1 %1513 }
  0xd9   :  { %v1946_v23 = vsel %vm1910_vm3, %v1895_v19, %v1897_v61 }
  0xda   :  { %2536 = vrot.lane.b32.xlu0 %v12898_v12, %s12721_s24  ;;  %3151 = vmatpush1.msra.mxu1 %v1946_v23 }
  0xdb   :  { %921 = vrot.lane.b32.xlu1 %v12931_v17, %s12720_s23 }
  0xdc   :  { %v13218_v25 = vpop.permute.xlu0 %1515  ;;  %v1881_v26 = vpop.permute.xlu1 %1880 }
  0xdd   :  { %v1600_v27 = vsel %vm1591_vm4, %v1514_v21, %v13218_v25 }
  0xde   :  { %2532 = vrot.lane.b32.xlu0 %v12912_v14, %s12721_s24  ;;  %3099 = vmatprep.subr.mxu0 %v1600_v27 }
  0xdf   :  { %907 = vrot.lane.b32.xlu1 %v12814_v0, %s12720_s23 }
  0xe0   :  { %v13226_v29 = vpop.permute.xlu0 %1882  ;;  %v1512_v30 = vpop.permute.xlu1 %1511 }
  0xe1   :  { %v1599_v32 = vsel %vm1591_vm4, %v1512_v30, %v1514_v21  ;;  %v1940_v33 = vsel %vm1910_vm3, %v1881_v26, %v13226_v29 }
  0xe2   :  { %909 = vrot.lane.b32.xlu0 %v12828_v2, %s12720_s23  ;;  %3100 = vmatpush2.msra.mxu0 %v1599_v32 }
  0xe3   :  { %2518 = vrot.lane.b32.xlu1 %v12917_v15, %s12721_s24  ;;  %3152 = vmatprep.subr.mxu1 %v1940_v33 }
  0xe4   :  { %v1879_v35 = vpop.permute.xlu0 %1878  ;;  %v1498_v36 = vpop.permute.xlu1 %1497 }
  0xe5   :  { %v1939_v39 = vsel %vm1910_vm3, %v1879_v35, %v1881_v26 }
  0xe6   :  { %2520 = vrot.lane.b32.xlu0 %v12926_v16, %s12721_s24  ;;  %3153 = vmatpush1.msra.mxu1 %v1939_v39 }
  0xe7   :  { %905 = vrot.lane.b32.xlu1 %v12819_v1, %s12720_s23 }
  0xe8   :  { %v13240_v40 = vpop.permute.xlu0 %1499  ;;  %v1865_v41 = vpop.permute.xlu1 %1864 }
  0xe9   :  { %v1593_v42 = vsel %vm1591_vm4, %v1498_v36, %v13240_v40 }
  0xea   :  { %2516 = vrot.lane.b32.xlu0 %v12931_v17, %s12721_s24  ;;  %3101 = vmatprep.subr.mxu0 %v1593_v42  ;;  %v13321_v42 = vld [vmem:[%s20320_s1 + $0x18] sm:$0xff] }
  0xeb   :  { %891 = vrot.lane.b32.xlu1 %v12833_v3, %s12720_s23  ;;  %11562 = vmatprep.mubr.msk.f32.mxu1 %vm3063_vm6, %v13321_v42 }
  0xec   :  { %v13248_v45 = vpop.permute.xlu0 %1866 }
  0xed   :  { %v1496_v46 = vpop.permute.xlu1 %1495  ;;  %v1933_v47 = vsel %vm1910_vm3, %v1865_v41, %v13248_v45 }
  0xee   :  { %893 = vrot.lane.b32.xlu0 %v12842_v4, %s12720_s23  ;;  %v1592_v49 = vsel %vm1591_vm4, %v1496_v46, %v1498_v36  ;;  %3154 = vmatprep.subr.mxu1 %v1933_v47 }
  0xef   :  { %2502 = vrot.lane.b32.xlu1 %v12814_v0, %s12721_s24  ;;  %3102 = vmatpush2.msra.mxu0 %v1592_v49 }
  0xf0   :  { %v1863_v51 = vpop.permute.xlu0 %1862 }
  0xf1   :  { %v1259_v52 = vpop.permute.xlu1 %1258  ;;  %v1932_v53 = vsel %vm1910_vm3, %v1863_v51, %v1865_v41 }
  0xf2   :  { %2504 = vrot.lane.b32.xlu0 %v12828_v2, %s12721_s24  ;;  %3155 = vmatpush1.msra.mxu1 %v1932_v53 }
  0xf3   :  { %889 = vrot.lane.b32.xlu1 %v12847_v5, %s12720_s23 }
  0xf4   :  { %v13262_v55 = vpop.permute.xlu0 %1260 }
  0xf5   :  { %v1849_v57 = vpop.permute.xlu1 %1848  ;;  %v1309_v59 = vsel %vm1272_vm5, %v1259_v52, %v13262_v55 }
  0xf6   :  { %2500 = vrot.lane.b32.xlu0 %v12819_v1, %s12721_s24  ;;  %3103 = vmatprep.subr.mxu0 %v1309_v59 }
  0xf7   :  { %875 = vrot.lane.b32.xlu1 %v12861_v7, %s12720_s23 }
  0xf8   :  { %v13270_v0 = vpop.permute.xlu0 %1850 }
  0xf9   :  { %v1257_v2 = vpop.permute.xlu1 %1256  ;;  %v1926_v60 = vsel %vm1910_vm3, %v1849_v57, %v13270_v0 }
  0xfa   :  { %877 = vrot.lane.b32.xlu0 %v12856_v6, %s12720_s23  ;;  %v1308_v61 = vsel %vm1272_vm5, %v1257_v2, %v1259_v52  ;;  %3156 = vmatprep.subr.mxu1 %v1926_v60 }
  0xfb   :  { %2486 = vrot.lane.b32.xlu1 %v12833_v3, %s12721_s24  ;;  %3104 = vmatpush2.msra.mxu0 %v1308_v61  ;;  %v13376_v61 = vld [vmem:[%s20319_s0 + $0x98] sm:$0xff] }
  0xfc   :  { %v1847_v1 = vpop.permute.xlu0 %1846 }
  0xfd   :  { %v1243_v63 = vpop.permute.xlu1 %1242  ;;  %v1925_v19 = vsel %vm1910_vm3, %v1847_v1, %v1849_v57  ;;  %v13360_v57 = vld [vmem:[%s20320_s1 + $0x8] sm:$0xff]  ;;  %v13383_v1 = vld [vmem:[%s20319_s0 + $0xa0] sm:$0xff] }
  0xfe   :  { %2488 = vrot.lane.b32.xlu0 %v12842_v4, %s12721_s24  ;;  %3157 = vmatpush1.msra.mxu1 %v1925_v19 }
  0xff   :  { %873 = vrot.lane.b32.xlu1 %v12870_v8, %s12720_s23  ;;  %3131 = vmatprep.mubr.f32.mxu0 %v13360_v57 }
 0x100   :  { %v13284_v21 = vpop.permute.xlu0 %1244 }
 0x101   :  { %v1833_v23 = vpop.permute.xlu1 %1832  ;;  %v1302_v26 = vsel %vm1272_vm5, %v1243_v63, %v13284_v21 }
 0x102   :  { %2484 = vrot.lane.b32.xlu0 %v12847_v5, %s12721_s24  ;;  %3105 = vmatprep.subr.mxu0 %v1302_v26 }
 0x103   :  { %859 = vrot.lane.b32.xlu1 %v12875_v9, %s12720_s23 }
 0x104   :  { %v13292_v3 = vpop.permute.xlu0 %1834 }
 0x105   :  { %v1241_v4 = vpop.permute.xlu1 %1240  ;;  %v1919_v27 = vsel %vm1910_vm3, %v1833_v23, %v13292_v3 }
 0x106   :  { %861 = vrot.lane.b32.xlu0 %v12884_v10, %s12720_s23  ;;  %v1301_v30 = vsel %vm1272_vm5, %v1241_v4, %v1243_v63  ;;  %3158 = vmatprep.subr.mxu1 %v1919_v27 }
 0x107   :  { %2470 = vrot.lane.b32.xlu1 %v12861_v7, %s12721_s24  ;;  %3106 = vmatpush2.msra.mxu0 %v1301_v30  ;;  %v13413_v30 = vld [vmem:[%s20319_s0 + $0x58] sm:$0xff] }
 0x108   :  { %v1831_v5 = vpop.permute.xlu0 %1830 }
 0x109   :  { %v1227_v32 = vpop.permute.xlu1 %1226  ;;  %v1918_v33 = vsel %vm1910_vm3, %v1831_v5, %v1833_v23  ;;  %v13401_v23 = vld [vmem:[%s20319_s0 + $0x160] sm:$0xff] }
 0x10a   :  { %2472 = vrot.lane.b32.xlu0 %v12856_v6, %s12721_s24  ;;  %3159 = vmatpush1.msra.mxu1 %v1918_v33 }
 0x10b   :  { %857 = vrot.lane.b32.xlu1 %v12889_v11, %s12720_s23 }
 0x10c   :  { %v13306_v35 = vpop.permute.xlu0 %1228 }
 0x10d   :  { %v1817_v36 = vpop.permute.xlu1 %1816  ;;  %v1295_v39 = vsel %vm1272_vm5, %v1227_v32, %v13306_v35 }
 0x10e   :  { %2468 = vrot.lane.b32.xlu0 %v12870_v8, %s12721_s24  ;;  %3107 = vmatprep.subr.mxu0 %v1295_v39  ;;  %v13428_v39 = vld [vmem:[%s20319_s0 + $0x118] sm:$0xff] }
 0x10f   :  { %620 = vrot.lane.b32.xlu1 %v12903_v13, %s12714_s21 }
 0x110   :  { %v13314_v7 = vpop.permute.xlu0 %1818 }
 0x111   :  { %v1225_v6 = vpop.permute.xlu1 %1224  ;;  %v1912_v41 = vsel %vm1910_vm3, %v1817_v36, %v13314_v7 }
 0x112   :  { %622 = vrot.lane.b32.xlu0 %v12898_v12, %s12714_s21  ;;  %v1294_v8 = vsel %vm1272_vm5, %v1225_v6, %v1227_v32  ;;  %3160 = vmatprep.subr.mxu1 %v1912_v41  ;;  %v13418_v32 = vld [vmem:[%s20319_s0 + $0x60] sm:$0xff] }
 0x113   :  { %2454 = vrot.lane.b32.xlu1 %v12875_v9, %s12721_s24  ;;  %3108 = vmatpush2.msra.mxu0 %v1294_v8  ;;  %v13340_v9 = vld [vmem:[%s20319_s0 + $0xd8] sm:$0xff]  ;;  %v13435_v41 = vld [vmem:[%s20319_s0 + $0x120] sm:$0xff] }
 0x114   :  { %v1815_v13 = vpop.permute.xlu0 %1814 }
 0x115   :  { %v1211_v46 = vpop.permute.xlu1 %1210  ;;  %v1911_v47 = vsel %vm1910_vm3, %v1815_v13, %v1817_v36 }
 0x116   :  { %2456 = vrot.lane.b32.xlu0 %v12884_v10, %s12721_s24  ;;  %3161 = vmatpush1.msra.mxu1 %v1911_v47  ;;  %v13351_v10 = vld [vmem:[%s20319_s0 + $0xe0] sm:$0xff] }
 0x117   :  { %618 = vrot.lane.b32.xlu1 %v12912_v14, %s12714_s21 }
 0x118   :  { %v13335_v12 = vpop.permute.xlu0 %1212 }
 0x119   :  { %v1578_v49 = vpop.permute.xlu1 %1577  ;;  %v1288_v51 = vsel %vm1272_vm5, %v1211_v46, %v13335_v12 }
 0x11a   :  { %2452 = vrot.lane.b32.xlu0 %v12889_v11, %s12721_s24  ;;  %3109 = vmatprep.subr.mxu0 %v1288_v51 }
 0x11b   :  { %592 = vrot.lane.b32.xlu1 %v13340_v9, %s12714_s21 }
 0x11c   :  { %v13353_v14 = vpop.permute.xlu0 %1579 }
 0x11d   :  { %v1209_v52 = vpop.permute.xlu1 %1208  ;;  %v1628_v53 = vsel %vm1591_vm4, %v1578_v49, %v13353_v14 }
 0x11e   :  { %594 = vrot.lane.b32.xlu0 %v13351_v10, %s12714_s21  ;;  %v1287_v11 = vsel %vm1272_vm5, %v1209_v52, %v1211_v46  ;;  %3162 = vmatprep.subr.mxu1 %v1628_v53  ;;  %v13446_v46 = vld [vmem:[%s20319_s0 + $0x18] sm:$0xff] }
 0x11f   :  { %604 = vrot.lane.b32.xlu1 %v12917_v15, %s12714_s21  ;;  %3110 = vmatpush2.msra.mxu0 %v1287_v11 }
 0x120   :  { %v1576_v59 = vpop.permute.xlu0 %1575 }
 0x121   :  { %v1195_v2 = vpop.permute.xlu1 %1194  ;;  %v1627_v60 = vsel %vm1591_vm4, %v1576_v59, %v1578_v49  ;;  %v13453_v49 = vld [vmem:[%s20319_s0 + $0x20] sm:$0xff] }
 0x122   :  { %606 = vrot.lane.b32.xlu0 %v12926_v16, %s12714_s21  ;;  %3163 = vmatpush1.msra.mxu1 %v1627_v60 }
 0x123   :  { %602 = vrot.lane.b32.xlu1 %v12931_v17, %s12714_s21  ;;  %v13394_v17 = vld [vmem:[%s20319_s0 + $0x158] sm:$0xff] }
 0x124   :  { %v13378_v15 = vpop.permute.xlu0 %1196 }
 0x125   :  { %v1562_v63 = vpop.permute.xlu1 %1561  ;;  %v1281_v16 = vsel %vm1272_vm5, %v1195_v2, %v13378_v15 }
 0x126   :  { %576 = vrot.lane.b32.xlu0 %v13376_v61, %s12714_s21  ;;  %3111 = vmatprep.subr.mxu0 %v1281_v16 }
 0x127   :  { %578 = vrot.lane.b32.xlu1 %v13383_v1, %s12714_s21 }
 0x128   :  { %v13396_v19 = vpop.permute.xlu0 %1563 }
 0x129   :  { %v1193_v26 = vpop.permute.xlu1 %1192  ;;  %v1621_v4 = vsel %vm1591_vm4, %v1562_v63, %v13396_v19 }
 0x12a   :  { %2219 = vrot.lane.b32.xlu0 %v13394_v17, %s12716_s18  ;;  %v1280_v27 = vsel %vm1272_vm5, %v1193_v26, %v1195_v2  ;;  %3164 = vmatprep.subr.mxu1 %v1621_v4 }
 0x12b   :  { %2221 = vrot.lane.b32.xlu1 %v13401_v23, %s12716_s18  ;;  %3112 = vmatpush2.msra.mxu0 %v1280_v27 }
 0x12c   :  { %v1560_v5 = vpop.permute.xlu0 %1559 }
 0x12d   :  { %v1179_v33 = vpop.permute.xlu1 %1178  ;;  %v1620_v36 = vsel %vm1591_vm4, %v1560_v5, %v1562_v63 }
 0x12e   :  { %560 = vrot.lane.b32.xlu0 %v13413_v30, %s12714_s21  ;;  %3165 = vmatpush1.msra.mxu1 %v1620_v36 }
 0x12f   :  { %562 = vrot.lane.b32.xlu1 %v13418_v32, %s12714_s21 }
 0x130   :  { %v13430_v6 = vpop.permute.xlu0 %1180 }
 0x131   :  { %v1546_v8 = vpop.permute.xlu1 %1545  ;;  %v1274_v13 = vsel %vm1272_vm5, %v1179_v33, %v13430_v6 }
 0x132   :  { %2203 = vrot.lane.b32.xlu0 %v13428_v39, %s12716_s18  ;;  %3113 = vmatprep.subr.mxu0 %v1274_v13 }
 0x133   :  { %2205 = vrot.lane.b32.xlu1 %v13435_v41, %s12716_s18 }
 0x134   :  { %v13448_v47 = vpop.permute.xlu0 %1547 }
 0x135   :  { %v1177_v51 = vpop.permute.xlu1 %1176  ;;  %v1614_v52 = vsel %vm1591_vm4, %v1546_v8, %v13448_v47 }
 0x136   :  { %544 = vrot.lane.b32.xlu0 %v13446_v46, %s12714_s21  ;;  %v1273_v53 = vsel %vm1272_vm5, %v1177_v51, %v1179_v33  ;;  %3166 = vmatprep.subr.mxu1 %v1614_v52 }
 0x137   :  { %546 = vrot.lane.b32.xlu1 %v13453_v49, %s12714_s21  ;;  %3114 = vmatpush2.msra.mxu0 %v1273_v53 }
 0x138   :  { %v1544_v11 = vpop.permute.xlu0 %1543 }
 0x139   :  { %v940_v59 = vpop.permute.xlu1 %939  ;;  %v1613_v2 = vsel %vm1591_vm4, %v1544_v11, %v1546_v8 }
 0x13a   :  { %2187 = vrot.lane.b32.xlu0 %v13340_v9, %s12716_s18  ;;  %3167 = vmatpush1.msra.mxu1 %v1613_v2 }
 0x13b   :  { %2189 = vrot.lane.b32.xlu1 %v13351_v10, %s12716_s18 }
 0x13c   :  { %v13467_v60 = vpop.permute.xlu0 %941 }
 0x13d   :  { %v1530_v63 = vpop.permute.xlu1 %1529  ;;  %v990_v16 = vsel %vm953_vm7, %v940_v59, %v13467_v60 }
 0x13e   :  { %305 = vrot.lane.b32.xlu0 %v13394_v17, %s12715_s28  ;;  %3115 = vmatprep.subr.mxu0 %v990_v16 }
 0x13f   :  { %307 = vrot.lane.b32.xlu1 %v13401_v23, %s12715_s28 }
 0x140   :  { %v13475_v26 = vpop.permute.xlu0 %1531 }
 0x141   :  { %v938_v4 = vpop.permute.xlu1 %937  ;;  %v1607_v27 = vsel %vm1591_vm4, %v1530_v63, %v13475_v26 }
 0x142   :  { %2171 = vrot.lane.b32.xlu0 %v13376_v61, %s12716_s18  ;;  %v989_v5 = vsel %vm953_vm7, %v938_v4, %v940_v59  ;;  %3168 = vmatprep.subr.mxu1 %v1607_v27 }
 0x143   :  { %2173 = vrot.lane.b32.xlu1 %v13383_v1, %s12716_s18  ;;  %3116 = vmatpush2.msra.mxu0 %v989_v5 }
 0x144   :  { %v1528_v33 = vpop.permute.xlu0 %1527 }
 0x145   :  { %v924_v36 = vpop.permute.xlu1 %923  ;;  %v1606_v8 = vsel %vm1591_vm4, %v1528_v33, %v1530_v63 }
 0x146   :  { %289 = vrot.lane.b32.xlu0 %v13428_v39, %s12715_s28  ;;  %3169 = vmatpush1.msra.mxu1 %v1606_v8 }
 0x147   :  { %291 = vrot.lane.b32.xlu1 %v13435_v41, %s12715_s28 }
 0x148   :  { %v13489_v13 = vpop.permute.xlu0 %925 }
 0x149   :  { %20374 = vst [vmem:[#allocation11_spill] sm:$0xff] %v13489_v13  ;;  %v2535_v51 = vpop.permute.xlu1 %2534  ;;  %v983_v52 = vsel %vm953_vm7, %v924_v36, %v13489_v13 }
 0x14a   :  { %2155 = vrot.lane.b32.xlu0 %v13413_v30, %s12716_s18  ;;  %3117 = vmatprep.subr.mxu0 %v983_v52 }
 0x14b   :  { %2157 = vrot.lane.b32.xlu1 %v13418_v32, %s12716_s18 }
 0x14c   :  { %v13497_v53 = vpop.permute.xlu0 %2536 }
 0x14d   :  { %v922_v11 = vpop.permute.xlu1 %921  ;;  %v2585_v59 = vsel %vm2548_vm8, %v2535_v51, %v13497_v53 }
 0x14e   :  { %273 = vrot.lane.b32.xlu0 %v13340_v9, %s12715_s28  ;;  %v982_v2 = vsel %vm953_vm7, %v922_v11, %v924_v36  ;;  %3190 = vmatprep.subr.mxu1 %v2585_v59 }
 0x14f   :  { %275 = vrot.lane.b32.xlu1 %v13351_v10, %s12715_s28  ;;  %3118 = vmatpush2.msra.mxu0 %v982_v2 }
 0x150   :  { %v2533_v63 = vpop.permute.xlu0 %2532 }
 0x151   :  { %v908_v16 = vpop.permute.xlu1 %907  ;;  %v2584_v4 = vsel %vm2548_vm8, %v2533_v63, %v2535_v51 }
 0x152   :  { %2139 = vrot.lane.b32.xlu0 %v13446_v46, %s12716_s18  ;;  %3191 = vmatpush2.msra.mxu1 %v2584_v4 }
 0x153   :  { %2141 = vrot.lane.b32.xlu1 %v13453_v49, %s12716_s18 }
 0x154   :  { %v13511_v27 = vpop.permute.xlu0 %909 }
 0x155   :  { %20375 = vst [vmem:[#allocation12_spill] sm:$0xff] %v13511_v27  ;;  %v2519_v5 = vpop.permute.xlu1 %2518  ;;  %v976_v33 = vsel %vm953_vm7, %v908_v16, %v13511_v27 }
 0x156   :  { %257 = vrot.lane.b32.xlu0 %v13376_v61, %s12715_s28  ;;  %3119 = vmatprep.subr.mxu0 %v976_v33 }
 0x157   :  { %259 = vrot.lane.b32.xlu1 %v13383_v1, %s12715_s28 }
 0x158   :  { %v13519_v36 = vpop.permute.xlu0 %2520 }
 0x159   :  { %v906_v8 = vpop.permute.xlu1 %905  ;;  %v2578_v51 = vsel %vm2548_vm8, %v2519_v5, %v13519_v36 }
 0x15a   :  { %1900 = vrot.lane.b32.xlu0 %v13394_v17, %s12717_s19  ;;  %v975_v52 = vsel %vm953_vm7, %v906_v8, %v908_v16  ;;  %3192 = vmatprep.subr.mxu1 %v2578_v51 }
 0x15b   :  { %1902 = vrot.lane.b32.xlu1 %v13401_v23, %s12717_s19  ;;  %3120 = vmatpush2.msra.mxu0 %v975_v52 }
 0x15c   :  { %v2517_v11 = vpop.permute.xlu0 %2516 }
 0x15d   :  { %v892_v59 = vpop.permute.xlu1 %891  ;;  %v2577_v2 = vsel %vm2548_vm8, %v2517_v11, %v2519_v5 }
 0x15e   :  { %241 = vrot.lane.b32.xlu0 %v13413_v30, %s12715_s28  ;;  %3193 = vmatpush2.msra.mxu1 %v2577_v2 }
 0x15f   :  { %243 = vrot.lane.b32.xlu1 %v13418_v32, %s12715_s28 }
 0x160   :  { %v13533_v63 = vpop.permute.xlu0 %893 }
 0x161   :  { %20376 = vst [vmem:[#allocation13_spill] sm:$0xff] %v13533_v63  ;;  %v2503_v4 = vpop.permute.xlu1 %2502  ;;  %v969_v16 = vsel %vm953_vm7, %v892_v59, %v13533_v63 }
 0x162   :  { %1884 = vrot.lane.b32.xlu0 %v13428_v39, %s12717_s19  ;;  %3121 = vmatprep.subr.mxu0 %v969_v16 }
 0x163   :  { %1886 = vrot.lane.b32.xlu1 %v13435_v41, %s12717_s19 }
 0x164   :  { %v13541_v5 = vpop.permute.xlu0 %2504 }
 0x165   :  { %v890_v33 = vpop.permute.xlu1 %889  ;;  %v2571_v8 = vsel %vm2548_vm8, %v2503_v4, %v13541_v5 }
 0x166   :  { %225 = vrot.lane.b32.xlu0 %v13446_v46, %s12715_s28  ;;  %v968_v51 = vsel %vm953_vm7, %v890_v33, %v892_v59  ;;  %3194 = vmatprep.subr.mxu1 %v2571_v8 }
 0x167   :  { %227 = vrot.lane.b32.xlu1 %v13453_v49, %s12715_s28  ;;  %3122 = vmatpush2.msra.mxu0 %v968_v51 }
 0x168   :  { %v2501_v52 = vpop.permute.xlu0 %2500 }
 0x169   :  { %v876_v11 = vpop.permute.xlu1 %875  ;;  %v2570_v2 = vsel %vm2548_vm8, %v2501_v52, %v2503_v4 }
 0x16a   :  { %1868 = vrot.lane.b32.xlu0 %v13340_v9, %s12717_s19  ;;  %3195 = vmatpush2.msra.mxu1 %v2570_v2 }
 0x16b   :  { %1870 = vrot.lane.b32.xlu1 %v13351_v10, %s12717_s19 }
 0x16c   :  { %v13555_v16 = vpop.permute.xlu0 %877 }
 0x16d   :  { %20377 = vst [vmem:[#allocation14_spill] sm:$0xff] %v13555_v16  ;;  %v2487_v63 = vpop.permute.xlu1 %2486  ;;  %v962_v59 = vsel %vm953_vm7, %v876_v11, %v13555_v16 }
 0x16e   :  { %1852 = vrot.lane.b32.xlu0 %v13376_v61, %s12717_s19  ;;  %3123 = vmatprep.subr.mxu0 %v962_v59 }
 0x16f   :  { %1854 = vrot.lane.b32.xlu1 %v13383_v1, %s12717_s19 }
 0x170   :  { %v13563_v4 = vpop.permute.xlu0 %2488 }
 0x171   :  { %v874_v33 = vpop.permute.xlu1 %873  ;;  %v2564_v8 = vsel %vm2548_vm8, %v2487_v63, %v13563_v4 }
 0x172   :  { %1836 = vrot.lane.b32.xlu0 %v13413_v30, %s12717_s19  ;;  %v961_v51 = vsel %vm953_vm7, %v874_v33, %v876_v11  ;;  %3196 = vmatprep.subr.mxu1 %v2564_v8 }
 0x173   :  { %1838 = vrot.lane.b32.xlu1 %v13418_v32, %s12717_s19  ;;  %3124 = vmatpush2.msra.mxu0 %v961_v51 }
 0x174   :  { %v2485_v52 = vpop.permute.xlu0 %2484 }
 0x175   :  { %v860_v2 = vpop.permute.xlu1 %859  ;;  %v2563_v59 = vsel %vm2548_vm8, %v2485_v52, %v2487_v63 }
 0x176   :  { %1820 = vrot.lane.b32.xlu0 %v13446_v46, %s12717_s19  ;;  %3197 = vmatpush2.msra.mxu1 %v2563_v59 }
 0x177   :  { %1822 = vrot.lane.b32.xlu1 %v13453_v49, %s12717_s19 }
 0x178   :  { %v13577_v16 = vpop.permute.xlu0 %861 }
 0x179   :  { %20378 = vst [vmem:[#allocation15_spill] sm:$0xff] %v13577_v16  ;;  %v2471_v27 = vpop.permute.xlu1 %2470  ;;  %v955_v11 = vsel %vm953_vm7, %v860_v2, %v13577_v16 }
 0x17a   :  { %1581 = vrot.lane.b32.xlu0 %v13394_v17, %s12718_s20  ;;  %3125 = vmatprep.subr.mxu0 %v955_v11 }
 0x17b   :  { %1583 = vrot.lane.b32.xlu1 %v13401_v23, %s12718_s20 }
 0x17c   :  { %v13585_v63 = vpop.permute.xlu0 %2472 }
 0x17d   :  { %v858_v33 = vpop.permute.xlu1 %857  ;;  %v2557_v8 = vsel %vm2548_vm8, %v2471_v27, %v13585_v63 }
 0x17e   :  { %1565 = vrot.lane.b32.xlu0 %v13428_v39, %s12718_s20  ;;  %v954_v51 = vsel %vm953_vm7, %v858_v33, %v860_v2  ;;  %3198 = vmatprep.subr.mxu1 %v2557_v8 }
 0x17f   :  { %1567 = vrot.lane.b32.xlu1 %v13435_v41, %s12718_s20  ;;  %3126 = vmatpush2.msra.mxu0 %v954_v51 }
 0x180   :  { %v2469_v52 = vpop.permute.xlu0 %2468 }
 0x181   :  { %v621_v59 = vpop.permute.xlu1 %620  ;;  %v2556_v11 = vsel %vm2548_vm8, %v2469_v52, %v2471_v27 }
 0x182   :  { %1549 = vrot.lane.b32.xlu0 %v13340_v9, %s12718_s20  ;;  %3199 = vmatpush2.msra.mxu1 %v2556_v11  ;;  %v13619_v11 = vld [vmem:[%s20320_s1 + $0x10] sm:$0xff] }
 0x183   :  { %1551 = vrot.lane.b32.xlu1 %v13351_v10, %s12718_s20 }
 0x184   :  { %v13599_v16 = vpop.permute.xlu0 %622 }
 0x185   :  { %20379 = vst [vmem:[#allocation16_spill] sm:$0xff] %v13599_v16  ;;  %v2455_v13 = vpop.permute.xlu1 %2454  ;;  %v671_v2 = vsel %vm634_vm0, %v621_v59, %v13599_v16 }
 0x186   :  { %1517 = vrot.lane.b32.xlu0 %v13413_v30, %s12718_s20  ;;  %3127 = vmatprep.subr.mxu0 %v671_v2 }
 0x187   :  { %1519 = vrot.lane.b32.xlu1 %v13418_v32, %s12718_s20 }
 0x188   :  { %v13607_v27 = vpop.permute.xlu0 %2456 }
 0x189   :  { %v619_v33 = vpop.permute.xlu1 %618  ;;  %v2550_v8 = vsel %vm2548_vm8, %v2455_v13, %v13607_v27 }
 0x18a   :  { %1533 = vrot.lane.b32.xlu0 %v13376_v61, %s12718_s20  ;;  %v670_v51 = vsel %vm634_vm0, %v619_v33, %v621_v59  ;;  %3200 = vmatprep.subr.mxu1 %v2550_v8 }
 0x18b   :  { %1535 = vrot.lane.b32.xlu1 %v13383_v1, %s12718_s20  ;;  %3128 = vmatpush2.msra.mxu0 %v670_v51 }
 0x18c   :  { %v2453_v52 = vpop.permute.xlu0 %2452 }
 0x18d   :  { %v593_v2 = vpop.permute.xlu1 %592  ;;  %v2549_v16 = vsel %vm2548_vm8, %v2453_v52, %v2455_v13  ;;  %v13645_v52 = vld [vmem:[%s20320_s1] sm:$0xff] }
 0x18e   :  { %1501 = vrot.lane.b32.xlu0 %v13446_v46, %s12718_s20  ;;  %3201 = vmatpush2.msra.mxu1 %v2549_v16  ;;  %v658_v13 = vsel %vm634_vm0, %v13021_v20, %v593_v2 }
 0x18f   :  { %1503 = vrot.lane.b32.xlu1 %v13453_v49, %s12718_s20  ;;  %3203 = vmatmul.mubr.f32.vlgmr.msra.gmra.mxu1 %v13619_v11 }
 0x190   :  { %v13627_v59 = vpop.permute.xlu0 %594  ;;  %3273 = vmatprep.mubr.f32.mxu1 %v13360_v57 }
 0x191   :  { %v605_v33 = vpop.permute.xlu1 %604  ;;  %v659_v8 = vsel %vm634_vm0, %v593_v2, %v13627_v59 }
 0x192   :  { %2538 = vrot.lane.b32.xlu0 %v13394_v17, %s12721_s24  ;;  %3209 = vmatprep.subr.mxu1 %v659_v8 }
 0x193   :  { %2540 = vrot.lane.b32.xlu1 %v13401_v23, %s12721_s24  ;;  %3210 = vmatpush1.msra.mxu1 %v658_v13 }
 0x194   :  { %v13638_v16 = vpop.permute.xlu0 %606 }
 0x195   :  { %v603_v51 = vpop.permute.xlu1 %602  ;;  %v664_v57 = vsel %vm634_vm0, %v605_v33, %v13638_v16 }
 0x196   :  { %1262 = vrot.lane.b32.xlu0 %v13394_v17, %s12719_s22  ;;  %3129 = vmatprep.subr.mxu0 %v664_v57  ;;  %v663_v20 = vsel %vm634_vm0, %v603_v51, %v605_v33 }
 0x197   :  { %1264 = vrot.lane.b32.xlu1 %v13401_v23, %s12719_s22  ;;  %3130 = vmatpush2.msra.mxu0 %v663_v20 }
 0x198   :  { %v577_v2 = vpop.permute.xlu0 %576  ;;  %3132 = vmatmul.mubr.f32.vlgmr.msra.gmra.mxu0 %v13645_v52 }
 0x199   :  { %v13653_v8 = vpop.permute.xlu1 %578  ;;  %v651_v13 = vsel %vm634_vm0, %v13030_v24, %v577_v2  ;;  %11563 = vmatprep.mubr.msk.f32.mxu0 %vm3063_vm6, %v13321_v42 }
 0x19a   :  { %2522 = vrot.lane.b32.xlu0 %v13428_v39, %s12721_s24  ;;  %v652_v33 = vsel %vm634_vm0, %v577_v2, %v13653_v8 }
 0x19b   :  { %2524 = vrot.lane.b32.xlu1 %v13435_v41, %s12721_s24  ;;  %3211 = vmatprep.subr.mxu1 %v652_v33 }
 0x19c   :  { %3212 = vmatpush1.msra.mxu1 %v651_v13  ;;  %v2220_v51 = vpop.permute.xlu0 %2219 }
 0x19d   :  { %v13665_v57 = vpop.permute.xlu1 %2221  ;;  %v2267_v24 = vsel %vm2229_vm2, %v13126_v22, %v2220_v51 }
 0x19e   :  { %1246 = vrot.lane.b32.xlu0 %v13428_v39, %s12719_s22  ;;  %v2268_v42 = vsel %vm2229_vm2, %v2220_v51, %v13665_v57 }
 0x19f   :  { %1248 = vrot.lane.b32.xlu1 %v13435_v41, %s12719_s22  ;;  %3280 = vmatprep.subr.mxu0 %v2268_v42 }
 0x1a0   :  { %3281 = vmatpush1.msra.mxu0 %v2267_v24  ;;  %v561_v20 = vpop.permute.xlu0 %560 }
 0x1a1   :  { %v13675_v2 = vpop.permute.xlu1 %562  ;;  %v644_v13 = vsel %vm634_vm0, %v13039_v28, %v561_v20 }
 0x1a2   :  { %2506 = vrot.lane.b32.xlu0 %v13340_v9, %s12721_s24  ;;  %v645_v22 = vsel %vm634_vm0, %v561_v20, %v13675_v2 }
 0x1a3   :  { %2508 = vrot.lane.b32.xlu1 %v13351_v10, %s12721_s24  ;;  %3213 = vmatprep.subr.mxu1 %v645_v22 }
 0x1a4   :  { %3214 = vmatpush1.msra.mxu1 %v644_v13  ;;  %v2204_v33 = vpop.permute.xlu0 %2203 }
 0x1a5   :  { %v13685_v51 = vpop.permute.xlu1 %2205  ;;  %v2260_v24 = vsel %vm2229_vm2, %v13143_v31, %v2204_v33 }
 0x1a6   :  { %1230 = vrot.lane.b32.xlu0 %v13340_v9, %s12719_s22  ;;  %v2261_v28 = vsel %vm2229_vm2, %v2204_v33, %v13685_v51 }
 0x1a7   :  { %1232 = vrot.lane.b32.xlu1 %v13351_v10, %s12719_s22  ;;  %3282 = vmatprep.subr.mxu0 %v2261_v28 }
 0x1a8   :  { %3283 = vmatpush1.msra.mxu0 %v2260_v24  ;;  %v545_v42 = vpop.permute.xlu0 %544 }
 0x1a9   :  { %v13695_v20 = vpop.permute.xlu1 %546  ;;  %v637_v13 = vsel %vm634_vm0, %v13052_v34, %v545_v42 }
 0x1aa   :  { %2490 = vrot.lane.b32.xlu0 %v13376_v61, %s12721_s24  ;;  %v638_v31 = vsel %vm634_vm0, %v545_v42, %v13695_v20 }
 0x1ab   :  { %2492 = vrot.lane.b32.xlu1 %v13383_v1, %s12721_s24  ;;  %3215 = vmatprep.subr.mxu1 %v638_v31 }
 0x1ac   :  { %3216 = vmatpush1.msra.mxu1 %v637_v13  ;;  %v2188_v22 = vpop.permute.xlu0 %2187 }
 0x1ad   :  { %v13705_v33 = vpop.permute.xlu1 %2189  ;;  %v2253_v24 = vsel %vm2229_vm2, %v13154_v37, %v2188_v22 }
 0x1ae   :  { %20380 = vst [vmem:[#allocation17_spill] sm:$0xff] %v13705_v33  ;;  %1214 = vrot.lane.b32.xlu0 %v13376_v61, %s12719_s22  ;;  %v2254_v34 = vsel %vm2229_vm2, %v2188_v22, %v13705_v33 }
 0x1af   :  { %1216 = vrot.lane.b32.xlu1 %v13383_v1, %s12719_s22  ;;  %3284 = vmatprep.subr.mxu0 %v2254_v34 }
 0x1b0   :  { %3285 = vmatpush1.msra.mxu0 %v2253_v24  ;;  %v306_v28 = vpop.permute.xlu0 %305 }
 0x1b1   :  { %v13715_v42 = vpop.permute.xlu1 %307  ;;  %v353_v13 = vsel %vm315_vm1, %v13061_v38, %v306_v28 }
 0x1b2   :  { %2474 = vrot.lane.b32.xlu0 %v13413_v30, %s12721_s24  ;;  %v354_v37 = vsel %vm315_vm1, %v306_v28, %v13715_v42 }
 0x1b3   :  { %2476 = vrot.lane.b32.xlu1 %v13418_v32, %s12721_s24  ;;  %3217 = vmatprep.subr.mxu1 %v354_v37  ;;  %v13748_v37 = vld [vmem:[%s20319_s0 + $0xe8] sm:$0xff] }
 0x1b4   :  { %3218 = vmatpush1.msra.mxu1 %v353_v13  ;;  %v2172_v31 = vpop.permute.xlu0 %2171 }
 0x1b5   :  { %v13725_v22 = vpop.permute.xlu1 %2173  ;;  %v2246_v24 = vsel %vm2229_vm2, %v13173_v43, %v2172_v31 }
 0x1b6   :  { %20381 = vst [vmem:[#allocation18_spill] sm:$0xff] %v13725_v22  ;;  %1198 = vrot.lane.b32.xlu0 %v13413_v30, %s12719_s22  ;;  %v2247_v38 = vsel %vm2229_vm2, %v2172_v31, %v13725_v22 }
 0x1b7   :  { %1200 = vrot.lane.b32.xlu1 %v13418_v32, %s12719_s22  ;;  %3286 = vmatprep.subr.mxu0 %v2247_v38 }
 0x1b8   :  { %3287 = vmatpush1.msra.mxu0 %v2246_v24  ;;  %v290_v34 = vpop.permute.xlu0 %289 }
 0x1b9   :  { %v13735_v28 = vpop.permute.xlu1 %291  ;;  %v346_v13 = vsel %vm315_vm1, %v13074_v44, %v290_v34  ;;  %v13753_v44 = vld [vmem:[%s20319_s0 + $0xf0] sm:$0xff] }
 0x1ba   :  { %2458 = vrot.lane.b32.xlu0 %v13446_v46, %s12721_s24  ;;  %v347_v43 = vsel %vm315_vm1, %v290_v34, %v13735_v28 }
 0x1bb   :  { %2460 = vrot.lane.b32.xlu1 %v13453_v49, %s12721_s24  ;;  %3219 = vmatprep.subr.mxu1 %v347_v43 }
 0x1bc   :  { %3220 = vmatpush1.msra.mxu1 %v346_v13  ;;  %v2156_v31 = vpop.permute.xlu0 %2155 }
 0x1bd   :  { %v13755_v24 = vpop.permute.xlu1 %2157  ;;  %v2239_v38 = vsel %vm2229_vm2, %v13183_v50, %v2156_v31 }
 0x1be   :  { %20382 = vst [vmem:[#allocation19_spill] sm:$0xff] %v13755_v24  ;;  %596 = vrot.lane.b32.xlu0 %v13748_v37, %s12714_s21  ;;  %v2240_v34 = vsel %vm2229_vm2, %v2156_v31, %v13755_v24  ;;  %v13778_v31 = vld [vmem:[%s20319_s0 + $0xa8] sm:$0xff] }
 0x1bf   :  { %598 = vrot.lane.b32.xlu1 %v13753_v44, %s12714_s21  ;;  %3288 = vmatprep.subr.mxu0 %v2240_v34 }
 0x1c0   :  { %3289 = vmatpush1.msra.mxu0 %v2239_v38  ;;  %v274_v13 = vpop.permute.xlu0 %273 }
 0x1c1   :  { %v13765_v43 = vpop.permute.xlu1 %275  ;;  %v339_v22 = vsel %vm315_vm1, %v13083_v48, %v274_v13  ;;  %v13783_v48 = vld [vmem:[%s20319_s0 + $0xb0] sm:$0xff] }
 0x1c2   :  { %1182 = vrot.lane.b32.xlu0 %v13446_v46, %s12719_s22  ;;  %v340_v50 = vsel %vm315_vm1, %v274_v13, %v13765_v43 }
 0x1c3   :  { %1184 = vrot.lane.b32.xlu1 %v13453_v49, %s12719_s22  ;;  %3221 = vmatprep.subr.mxu1 %v340_v50 }
 0x1c4   :  { %3222 = vmatpush1.msra.mxu1 %v339_v22  ;;  %v2140_v38 = vpop.permute.xlu0 %2139 }
 0x1c5   :  { %v13785_v34 = vpop.permute.xlu1 %2141  ;;  %v2232_v13 = vsel %vm2229_vm2, %v13196_v56, %v2140_v38 }
 0x1c6   :  { %20383 = vst [vmem:[#allocation20_spill] sm:$0xff] %v13785_v34  ;;  %580 = vrot.lane.b32.xlu0 %v13778_v31, %s12714_s21  ;;  %v2233_v50 = vsel %vm2229_vm2, %v2140_v38, %v13785_v34  ;;  %v13808_v38 = vld [vmem:[%s20319_s0 + $0x68] sm:$0xff] }
 0x1c7   :  { %582 = vrot.lane.b32.xlu1 %v13783_v48, %s12714_s21  ;;  %3290 = vmatprep.subr.mxu0 %v2233_v50 }
 0x1c8   :  { %3291 = vmatpush1.msra.mxu0 %v2232_v13  ;;  %v258_v22 = vpop.permute.xlu0 %257 }
 0x1c9   :  { %v13795_v24 = vpop.permute.xlu1 %259  ;;  %v332_v33 = vsel %vm315_vm1, %v13096_v54, %v258_v22  ;;  %v13813_v54 = vld [vmem:[%s20319_s0 + $0x70] sm:$0xff] }
 0x1ca   :  { %943 = vrot.lane.b32.xlu0 %v13394_v17, %s12720_s23  ;;  %v333_v56 = vsel %vm315_vm1, %v258_v22, %v13795_v24 }
 0x1cb   :  { %945 = vrot.lane.b32.xlu1 %v13401_v23, %s12720_s23  ;;  %3223 = vmatprep.subr.mxu1 %v333_v56 }
 0x1cc   :  { %3224 = vmatpush1.msra.mxu1 %v332_v33  ;;  %v1901_v13 = vpop.permute.xlu0 %1900 }
 0x1cd   :  { %v13815_v50 = vpop.permute.xlu1 %1902  ;;  %v1948_v22 = vsel %vm1910_vm3, %v13205_v62, %v1901_v13 }
 0x1ce   :  { %20384 = vst [vmem:[#allocation21_spill] sm:$0xff] %v13815_v50  ;;  %564 = vrot.lane.b32.xlu0 %v13808_v38, %s12714_s21  ;;  %v1949_v23 = vsel %vm1910_vm3, %v1901_v13, %v13815_v50  ;;  %v13838_v13 = vld [vmem:[%s20319_s0 + $0x28] sm:$0xff] }
 0x1cf   :  { %566 = vrot.lane.b32.xlu1 %v13813_v54, %s12714_s21  ;;  %3292 = vmatprep.subr.mxu0 %v1949_v23 }
 0x1d0   :  { %3293 = vmatpush1.msra.mxu0 %v1948_v22  ;;  %v242_v33 = vpop.permute.xlu0 %241 }
 0x1d1   :  { %v13825_v56 = vpop.permute.xlu1 %243  ;;  %v325_v34 = vsel %vm315_vm1, %v13105_v58, %v242_v33  ;;  %v13843_v58 = vld [vmem:[%s20319_s0 + $0x30] sm:$0xff] }
 0x1d2   :  { %927 = vrot.lane.b32.xlu0 %v13428_v39, %s12720_s23  ;;  %v326_v62 = vsel %vm315_vm1, %v242_v33, %v13825_v56 }
 0x1d3   :  { %929 = vrot.lane.b32.xlu1 %v13435_v41, %s12720_s23  ;;  %3225 = vmatprep.subr.mxu1 %v326_v62 }
 0x1d4   :  { %3226 = vmatpush1.msra.mxu1 %v325_v34  ;;  %v1885_v22 = vpop.permute.xlu0 %1884 }
 0x1d5   :  { %v13845_v23 = vpop.permute.xlu1 %1886  ;;  %v1941_v33 = vsel %vm1910_vm3, %v13226_v29, %v1885_v22 }
 0x1d6   :  { %548 = vrot.lane.b32.xlu0 %v13838_v13, %s12714_s21  ;;  %v1942_v41 = vsel %vm1910_vm3, %v1885_v22, %v13845_v23  ;;  %v13868_v22 = vld [vmem:[%s20319_s0 + $0x168] sm:$0xff] }
 0x1d7   :  { %550 = vrot.lane.b32.xlu1 %v13843_v58, %s12714_s21  ;;  %3294 = vmatprep.subr.mxu0 %v1942_v41 }
 0x1d8   :  { %3295 = vmatpush1.msra.mxu0 %v1941_v33  ;;  %v226_v34 = vpop.permute.xlu0 %225  ;;  %v76_v33 = vld [vmem:[%s20319_s0 + $0x150] sm:$0xff] }
 0x1d9   :  { %v13855_v62 = vpop.permute.xlu1 %227  ;;  %v318_v50 = vsel %vm315_vm1, %v13118_v18, %v226_v34 }
 0x1da   :  { %911 = vrot.lane.b32.xlu0 %v13340_v9, %s12720_s23  ;;  %v319_v29 = vsel %vm315_vm1, %v226_v34, %v13855_v62  ;;  %v13876_v9 = vld [vmem:[%s20319_s0 + $0x170] sm:$0xff] }
 0x1db   :  { %913 = vrot.lane.b32.xlu1 %v13351_v10, %s12720_s23  ;;  %3227 = vmatprep.subr.mxu1 %v319_v29 }
 0x1dc   :  { %3228 = vmatpush1.msra.mxu1 %v318_v50  ;;  %v1869_v18 = vpop.permute.xlu0 %1868  ;;  %v69_v50 = vld [vmem:[%s20319_s0 + $0x110] sm:$0xff] }
 0x1dd   :  { %v13878_v41 = vpop.permute.xlu1 %1870  ;;  %v1934_v10 = vsel %vm1910_vm3, %v13248_v45, %v1869_v18  ;;  %3229 = vmatprep.subr.mxu1 %v13394_v17  ;;  %v63_v45 = vld [vmem:[%s20319_s0 + $0xd8] sm:$0xff] }
 0x1de   :  { %309 = vrot.lane.b32.xlu0 %v13868_v22, %s12715_s28  ;;  %v1935_v34 = vsel %vm1910_vm3, %v1869_v18, %v13878_v41  ;;  %3230 = vmatpush1.msra.mxu1 %v76_v33  ;;  %v62_v18 = vld [vmem:[%s20319_s0 + $0xd0] sm:$0xff] }
 0x1df   :  { %311 = vrot.lane.b32.xlu1 %v13876_v9, %s12715_s28  ;;  %3296 = vmatprep.subr.mxu0 %v1935_v34 }
 0x1e0   :  { %3297 = vmatpush1.msra.mxu0 %v1934_v10  ;;  %v1853_v17 = vpop.permute.xlu0 %1852  ;;  %3231 = vmatprep.subr.mxu1 %v13428_v39  ;;  %v55_v39 = vld [vmem:[%s20319_s0 + $0x90] sm:$0xff] }
 0x1e1   :  { %v13896_v29 = vpop.permute.xlu1 %1854  ;;  %v1927_v33 = vsel %vm1910_vm3, %v13270_v0, %v1853_v17  ;;  %3232 = vmatpush1.msra.mxu1 %v69_v50  ;;  %v13912_v0 = vld [vmem:[%s20319_s0 + $0x128] sm:$0xff]  ;;  %v13920_v50 = vld [vmem:[%s20319_s0 + $0x130] sm:$0xff] }
 0x1e2   :  { %895 = vrot.lane.b32.xlu0 %v13376_v61, %s12720_s23  ;;  %v1928_v34 = vsel %vm1910_vm3, %v1853_v17, %v13896_v29  ;;  %3233 = vmatprep.subr.mxu1 %v63_v45 }
 0x1e3   :  { %897 = vrot.lane.b32.xlu1 %v13383_v1, %s12720_s23  ;;  %3298 = vmatprep.subr.mxu0 %v1928_v34  ;;  %v41_v34 = vld [vmem:[%s20319_s0 + $0x10] sm:$0xff] }
 0x1e4   :  { %3299 = vmatpush1.msra.mxu0 %v1927_v33  ;;  %v1837_v10 = vpop.permute.xlu0 %1836  ;;  %3234 = vmatpush1.msra.mxu1 %v62_v18  ;;  %v48_v33 = vld [vmem:[%s20319_s0 + $0x50] sm:$0xff] }
 0x1e5   :  { %v13922_v45 = vpop.permute.xlu1 %1838  ;;  %v1920_v1 = vsel %vm1910_vm3, %v13292_v3, %v1837_v10  ;;  %3235 = vmatprep.subr.mxu1 %v13376_v61 }
 0x1e6   :  { %293 = vrot.lane.b32.xlu0 %v13912_v0, %s12715_s28  ;;  %v1921_v17 = vsel %vm1910_vm3, %v1837_v10, %v13922_v45  ;;  %3236 = vmatpush1.msra.mxu1 %v55_v39 }
 0x1e7   :  { %295 = vrot.lane.b32.xlu1 %v13920_v50, %s12715_s28  ;;  %3300 = vmatprep.subr.mxu0 %v1921_v17 }
 0x1e8   :  { %3301 = vmatpush1.msra.mxu0 %v1920_v1  ;;  %v1821_v18 = vpop.permute.xlu0 %1820  ;;  %3237 = vmatprep.subr.mxu1 %v13413_v30 }
 0x1e9   :  { %v13937_v3 = vpop.permute.xlu1 %1822  ;;  %v1913_v61 = vsel %vm1910_vm3, %v13314_v7, %v1821_v18  ;;  %3238 = vmatpush1.msra.mxu1 %v48_v33 }
 0x1ea   :  { %879 = vrot.lane.b32.xlu0 %v13413_v30, %s12720_s23  ;;  %v1914_v39 = vsel %vm1910_vm3, %v1821_v18, %v13937_v3  ;;  %3239 = vmatprep.subr.mxu1 %v13446_v46 }
 0x1eb   :  { %881 = vrot.lane.b32.xlu1 %v13418_v32, %s12720_s23  ;;  %3302 = vmatprep.subr.mxu0 %v1914_v39 }
 0x1ec   :  { %3303 = vmatpush1.msra.mxu0 %v1913_v61  ;;  %v1582_v10 = vpop.permute.xlu0 %1581  ;;  %3240 = vmatpush1.msra.mxu1 %v41_v34 }
 0x1ed   :  { %v13951_v7 = vpop.permute.xlu1 %1583  ;;  %v1629_v1 = vsel %vm1591_vm4, %v13353_v14, %v1582_v10 }
 0x1ee   :  { %277 = vrot.lane.b32.xlu0 %v13748_v37, %s12715_s28  ;;  %v1630_v30 = vsel %vm1591_vm4, %v1582_v10, %v13951_v7 }
 0x1ef   :  { %279 = vrot.lane.b32.xlu1 %v13753_v44, %s12715_s28  ;;  %3304 = vmatprep.subr.mxu0 %v1630_v30 }
 0x1f0   :  { %3305 = vmatpush1.msra.mxu0 %v1629_v1  ;;  %v1566_v32 = vpop.permute.xlu0 %1565 }
 0x1f1   :  { %v13961_v17 = vpop.permute.xlu1 %1567  ;;  %v1622_v33 = vsel %vm1591_vm4, %v13396_v19, %v1566_v32 }
 0x1f2   :  { %863 = vrot.lane.b32.xlu0 %v13446_v46, %s12720_s23  ;;  %v1623_v14 = vsel %vm1591_vm4, %v1566_v32, %v13961_v17  ;;  %v485_v46 = vld [vmem:[%s20319_s0 + $0x158] sm:$0xff] }
 0x1f3   :  { %865 = vrot.lane.b32.xlu1 %v13453_v49, %s12720_s23  ;;  %3306 = vmatprep.subr.mxu0 %v1623_v14  ;;  %v477_v14 = vld [vmem:[%s20319_s0 + $0x118] sm:$0xff] }
 0x1f4   :  { %3307 = vmatpush1.msra.mxu0 %v1622_v33  ;;  %v1550_v18 = vpop.permute.xlu0 %1549 }
 0x1f5   :  { %v13971_v61 = vpop.permute.xlu1 %1551  ;;  %v1615_v34 = vsel %vm1591_vm4, %v13448_v47, %v1550_v18  ;;  %v13987_v47 = vld [vmem:[%s20319_s0 + $0x160] sm:$0xff] }
 0x1f6   :  { %261 = vrot.lane.b32.xlu0 %v13778_v31, %s12715_s28  ;;  %v1616_v19 = vsel %vm1591_vm4, %v1550_v18, %v13971_v61 }
 0x1f7   :  { %263 = vrot.lane.b32.xlu1 %v13783_v48, %s12715_s28  ;;  %3308 = vmatprep.subr.mxu0 %v1616_v19 }
 0x1f8   :  { %3309 = vmatpush1.msra.mxu0 %v1615_v34  ;;  %v1518_v49 = vpop.permute.xlu0 %1517 }
 0x1f9   :  { %v13989_v39 = vpop.permute.xlu1 %1519  ;;  %v1601_v10 = vsel %vm1591_vm4, %v13218_v25, %v1518_v49 }
 0x1fa   :  { %624 = vrot.lane.b32.xlu0 %v485_v46, %s12714_s21  ;;  %v1602_v1 = vsel %vm1591_vm4, %v1518_v49, %v13989_v39 }
 0x1fb   :  { %626 = vrot.lane.b32.xlu1 %v13987_v47, %s12714_s21  ;;  %3241 = vmatprep.subr.mxu1 %v1602_v1 }
 0x1fc   :  { %3242 = vmatpush2.msra.mxu1 %v1601_v10  ;;  %v1534_v30 = vpop.permute.xlu0 %1533 }
 0x1fd   :  { %v13998_v32 = vpop.permute.xlu1 %1535  ;;  %v1608_v33 = vsel %vm1591_vm4, %v13475_v26, %v1534_v30  ;;  %v14014_v26 = vld [vmem:[%s20319_s0 + $0x120] sm:$0xff] }
 0x1fe   :  { %245 = vrot.lane.b32.xlu0 %v13808_v38, %s12715_s28  ;;  %v1609_v25 = vsel %vm1591_vm4, %v1534_v30, %v13998_v32 }
 0x1ff   :  { %247 = vrot.lane.b32.xlu1 %v13813_v54, %s12715_s28  ;;  %3310 = vmatprep.subr.mxu0 %v1609_v25 }
 0x200   :  { %3311 = vmatpush1.msra.mxu0 %v1608_v33  ;;  %v1502_v18 = vpop.permute.xlu0 %1501 }
 0x201   :  { %v14016_v34 = vpop.permute.xlu1 %1503  ;;  %v1594_v19 = vsel %vm1591_vm4, %v13240_v40, %v1502_v18 }
 0x202   :  { %608 = vrot.lane.b32.xlu0 %v477_v14, %s12714_s21  ;;  %v1595_v46 = vsel %vm1591_vm4, %v1502_v18, %v14016_v34 }
 0x203   :  { %610 = vrot.lane.b32.xlu1 %v14014_v26, %s12714_s21  ;;  %3243 = vmatprep.subr.mxu1 %v1595_v46 }
 0x204   :  { %3244 = vmatpush2.msra.mxu1 %v1594_v19  ;;  %v2539_v49 = vpop.permute.xlu0 %2538 }
 0x205   :  { %v14025_v10 = vpop.permute.xlu1 %2540  ;;  %v2586_v1 = vsel %vm2548_vm8, %v13497_v53, %v2539_v49 }
 0x206   :  { %229 = vrot.lane.b32.xlu0 %v13838_v13, %s12715_s28  ;;  %v2587_v40 = vsel %vm2548_vm8, %v2539_v49, %v14025_v10 }
 0x207   :  { %231 = vrot.lane.b32.xlu1 %v13843_v58, %s12715_s28  ;;  %3332 = vmatprep.subr.mxu0 %v2587_v40 }
 0x208   :  { %3333 = vmatpush2.msra.mxu0 %v2586_v1  ;;  %v1263_v30 = vpop.permute.xlu0 %1262 }
 0x209   :  { %v14035_v33 = vpop.permute.xlu1 %1264  ;;  %v1310_v25 = vsel %vm1272_vm5, %v13262_v55, %v1263_v30 }
 0x20a   :  { %2223 = vrot.lane.b32.xlu0 %v13868_v22, %s12716_s18  ;;  %v1311_v53 = vsel %vm1272_vm5, %v1263_v30, %v14035_v33 }
 0x20b   :  { %2225 = vrot.lane.b32.xlu1 %v13876_v9, %s12716_s18  ;;  %3245 = vmatprep.subr.mxu1 %v1311_v53 }
 0x20c   :  { %3246 = vmatpush2.msra.mxu1 %v1310_v25  ;;  %v2523_v14 = vpop.permute.xlu0 %2522 }
 0x20d   :  { %v14045_v18 = vpop.permute.xlu1 %2524  ;;  %v2579_v19 = vsel %vm2548_vm8, %v13519_v36, %v2523_v14 }
 0x20e   :  { %2207 = vrot.lane.b32.xlu0 %v13912_v0, %s12716_s18  ;;  %v2580_v55 = vsel %vm2548_vm8, %v2523_v14, %v14045_v18 }
 0x20f   :  { %2209 = vrot.lane.b32.xlu1 %v13920_v50, %s12716_s18  ;;  %3334 = vmatprep.subr.mxu0 %v2580_v55 }
 0x210   :  { %3335 = vmatpush2.msra.mxu0 %v2579_v19  ;;  %v1247_v46 = vpop.permute.xlu0 %1246 }
 0x211   :  { %v14055_v49 = vpop.permute.xlu1 %1248  ;;  %v1303_v1 = vsel %vm1272_vm5, %v13284_v21, %v1247_v46 }
 0x212   :  { %2191 = vrot.lane.b32.xlu0 %v13748_v37, %s12716_s18  ;;  %v1304_v36 = vsel %vm1272_vm5, %v1247_v46, %v14055_v49 }
 0x213   :  { %2193 = vrot.lane.b32.xlu1 %v13753_v44, %s12716_s18  ;;  %3247 = vmatprep.subr.mxu1 %v1304_v36 }
 0x214   :  { %3248 = vmatpush2.msra.mxu1 %v1303_v1  ;;  %v2507_v40 = vpop.permute.xlu0 %2506 }
 0x215   :  { %v14065_v30 = vpop.permute.xlu1 %2508  ;;  %v2572_v25 = vsel %vm2548_vm8, %v13541_v5, %v2507_v40 }
 0x216   :  { %2175 = vrot.lane.b32.xlu0 %v13778_v31, %s12716_s18  ;;  %v2573_v21 = vsel %vm2548_vm8, %v2507_v40, %v14065_v30 }
 0x217   :  { %2177 = vrot.lane.b32.xlu1 %v13783_v48, %s12716_s18  ;;  %3336 = vmatprep.subr.mxu0 %v2573_v21 }
 0x218   :  { %3337 = vmatpush2.msra.mxu0 %v2572_v25  ;;  %v1231_v53 = vpop.permute.xlu0 %1230 }
 0x219   :  { %v14075_v14 = vpop.permute.xlu1 %1232  ;;  %v1296_v19 = vsel %vm1272_vm5, %v13306_v35, %v1231_v53 }
 0x21a   :  { %2159 = vrot.lane.b32.xlu0 %v13808_v38, %s12716_s18  ;;  %v1297_v5 = vsel %vm1272_vm5, %v1231_v53, %v14075_v14 }
 0x21b   :  { %2161 = vrot.lane.b32.xlu1 %v13813_v54, %s12716_s18  ;;  %3249 = vmatprep.subr.mxu1 %v1297_v5 }
 0x21c   :  { %3250 = vmatpush2.msra.mxu1 %v1296_v19  ;;  %v2491_v55 = vpop.permute.xlu0 %2490 }
 0x21d   :  { %v14085_v46 = vpop.permute.xlu1 %2492  ;;  %v2565_v1 = vsel %vm2548_vm8, %v13563_v4, %v2491_v55 }
 0x21e   :  { %2143 = vrot.lane.b32.xlu0 %v13838_v13, %s12716_s18  ;;  %v2566_v35 = vsel %vm2548_vm8, %v2491_v55, %v14085_v46 }
 0x21f   :  { %2145 = vrot.lane.b32.xlu1 %v13843_v58, %s12716_s18  ;;  %3338 = vmatprep.subr.mxu0 %v2566_v35 }
 0x220   :  { %3339 = vmatpush2.msra.mxu0 %v2565_v1  ;;  %v1215_v36 = vpop.permute.xlu0 %1214 }
 0x221   :  { %v14095_v40 = vpop.permute.xlu1 %1216  ;;  %v1289_v25 = vsel %vm1272_vm5, %v13335_v12, %v1215_v36 }
 0x222   :  { %1904 = vrot.lane.b32.xlu0 %v13868_v22, %s12717_s19  ;;  %v1290_v4 = vsel %vm1272_vm5, %v1215_v36, %v14095_v40 }
 0x223   :  { %1906 = vrot.lane.b32.xlu1 %v13876_v9, %s12717_s19  ;;  %3251 = vmatprep.subr.mxu1 %v1290_v4 }
 0x224   :  { %3252 = vmatpush2.msra.mxu1 %v1289_v25  ;;  %v2475_v21 = vpop.permute.xlu0 %2474 }
 0x225   :  { %v14105_v53 = vpop.permute.xlu1 %2476  ;;  %v2558_v19 = vsel %vm2548_vm8, %v13585_v63, %v2475_v21 }
 0x226   :  { %1521 = vrot.lane.b32.xlu0 %v13808_v38, %s12718_s20  ;;  %v2559_v12 = vsel %vm2548_vm8, %v2475_v21, %v14105_v53 }
 0x227   :  { %1523 = vrot.lane.b32.xlu1 %v13813_v54, %s12718_s20  ;;  %3340 = vmatprep.subr.mxu0 %v2559_v12  ;;  %v14147_v12 = vld [vmem:[%s20320_s1 + $0x8] sm:$0xff] }
 0x228   :  { %3341 = vmatpush2.msra.mxu0 %v2558_v19  ;;  %v1199_v5 = vpop.permute.xlu0 %1198 }
 0x229   :  { %v14115_v55 = vpop.permute.xlu1 %1200  ;;  %v1282_v1 = vsel %vm1272_vm5, %v13378_v15, %v1199_v5 }
 0x22a   :  { %1888 = vrot.lane.b32.xlu0 %v13912_v0, %s12717_s19  ;;  %v1283_v63 = vsel %vm1272_vm5, %v1199_v5, %v14115_v55 }
 0x22b   :  { %1890 = vrot.lane.b32.xlu1 %v13920_v50, %s12717_s19  ;;  %3253 = vmatprep.subr.mxu1 %v1283_v63 }
 0x22c   :  { %3254 = vmatpush2.msra.mxu1 %v1282_v1  ;;  %v2459_v35 = vpop.permute.xlu0 %2458 }
 0x22d   :  { %v14125_v36 = vpop.permute.xlu1 %2460  ;;  %v2551_v25 = vsel %vm2548_vm8, %v13607_v27, %v2459_v35 }
 0x22e   :  { %1505 = vrot.lane.b32.xlu0 %v13838_v13, %s12718_s20  ;;  %v2552_v15 = vsel %vm2548_vm8, %v2459_v35, %v14125_v36 }
 0x22f   :  { %1507 = vrot.lane.b32.xlu1 %v13843_v58, %s12718_s20  ;;  %3342 = vmatprep.subr.mxu0 %v2552_v15 }
 0x230   :  { %3343 = vmatpush2.msra.mxu0 %v2551_v25  ;;  %v597_v4 = vpop.permute.xlu0 %596 }
 0x231   :  { %v14135_v21 = vpop.permute.xlu1 %598  ;;  %3345 = vmatmul.mubr.f32.vlgmr.msra.gmra.mxu0 %v13619_v11  ;;  %v660_v19 = vsel %vm634_vm0, %v13627_v59, %v597_v4 }
 0x232   :  { %1872 = vrot.lane.b32.xlu0 %v13748_v37, %s12717_s19  ;;  %v661_v27 = vsel %vm634_vm0, %v597_v4, %v14135_v21  ;;  %3415 = vmatprep.mubr.f32.mxu0 %v14147_v12 }
 0x233   :  { %1874 = vrot.lane.b32.xlu1 %v13753_v44, %s12717_s19  ;;  %3351 = vmatprep.subr.mxu0 %v661_v27 }
 0x234   :  { %3352 = vmatpush1.msra.mxu0 %v660_v19  ;;  %v1183_v11 = vpop.permute.xlu0 %1182 }
 0x235   :  { %v14152_v59 = vpop.permute.xlu1 %1184  ;;  %v1275_v5 = vsel %vm1272_vm5, %v13430_v6, %v1183_v11 }
 0x236   :  { %1266 = vrot.lane.b32.xlu0 %v13868_v22, %s12719_s22  ;;  %v1276_v1 = vsel %vm1272_vm5, %v1183_v11, %v14152_v59 }
 0x237   :  { %1268 = vrot.lane.b32.xlu1 %v13876_v9, %s12719_s22  ;;  %3255 = vmatprep.subr.mxu1 %v1276_v1 }
 0x238   :  { %3256 = vmatpush2.msra.mxu1 %v1275_v5  ;;  %v581_v63 = vpop.permute.xlu0 %580 }
 0x239   :  { %v14162_v35 = vpop.permute.xlu1 %582  ;;  %v653_v25 = vsel %vm634_vm0, %v13653_v8, %v581_v63 }
 0x23a   :  { %1856 = vrot.lane.b32.xlu0 %v13778_v31, %s12717_s19  ;;  %v654_v6 = vsel %vm634_vm0, %v581_v63, %v14162_v35 }
 0x23b   :  { %1858 = vrot.lane.b32.xlu1 %v13783_v48, %s12717_s19  ;;  %3353 = vmatprep.subr.mxu0 %v654_v6 }
 0x23c   :  { %3354 = vmatpush1.msra.mxu0 %v653_v25  ;;  %v944_v15 = vpop.permute.xlu0 %943  ;;  %v20385_v25 = vld [vmem:[#allocation11_spill] sm:$0xff] }
 0x23d   :  { %v14172_v4 = vpop.permute.xlu1 %945  ;;  %v991_v19 = vsel %vm953_vm7, %v13467_v60, %v944_v15 }
 0x23e   :  { %1250 = vrot.lane.b32.xlu0 %v13912_v0, %s12719_s22  ;;  %v992_v8 = vsel %vm953_vm7, %v944_v15, %v14172_v4 }
 0x23f   :  { %1252 = vrot.lane.b32.xlu1 %v13920_v50, %s12719_s22  ;;  %3257 = vmatprep.subr.mxu1 %v992_v8 }
 0x240   :  { %3258 = vmatpush2.msra.mxu1 %v991_v19  ;;  %v565_v27 = vpop.permute.xlu0 %564 }
 0x241   :  { %v14182_v11 = vpop.permute.xlu1 %566  ;;  %v646_v5 = vsel %vm634_vm0, %v13675_v2, %v565_v27 }
 0x242   :  { %1840 = vrot.lane.b32.xlu0 %v13808_v38, %s12717_s19  ;;  %v647_v60 = vsel %vm634_vm0, %v565_v27, %v14182_v11 }
 0x243   :  { %1842 = vrot.lane.b32.xlu1 %v13813_v54, %s12717_s19  ;;  %3355 = vmatprep.subr.mxu0 %v647_v60 }
 0x244   :  { %3356 = vmatpush1.msra.mxu0 %v646_v5  ;;  %v928_v1 = vpop.permute.xlu0 %927 }
 0x245   :  { %v14192_v63 = vpop.permute.xlu1 %929  ;;  %v984_v6 = vsel %vm953_vm7, %v20385_v25, %v928_v1 }
 0x246   :  { %1234 = vrot.lane.b32.xlu0 %v13748_v37, %s12719_s22  ;;  %v985_v2 = vsel %vm953_vm7, %v928_v1, %v14192_v63  ;;  %v20386_v1 = vld [vmem:[#allocation12_spill] sm:$0xff] }
 0x247   :  { %1236 = vrot.lane.b32.xlu1 %v13753_v44, %s12719_s22  ;;  %3259 = vmatprep.subr.mxu1 %v985_v2 }
 0x248   :  { %3260 = vmatpush2.msra.mxu1 %v984_v6  ;;  %v549_v15 = vpop.permute.xlu0 %548 }
 0x249   :  { %v14202_v19 = vpop.permute.xlu1 %550  ;;  %v639_v8 = vsel %vm634_vm0, %v13695_v20, %v549_v15 }
 0x24a   :  { %1824 = vrot.lane.b32.xlu0 %v13838_v13, %s12717_s19  ;;  %v640_v27 = vsel %vm634_vm0, %v549_v15, %v14202_v19 }
 0x24b   :  { %1826 = vrot.lane.b32.xlu1 %v13843_v58, %s12717_s19  ;;  %3357 = vmatprep.subr.mxu0 %v640_v27 }
 0x24c   :  { %3358 = vmatpush1.msra.mxu0 %v639_v8  ;;  %v912_v5 = vpop.permute.xlu0 %911 }
 0x24d   :  { %v14212_v60 = vpop.permute.xlu1 %913  ;;  %v977_v25 = vsel %vm953_vm7, %v20386_v1, %v912_v5  ;;  %v20387_v1 = vld [vmem:[#allocation13_spill] sm:$0xff] }
 0x24e   :  { %1218 = vrot.lane.b32.xlu0 %v13778_v31, %s12719_s22  ;;  %v978_v20 = vsel %vm953_vm7, %v912_v5, %v14212_v60 }
 0x24f   :  { %1220 = vrot.lane.b32.xlu1 %v13783_v48, %s12719_s22  ;;  %3261 = vmatprep.subr.mxu1 %v978_v20 }
 0x250   :  { %3262 = vmatpush2.msra.mxu1 %v977_v25  ;;  %v310_v6 = vpop.permute.xlu0 %309 }
 0x251   :  { %v14222_v2 = vpop.permute.xlu1 %311  ;;  %v355_v15 = vsel %vm315_vm1, %v13715_v42, %v310_v6 }
 0x252   :  { %1585 = vrot.lane.b32.xlu0 %v13868_v22, %s12718_s20  ;;  %v356_v8 = vsel %vm315_vm1, %v310_v6, %v14222_v2 }
 0x253   :  { %1587 = vrot.lane.b32.xlu1 %v13876_v9, %s12718_s20  ;;  %3359 = vmatprep.subr.mxu0 %v356_v8 }
 0x254   :  { %3360 = vmatpush1.msra.mxu0 %v355_v15  ;;  %v896_v27 = vpop.permute.xlu0 %895 }
 0x255   :  { %v14232_v5 = vpop.permute.xlu1 %897  ;;  %v970_v25 = vsel %vm953_vm7, %v20387_v1, %v896_v27 }
 0x256   :  { %1202 = vrot.lane.b32.xlu0 %v13808_v38, %s12719_s22  ;;  %v971_v42 = vsel %vm953_vm7, %v896_v27, %v14232_v5 }
 0x257   :  { %1204 = vrot.lane.b32.xlu1 %v13813_v54, %s12719_s22  ;;  %3263 = vmatprep.subr.mxu1 %v971_v42 }
 0x258   :  { %3264 = vmatpush2.msra.mxu1 %v970_v25  ;;  %v294_v20 = vpop.permute.xlu0 %293  ;;  %v20389_v25 = vld [vmem:[#allocation14_spill] sm:$0xff] }
 0x259   :  { %v14242_v6 = vpop.permute.xlu1 %295  ;;  %v348_v15 = vsel %vm315_vm1, %v13735_v28, %v294_v20 }
 0x25a   :  { %20388 = vst [vmem:[#allocation11_spill] sm:$0xff] %v14242_v6  ;;  %1569 = vrot.lane.b32.xlu0 %v13912_v0, %s12718_s20  ;;  %v349_v8 = vsel %vm315_vm1, %v294_v20, %v14242_v6 }
 0x25b   :  { %1571 = vrot.lane.b32.xlu1 %v13920_v50, %s12718_s20  ;;  %3361 = vmatprep.subr.mxu0 %v349_v8 }
 0x25c   :  { %3362 = vmatpush1.msra.mxu0 %v348_v15  ;;  %v880_v27 = vpop.permute.xlu0 %879 }
 0x25d   :  { %v14252_v1 = vpop.permute.xlu1 %881  ;;  %v963_v42 = vsel %vm953_vm7, %v20389_v25, %v880_v27 }
 0x25e   :  { %1186 = vrot.lane.b32.xlu0 %v13838_v13, %s12719_s22  ;;  %v964_v28 = vsel %vm953_vm7, %v880_v27, %v14252_v1 }
 0x25f   :  { %1188 = vrot.lane.b32.xlu1 %v13843_v58, %s12719_s22  ;;  %3265 = vmatprep.subr.mxu1 %v964_v28 }
 0x260   :  { %3266 = vmatpush2.msra.mxu1 %v963_v42  ;;  %v278_v20 = vpop.permute.xlu0 %277  ;;  %v20391_v42 = vld [vmem:[#allocation15_spill] sm:$0xff] }
 0x261   :  { %v14262_v8 = vpop.permute.xlu1 %279  ;;  %v341_v15 = vsel %vm315_vm1, %v13765_v43, %v278_v20 }
 0x262   :  { %20390 = vst [vmem:[#allocation12_spill] sm:$0xff] %v14262_v8  ;;  %1553 = vrot.lane.b32.xlu0 %v13748_v37, %s12718_s20  ;;  %v342_v25 = vsel %vm315_vm1, %v278_v20, %v14262_v8 }
 0x263   :  { %1555 = vrot.lane.b32.xlu1 %v13753_v44, %s12718_s20  ;;  %3363 = vmatprep.subr.mxu0 %v342_v25 }
 0x264   :  { %3364 = vmatpush1.msra.mxu0 %v341_v15  ;;  %v864_v27 = vpop.permute.xlu0 %863 }
 0x265   :  { %v14272_v28 = vpop.permute.xlu1 %865  ;;  %v956_v6 = vsel %vm953_vm7, %v20391_v42, %v864_v27 }
 0x266   :  { %947 = vrot.lane.b32.xlu0 %v13868_v22, %s12720_s23  ;;  %v957_v43 = vsel %vm953_vm7, %v864_v27, %v14272_v28 }
 0x267   :  { %949 = vrot.lane.b32.xlu1 %v13876_v9, %s12720_s23  ;;  %3267 = vmatprep.subr.mxu1 %v957_v43 }
 0x268   :  { %3268 = vmatpush2.msra.mxu1 %v956_v6  ;;  %v262_v20 = vpop.permute.xlu0 %261  ;;  %v20392_v6 = vld [vmem:[#allocation16_spill] sm:$0xff] }
 0x269   :  { %v14282_v25 = vpop.permute.xlu1 %263  ;;  %v334_v15 = vsel %vm315_vm1, %v13795_v24, %v262_v20 }
 0x26a   :  { %1537 = vrot.lane.b32.xlu0 %v13778_v31, %s12718_s20  ;;  %v335_v42 = vsel %vm315_vm1, %v262_v20, %v14282_v25 }
 0x26b   :  { %1539 = vrot.lane.b32.xlu1 %v13783_v48, %s12718_s20  ;;  %3365 = vmatprep.subr.mxu0 %v335_v42 }
 0x26c   :  { %3366 = vmatpush1.msra.mxu0 %v334_v15  ;;  %v625_v27 = vpop.permute.xlu0 %624 }
 0x26d   :  { %v14292_v43 = vpop.permute.xlu1 %626  ;;  %v672_v8 = vsel %vm634_vm0, %v20392_v6, %v625_v27 }
 0x26e   :  { %931 = vrot.lane.b32.xlu0 %v13912_v0, %s12720_s23  ;;  %v673_v24 = vsel %vm634_vm0, %v625_v27, %v14292_v43 }
 0x26f   :  { %933 = vrot.lane.b32.xlu1 %v13920_v50, %s12720_s23  ;;  %3269 = vmatprep.subr.mxu1 %v673_v24 }
 0x270   :  { %3270 = vmatpush2.msra.mxu1 %v672_v8  ;;  %v246_v20 = vpop.permute.xlu0 %245 }
 0x271   :  { %v14302_v42 = vpop.permute.xlu1 %247  ;;  %v327_v15 = vsel %vm315_vm1, %v13825_v56, %v246_v20 }
 0x272   :  { %2542 = vrot.lane.b32.xlu0 %v13868_v22, %s12721_s24  ;;  %v328_v6 = vsel %vm315_vm1, %v246_v20, %v14302_v42 }
 0x273   :  { %2544 = vrot.lane.b32.xlu1 %v13876_v9, %s12721_s24  ;;  %3367 = vmatprep.subr.mxu0 %v328_v6 }
 0x274   :  { %3368 = vmatpush1.msra.mxu0 %v327_v15  ;;  %v609_v27 = vpop.permute.xlu0 %608 }
 0x275   :  { %v14312_v24 = vpop.permute.xlu1 %610  ;;  %v665_v8 = vsel %vm634_vm0, %v13638_v16, %v609_v27 }
 0x276   :  { %915 = vrot.lane.b32.xlu0 %v13748_v37, %s12720_s23  ;;  %v666_v56 = vsel %vm634_vm0, %v609_v27, %v14312_v24  ;;  %v14334_v37 = vld [vmem:[%s20320_s1 + $0x18] sm:$0xff] }
 0x277   :  { %917 = vrot.lane.b32.xlu1 %v13753_v44, %s12720_s23  ;;  %3271 = vmatprep.subr.mxu1 %v666_v56  ;;  %v2386_v56 = vld [vmem:[%s20319_s0 + $0xf0] sm:$0xff] }
 0x278   :  { %3272 = vmatpush2.msra.mxu1 %v665_v8  ;;  %v230_v20 = vpop.permute.xlu0 %229  ;;  %v2385_v8 = vld [vmem:[%s20319_s0 + $0xe8] sm:$0xff] }
 0x279   :  { %v14322_v6 = vpop.permute.xlu1 %231  ;;  %v320_v15 = vsel %vm315_vm1, %v13855_v62, %v230_v20  ;;  %3274 = vmatmul.mubr.f32.vlgmr.msra.gmra.mxu1 %v13645_v52 }
 0x27a   :  { %2526 = vrot.lane.b32.xlu0 %v13912_v0, %s12721_s24  ;;  %v321_v16 = vsel %vm315_vm1, %v230_v20, %v14322_v6  ;;  %11564 = vmatprep.mubr.msk.f32.mxu1 %vm3063_vm6, %v14334_v37 }
 0x27b   :  { %2528 = vrot.lane.b32.xlu1 %v13920_v50, %s12721_s24  ;;  %3369 = vmatprep.subr.mxu0 %v321_v16 }
 0x27c   :  { %3370 = vmatpush1.msra.mxu0 %v320_v15  ;;  %v2224_v52 = vpop.permute.xlu0 %2223  ;;  %v57_v15 = vld [vmem:[%s20319_s0 + $0xa0] sm:$0xff] }
 0x27d   :  { %v14340_v44 = vpop.permute.xlu1 %2225  ;;  %v2269_v62 = vsel %vm2229_vm2, %v13665_v57, %v2224_v52  ;;  %3371 = vmatprep.subr.mxu0 %v13868_v22 }
 0x27e   :  { %899 = vrot.lane.b32.xlu0 %v13778_v31, %s12720_s23  ;;  %v2270_v27 = vsel %vm2229_vm2, %v2224_v52, %v14340_v44  ;;  %3372 = vmatpush1.msra.mxu0 %v13987_v47  ;;  %v20393_v52 = vld [vmem:[#allocation17_spill] sm:$0xff] }
 0x27f   :  { %901 = vrot.lane.b32.xlu1 %v13783_v48, %s12720_s23  ;;  %3422 = vmatprep.subr.mxu1 %v2270_v27  ;;  %v64_v48 = vld [vmem:[%s20319_s0 + $0xe0] sm:$0xff] }
 0x280   :  { %3423 = vmatpush1.msra.mxu1 %v2269_v62  ;;  %v2208_v57 = vpop.permute.xlu0 %2207  ;;  %3373 = vmatprep.subr.mxu0 %v13912_v0 }
 0x281   :  { %v14359_v31 = vpop.permute.xlu1 %2209  ;;  %v2262_v47 = vsel %vm2229_vm2, %v13685_v51, %v2208_v57  ;;  %3374 = vmatpush1.msra.mxu0 %v14014_v26  ;;  %v2377_v26 = vld [vmem:[%s20319_s0 + $0xa8] sm:$0xff] }
 0x282   :  { %2510 = vrot.lane.b32.xlu0 %v2385_v8, %s12721_s24  ;;  %v2263_v20 = vsel %vm2229_vm2, %v2208_v57, %v14359_v31  ;;  %3375 = vmatprep.subr.mxu0 %v2385_v8  ;;  %v50_v8 = vld [vmem:[%s20319_s0 + $0x60] sm:$0xff]  ;;  %v2369_v57 = vld [vmem:[%s20319_s0 + $0x68] sm:$0xff] }
 0x283   :  { %2512 = vrot.lane.b32.xlu1 %v2386_v56, %s12721_s24  ;;  %3424 = vmatprep.subr.mxu1 %v2263_v20  ;;  %v20394_v20 = vld [vmem:[#allocation18_spill] sm:$0xff] }
 0x284   :  { %3425 = vmatpush1.msra.mxu1 %v2262_v47  ;;  %v2192_v51 = vpop.permute.xlu0 %2191  ;;  %3376 = vmatpush1.msra.mxu0 %v64_v48  ;;  %v2378_v47 = vld [vmem:[%s20319_s0 + $0xb0] sm:$0xff] }
 0x285   :  { %v14377_v16 = vpop.permute.xlu1 %2193  ;;  %v2255_v62 = vsel %vm2229_vm2, %v20393_v52, %v2192_v51  ;;  %3377 = vmatprep.subr.mxu0 %v2377_v26 }
 0x286   :  { %883 = vrot.lane.b32.xlu0 %v13808_v38, %s12720_s23  ;;  %v2256_v27 = vsel %vm2229_vm2, %v2192_v51, %v14377_v16  ;;  %3378 = vmatpush1.msra.mxu0 %v57_v15  ;;  %v44_v38 = vld [vmem:[%s20319_s0 + $0x28] sm:$0xff]  ;;  %v43_v15 = vld [vmem:[%s20319_s0 + $0x20] sm:$0xff] }
 0x287   :  { %885 = vrot.lane.b32.xlu1 %v13813_v54, %s12720_s23  ;;  %3426 = vmatprep.subr.mxu1 %v2256_v27  ;;  %v20395_v27 = vld [vmem:[#allocation19_spill] sm:$0xff] }
 0x288   :  { %3427 = vmatpush1.msra.mxu1 %v2255_v62  ;;  %v2176_v56 = vpop.permute.xlu0 %2175  ;;  %3379 = vmatprep.subr.mxu0 %v2369_v57 }
 0x289   :  { %v14399_v48 = vpop.permute.xlu1 %2177  ;;  %v2248_v54 = vsel %vm2229_vm2, %v20394_v20, %v2176_v56  ;;  %3380 = vmatpush1.msra.mxu0 %v50_v8 }
 0x28a   :  { %2494 = vrot.lane.b32.xlu0 %v2377_v26, %s12721_s24  ;;  %v2249_v51 = vsel %vm2229_vm2, %v2176_v56, %v14399_v48  ;;  %3381 = vmatprep.subr.mxu0 %v44_v38 }
 0x28b   :  { %2496 = vrot.lane.b32.xlu1 %v2378_v47, %s12721_s24  ;;  %3428 = vmatprep.subr.mxu1 %v2249_v51  ;;  %v2370_v47 = vld [vmem:[%s20319_s0 + $0x70] sm:$0xff] }
 0x28c   :  { %3429 = vmatpush1.msra.mxu1 %v2248_v54  ;;  %v2160_v52 = vpop.permute.xlu0 %2159  ;;  %3382 = vmatpush1.msra.mxu0 %v43_v15  ;;  %v20396_v54 = vld [vmem:[#allocation20_spill] sm:$0xff] }
 0x28d   :  { %v14410_v62 = vpop.permute.xlu1 %2161  ;;  %v2241_v8 = vsel %vm2229_vm2, %v20395_v27, %v2160_v52 }
 0x28e   :  { %867 = vrot.lane.b32.xlu0 %v13838_v13, %s12720_s23  ;;  %v2242_v26 = vsel %vm2229_vm2, %v2160_v52, %v14410_v62  ;;  %v20397_v52 = vld [vmem:[#allocation21_spill] sm:$0xff] }
 0x28f   :  { %869 = vrot.lane.b32.xlu1 %v13843_v58, %s12720_s23  ;;  %3430 = vmatprep.subr.mxu1 %v2242_v26  ;;  %v2362_v26 = vld [vmem:[%s20319_s0 + $0x30] sm:$0xff] }
 0x290   :  { %3431 = vmatpush1.msra.mxu1 %v2241_v8  ;;  %v2144_v56 = vpop.permute.xlu0 %2143 }
 0x291   :  { %v14423_v20 = vpop.permute.xlu1 %2145  ;;  %v2234_v15 = vsel %vm2229_vm2, %v20396_v54, %v2144_v56 }
 0x292   :  { %2478 = vrot.lane.b32.xlu0 %v2369_v57, %s12721_s24  ;;  %v2235_v13 = vsel %vm2229_vm2, %v2144_v56, %v14423_v20 }
 0x293   :  { %2480 = vrot.lane.b32.xlu1 %v2370_v47, %s12721_s24  ;;  %3432 = vmatprep.subr.mxu1 %v2235_v13 }
 0x294   :  { %3433 = vmatpush1.msra.mxu1 %v2234_v15  ;;  %v1905_v58 = vpop.permute.xlu0 %1904 }
 0x295   :  { %v14431_v51 = vpop.permute.xlu1 %1906  ;;  %v1950_v27 = vsel %vm1910_vm3, %v20397_v52, %v1905_v58  ;;  %v14485_v52 = vld [vmem:[%s20319_s0 + $0x38] sm:$0xff] }
 0x296   :  { %628 = vrot.lane.b32.xlu0 %v13868_v22, %s12714_s21  ;;  %v1951_v8 = vsel %vm1910_vm3, %v1905_v58, %v14431_v51 }
 0x297   :  { %630 = vrot.lane.b32.xlu1 %v13876_v9, %s12714_s21  ;;  %3434 = vmatprep.subr.mxu1 %v1951_v8 }
 0x298   :  { %3435 = vmatpush1.msra.mxu1 %v1950_v27  ;;  %v1522_v57 = vpop.permute.xlu0 %1521 }
 0x299   :  { %v14444_v56 = vpop.permute.xlu1 %1523  ;;  %v1603_v47 = vsel %vm1591_vm4, %v13989_v39, %v1522_v57 }
 0x29a   :  { %2462 = vrot.lane.b32.xlu0 %v44_v38, %s12721_s24  ;;  %v1604_v22 = vsel %vm1591_vm4, %v1522_v57, %v14444_v56  ;;  %v14465_v38 = vld [vmem:[%s20319_s0 + $0x78] sm:$0xff] }
 0x29b   :  { %2464 = vrot.lane.b32.xlu1 %v2362_v26, %s12721_s24  ;;  %3383 = vmatprep.subr.mxu0 %v1604_v22 }
 0x29c   :  { %3384 = vmatpush2.msra.mxu0 %v1603_v47  ;;  %v1889_v9 = vpop.permute.xlu0 %1888  ;;  %v14505_v47 = vld [vmem:[%s20319_s0 + $0x178] sm:$0xff] }
 0x29d   :  { %v14452_v54 = vpop.permute.xlu1 %1890  ;;  %v1943_v15 = vsel %vm1910_vm3, %v13845_v23, %v1889_v9  ;;  %v14470_v23 = vld [vmem:[%s20319_s0 + $0xf8] sm:$0xff] }
 0x29e   :  { %612 = vrot.lane.b32.xlu0 %v13912_v0, %s12714_s21  ;;  %v1944_v39 = vsel %vm1910_vm3, %v1889_v9, %v14452_v54 }
 0x29f   :  { %614 = vrot.lane.b32.xlu1 %v13920_v50, %s12714_s21  ;;  %3436 = vmatprep.subr.mxu1 %v1944_v39 }
 0x2a0   :  { %3437 = vmatpush1.msra.mxu1 %v1943_v15  ;;  %v1506_v13 = vpop.permute.xlu0 %1505 }
 0x2a1   :  { %v14472_v0 = vpop.permute.xlu1 %1507  ;;  %v1596_v58 = vsel %vm1591_vm4, %v14016_v34, %v1506_v13  ;;  %v14490_v34 = vld [vmem:[%s20319_s0 + $0xb8] sm:$0xff] }
 0x2a2   :  { %1525 = vrot.lane.b32.xlu0 %v14465_v38, %s12718_s20  ;;  %v1597_v50 = vsel %vm1591_vm4, %v1506_v13, %v14472_v0  ;;  %v14520_v13 = vld [vmem:[%s20319_s0 + $0x138] sm:$0xff] }
 0x2a3   :  { %600 = vrot.lane.b32.xlu1 %v14470_v23, %s12714_s21  ;;  %3385 = vmatprep.subr.mxu0 %v1597_v50 }
 0x2a4   :  { %3386 = vmatpush2.msra.mxu0 %v1596_v58  ;;  %v1873_v27 = vpop.permute.xlu0 %1872 }
 0x2a5   :  { %v14492_v8 = vpop.permute.xlu1 %1874  ;;  %v1936_v57 = vsel %vm1910_vm3, %v13878_v41, %v1873_v27 }
 0x2a6   :  { %1509 = vrot.lane.b32.xlu0 %v14485_v52, %s12718_s20  ;;  %v1937_v26 = vsel %vm1910_vm3, %v1873_v27, %v14492_v8 }
 0x2a7   :  { %584 = vrot.lane.b32.xlu1 %v14490_v34, %s12714_s21  ;;  %3438 = vmatprep.subr.mxu1 %v1937_v26 }
 0x2a8   :  { %3439 = vmatpush1.msra.mxu1 %v1936_v57  ;;  %v1267_v22 = vpop.permute.xlu0 %1266 }
 0x2a9   :  { %v14507_v9 = vpop.permute.xlu1 %1268  ;;  %v1312_v41 = vsel %vm1272_vm5, %v14035_v33, %v1267_v22 }
 0x2aa   :  { %2227 = vrot.lane.b32.xlu0 %v14505_v47, %s12716_s18  ;;  %v1313_v15 = vsel %vm1272_vm5, %v1267_v22, %v14507_v9 }
 0x2ab   :  { %1270 = vrot.lane.b32.xlu1 %v14505_v47, %s12719_s22  ;;  %3387 = vmatprep.subr.mxu0 %v1313_v15 }
 0x2ac   :  { %3388 = vmatpush2.msra.mxu0 %v1312_v41  ;;  %v1857_v39 = vpop.permute.xlu0 %1856 }
 0x2ad   :  { %v14522_v58 = vpop.permute.xlu1 %1858  ;;  %v1929_v33 = vsel %vm1910_vm3, %v13896_v29, %v1857_v39 }
 0x2ae   :  { %568 = vrot.lane.b32.xlu0 %v14465_v38, %s12714_s21  ;;  %v1930_v50 = vsel %vm1910_vm3, %v1857_v39, %v14522_v58 }
 0x2af   :  { %2211 = vrot.lane.b32.xlu1 %v14520_v13, %s12716_s18  ;;  %3440 = vmatprep.subr.mxu1 %v1930_v50 }
 0x2b0   :  { %3441 = vmatpush1.msra.mxu1 %v1929_v33  ;;  %v1251_v27 = vpop.permute.xlu0 %1250 }
 0x2b1   :  { %v14532_v57 = vpop.permute.xlu1 %1252  ;;  %v1305_v26 = vsel %vm1272_vm5, %v14055_v49, %v1251_v27 }
 0x2b2   :  { %1254 = vrot.lane.b32.xlu0 %v14520_v13, %s12719_s22  ;;  %v1306_v29 = vsel %vm1272_vm5, %v1251_v27, %v14532_v57 }
 0x2b3   :  { %552 = vrot.lane.b32.xlu1 %v14485_v52, %s12714_s21  ;;  %3389 = vmatprep.subr.mxu0 %v1306_v29 }
 0x2b4   :  { %3390 = vmatpush2.msra.mxu0 %v1305_v26  ;;  %v1841_v22 = vpop.permute.xlu0 %1840 }
 0x2b5   :  { %v14542_v41 = vpop.permute.xlu1 %1842  ;;  %v1922_v15 = vsel %vm1910_vm3, %v13922_v45, %v1841_v22 }
 0x2b6   :  { %2195 = vrot.lane.b32.xlu0 %v14470_v23, %s12716_s18  ;;  %v1923_v49 = vsel %vm1910_vm3, %v1841_v22, %v14542_v41 }
 0x2b7   :  { %1238 = vrot.lane.b32.xlu1 %v14470_v23, %s12719_s22  ;;  %3442 = vmatprep.subr.mxu1 %v1923_v49 }
 0x2b8   :  { %3443 = vmatpush1.msra.mxu1 %v1922_v15  ;;  %v1235_v39 = vpop.permute.xlu0 %1234 }
 0x2b9   :  { %v14552_v33 = vpop.permute.xlu1 %1236  ;;  %v1298_v50 = vsel %vm1272_vm5, %v14075_v14, %v1235_v39 }
 0x2ba   :  { %313 = vrot.lane.b32.xlu0 %v14505_v47, %s12715_s28  ;;  %v1299_v45 = vsel %vm1272_vm5, %v1235_v39, %v14552_v33 }
 0x2bb   :  { %2179 = vrot.lane.b32.xlu1 %v14490_v34, %s12716_s18  ;;  %3391 = vmatprep.subr.mxu0 %v1299_v45 }
 0x2bc   :  { %3392 = vmatpush2.msra.mxu0 %v1298_v50  ;;  %v1825_v27 = vpop.permute.xlu0 %1824 }
 0x2bd   :  { %v14562_v26 = vpop.permute.xlu1 %1826  ;;  %v1915_v29 = vsel %vm1910_vm3, %v13937_v3, %v1825_v27 }
 0x2be   :  { %1222 = vrot.lane.b32.xlu0 %v14490_v34, %s12719_s22  ;;  %v1916_v14 = vsel %vm1910_vm3, %v1825_v27, %v14562_v26 }
 0x2bf   :  { %297 = vrot.lane.b32.xlu1 %v14520_v13, %s12715_s28  ;;  %3444 = vmatprep.subr.mxu1 %v1916_v14 }
 0x2c0   :  { %3445 = vmatpush1.msra.mxu1 %v1915_v29  ;;  %v1219_v22 = vpop.permute.xlu0 %1218 }
 0x2c1   :  { %v14572_v15 = vpop.permute.xlu1 %1220  ;;  %v1291_v49 = vsel %vm1272_vm5, %v14095_v40, %v1219_v22 }
 0x2c2   :  { %2163 = vrot.lane.b32.xlu0 %v14465_v38, %s12716_s18  ;;  %v1292_v3 = vsel %vm1272_vm5, %v1219_v22, %v14572_v15 }
 0x2c3   :  { %1206 = vrot.lane.b32.xlu1 %v14465_v38, %s12719_s22  ;;  %3393 = vmatprep.subr.mxu0 %v1292_v3 }
 0x2c4   :  { %3394 = vmatpush2.msra.mxu0 %v1291_v49  ;;  %v1586_v39 = vpop.permute.xlu0 %1585 }
 0x2c5   :  { %v14582_v50 = vpop.permute.xlu1 %1587  ;;  %v1631_v45 = vsel %vm1591_vm4, %v13951_v7, %v1586_v39 }
 0x2c6   :  { %281 = vrot.lane.b32.xlu0 %v14470_v23, %s12715_s28  ;;  %v1632_v40 = vsel %vm1591_vm4, %v1586_v39, %v14582_v50 }
 0x2c7   :  { %2147 = vrot.lane.b32.xlu1 %v14485_v52, %s12716_s18  ;;  %3446 = vmatprep.subr.mxu1 %v1632_v40 }
 0x2c8   :  { %3447 = vmatpush1.msra.mxu1 %v1631_v45  ;;  %v1203_v27 = vpop.permute.xlu0 %1202 }
 0x2c9   :  { %v14592_v29 = vpop.permute.xlu1 %1204  ;;  %v1284_v14 = vsel %vm1272_vm5, %v14115_v55, %v1203_v27 }
 0x2ca   :  { %1190 = vrot.lane.b32.xlu0 %v14485_v52, %s12719_s22  ;;  %v1285_v7 = vsel %vm1272_vm5, %v1203_v27, %v14592_v29 }
 0x2cb   :  { %265 = vrot.lane.b32.xlu1 %v14490_v34, %s12715_s28  ;;  %3395 = vmatprep.subr.mxu0 %v1285_v7 }
 0x2cc   :  { %3396 = vmatpush2.msra.mxu0 %v1284_v14  ;;  %v1570_v22 = vpop.permute.xlu0 %1569 }
 0x2cd   :  { %v14602_v49 = vpop.permute.xlu1 %1571  ;;  %v1624_v3 = vsel %vm1591_vm4, %v13961_v17, %v1570_v22 }
 0x2ce   :  { %1908 = vrot.lane.b32.xlu0 %v14505_v47, %s12717_s19  ;;  %v1625_v55 = vsel %vm1591_vm4, %v1570_v22, %v14602_v49 }
 0x2cf   :  { %951 = vrot.lane.b32.xlu1 %v14505_v47, %s12720_s23  ;;  %3448 = vmatprep.subr.mxu1 %v1625_v55 }
 0x2d0   :  { %3449 = vmatpush1.msra.mxu1 %v1624_v3  ;;  %v1187_v39 = vpop.permute.xlu0 %1186 }
 0x2d1   :  { %v14612_v45 = vpop.permute.xlu1 %1188  ;;  %v1277_v40 = vsel %vm1272_vm5, %v14152_v59, %v1187_v39 }
 0x2d2   :  { %249 = vrot.lane.b32.xlu0 %v14465_v38, %s12715_s28  ;;  %v1278_v17 = vsel %vm1272_vm5, %v1187_v39, %v14612_v45 }
 0x2d3   :  { %1892 = vrot.lane.b32.xlu1 %v14520_v13, %s12717_s19  ;;  %3397 = vmatprep.subr.mxu0 %v1278_v17 }
 0x2d4   :  { %3398 = vmatpush2.msra.mxu0 %v1277_v40  ;;  %v1554_v27 = vpop.permute.xlu0 %1553 }
 0x2d5   :  { %v14622_v14 = vpop.permute.xlu1 %1555  ;;  %v1617_v7 = vsel %vm1591_vm4, %v13971_v61, %v1554_v27 }
 0x2d6   :  { %20398 = vst [vmem:[#allocation13_spill] sm:$0xff] %v14622_v14  ;;  %935 = vrot.lane.b32.xlu0 %v14520_v13, %s12720_s23  ;;  %v1618_v59 = vsel %vm1591_vm4, %v1554_v27, %v14622_v14  ;;  %v20353_v14 = vmov 0.0  }
 0x2d7   :  { %233 = vrot.lane.b32.xlu1 %v14485_v52, %s12715_s28  ;;  %3450 = vmatprep.subr.mxu1 %v1618_v59 }
 0x2d8   :  { %3451 = vmatpush1.msra.mxu1 %v1617_v7  ;;  %v948_v22 = vpop.permute.xlu0 %947 }
 0x2d9   :  { %v14632_v3 = vpop.permute.xlu1 %949  ;;  %v993_v55 = vsel %vm953_vm7, %v14172_v4, %v948_v22 }
 0x2da   :  { %1876 = vrot.lane.b32.xlu0 %v14470_v23, %s12717_s19  ;;  %v994_v61 = vsel %vm953_vm7, %v948_v22, %v14632_v3 }
 0x2db   :  { %919 = vrot.lane.b32.xlu1 %v14470_v23, %s12720_s23  ;;  %3399 = vmatprep.subr.mxu0 %v994_v61 }
 0x2dc   :  { %3400 = vmatpush2.msra.mxu0 %v993_v55  ;;  %v1538_v39 = vpop.permute.xlu0 %1537 }
 0x2dd   :  { %v14642_v40 = vpop.permute.xlu1 %1539  ;;  %v1610_v17 = vsel %vm1591_vm4, %v13998_v32, %v1538_v39 }
 0x2de   :  { %20399 = vst [vmem:[#allocation14_spill] sm:$0xff] %v14642_v40  ;;  %1860 = vrot.lane.b32.xlu0 %v14490_v34, %s12717_s19  ;;  %v1611_v4 = vsel %vm1591_vm4, %v1538_v39, %v14642_v40 }
 0x2df   :  { %903 = vrot.lane.b32.xlu1 %v14490_v34, %s12720_s23  ;;  %3452 = vmatprep.subr.mxu1 %v1611_v4 }
 0x2e0   :  { %3453 = vmatpush1.msra.mxu1 %v1610_v17  ;;  %v932_v27 = vpop.permute.xlu0 %931 }
 0x2e1   :  { %v14652_v7 = vpop.permute.xlu1 %933  ;;  %v986_v59 = vsel %vm953_vm7, %v14192_v63, %v932_v27 }
 0x2e2   :  { %1844 = vrot.lane.b32.xlu0 %v14465_v38, %s12717_s19  ;;  %v987_v32 = vsel %vm953_vm7, %v932_v27, %v14652_v7 }
 0x2e3   :  { %887 = vrot.lane.b32.xlu1 %v14465_v38, %s12720_s23  ;;  %3401 = vmatprep.subr.mxu0 %v987_v32 }
 0x2e4   :  { %3402 = vmatpush2.msra.mxu0 %v986_v59  ;;  %v2543_v22 = vpop.permute.xlu0 %2542 }
 0x2e5   :  { %v14662_v55 = vpop.permute.xlu1 %2544  ;;  %v2588_v61 = vsel %vm2548_vm8, %v14025_v10, %v2543_v22 }
 0x2e6   :  { %20400 = vst [vmem:[#allocation15_spill] sm:$0xff] %v14662_v55  ;;  %1828 = vrot.lane.b32.xlu0 %v14485_v52, %s12717_s19  ;;  %v2589_v63 = vsel %vm2548_vm8, %v2543_v22, %v14662_v55 }
 0x2e7   :  { %871 = vrot.lane.b32.xlu1 %v14485_v52, %s12720_s23  ;;  %3474 = vmatprep.subr.mxu1 %v2589_v63 }
 0x2e8   :  { %3475 = vmatpush2.msra.mxu1 %v2588_v61  ;;  %v916_v39 = vpop.permute.xlu0 %915  ;;  %v14695_v61 = vld [vmem:[%s20319_s0 + $0x248] sm:$0xff] }
 0x2e9   :  { %v14672_v17 = vpop.permute.xlu1 %917  ;;  %v979_v4 = vsel %vm953_vm7, %v14212_v60, %v916_v39 }
 0x2ea   :  { %1589 = vrot.lane.b32.xlu0 %v14505_v47, %s12718_s20  ;;  %v980_v10 = vsel %vm953_vm7, %v916_v39, %v14672_v17 }
 0x2eb   :  { %632 = vrot.lane.b32.xlu1 %v14505_v47, %s12714_s21  ;;  %3403 = vmatprep.subr.mxu0 %v980_v10 }
 0x2ec   :  { %3404 = vmatpush2.msra.mxu0 %v979_v4  ;;  %v2527_v27 = vpop.permute.xlu0 %2526  ;;  %v14710_v4 = vld [vmem:[%s20319_s0 + $0x250] sm:$0xff] }
 0x2ed   :  { %v14682_v59 = vpop.permute.xlu1 %2528  ;;  %v2581_v32 = vsel %vm2548_vm8, %v14045_v18, %v2527_v27 }
 0x2ee   :  { %20401 = vst [vmem:[#allocation16_spill] sm:$0xff] %v14682_v59  ;;  %1573 = vrot.lane.b32.xlu0 %v14520_v13, %s12718_s20  ;;  %v2582_v60 = vsel %vm2548_vm8, %v2527_v27, %v14682_v59 }
 0x2ef   :  { %616 = vrot.lane.b32.xlu1 %v14520_v13, %s12714_s21  ;;  %3476 = vmatprep.subr.mxu1 %v2582_v60  ;;  %v14725_v60 = vld [vmem:[%s20319_s0 + $0x240] sm:$0xff] }
 0x2f0   :  { %3477 = vmatpush2.msra.mxu1 %v2581_v32  ;;  %v900_v22 = vpop.permute.xlu0 %899 }
 0x2f1   :  { %v14697_v63 = vpop.permute.xlu1 %901  ;;  %v972_v18 = vsel %vm953_vm7, %v14232_v5, %v900_v22 }
 0x2f2   :  { %1557 = vrot.lane.b32.xlu0 %v14470_v23, %s12718_s20  ;;  %v973_v39 = vsel %vm953_vm7, %v900_v22, %v14697_v63 }
 0x2f3   :  { %4342 = vrot.lane.b32.xlu1 %v14695_v61, %s12714_s21  ;;  %3405 = vmatprep.subr.mxu0 %v973_v39 }
 0x2f4   :  { %3406 = vmatpush2.msra.mxu0 %v972_v18  ;;  %v2511_v10 = vpop.permute.xlu0 %2510 }
 0x2f5   :  { %v14712_v27 = vpop.permute.xlu1 %2512  ;;  %v2574_v5 = vsel %vm2548_vm8, %v14065_v30, %v2511_v10  ;;  %v14730_v30 = vld [vmem:[%s20319_s0 + $0x208] sm:$0xff] }
 0x2f6   :  { %20402 = vst [vmem:[#allocation17_spill] sm:$0xff] %v14712_v27  ;;  %4344 = vrot.lane.b32.xlu0 %v14710_v4, %s12714_s21  ;;  %v2575_v32 = vsel %vm2548_vm8, %v2511_v10, %v14712_v27 }
 0x2f7   :  { %1541 = vrot.lane.b32.xlu1 %v14490_v34, %s12718_s20  ;;  %3478 = vmatprep.subr.mxu1 %v2575_v32 }
 0x2f8   :  { %3479 = vmatpush2.msra.mxu1 %v2574_v5  ;;  %v884_v22 = vpop.permute.xlu0 %883  ;;  %v14745_v5 = vld [vmem:[%s20319_s0 + $0x210] sm:$0xff] }
 0x2f9   :  { %v14732_v18 = vpop.permute.xlu1 %885  ;;  %v965_v39 = vsel %vm953_vm7, %v14252_v1, %v884_v22 }
 0x2fa   :  { %4340 = vrot.lane.b32.xlu0 %v14725_v60, %s12714_s21  ;;  %v966_v10 = vsel %vm953_vm7, %v884_v22, %v14732_v18 }
 0x2fb   :  { %4326 = vrot.lane.b32.xlu1 %v14730_v30, %s12714_s21  ;;  %3407 = vmatprep.subr.mxu0 %v966_v10 }
 0x2fc   :  { %3408 = vmatpush2.msra.mxu0 %v965_v39  ;;  %v2495_v32 = vpop.permute.xlu0 %2494  ;;  %v14760_v39 = vld [vmem:[%s20319_s0 + $0x200] sm:$0xff] }
 0x2fd   :  { %v14747_v27 = vpop.permute.xlu1 %2496  ;;  %v2567_v1 = vsel %vm2548_vm8, %v14085_v46, %v2495_v32  ;;  %v14765_v46 = vld [vmem:[%s20319_s0 + $0x1c8] sm:$0xff] }
 0x2fe   :  { %20403 = vst [vmem:[#allocation18_spill] sm:$0xff] %v14747_v27  ;;  %4328 = vrot.lane.b32.xlu0 %v14745_v5, %s12714_s21  ;;  %v2568_v22 = vsel %vm2548_vm8, %v2495_v32, %v14747_v27 }
 0x2ff   :  { %2546 = vrot.lane.b32.xlu1 %v14505_v47, %s12721_s24  ;;  %3480 = vmatprep.subr.mxu1 %v2568_v22 }
 0x300   :  { %3481 = vmatpush2.msra.mxu1 %v2567_v1  ;;  %v868_v10 = vpop.permute.xlu0 %867  ;;  %v14780_v1 = vld [vmem:[%s20319_s0 + $0x1d0] sm:$0xff] }
 0x301   :  { %v14767_v59 = vpop.permute.xlu1 %869  ;;  %v958_v32 = vsel %vm953_vm7, %v14272_v28, %v868_v10 }
 0x302   :  { %4324 = vrot.lane.b32.xlu0 %v14760_v39, %s12714_s21  ;;  %v959_v47 = vsel %vm953_vm7, %v868_v10, %v14767_v59 }
 0x303   :  { %4310 = vrot.lane.b32.xlu1 %v14765_v46, %s12714_s21  ;;  %3409 = vmatprep.subr.mxu0 %v959_v47 }
 0x304   :  { %3410 = vmatpush2.msra.mxu0 %v958_v32  ;;  %v2479_v22 = vpop.permute.xlu0 %2478  ;;  %v14795_v32 = vld [vmem:[%s20319_s0 + $0x1c0] sm:$0xff] }
 0x305   :  { %v14782_v27 = vpop.permute.xlu1 %2480  ;;  %v2560_v28 = vsel %vm2548_vm8, %v14105_v53, %v2479_v22  ;;  %v14800_v53 = vld [vmem:[%s20319_s0 + $0x188] sm:$0xff] }
 0x306   :  { %20404 = vst [vmem:[#allocation19_spill] sm:$0xff] %v14782_v27  ;;  %4312 = vrot.lane.b32.xlu0 %v14780_v1, %s12714_s21  ;;  %v2561_v10 = vsel %vm2548_vm8, %v2479_v22, %v14782_v27 }
 0x307   :  { %2530 = vrot.lane.b32.xlu1 %v14520_v13, %s12721_s24  ;;  %3482 = vmatprep.subr.mxu1 %v2561_v10 }
 0x308   :  { %3483 = vmatpush2.msra.mxu1 %v2560_v28  ;;  %v629_v47 = vpop.permute.xlu0 %628  ;;  %v14815_v28 = vld [vmem:[%s20319_s0 + $0x190] sm:$0xff] }
 0x309   :  { %v14802_v55 = vpop.permute.xlu1 %630  ;;  %v674_v22 = vsel %vm634_vm0, %v14292_v43, %v629_v47 }
 0x30a   :  { %4308 = vrot.lane.b32.xlu0 %v14795_v32, %s12714_s21  ;;  %v675_v13 = vsel %vm634_vm0, %v629_v47, %v14802_v55 }
 0x30b   :  { %4294 = vrot.lane.b32.xlu1 %v14800_v53, %s12714_s21  ;;  %3411 = vmatprep.subr.mxu0 %v675_v13 }
 0x30c   :  { %3412 = vmatpush2.msra.mxu0 %v674_v22  ;;  %v2463_v10 = vpop.permute.xlu0 %2462  ;;  %v14830_v22 = vld [vmem:[%s20319_s0 + $0x180] sm:$0xff] }
 0x30d   :  { %v14817_v27 = vpop.permute.xlu1 %2464  ;;  %v2553_v43 = vsel %vm2548_vm8, %v14125_v36, %v2463_v10  ;;  %v14835_v36 = vld [vmem:[%s20319_s0 + $0x2c8] sm:$0xff] }
 0x30e   :  { %20405 = vst [vmem:[#allocation20_spill] sm:$0xff] %v14817_v27  ;;  %4296 = vrot.lane.b32.xlu0 %v14815_v28, %s12714_s21  ;;  %v2554_v47 = vsel %vm2548_vm8, %v2463_v10, %v14817_v27 }
 0x30f   :  { %2514 = vrot.lane.b32.xlu1 %v14470_v23, %s12721_s24  ;;  %3484 = vmatprep.subr.mxu1 %v2554_v47  ;;  %v14844_v23 = vld [vmem:[%s20320_s1 + $0x10] sm:$0xff] }
 0x310   :  { %3485 = vmatpush2.msra.mxu1 %v2553_v43  ;;  %v613_v13 = vpop.permute.xlu0 %612  ;;  %20406 = vst [vmem:[#allocation21_spill] sm:$0xff] %v14844_v23 }
 0x311   :  { %v14837_v40 = vpop.permute.xlu1 %614  ;;  %v667_v10 = vsel %vm634_vm0, %v14312_v24, %v613_v13  ;;  %3487 = vmatmul.mubr.f32.vlgmr.msra.gmra.mxu1 %v14844_v23  ;;  %v14857_v24 = vld [vmem:[%s20319_s0 + $0x2d0] sm:$0xff] }
 0x312   :  { %4292 = vrot.lane.b32.xlu0 %v14830_v22, %s12714_s21  ;;  %v668_v43 = vsel %vm634_vm0, %v613_v13, %v14837_v40  ;;  %3557 = vmatprep.mubr.f32.mxu1 %v14147_v12  ;;  %v14865_v12 = vld [vmem:[%s20320_s1] sm:$0xff] }
 0x313   :  { %4056 = vrot.lane.b32.xlu1 %v14835_v36, %s12715_s28  ;;  %3413 = vmatprep.subr.mxu0 %v668_v43  ;;  %v14882_v43 = vld [vmem:[%s20319_s0 + $0x288] sm:$0xff] }
 0x314   :  { %3414 = vmatpush2.msra.mxu0 %v667_v10  ;;  %v1526_v47 = vpop.permute.xlu0 %1525 }
 0x315   :  { %v601_v23 = vpop.permute.xlu1 %600  ;;  %v1605_v27 = vsel %vm1591_vm4, %v14444_v56, %v1526_v47  ;;  %3563 = vmatprep.subr.mxu0 %v20353_v14  ;;  %3416 = vmatmul.mubr.f32.vlgmr.msra.gmra.mxu0 %v14865_v12  ;;  %v14877_v56 = vld [vmem:[%s20319_s0 + $0x2c0] sm:$0xff] }
 0x316   :  { %v662_v13 = vsel %vm634_vm0, %v14135_v21, %v601_v23  ;;  %4058 = vrot.lane.b32.xlu0 %v14857_v24, %s12715_s28  ;;  %12008 = vmatprep.subr.mxu1 %v1605_v27  ;;  %v14897_v23 = vld [vmem:[%s20319_s0 + $0x290] sm:$0xff] }
 0x317   :  { %2498 = vrot.lane.b32.xlu1 %v14490_v34, %s12721_s24  ;;  %12009 = vmatpush3.msra.mxu1 %v662_v13  ;;  %v14910_v13 = vld [vmem:[%s20319_s0 + $0x280] sm:$0xff] }
 0x318   :  { %v1510_v10 = vpop.permute.xlu0 %1509  ;;  %11565 = vmatprep.mubr.msk.f32.mxu0 %vm3063_vm6, %v14334_v37 }
 0x319   :  { %v585_v21 = vpop.permute.xlu1 %584  ;;  %v1598_v27 = vsel %vm1591_vm4, %v14472_v0, %v1510_v10 }
 0x31a   :  { %v655_v34 = vsel %vm634_vm0, %v14162_v35, %v585_v21  ;;  %4054 = vrot.lane.b32.xlu0 %v14877_v56, %s12715_s28  ;;  %12010 = vmatprep.subr.mxu1 %v1598_v27 }
 0x31b   :  { %4040 = vrot.lane.b32.xlu1 %v14882_v43, %s12715_s28  ;;  %12011 = vmatpush3.msra.mxu1 %v655_v34 }
 0x31c   :  { %v2228_v37 = vpop.permute.xlu0 %2227 }
 0x31d   :  { %v2271_v0 = vsel %vm2229_vm2, %v14340_v44, %v2228_v37  ;;  %v1271_v47 = vpop.permute.xlu1 %1270 }
 0x31e   :  { %4042 = vrot.lane.b32.xlu0 %v14897_v23, %s12715_s28  ;;  %v1314_v35 = vsel %vm1272_vm5, %v14507_v9, %v1271_v47  ;;  %3564 = vmatpush1.msra.mxu0 %v2271_v0 }
 0x31f   :  { %2482 = vrot.lane.b32.xlu1 %v14465_v38, %s12721_s24  ;;  %12012 = vmatprep.subr.mxu1 %v1314_v35 }
 0x320   :  { %v569_v10 = vpop.permute.xlu0 %568  ;;  %3565 = vmatprep.subr.mxu0 %v20353_v14 }
 0x321   :  { %v648_v44 = vsel %vm634_vm0, %v14182_v11, %v569_v10  ;;  %v2212_v21 = vpop.permute.xlu1 %2211 }
 0x322   :  { %v2264_v9 = vsel %vm2229_vm2, %v14359_v31, %v2212_v21  ;;  %4038 = vrot.lane.b32.xlu0 %v14910_v13, %s12715_s28  ;;  %12013 = vmatpush3.msra.mxu1 %v648_v44 }
 0x323   :  { %4024 = vrot.lane.b32.xlu1 %v14695_v61, %s12715_s28  ;;  %3566 = vmatpush1.msra.mxu0 %v2264_v9 }
 0x324   :  { %v1255_v38 = vpop.permute.xlu0 %1254  ;;  %3567 = vmatprep.subr.mxu0 %v20353_v14 }
 0x325   :  { %v553_v27 = vpop.permute.xlu1 %552  ;;  %v1307_v34 = vsel %vm1272_vm5, %v14532_v57, %v1255_v38 }
 0x326   :  { %v641_v11 = vsel %vm634_vm0, %v14202_v19, %v553_v27  ;;  %4026 = vrot.lane.b32.xlu0 %v14710_v4, %s12715_s28  ;;  %12014 = vmatprep.subr.mxu1 %v1307_v34  ;;  %v20408_v27 = vld [vmem:[#allocation12_spill] sm:$0xff] }
 0x327   :  { %2466 = vrot.lane.b32.xlu1 %v14485_v52, %s12721_s24  ;;  %12015 = vmatpush3.msra.mxu1 %v641_v11 }
 0x328   :  { %v2196_v31 = vpop.permute.xlu0 %2195 }
 0x329   :  { %v2257_v37 = vsel %vm2229_vm2, %v14377_v16, %v2196_v31  ;;  %v1239_v0 = vpop.permute.xlu1 %1238 }
 0x32a   :  { %4022 = vrot.lane.b32.xlu0 %v14725_v60, %s12715_s28  ;;  %v1300_v57 = vsel %vm1272_vm5, %v14552_v33, %v1239_v0  ;;  %3568 = vmatpush1.msra.mxu0 %v2257_v37 }
 0x32b   :  { %4008 = vrot.lane.b32.xlu1 %v14730_v30, %s12715_s28  ;;  %12016 = vmatprep.subr.mxu1 %v1300_v57 }
 0x32c   :  { %v314_v19 = vpop.permute.xlu0 %313  ;;  %3569 = vmatprep.subr.mxu0 %v20353_v14 }
 0x32d   :  { %v357_v52 = vsel %vm315_vm1, %v14222_v2, %v314_v19  ;;  %v2180_v47 = vpop.permute.xlu1 %2179  ;;  %v20407_v2 = vld [vmem:[#allocation11_spill] sm:$0xff] }
 0x32e   :  { %v2250_v16 = vsel %vm2229_vm2, %v14399_v48, %v2180_v47  ;;  %4010 = vrot.lane.b32.xlu0 %v14745_v5, %s12715_s28  ;;  %12017 = vmatpush3.msra.mxu1 %v357_v52 }
 0x32f   :  { %5964 = vrot.lane.b32.xlu1 %v14835_v36, %s12716_s18  ;;  %3570 = vmatpush1.msra.mxu0 %v2250_v16 }
 0x330   :  { %v1223_v33 = vpop.permute.xlu0 %1222  ;;  %3571 = vmatprep.subr.mxu0 %v20353_v14 }
 0x331   :  { %v298_v35 = vpop.permute.xlu1 %297  ;;  %v1293_v10 = vsel %vm1272_vm5, %v14572_v15, %v1223_v33 }
 0x332   :  { %v350_v44 = vsel %vm315_vm1, %v20407_v2, %v298_v35  ;;  %5966 = vrot.lane.b32.xlu0 %v14857_v24, %s12716_s18  ;;  %12018 = vmatprep.subr.mxu1 %v1293_v10 }
 0x333   :  { %4006 = vrot.lane.b32.xlu1 %v14760_v39, %s12715_s28  ;;  %12019 = vmatpush3.msra.mxu1 %v350_v44 }
 0x334   :  { %v2164_v48 = vpop.permute.xlu0 %2163 }
 0x335   :  { %v2243_v21 = vsel %vm2229_vm2, %v14410_v62, %v2164_v48  ;;  %v1207_v9 = vpop.permute.xlu1 %1206  ;;  %v73_v48 = vld [vmem:[%s20319_s0 + $0x130] sm:$0xff] }
 0x336   :  { %5962 = vrot.lane.b32.xlu0 %v14877_v56, %s12716_s18  ;;  %v1286_v15 = vsel %vm1272_vm5, %v14592_v29, %v1207_v9  ;;  %3572 = vmatpush1.msra.mxu0 %v2243_v21 }
 0x337   :  { %3992 = vrot.lane.b32.xlu1 %v14765_v46, %s12715_s28  ;;  %12020 = vmatprep.subr.mxu1 %v1286_v15  ;;  %v66_v15 = vld [vmem:[%s20319_s0 + $0xf0] sm:$0xff] }
 0x338   :  { %v282_v38 = vpop.permute.xlu0 %281  ;;  %3573 = vmatprep.subr.mxu0 %v20353_v14 }
 0x339   :  { %v343_v34 = vsel %vm315_vm1, %v20408_v27, %v282_v38  ;;  %v2148_v11 = vpop.permute.xlu1 %2147 }
 0x33a   :  { %v2236_v62 = vsel %vm2229_vm2, %v14423_v20, %v2148_v11  ;;  %3994 = vrot.lane.b32.xlu0 %v14780_v1, %s12715_s28  ;;  %12021 = vmatpush3.msra.mxu1 %v343_v34  ;;  %v59_v34 = vld [vmem:[%s20319_s0 + $0xb0] sm:$0xff] }
 0x33b   :  { %5948 = vrot.lane.b32.xlu1 %v14882_v43, %s12716_s18  ;;  %3574 = vmatpush1.msra.mxu0 %v2236_v62 }
 0x33c   :  { %v1191_v29 = vpop.permute.xlu0 %1190  ;;  %3575 = vmatprep.subr.mxu0 %v20353_v14 }
 0x33d   :  { %v266_v31 = vpop.permute.xlu1 %265  ;;  %v1279_v37 = vsel %vm1272_vm5, %v14612_v45, %v1191_v29  ;;  %v52_v29 = vld [vmem:[%s20319_s0 + $0x70] sm:$0xff] }
 0x33e   :  { %v336_v0 = vsel %vm315_vm1, %v14282_v25, %v266_v31  ;;  %5950 = vrot.lane.b32.xlu0 %v14897_v23, %s12716_s18  ;;  %12022 = vmatprep.subr.mxu1 %v1279_v37 }
 0x33f   :  { %3990 = vrot.lane.b32.xlu1 %v14795_v32, %s12715_s28  ;;  %12023 = vmatpush3.msra.mxu1 %v336_v0  ;;  %v45_v0 = vld [vmem:[%s20319_s0 + $0x30] sm:$0xff] }
 0x340   :  { %v1909_v20 = vpop.permute.xlu0 %1908 }
 0x341   :  { %v1952_v57 = vsel %vm1910_vm3, %v14431_v51, %v1909_v20  ;;  %v952_v19 = vpop.permute.xlu1 %951 }
 0x342   :  { %5946 = vrot.lane.b32.xlu0 %v14910_v13, %s12716_s18  ;;  %v995_v45 = vsel %vm953_vm7, %v14632_v3, %v952_v19  ;;  %3576 = vmatpush1.msra.mxu0 %v1952_v57 }
 0x343   :  { %3976 = vrot.lane.b32.xlu1 %v14800_v53, %s12715_s28  ;;  %12024 = vmatprep.subr.mxu1 %v995_v45 }
 0x344   :  { %v250_v25 = vpop.permute.xlu0 %249  ;;  %3577 = vmatprep.subr.mxu0 %v20353_v14 }
 0x345   :  { %v329_v52 = vsel %vm315_vm1, %v14302_v42, %v250_v25  ;;  %v1893_v47 = vpop.permute.xlu1 %1892 }
 0x346   :  { %v1945_v51 = vsel %vm1910_vm3, %v14452_v54, %v1893_v47  ;;  %3978 = vrot.lane.b32.xlu0 %v14815_v28, %s12715_s28  ;;  %12025 = vmatpush3.msra.mxu1 %v329_v52  ;;  %v20410_v52 = vld [vmem:[#allocation14_spill] sm:$0xff] }
 0x347   :  { %5932 = vrot.lane.b32.xlu1 %v14695_v61, %s12716_s18  ;;  %3578 = vmatpush1.msra.mxu0 %v1945_v51 }
 0x348   :  { %v936_v3 = vpop.permute.xlu0 %935  ;;  %3579 = vmatprep.subr.mxu0 %v20353_v14 }
 0x349   :  { %v234_v16 = vpop.permute.xlu1 %233  ;;  %v988_v33 = vsel %vm953_vm7, %v14652_v7, %v936_v3  ;;  %v80_v7 = vld [vmem:[%s20319_s0 + $0x170] sm:$0xff] }
 0x34a   :  { %v322_v42 = vsel %vm315_vm1, %v14322_v6, %v234_v16  ;;  %5934 = vrot.lane.b32.xlu0 %v14710_v4, %s12716_s18  ;;  %12026 = vmatprep.subr.mxu1 %v988_v33 }
 0x34b   :  { %3974 = vrot.lane.b32.xlu1 %v14830_v22, %s12715_s28  ;;  %12027 = vmatpush3.msra.mxu1 %v322_v42 }
 0x34c   :  { %v1877_v54 = vpop.permute.xlu0 %1876 }
 0x34d   :  { %v1938_v35 = vsel %vm1910_vm3, %v14492_v8, %v1877_v54  ;;  %v920_v10 = vpop.permute.xlu1 %919  ;;  %v20411_v54 = vld [vmem:[#allocation15_spill] sm:$0xff] }
 0x34e   :  { %5930 = vrot.lane.b32.xlu0 %v14725_v60, %s12716_s18  ;;  %v981_v6 = vsel %vm953_vm7, %v14672_v17, %v920_v10  ;;  %3580 = vmatpush1.msra.mxu0 %v1938_v35 }
 0x34f   :  { %5916 = vrot.lane.b32.xlu1 %v14730_v30, %s12716_s18  ;;  %12028 = vmatprep.subr.mxu1 %v981_v6 }
 0x350   :  { %v1861_v2 = vpop.permute.xlu0 %1860  ;;  %12029 = vmatpush3.msra.mxu1 %v80_v7  ;;  %3581 = vmatprep.subr.mxu0 %v20353_v14 }
 0x351   :  { %v1931_v8 = vsel %vm1910_vm3, %v14522_v58, %v1861_v2  ;;  %v904_v44 = vpop.permute.xlu1 %903 }
 0x352   :  { %5918 = vrot.lane.b32.xlu0 %v14745_v5, %s12716_s18  ;;  %v974_v17 = vsel %vm953_vm7, %v14697_v63, %v904_v44  ;;  %3582 = vmatpush1.msra.mxu0 %v1931_v8 }
 0x353   :  { %5914 = vrot.lane.b32.xlu1 %v14760_v39, %s12716_s18  ;;  %12030 = vmatprep.subr.mxu1 %v974_v17 }
 0x354   :  { %v1845_v21 = vpop.permute.xlu0 %1844  ;;  %12031 = vmatpush3.msra.mxu1 %v73_v48  ;;  %3583 = vmatprep.subr.mxu0 %v20353_v14  ;;  %v20412_v48 = vld [vmem:[#allocation16_spill] sm:$0xff] }
 0x355   :  { %v1924_v58 = vsel %vm1910_vm3, %v14542_v41, %v1845_v21  ;;  %v888_v9 = vpop.permute.xlu1 %887 }
 0x356   :  { %5900 = vrot.lane.b32.xlu0 %v14765_v46, %s12716_s18  ;;  %v967_v63 = vsel %vm953_vm7, %v14732_v18, %v888_v9  ;;  %3584 = vmatpush1.msra.mxu0 %v1924_v58 }
 0x357   :  { %5902 = vrot.lane.b32.xlu1 %v14780_v1, %s12716_s18  ;;  %12032 = vmatprep.subr.mxu1 %v967_v63 }
 0x358   :  { %v1829_v38 = vpop.permute.xlu0 %1828  ;;  %12033 = vmatpush3.msra.mxu1 %v66_v15  ;;  %3585 = vmatprep.subr.mxu0 %v20353_v14 }
 0x359   :  { %v1917_v41 = vsel %vm1910_vm3, %v14562_v26, %v1829_v38  ;;  %v872_v27 = vpop.permute.xlu1 %871 }
 0x35a   :  { %5898 = vrot.lane.b32.xlu0 %v14795_v32, %s12716_s18  ;;  %v960_v18 = vsel %vm953_vm7, %v14767_v59, %v872_v27  ;;  %3586 = vmatpush1.msra.mxu0 %v1917_v41  ;;  %v20413_v41 = vld [vmem:[#allocation17_spill] sm:$0xff] }
 0x35b   :  { %5884 = vrot.lane.b32.xlu1 %v14800_v53, %s12716_s18  ;;  %12034 = vmatprep.subr.mxu1 %v960_v18 }
 0x35c   :  { %v1590_v11 = vpop.permute.xlu0 %1589  ;;  %12035 = vmatpush3.msra.mxu1 %v59_v34  ;;  %3587 = vmatprep.subr.mxu0 %v20353_v14 }
 0x35d   :  { %v1633_v26 = vsel %vm1591_vm4, %v14582_v50, %v1590_v11  ;;  %v633_v62 = vpop.permute.xlu1 %632 }
 0x35e   :  { %5886 = vrot.lane.b32.xlu0 %v14815_v28, %s12716_s18  ;;  %v676_v59 = vsel %vm634_vm0, %v14802_v55, %v633_v62  ;;  %3588 = vmatpush1.msra.mxu0 %v1633_v26 }
 0x35f   :  { %5882 = vrot.lane.b32.xlu1 %v14830_v22, %s12716_s18  ;;  %12036 = vmatprep.subr.mxu1 %v676_v59  ;;  %v20414_v59 = vld [vmem:[#allocation18_spill] sm:$0xff] }
 0x360   :  { %v1574_v31 = vpop.permute.xlu0 %1573  ;;  %12037 = vmatpush3.msra.mxu1 %v52_v29  ;;  %3589 = vmatprep.subr.mxu0 %v20353_v14 }
 0x361   :  { %v1626_v50 = vsel %vm1591_vm4, %v14602_v49, %v1574_v31  ;;  %v617_v37 = vpop.permute.xlu1 %616  ;;  %v20409_v49 = vld [vmem:[#allocation13_spill] sm:$0xff] }
 0x362   :  { %5646 = vrot.lane.b32.xlu0 %v14835_v36, %s12717_s19  ;;  %v669_v55 = vsel %vm634_vm0, %v14837_v40, %v617_v37  ;;  %3590 = vmatpush1.msra.mxu0 %v1626_v50 }
 0x363   :  { %5648 = vrot.lane.b32.xlu1 %v14857_v24, %s12717_s19  ;;  %12038 = vmatprep.subr.mxu1 %v669_v55 }
 0x364   :  { %v1558_v20 = vpop.permute.xlu0 %1557  ;;  %3591 = vmatprep.subr.mxu0 %v20353_v14  ;;  %12039 = vmatpush3.msra.mxu1 %v45_v0 }
 0x365   :  { %v1619_v57 = vsel %vm1591_vm4, %v20409_v49, %v1558_v20  ;;  %v4343_v19 = vpop.permute.xlu1 %4342  ;;  %3558 = vmatmul.mubr.f32.vlgmr.msra.gmra.mxu1 %v14865_v12 }
 0x366   :  { %5644 = vrot.lane.b32.xlu0 %v14877_v56, %s12717_s19  ;;  %3592 = vmatpush1.msra.mxu0 %v1619_v57  ;;  %v20415_v57 = vld [vmem:[#allocation19_spill] sm:$0xff] }
 0x367   :  { %5630 = vrot.lane.b32.xlu1 %v14882_v43, %s12717_s19  ;;  %3593 = vmatprep.subr.mxu0 %v20353_v14 }
 0x368   :  { %v15088_v40 = vpop.permute.xlu0 %4344 }
 0x369   :  { %v1542_v45 = vpop.permute.xlu1 %1541  ;;  %v4410_v25 = vsel %vm634_vm0, %v4343_v19, %v15088_v40 }
 0x36a   :  { %v1612_v47 = vsel %vm1591_vm4, %v20410_v52, %v1542_v45  ;;  %5632 = vrot.lane.b32.xlu0 %v14897_v23, %s12717_s19  ;;  %6813 = vmatprep.subr.mxu1 %v4410_v25 }
 0x36b   :  { %5628 = vrot.lane.b32.xlu1 %v14910_v13, %s12717_s19  ;;  %3594 = vmatpush1.msra.mxu0 %v1612_v47 }
 0x36c   :  { %v4341_v12 = vpop.permute.xlu0 %4340  ;;  %3615 = vmatprep.subr.mxu0 %v20353_v14 }
 0x36d   :  { %v4409_v51 = vsel %vm634_vm0, %v4341_v12, %v4343_v19  ;;  %v4327_v3 = vpop.permute.xlu1 %4326 }
 0x36e   :  { %5614 = vrot.lane.b32.xlu0 %v14695_v61, %s12717_s19  ;;  %6814 = vmatpush1.msra.mxu1 %v4409_v51 }
 0x36f   :  { %5616 = vrot.lane.b32.xlu1 %v14710_v4, %s12717_s19 }
 0x370   :  { %v15104_v16 = vpop.permute.xlu0 %4328 }
 0x371   :  { %v2547_v33 = vpop.permute.xlu1 %2546  ;;  %v4403_v42 = vsel %vm634_vm0, %v4327_v3, %v15104_v16 }
 0x372   :  { %v2590_v35 = vsel %vm2548_vm8, %v20411_v54, %v2547_v33  ;;  %5612 = vrot.lane.b32.xlu0 %v14725_v60, %s12717_s19  ;;  %6815 = vmatprep.subr.mxu1 %v4403_v42  ;;  %v20417_v54 = vld [vmem:[#allocation21_spill] sm:$0xff] }
 0x373   :  { %5264 = vrot.lane.b32.xlu1 %v14765_v46, %s12718_s20  ;;  %3616 = vmatpush2.msra.mxu0 %v2590_v35 }
 0x374   :  { %v4325_v10 = vpop.permute.xlu0 %4324  ;;  %3617 = vmatprep.subr.mxu0 %v20353_v14 }
 0x375   :  { %v4402_v7 = vsel %vm634_vm0, %v4325_v10, %v4327_v3  ;;  %v4311_v6 = vpop.permute.xlu1 %4310  ;;  %v20416_v3 = vld [vmem:[#allocation20_spill] sm:$0xff] }
 0x376   :  { %5266 = vrot.lane.b32.xlu0 %v14780_v1, %s12718_s20  ;;  %6816 = vmatpush1.msra.mxu1 %v4402_v7 }
 0x377   :  { %5598 = vrot.lane.b32.xlu1 %v14730_v30, %s12717_s19 }
 0x378   :  { %v15120_v2 = vpop.permute.xlu0 %4312 }
 0x379   :  { %v2531_v8 = vpop.permute.xlu1 %2530  ;;  %v4396_v44 = vsel %vm634_vm0, %v4311_v6, %v15120_v2 }
 0x37a   :  { %v2583_v17 = vsel %vm2548_vm8, %v20412_v48, %v2531_v8  ;;  %5600 = vrot.lane.b32.xlu0 %v14745_v5, %s12717_s19  ;;  %6817 = vmatprep.subr.mxu1 %v4396_v44 }
 0x37b   :  { %5262 = vrot.lane.b32.xlu1 %v14795_v32, %s12718_s20  ;;  %3618 = vmatpush2.msra.mxu0 %v2583_v17 }
 0x37c   :  { %v4309_v21 = vpop.permute.xlu0 %4308  ;;  %3619 = vmatprep.subr.mxu0 %v20353_v14 }
 0x37d   :  { %v4395_v58 = vsel %vm634_vm0, %v4309_v21, %v4311_v6  ;;  %v4295_v9 = vpop.permute.xlu1 %4294 }
 0x37e   :  { %5596 = vrot.lane.b32.xlu0 %v14760_v39, %s12717_s19  ;;  %6818 = vmatpush1.msra.mxu1 %v4395_v58 }
 0x37f   :  { %5248 = vrot.lane.b32.xlu1 %v14800_v53, %s12718_s20 }
 0x380   :  { %v15136_v15 = vpop.permute.xlu0 %4296 }
 0x381   :  { %v2515_v63 = vpop.permute.xlu1 %2514  ;;  %v4389_v38 = vsel %vm634_vm0, %v4295_v9, %v15136_v15 }
 0x382   :  { %v2576_v27 = vsel %vm2548_vm8, %v20413_v41, %v2515_v63  ;;  %5250 = vrot.lane.b32.xlu0 %v14815_v28, %s12718_s20  ;;  %6819 = vmatprep.subr.mxu1 %v4389_v38 }
 0x383   :  { %5582 = vrot.lane.b32.xlu1 %v14765_v46, %s12717_s19  ;;  %3620 = vmatpush2.msra.mxu0 %v2576_v27 }
 0x384   :  { %v4293_v34 = vpop.permute.xlu0 %4292  ;;  %3621 = vmatprep.subr.mxu0 %v20353_v14 }
 0x385   :  { %v4388_v18 = vsel %vm634_vm0, %v4293_v34, %v4295_v9  ;;  %v4057_v11 = vpop.permute.xlu1 %4056 }
 0x386   :  { %5584 = vrot.lane.b32.xlu0 %v14780_v1, %s12717_s19  ;;  %6820 = vmatpush1.msra.mxu1 %v4388_v18 }
 0x387   :  { %5246 = vrot.lane.b32.xlu1 %v14830_v22, %s12718_s20 }
 0x388   :  { %v15152_v26 = vpop.permute.xlu0 %4058 }
 0x389   :  { %v2499_v62 = vpop.permute.xlu1 %2498  ;;  %v4106_v29 = vsel %vm315_vm1, %v4057_v11, %v15152_v26 }
 0x38a   :  { %v2569_v31 = vsel %vm2548_vm8, %v20414_v59, %v2499_v62  ;;  %5580 = vrot.lane.b32.xlu0 %v14795_v32, %s12717_s19  ;;  %6821 = vmatprep.subr.mxu1 %v4106_v29 }
 0x38b   :  { %5010 = vrot.lane.b32.xlu1 %v14835_v36, %s12719_s22  ;;  %3622 = vmatpush2.msra.mxu0 %v2569_v31 }
 0x38c   :  { %v4055_v50 = vpop.permute.xlu0 %4054  ;;  %3623 = vmatprep.subr.mxu0 %v20353_v14 }
 0x38d   :  { %v4105_v37 = vsel %vm315_vm1, %v4055_v50, %v4057_v11  ;;  %v4041_v0 = vpop.permute.xlu1 %4040 }
 0x38e   :  { %5012 = vrot.lane.b32.xlu0 %v14857_v24, %s12719_s22  ;;  %6822 = vmatpush1.msra.mxu1 %v4105_v37 }
 0x38f   :  { %5566 = vrot.lane.b32.xlu1 %v14800_v53, %s12717_s19 }
 0x390   :  { %v15168_v55 = vpop.permute.xlu0 %4042 }
 0x391   :  { %v2483_v20 = vpop.permute.xlu1 %2482  ;;  %v4099_v49 = vsel %vm315_vm1, %v4041_v0, %v15168_v55 }
 0x392   :  { %v2562_v19 = vsel %vm2548_vm8, %v20415_v57, %v2483_v20  ;;  %5568 = vrot.lane.b32.xlu0 %v14815_v28, %s12717_s19  ;;  %6823 = vmatprep.subr.mxu1 %v4099_v49  ;;  %v15259_v49 = vld [vmem:[%s20319_s0 + $0x2c8] sm:$0xff] }
 0x393   :  { %5008 = vrot.lane.b32.xlu1 %v14877_v56, %s12719_s22  ;;  %3624 = vmatpush2.msra.mxu0 %v2562_v19 }
 0x394   :  { %v4039_v45 = vpop.permute.xlu0 %4038  ;;  %3625 = vmatprep.subr.mxu0 %v20353_v14 }
 0x395   :  { %v4098_v25 = vsel %vm315_vm1, %v4039_v45, %v4041_v0  ;;  %v4025_v52 = vpop.permute.xlu1 %4024 }
 0x396   :  { %5564 = vrot.lane.b32.xlu0 %v14830_v22, %s12717_s19  ;;  %6824 = vmatpush1.msra.mxu1 %v4098_v25 }
 0x397   :  { %4994 = vrot.lane.b32.xlu1 %v14882_v43, %s12719_s22 }
 0x398   :  { %v15184_v47 = vpop.permute.xlu0 %4026 }
 0x399   :  { %v2467_v12 = vpop.permute.xlu1 %2466  ;;  %v4092_v51 = vsel %vm315_vm1, %v4025_v52, %v15184_v47 }
 0x39a   :  { %v2555_v33 = vsel %vm2548_vm8, %v20416_v3, %v2467_v12  ;;  %4996 = vrot.lane.b32.xlu0 %v14897_v23, %s12719_s22  ;;  %6825 = vmatprep.subr.mxu1 %v4092_v51  ;;  %v15303_v12 = vld [vmem:[%s20319_s0 + $0x200] sm:$0xff] }
 0x39b   :  { %5328 = vrot.lane.b32.xlu1 %v14835_v36, %s12718_s20  ;;  %3626 = vmatpush2.msra.mxu0 %v2555_v33  ;;  %v15322_v33 = vld [vmem:[%s20319_s0 + $0x1c0] sm:$0xff] }
 0x39c   :  { %v4023_v42 = vpop.permute.xlu0 %4022  ;;  %3628 = vmatmul.mubr.f32.vlgmr.msra.gmra.mxu0 %v20417_v54 }
 0x39d   :  { %v4091_v35 = vsel %vm315_vm1, %v4023_v42, %v4025_v52  ;;  %v4009_v10 = vpop.permute.xlu1 %4008 }
 0x39e   :  { %5330 = vrot.lane.b32.xlu0 %v14857_v24, %s12718_s20  ;;  %6826 = vmatpush1.msra.mxu1 %v4091_v35 }
 0x39f   :  { %4992 = vrot.lane.b32.xlu1 %v14910_v13, %s12719_s22 }
 0x3a0   :  { %v15200_v7 = vpop.permute.xlu0 %4010 }
 0x3a1   :  { %v5965_v6 = vpop.permute.xlu1 %5964  ;;  %v4085_v8 = vsel %vm315_vm1, %v4009_v10, %v15200_v7 }
 0x3a2   :  { %5326 = vrot.lane.b32.xlu0 %v14877_v56, %s12718_s20  ;;  %6827 = vmatprep.subr.mxu1 %v4085_v8 }
 0x3a3   :  { %4978 = vrot.lane.b32.xlu1 %v14695_v61, %s12719_s22 }
 0x3a4   :  { %v15208_v44 = vpop.permute.xlu0 %5966 }
 0x3a5   :  { %v4007_v48 = vpop.permute.xlu1 %4006  ;;  %v6014_v17 = vsel %vm2229_vm2, %v5965_v6, %v15208_v44 }
 0x3a6   :  { %v4084_v21 = vsel %vm315_vm1, %v4007_v48, %v4009_v10  ;;  %4980 = vrot.lane.b32.xlu0 %v14710_v4, %s12719_s22  ;;  %6884 = vmatprep.subr.mxu0 %v6014_v17  ;;  %v15337_v10 = vld [vmem:[%s20319_s0 + $0x180] sm:$0xff] }
 0x3a7   :  { %5312 = vrot.lane.b32.xlu1 %v14882_v43, %s12718_s20  ;;  %6828 = vmatpush1.msra.mxu1 %v4084_v21 }
 0x3a8   :  { %v5963_v58 = vpop.permute.xlu0 %5962 }
 0x3a9   :  { %v6013_v9 = vsel %vm2229_vm2, %v5963_v58, %v5965_v6  ;;  %v3993_v63 = vpop.permute.xlu1 %3992 }
 0x3aa   :  { %5314 = vrot.lane.b32.xlu0 %v14897_v23, %s12718_s20  ;;  %6885 = vmatpush1.msra.mxu0 %v6013_v9 }
 0x3ab   :  { %4976 = vrot.lane.b32.xlu1 %v14725_v60, %s12719_s22 }
 0x3ac   :  { %v15222_v38 = vpop.permute.xlu0 %3994 }
 0x3ad   :  { %v5949_v41 = vpop.permute.xlu1 %5948  ;;  %v4078_v27 = vsel %vm315_vm1, %v3993_v63, %v15222_v38 }
 0x3ae   :  { %5310 = vrot.lane.b32.xlu0 %v14910_v13, %s12718_s20  ;;  %6829 = vmatprep.subr.mxu1 %v4078_v27 }
 0x3af   :  { %4962 = vrot.lane.b32.xlu1 %v14730_v30, %s12719_s22 }
 0x3b0   :  { %v15230_v34 = vpop.permute.xlu0 %5950 }
 0x3b1   :  { %v3991_v18 = vpop.permute.xlu1 %3990  ;;  %v6007_v11 = vsel %vm2229_vm2, %v5949_v41, %v15230_v34 }
 0x3b2   :  { %v4077_v62 = vsel %vm315_vm1, %v3991_v18, %v3993_v63  ;;  %4964 = vrot.lane.b32.xlu0 %v14745_v5, %s12719_s22  ;;  %6886 = vmatprep.subr.mxu0 %v6007_v11 }
 0x3b3   :  { %5296 = vrot.lane.b32.xlu1 %v14695_v61, %s12718_s20  ;;  %6830 = vmatpush1.msra.mxu1 %v4077_v62 }
 0x3b4   :  { %v5947_v29 = vpop.permute.xlu0 %5946 }
 0x3b5   :  { %v6006_v59 = vsel %vm2229_vm2, %v5947_v29, %v5949_v41  ;;  %v3977_v31 = vpop.permute.xlu1 %3976  ;;  %v11970_v29 = vld [vmem:[%s20319_s0 + $0x250] sm:$0xff] }
 0x3b6   :  { %5298 = vrot.lane.b32.xlu0 %v14710_v4, %s12718_s20  ;;  %6887 = vmatpush1.msra.mxu0 %v6006_v59 }
 0x3b7   :  { %4960 = vrot.lane.b32.xlu1 %v14760_v39, %s12719_s22 }
 0x3b8   :  { %v15244_v50 = vpop.permute.xlu0 %3978 }
 0x3b9   :  { %v5933_v37 = vpop.permute.xlu1 %5932  ;;  %v4071_v0 = vsel %vm315_vm1, %v3977_v31, %v15244_v50 }
 0x3ba   :  { %5294 = vrot.lane.b32.xlu0 %v14725_v60, %s12718_s20  ;;  %6831 = vmatprep.subr.mxu1 %v4071_v0 }
 0x3bb   :  { %4946 = vrot.lane.b32.xlu1 %v14765_v46, %s12719_s22 }
 0x3bc   :  { %v15252_v61 = vpop.permute.xlu0 %5934 }
 0x3bd   :  { %v3975_v4 = vpop.permute.xlu1 %3974  ;;  %v6000_v20 = vsel %vm2229_vm2, %v5933_v37, %v15252_v61 }
 0x3be   :  { %v4070_v57 = vsel %vm315_vm1, %v3975_v4, %v3977_v31  ;;  %4948 = vrot.lane.b32.xlu0 %v14780_v1, %s12719_s22  ;;  %6888 = vmatprep.subr.mxu0 %v6000_v20  ;;  %v15274_v1 = vld [vmem:[%s20319_s0 + $0x248] sm:$0xff] }
 0x3bf   :  { %5280 = vrot.lane.b32.xlu1 %v14730_v30, %s12718_s20  ;;  %6832 = vmatpush1.msra.mxu1 %v4070_v57 }
 0x3c0   :  { %v5931_v60 = vpop.permute.xlu0 %5930  ;;  %6833 = vmatprep.subr.mxu1 %v15259_v49 }
 0x3c1   :  { %v5999_v46 = vsel %vm2229_vm2, %v5931_v60, %v5933_v37  ;;  %v5917_v19 = vpop.permute.xlu1 %5916  ;;  %6834 = vmatpush1.msra.mxu1 %v14877_v56  ;;  %v11962_v60 = vld [vmem:[%s20319_s0 + $0x210] sm:$0xff] }
 0x3c2   :  { %5282 = vrot.lane.b32.xlu0 %v14745_v5, %s12718_s20  ;;  %6889 = vmatpush1.msra.mxu0 %v5999_v46  ;;  %v15288_v5 = vld [vmem:[%s20319_s0 + $0x240] sm:$0xff] }
 0x3c3   :  { %4944 = vrot.lane.b32.xlu1 %v14795_v32, %s12719_s22  ;;  %6835 = vmatprep.subr.mxu1 %v14882_v43  ;;  %v15296_v32 = vld [vmem:[%s20319_s0 + $0x208] sm:$0xff] }
 0x3c4   :  { %v15279_v30 = vpop.permute.xlu0 %5918  ;;  %6836 = vmatpush1.msra.mxu1 %v14910_v13 }
 0x3c5   :  { %v5915_v45 = vpop.permute.xlu1 %5914  ;;  %v5993_v25 = vsel %vm2229_vm2, %v5917_v19, %v15279_v30  ;;  %6837 = vmatprep.subr.mxu1 %v15274_v1 }
 0x3c6   :  { %v5992_v52 = vsel %vm2229_vm2, %v5915_v45, %v5917_v19  ;;  %5278 = vrot.lane.b32.xlu0 %v14760_v39, %s12718_s20  ;;  %6890 = vmatprep.subr.mxu0 %v5993_v25  ;;  %v15312_v39 = vld [vmem:[%s20319_s0 + $0x1c8] sm:$0xff] }
 0x3c7   :  { %4930 = vrot.lane.b32.xlu1 %v14800_v53, %s12719_s22  ;;  %6891 = vmatpush1.msra.mxu0 %v5992_v52 }
 0x3c8   :  { %v5901_v51 = vpop.permute.xlu0 %5900  ;;  %6838 = vmatpush1.msra.mxu1 %v15288_v5 }
 0x3c9   :  { %v15306_v3 = vpop.permute.xlu1 %5902  ;;  %6839 = vmatprep.subr.mxu1 %v15296_v32 }
 0x3ca   :  { %4932 = vrot.lane.b32.xlu0 %v14815_v28, %s12719_s22  ;;  %v5986_v53 = vsel %vm2229_vm2, %v5901_v51, %v15306_v3  ;;  %6840 = vmatpush1.msra.mxu1 %v15303_v12  ;;  %v15330_v28 = vld [vmem:[%s20319_s0 + $0x188] sm:$0xff] }
 0x3cb   :  { %6282 = vrot.lane.b32.xlu1 %v14835_v36, %s12721_s24  ;;  %6892 = vmatprep.subr.mxu0 %v5986_v53 }
 0x3cc   :  { %v5899_v42 = vpop.permute.xlu0 %5898  ;;  %6841 = vmatprep.subr.mxu1 %v15312_v39 }
 0x3cd   :  { %v5985_v54 = vsel %vm2229_vm2, %v5899_v42, %v5901_v51  ;;  %v5885_v35 = vpop.permute.xlu1 %5884  ;;  %6842 = vmatpush1.msra.mxu1 %v15322_v33 }
 0x3ce   :  { %6284 = vrot.lane.b32.xlu0 %v14857_v24, %s12721_s24  ;;  %6893 = vmatpush1.msra.mxu0 %v5985_v54  ;;  %v11954_v54 = vld [vmem:[%s20319_s0 + $0x1d0] sm:$0xff] }
 0x3cf   :  { %4928 = vrot.lane.b32.xlu1 %v14830_v22, %s12719_s22  ;;  %6843 = vmatprep.subr.mxu1 %v15330_v28 }
 0x3d0   :  { %v15344_v6 = vpop.permute.xlu0 %5886  ;;  %6844 = vmatpush1.msra.mxu1 %v15337_v10 }
 0x3d1   :  { %v5883_v8 = vpop.permute.xlu1 %5882  ;;  %v5979_v48 = vsel %vm2229_vm2, %v5885_v35, %v15344_v6 }
 0x3d2   :  { %v5978_v17 = vsel %vm2229_vm2, %v5883_v8, %v5885_v35  ;;  %6280 = vrot.lane.b32.xlu0 %v14877_v56, %s12721_s24  ;;  %6894 = vmatprep.subr.mxu0 %v5979_v48 }
 0x3d3   :  { %4692 = vrot.lane.b32.xlu1 %v14835_v36, %s12720_s23  ;;  %6895 = vmatpush1.msra.mxu0 %v5978_v17 }
 0x3d4   :  { %v5647_v22 = vpop.permute.xlu0 %5646 }
 0x3d5   :  { %v15354_v21 = vpop.permute.xlu1 %5648 }
 0x3d6   :  { %4694 = vrot.lane.b32.xlu0 %v14857_v24, %s12720_s23  ;;  %v5696_v58 = vsel %vm1910_vm3, %v5647_v22, %v15354_v21 }
 0x3d7   :  { %6266 = vrot.lane.b32.xlu1 %v14882_v43, %s12721_s24  ;;  %6896 = vmatprep.subr.mxu0 %v5696_v58 }
 0x3d8   :  { %v5645_v9 = vpop.permute.xlu0 %5644 }
 0x3d9   :  { %v5695_v63 = vsel %vm1910_vm3, %v5645_v9, %v5647_v22  ;;  %v5631_v41 = vpop.permute.xlu1 %5630 }
 0x3da   :  { %6268 = vrot.lane.b32.xlu0 %v14897_v23, %s12721_s24  ;;  %6897 = vmatpush1.msra.mxu0 %v5695_v63 }
 0x3db   :  { %4690 = vrot.lane.b32.xlu1 %v14877_v56, %s12720_s23 }
 0x3dc   :  { %v15367_v36 = vpop.permute.xlu0 %5632 }
 0x3dd   :  { %v5629_v24 = vpop.permute.xlu1 %5628  ;;  %v5689_v27 = vsel %vm1910_vm3, %v5631_v41, %v15367_v36 }
 0x3de   :  { %v5688_v18 = vsel %vm1910_vm3, %v5629_v24, %v5631_v41  ;;  %6264 = vrot.lane.b32.xlu0 %v14910_v13, %s12721_s24  ;;  %6898 = vmatprep.subr.mxu0 %v5689_v27  ;;  %v11946_v41 = vld [vmem:[%s20319_s0 + $0x190] sm:$0xff] }
 0x3df   :  { %4676 = vrot.lane.b32.xlu1 %v14882_v43, %s12720_s23  ;;  %6899 = vmatpush1.msra.mxu0 %v5688_v18  ;;  %v15461_v18 = vld [vmem:[%s20320_s1 + $0x18] sm:$0xff] }
 0x3e0   :  { %v5615_v11 = vpop.permute.xlu0 %5614  ;;  %11992 = vmatprep.mubr.msk.f32.mxu0 %vm3063_vm6, %v15461_v18 }
 0x3e1   :  { %v15376_v62 = vpop.permute.xlu1 %5616 }
 0x3e2   :  { %4678 = vrot.lane.b32.xlu0 %v14897_v23, %s12720_s23  ;;  %v5682_v56 = vsel %vm1910_vm3, %v5615_v11, %v15376_v62 }
 0x3e3   :  { %6250 = vrot.lane.b32.xlu1 %v15274_v1, %s12721_s24  ;;  %6900 = vmatprep.subr.mxu0 %v5682_v56 }
 0x3e4   :  { %v5613_v59 = vpop.permute.xlu0 %5612 }
 0x3e5   :  { %v5681_v43 = vsel %vm1910_vm3, %v5613_v59, %v5615_v11  ;;  %v5265_v31 = vpop.permute.xlu1 %5264 }
 0x3e6   :  { %6252 = vrot.lane.b32.xlu0 %v11970_v29, %s12721_s24  ;;  %6901 = vmatpush1.msra.mxu0 %v5681_v43 }
 0x3e7   :  { %4674 = vrot.lane.b32.xlu1 %v14910_v13, %s12720_s23 }
 0x3e8   :  { %v15391_v23 = vpop.permute.xlu0 %5266 }
 0x3e9   :  { %v5599_v37 = vpop.permute.xlu1 %5598  ;;  %v5350_v0 = vsel %vm1591_vm4, %v5265_v31, %v15391_v23 }
 0x3ea   :  { %6248 = vrot.lane.b32.xlu0 %v15288_v5, %s12721_s24  ;;  %6845 = vmatprep.subr.mxu1 %v5350_v0 }
 0x3eb   :  { %4660 = vrot.lane.b32.xlu1 %v15274_v1, %s12720_s23 }
 0x3ec   :  { %v15399_v4 = vpop.permute.xlu0 %5600 }
 0x3ed   :  { %v5263_v20 = vpop.permute.xlu1 %5262  ;;  %v5675_v57 = vsel %vm1910_vm3, %v5599_v37, %v15399_v4 }
 0x3ee   :  { %v5349_v13 = vsel %vm1591_vm4, %v5263_v20, %v5265_v31  ;;  %4662 = vrot.lane.b32.xlu0 %v11970_v29, %s12720_s23  ;;  %6902 = vmatprep.subr.mxu0 %v5675_v57 }
 0x3ef   :  { %6234 = vrot.lane.b32.xlu1 %v15296_v32, %s12721_s24  ;;  %6846 = vmatpush2.msra.mxu1 %v5349_v13 }
 0x3f0   :  { %v5597_v46 = vpop.permute.xlu0 %5596 }
 0x3f1   :  { %v5674_v19 = vsel %vm1910_vm3, %v5597_v46, %v5599_v37  ;;  %v5249_v1 = vpop.permute.xlu1 %5248 }
 0x3f2   :  { %6236 = vrot.lane.b32.xlu0 %v11962_v60, %s12721_s24  ;;  %6903 = vmatpush1.msra.mxu0 %v5674_v19 }
 0x3f3   :  { %4658 = vrot.lane.b32.xlu1 %v15288_v5, %s12720_s23 }
 0x3f4   :  { %v15414_v45 = vpop.permute.xlu0 %5250 }
 0x3f5   :  { %v5583_v25 = vpop.permute.xlu1 %5582  ;;  %v5343_v52 = vsel %vm1591_vm4, %v5249_v1, %v15414_v45 }
 0x3f6   :  { %6232 = vrot.lane.b32.xlu0 %v15303_v12, %s12721_s24  ;;  %6847 = vmatprep.subr.mxu1 %v5343_v52 }
 0x3f7   :  { %4644 = vrot.lane.b32.xlu1 %v15296_v32, %s12720_s23 }
 0x3f8   :  { %v15422_v51 = vpop.permute.xlu0 %5584 }
 0x3f9   :  { %v5247_v53 = vpop.permute.xlu1 %5246  ;;  %v5668_v42 = vsel %vm1910_vm3, %v5583_v25, %v15422_v51 }
 0x3fa   :  { %v5342_v5 = vsel %vm1591_vm4, %v5247_v53, %v5249_v1  ;;  %4646 = vrot.lane.b32.xlu0 %v11962_v60, %s12720_s23  ;;  %6904 = vmatprep.subr.mxu0 %v5668_v42  ;;  %v11698_v60 = vld [vmem:[%s20319_s0 + $0x2d0] sm:$0xff]  ;;  %v11696_v42 = vld [vmem:[%s20319_s0 + $0x2c0] sm:$0xff] }
 0x3fb   :  { %6218 = vrot.lane.b32.xlu1 %v15312_v39, %s12721_s24  ;;  %6848 = vmatpush2.msra.mxu1 %v5342_v5 }
 0x3fc   :  { %v5581_v32 = vpop.permute.xlu0 %5580 }
 0x3fd   :  { %v5667_v35 = vsel %vm1910_vm3, %v5581_v32, %v5583_v25  ;;  %v5011_v8 = vpop.permute.xlu1 %5010  ;;  %v15518_v25 = vld [vmem:[%s20319_s0 + $0x2a0] sm:$0xff] }
 0x3fe   :  { %6220 = vrot.lane.b32.xlu0 %v11954_v54, %s12721_s24  ;;  %6905 = vmatpush1.msra.mxu0 %v5667_v35 }
 0x3ff   :  { %4642 = vrot.lane.b32.xlu1 %v15303_v12, %s12720_s23 }
 0x400   :  { %v15437_v48 = vpop.permute.xlu0 %5012 }
 0x401   :  { %v5567_v17 = vpop.permute.xlu1 %5566  ;;  %v5060_v22 = vsel %vm1272_vm5, %v5011_v8, %v15437_v48 }
 0x402   :  { %6216 = vrot.lane.b32.xlu0 %v15322_v33, %s12721_s24  ;;  %6849 = vmatprep.subr.mxu1 %v5060_v22 }
 0x403   :  { %4628 = vrot.lane.b32.xlu1 %v15312_v39, %s12720_s23 }
 0x404   :  { %v15445_v58 = vpop.permute.xlu0 %5568 }
 0x405   :  { %v5009_v9 = vpop.permute.xlu1 %5008  ;;  %v5661_v63 = vsel %vm1910_vm3, %v5567_v17, %v15445_v58 }
 0x406   :  { %v5059_v12 = vsel %vm1272_vm5, %v5009_v9, %v5011_v8  ;;  %4630 = vrot.lane.b32.xlu0 %v11954_v54, %s12720_s23  ;;  %6906 = vmatprep.subr.mxu0 %v5661_v63  ;;  %v11689_v54 = vld [vmem:[%s20319_s0 + $0x288] sm:$0xff]  ;;  %v15550_v9 = vld [vmem:[%s20319_s0 + $0x258] sm:$0xff] }
 0x407   :  { %6202 = vrot.lane.b32.xlu1 %v15330_v28, %s12721_s24  ;;  %6850 = vmatpush2.msra.mxu1 %v5059_v12  ;;  %v15538_v8 = vld [vmem:[%s20320_s1 + $0x8] sm:$0xff] }
 0x408   :  { %v5565_v39 = vpop.permute.xlu0 %5564  ;;  %6877 = vmatprep.mubr.f32.mxu1 %v15538_v8 }
 0x409   :  { %v5660_v24 = vsel %vm1910_vm3, %v5565_v39, %v5567_v17  ;;  %v4995_v27 = vpop.permute.xlu1 %4994  ;;  %v11690_v17 = vld [vmem:[%s20319_s0 + $0x290] sm:$0xff] }
 0x40a   :  { %6204 = vrot.lane.b32.xlu0 %v11946_v41, %s12721_s24  ;;  %6907 = vmatpush1.msra.mxu0 %v5660_v24  ;;  %v11688_v24 = vld [vmem:[%s20319_s0 + $0x280] sm:$0xff] }
 0x40b   :  { %4626 = vrot.lane.b32.xlu1 %v15322_v33, %s12720_s23  ;;  %v15480_v33 = vld [vmem:[%s20319_s0 + $0x2d8] sm:$0xff] }
 0x40c   :  { %v15467_v11 = vpop.permute.xlu0 %4996 }
 0x40d   :  { %v5329_v56 = vpop.permute.xlu1 %5328  ;;  %v5053_v29 = vsel %vm1272_vm5, %v4995_v27, %v15467_v11 }
 0x40e   :  { %6200 = vrot.lane.b32.xlu0 %v15337_v10, %s12721_s24  ;;  %6851 = vmatprep.subr.mxu1 %v5053_v29 }
 0x40f   :  { %4612 = vrot.lane.b32.xlu1 %v15330_v28, %s12720_s23  ;;  %v15491_v28 = vld [vmem:[%s20319_s0 + $0x2e0] sm:$0xff] }
 0x410   :  { %v15475_v59 = vpop.permute.xlu0 %5330 }
 0x411   :  { %v4993_v43 = vpop.permute.xlu1 %4992  ;;  %v5378_v31 = vsel %vm1591_vm4, %v5329_v56, %v15475_v59 }
 0x412   :  { %v5052_v37 = vsel %vm1272_vm5, %v4993_v43, %v4995_v27  ;;  %4614 = vrot.lane.b32.xlu0 %v11946_v41, %s12720_s23  ;;  %6908 = vmatprep.subr.mxu0 %v5378_v31  ;;  %v15560_v41 = vld [vmem:[%s20319_s0 + $0x260] sm:$0xff] }
 0x413   :  { %5968 = vrot.lane.b32.xlu1 %v15480_v33, %s12716_s18  ;;  %6852 = vmatpush2.msra.mxu1 %v5052_v37 }
 0x414   :  { %v5327_v0 = vpop.permute.xlu0 %5326 }
 0x415   :  { %v5377_v20 = vsel %vm1591_vm4, %v5327_v0, %v5329_v56  ;;  %v4979_v57 = vpop.permute.xlu1 %4978  ;;  %v15581_v0 = vld [vmem:[%s20319_s0 + $0x218] sm:$0xff] }
 0x416   :  { %5970 = vrot.lane.b32.xlu0 %v15491_v28, %s12716_s18  ;;  %6909 = vmatpush1.msra.mxu0 %v5377_v20 }
 0x417   :  { %4610 = vrot.lane.b32.xlu1 %v15337_v10, %s12720_s23  ;;  %v15511_v10 = vld [vmem:[%s20319_s0 + $0x298] sm:$0xff] }
 0x418   :  { %v15498_v13 = vpop.permute.xlu0 %4980 }
 0x419   :  { %v5313_v46 = vpop.permute.xlu1 %5312  ;;  %v5046_v19 = vsel %vm1272_vm5, %v4979_v57, %v15498_v13 }
 0x41a   :  { %4374 = vrot.lane.b32.xlu0 %v15259_v49, %s12714_s21  ;;  %6853 = vmatprep.subr.mxu1 %v5046_v19 }
 0x41b   :  { %4376 = vrot.lane.b32.xlu1 %v11698_v60, %s12714_s21 }
 0x41c   :  { %v15513_v1 = vpop.permute.xlu0 %5314 }
 0x41d   :  { %v4977_v52 = vpop.permute.xlu1 %4976  ;;  %v5371_v53 = vsel %vm1591_vm4, %v5313_v46, %v15513_v1 }
 0x41e   :  { %v5045_v49 = vsel %vm1272_vm5, %v4977_v52, %v4979_v57  ;;  %5952 = vrot.lane.b32.xlu0 %v15511_v10, %s12716_s18  ;;  %6910 = vmatprep.subr.mxu0 %v5371_v53  ;;  %v15588_v57 = vld [vmem:[%s20319_s0 + $0x220] sm:$0xff] }
 0x41f   :  { %5954 = vrot.lane.b32.xlu1 %v15518_v25, %s12716_s18  ;;  %6854 = vmatpush2.msra.mxu1 %v5045_v49 }
 0x420   :  { %v5311_v5 = vpop.permute.xlu0 %5310 }
 0x421   :  { %v5370_v32 = vsel %vm1591_vm4, %v5311_v5, %v5313_v46  ;;  %v4963_v35 = vpop.permute.xlu1 %4962 }
 0x422   :  { %4372 = vrot.lane.b32.xlu0 %v11696_v42, %s12714_s21  ;;  %6911 = vmatpush1.msra.mxu0 %v5370_v32  ;;  %v15608_v42 = vld [vmem:[%s20319_s0 + $0x1d8] sm:$0xff] }
 0x423   :  { %4358 = vrot.lane.b32.xlu1 %v11689_v54, %s12714_s21  ;;  %v15613_v54 = vld [vmem:[%s20319_s0 + $0x1e0] sm:$0xff] }
 0x424   :  { %v15545_v22 = vpop.permute.xlu0 %4964 }
 0x425   :  { %v5297_v63 = vpop.permute.xlu1 %5296  ;;  %v5039_v12 = vsel %vm1272_vm5, %v4963_v35, %v15545_v22 }
 0x426   :  { %4360 = vrot.lane.b32.xlu0 %v11690_v17, %s12714_s21  ;;  %6855 = vmatprep.subr.mxu1 %v5039_v12 }
 0x427   :  { %5936 = vrot.lane.b32.xlu1 %v15550_v9, %s12716_s18 }
 0x428   :  { %v15562_v39 = vpop.permute.xlu0 %5298 }
 0x429   :  { %v4961_v27 = vpop.permute.xlu1 %4960  ;;  %v5364_v56 = vsel %vm1591_vm4, %v5297_v63, %v15562_v39 }
 0x42a   :  { %v5038_v29 = vsel %vm1272_vm5, %v4961_v27, %v4963_v35  ;;  %5938 = vrot.lane.b32.xlu0 %v15560_v41, %s12716_s18  ;;  %6912 = vmatprep.subr.mxu0 %v5364_v56  ;;  %v15638_v56 = vld [vmem:[%s20319_s0 + $0x1a0] sm:$0xff] }
 0x42b   :  { %4356 = vrot.lane.b32.xlu1 %v11688_v24, %s12714_s21  ;;  %6856 = vmatpush2.msra.mxu1 %v5038_v29  ;;  %v15631_v24 = vld [vmem:[%s20319_s0 + $0x198] sm:$0xff] }
 0x42c   :  { %v5295_v43 = vpop.permute.xlu0 %5294 }
 0x42d   :  { %v5363_v31 = vsel %vm1591_vm4, %v5295_v43, %v5297_v63  ;;  %v4947_v37 = vpop.permute.xlu1 %4946 }
 0x42e   :  { %4346 = vrot.lane.b32.xlu0 %v15550_v9, %s12714_s21  ;;  %6913 = vmatpush1.msra.mxu0 %v5363_v31 }
 0x42f   :  { %4348 = vrot.lane.b32.xlu1 %v15560_v41, %s12714_s21 }
 0x430   :  { %v15583_v20 = vpop.permute.xlu0 %4948 }
 0x431   :  { %v5281_v60 = vpop.permute.xlu1 %5280  ;;  %v5032_v46 = vsel %vm1272_vm5, %v4947_v37, %v15583_v20 }
 0x432   :  { %5920 = vrot.lane.b32.xlu0 %v15581_v0, %s12716_s18  ;;  %6857 = vmatprep.subr.mxu1 %v5032_v46 }
 0x433   :  { %5922 = vrot.lane.b32.xlu1 %v15588_v57, %s12716_s18 }
 0x434   :  { %v15596_v19 = vpop.permute.xlu0 %5282 }
 0x435   :  { %v4945_v52 = vpop.permute.xlu1 %4944  ;;  %v5357_v53 = vsel %vm1591_vm4, %v5281_v60, %v15596_v19 }
 0x436   :  { %v5031_v49 = vsel %vm1272_vm5, %v4945_v52, %v4947_v37  ;;  %4330 = vrot.lane.b32.xlu0 %v15581_v0, %s12714_s21  ;;  %6914 = vmatprep.subr.mxu0 %v5357_v53 }
 0x437   :  { %4332 = vrot.lane.b32.xlu1 %v15588_v57, %s12714_s21  ;;  %6858 = vmatpush2.msra.mxu1 %v5031_v49 }
 0x438   :  { %v5279_v5 = vpop.permute.xlu0 %5278 }
 0x439   :  { %v5356_v32 = vsel %vm1591_vm4, %v5279_v5, %v5281_v60  ;;  %v4931_v35 = vpop.permute.xlu1 %4930 }
 0x43a   :  { %5904 = vrot.lane.b32.xlu0 %v15608_v42, %s12716_s18  ;;  %6915 = vmatpush1.msra.mxu0 %v5356_v32 }
 0x43b   :  { %5906 = vrot.lane.b32.xlu1 %v15613_v54, %s12716_s18 }
 0x43c   :  { %v15620_v17 = vpop.permute.xlu0 %4932 }
 0x43d   :  { %v6283_v63 = vpop.permute.xlu1 %6282  ;;  %v5025_v12 = vsel %vm1272_vm5, %v4931_v35, %v15620_v17 }
 0x43e   :  { %4314 = vrot.lane.b32.xlu0 %v15608_v42, %s12714_s21  ;;  %6859 = vmatprep.subr.mxu1 %v5025_v12 }
 0x43f   :  { %4316 = vrot.lane.b32.xlu1 %v15613_v54, %s12714_s21 }
 0x440   :  { %v15633_v27 = vpop.permute.xlu0 %6284 }
 0x441   :  { %v4929_v29 = vpop.permute.xlu1 %4928  ;;  %v6332_v43 = vsel %vm2548_vm8, %v6283_v63, %v15633_v27 }
 0x442   :  { %v5024_v31 = vsel %vm1272_vm5, %v4929_v29, %v4931_v35  ;;  %5888 = vrot.lane.b32.xlu0 %v15631_v24, %s12716_s18  ;;  %6936 = vmatprep.subr.mxu0 %v6332_v43 }
 0x443   :  { %5890 = vrot.lane.b32.xlu1 %v15638_v56, %s12716_s18  ;;  %6860 = vmatpush2.msra.mxu1 %v5024_v31 }
 0x444   :  { %v6281_v37 = vpop.permute.xlu0 %6280 }
 0x445   :  { %v6331_v60 = vsel %vm2548_vm8, %v6281_v37, %v6283_v63  ;;  %v4693_v46 = vpop.permute.xlu1 %4692 }
 0x446   :  { %4298 = vrot.lane.b32.xlu0 %v15631_v24, %s12714_s21  ;;  %6937 = vmatpush2.msra.mxu0 %v6331_v60 }
 0x447   :  { %4300 = vrot.lane.b32.xlu1 %v15638_v56, %s12714_s21 }
 0x448   :  { %v15652_v52 = vpop.permute.xlu0 %4694 }
 0x449   :  { %v6267_v53 = vpop.permute.xlu1 %6266  ;;  %v4742_v49 = vsel %vm953_vm7, %v4693_v46, %v15652_v52 }
 0x44a   :  { %5650 = vrot.lane.b32.xlu0 %v15480_v33, %s12717_s19  ;;  %6861 = vmatprep.subr.mxu1 %v4742_v49 }
 0x44b   :  { %5652 = vrot.lane.b32.xlu1 %v15491_v28, %s12717_s19 }
 0x44c   :  { %v15660_v5 = vpop.permute.xlu0 %6268 }
 0x44d   :  { %v4691_v32 = vpop.permute.xlu1 %4690  ;;  %v6325_v35 = vsel %vm2548_vm8, %v6267_v53, %v15660_v5 }
 0x44e   :  { %v4741_v63 = vsel %vm953_vm7, %v4691_v32, %v4693_v46  ;;  %4060 = vrot.lane.b32.xlu0 %v15480_v33, %s12715_s28  ;;  %6938 = vmatprep.subr.mxu0 %v6325_v35 }
 0x44f   :  { %4062 = vrot.lane.b32.xlu1 %v15491_v28, %s12715_s28  ;;  %6862 = vmatpush2.msra.mxu1 %v4741_v63 }
 0x450   :  { %v6265_v12 = vpop.permute.xlu0 %6264 }
 0x451   :  { %v6324_v29 = vsel %vm2548_vm8, %v6265_v12, %v6267_v53  ;;  %v4677_v43 = vpop.permute.xlu1 %4676 }
 0x452   :  { %5634 = vrot.lane.b32.xlu0 %v15511_v10, %s12717_s19  ;;  %6939 = vmatpush2.msra.mxu0 %v6324_v29 }
 0x453   :  { %5636 = vrot.lane.b32.xlu1 %v15518_v25, %s12717_s19 }
 0x454   :  { %v15674_v31 = vpop.permute.xlu0 %4678 }
 0x455   :  { %20418 = vst [vmem:[#allocation11_spill] sm:$0xff] %v15674_v31  ;;  %v6251_v37 = vpop.permute.xlu1 %6250  ;;  %v4735_v60 = vsel %vm953_vm7, %v4677_v43, %v15674_v31 }
 0x456   :  { %4044 = vrot.lane.b32.xlu0 %v15511_v10, %s12715_s28  ;;  %6863 = vmatprep.subr.mxu1 %v4735_v60 }
 0x457   :  { %4046 = vrot.lane.b32.xlu1 %v15518_v25, %s12715_s28 }
 0x458   :  { %v15682_v46 = vpop.permute.xlu0 %6252 }
 0x459   :  { %v4675_v53 = vpop.permute.xlu1 %4674  ;;  %v6318_v49 = vsel %vm2548_vm8, %v6251_v37, %v15682_v46 }
 0x45a   :  { %v4734_v32 = vsel %vm953_vm7, %v4675_v53, %v4677_v43  ;;  %5618 = vrot.lane.b32.xlu0 %v15550_v9, %s12717_s19  ;;  %6940 = vmatprep.subr.mxu0 %v6318_v49 }
 0x45b   :  { %5620 = vrot.lane.b32.xlu1 %v15560_v41, %s12717_s19  ;;  %6864 = vmatpush2.msra.mxu1 %v4734_v32 }
 0x45c   :  { %v6249_v35 = vpop.permute.xlu0 %6248 }
 0x45d   :  { %v6317_v63 = vsel %vm2548_vm8, %v6249_v35, %v6251_v37  ;;  %v4661_v12 = vpop.permute.xlu1 %4660 }
 0x45e   :  { %4028 = vrot.lane.b32.xlu0 %v15550_v9, %s12715_s28  ;;  %6941 = vmatpush2.msra.mxu0 %v6317_v63 }
 0x45f   :  { %4030 = vrot.lane.b32.xlu1 %v15560_v41, %s12715_s28 }
 0x460   :  { %v15696_v29 = vpop.permute.xlu0 %4662 }
 0x461   :  { %20419 = vst [vmem:[#allocation12_spill] sm:$0xff] %v15696_v29  ;;  %v6235_v43 = vpop.permute.xlu1 %6234  ;;  %v4728_v60 = vsel %vm953_vm7, %v4661_v12, %v15696_v29 }
 0x462   :  { %5602 = vrot.lane.b32.xlu0 %v15581_v0, %s12717_s19  ;;  %6865 = vmatprep.subr.mxu1 %v4728_v60 }
 0x463   :  { %5604 = vrot.lane.b32.xlu1 %v15588_v57, %s12717_s19 }
 0x464   :  { %v15704_v37 = vpop.permute.xlu0 %6236 }
 0x465   :  { %v4659_v53 = vpop.permute.xlu1 %4658  ;;  %v6311_v49 = vsel %vm2548_vm8, %v6235_v43, %v15704_v37 }
 0x466   :  { %v4727_v32 = vsel %vm953_vm7, %v4659_v53, %v4661_v12  ;;  %4012 = vrot.lane.b32.xlu0 %v15581_v0, %s12715_s28  ;;  %6942 = vmatprep.subr.mxu0 %v6311_v49 }
 0x467   :  { %4014 = vrot.lane.b32.xlu1 %v15588_v57, %s12715_s28  ;;  %6866 = vmatpush2.msra.mxu1 %v4727_v32 }
 0x468   :  { %v6233_v35 = vpop.permute.xlu0 %6232 }
 0x469   :  { %v6310_v63 = vsel %vm2548_vm8, %v6233_v35, %v6235_v43  ;;  %v4645_v60 = vpop.permute.xlu1 %4644 }
 0x46a   :  { %5586 = vrot.lane.b32.xlu0 %v15608_v42, %s12717_s19  ;;  %6943 = vmatpush2.msra.mxu0 %v6310_v63 }
 0x46b   :  { %5588 = vrot.lane.b32.xlu1 %v15613_v54, %s12717_s19 }
 0x46c   :  { %v15718_v12 = vpop.permute.xlu0 %4646 }
 0x46d   :  { %20420 = vst [vmem:[#allocation13_spill] sm:$0xff] %v15718_v12  ;;  %v6219_v53 = vpop.permute.xlu1 %6218  ;;  %v4721_v49 = vsel %vm953_vm7, %v4645_v60, %v15718_v12 }
 0x46e   :  { %3996 = vrot.lane.b32.xlu0 %v15608_v42, %s12715_s28  ;;  %6867 = vmatprep.subr.mxu1 %v4721_v49 }
 0x46f   :  { %3998 = vrot.lane.b32.xlu1 %v15613_v54, %s12715_s28 }
 0x470   :  { %v15726_v43 = vpop.permute.xlu0 %6220 }
 0x471   :  { %v4643_v32 = vpop.permute.xlu1 %4642  ;;  %v6304_v35 = vsel %vm2548_vm8, %v6219_v53, %v15726_v43 }
 0x472   :  { %v4720_v63 = vsel %vm953_vm7, %v4643_v32, %v4645_v60  ;;  %5570 = vrot.lane.b32.xlu0 %v15631_v24, %s12717_s19  ;;  %6944 = vmatprep.subr.mxu0 %v6304_v35 }
 0x473   :  { %5572 = vrot.lane.b32.xlu1 %v15638_v56, %s12717_s19  ;;  %6868 = vmatpush2.msra.mxu1 %v4720_v63 }
 0x474   :  { %v6217_v49 = vpop.permute.xlu0 %6216 }
 0x475   :  { %v6303_v14 = vsel %vm2548_vm8, %v6217_v49, %v6219_v53  ;;  %v4629_v12 = vpop.permute.xlu1 %4628 }
 0x476   :  { %3980 = vrot.lane.b32.xlu0 %v15631_v24, %s12715_s28  ;;  %6945 = vmatpush2.msra.mxu0 %v6303_v14 }
 0x477   :  { %3982 = vrot.lane.b32.xlu1 %v15638_v56, %s12715_s28 }
 0x478   :  { %v15740_v60 = vpop.permute.xlu0 %4630 }
 0x479   :  { %20421 = vst [vmem:[#allocation14_spill] sm:$0xff] %v15740_v60  ;;  %v6203_v32 = vpop.permute.xlu1 %6202  ;;  %v4714_v35 = vsel %vm953_vm7, %v4629_v12, %v15740_v60  ;;  %v15760_v60 = vld [vmem:[%s20320_s1 + $0x10] sm:$0xff] }
 0x47a   :  { %5332 = vrot.lane.b32.xlu0 %v15480_v33, %s12718_s20  ;;  %6869 = vmatprep.subr.mxu1 %v4714_v35 }
 0x47b   :  { %5334 = vrot.lane.b32.xlu1 %v15491_v28, %s12718_s20 }
 0x47c   :  { %v15748_v53 = vpop.permute.xlu0 %6204 }
 0x47d   :  { %v4627_v63 = vpop.permute.xlu1 %4626  ;;  %v6297_v14 = vsel %vm2548_vm8, %v6203_v32, %v15748_v53 }
 0x47e   :  { %v4713_v49 = vsel %vm953_vm7, %v4627_v63, %v4629_v12  ;;  %5316 = vrot.lane.b32.xlu0 %v15511_v10, %s12718_s20  ;;  %6946 = vmatprep.subr.mxu0 %v6297_v14 }
 0x47f   :  { %5318 = vrot.lane.b32.xlu1 %v15518_v25, %s12718_s20  ;;  %6870 = vmatpush2.msra.mxu1 %v4713_v49 }
 0x480   :  { %v6201_v35 = vpop.permute.xlu0 %6200 }
 0x481   :  { %v6296_v29 = vsel %vm2548_vm8, %v6201_v35, %v6203_v32  ;;  %v4613_v31 = vpop.permute.xlu1 %4612 }
 0x482   :  { %5300 = vrot.lane.b32.xlu0 %v15550_v9, %s12718_s20  ;;  %6947 = vmatpush2.msra.mxu0 %v6296_v29 }
 0x483   :  { %5302 = vrot.lane.b32.xlu1 %v15560_v41, %s12718_s20  ;;  %6949 = vmatmul.mubr.f32.vlgmr.msra.gmra.mxu0 %v15760_v60 }
 0x484   :  { %v15768_v12 = vpop.permute.xlu0 %4614  ;;  %11993 = vmatprep.mubr.msk.f32.mxu0 %vm3063_vm6, %v15461_v18 }
 0x485   :  { %20422 = vst [vmem:[#allocation15_spill] sm:$0xff] %v15768_v12  ;;  %v5969_v63 = vpop.permute.xlu1 %5968  ;;  %v4707_v14 = vsel %vm953_vm7, %v4613_v31, %v15768_v12 }
 0x486   :  { %5284 = vrot.lane.b32.xlu0 %v15581_v0, %s12718_s20  ;;  %6871 = vmatprep.subr.mxu1 %v4707_v14  ;;  %v6015_v18 = vsel %vm2229_vm2, %v15208_v44, %v5969_v63 }
 0x487   :  { %5286 = vrot.lane.b32.xlu1 %v15588_v57, %s12718_s20 }
 0x488   :  { %v15778_v29 = vpop.permute.xlu0 %5970 }
 0x489   :  { %20423 = vst [vmem:[#allocation16_spill] sm:$0xff] %v15778_v29  ;;  %v4611_v32 = vpop.permute.xlu1 %4610  ;;  %v6016_v49 = vsel %vm2229_vm2, %v5969_v63, %v15778_v29 }
 0x48a   :  { %v4706_v35 = vsel %vm953_vm7, %v4611_v32, %v4613_v31  ;;  %6286 = vrot.lane.b32.xlu0 %v15480_v33, %s12721_s24  ;;  %7026 = vmatprep.subr.mxu0 %v6016_v49 }
 0x48b   :  { %6288 = vrot.lane.b32.xlu1 %v15491_v28, %s12721_s24  ;;  %6872 = vmatpush2.msra.mxu1 %v4706_v35 }
 0x48c   :  { %7027 = vmatpush1.msra.mxu0 %v6015_v18  ;;  %v4375_v14 = vpop.permute.xlu0 %4374 }
 0x48d   :  { %v15789_v12 = vpop.permute.xlu1 %4376 }
 0x48e   :  { %20424 = vst [vmem:[#allocation17_spill] sm:$0xff] %v15789_v12  ;;  %6270 = vrot.lane.b32.xlu0 %v15511_v10, %s12721_s24  ;;  %v4424_v31 = vsel %vm634_vm0, %v4375_v14, %v15789_v12 }
 0x48f   :  { %6272 = vrot.lane.b32.xlu1 %v15518_v25, %s12721_s24  ;;  %6873 = vmatprep.subr.mxu1 %v4424_v31 }
 0x490   :  { %v5953_v32 = vpop.permute.xlu0 %5952 }
 0x491   :  { %v15797_v49 = vpop.permute.xlu1 %5954  ;;  %v6008_v44 = vsel %vm2229_vm2, %v15230_v34, %v5953_v32 }
 0x492   :  { %20425 = vst [vmem:[#allocation18_spill] sm:$0xff] %v15797_v49  ;;  %6254 = vrot.lane.b32.xlu0 %v15550_v9, %s12721_s24  ;;  %v6009_v63 = vsel %vm2229_vm2, %v5953_v32, %v15797_v49 }
 0x493   :  { %6256 = vrot.lane.b32.xlu1 %v15560_v41, %s12721_s24  ;;  %7028 = vmatprep.subr.mxu0 %v6009_v63 }
 0x494   :  { %7029 = vmatpush1.msra.mxu0 %v6008_v44  ;;  %v4373_v35 = vpop.permute.xlu0 %4372 }
 0x495   :  { %v4423_v18 = vsel %vm634_vm0, %v4373_v35, %v4375_v14  ;;  %v4359_v31 = vpop.permute.xlu1 %4358  ;;  %v6422_v35 = vld [vmem:[%s20320_s1] sm:$0xff] }
 0x496   :  { %5268 = vrot.lane.b32.xlu0 %v15608_v42, %s12718_s20  ;;  %6874 = vmatpush2.msra.mxu1 %v4423_v18 }
 0x497   :  { %5270 = vrot.lane.b32.xlu1 %v15613_v54, %s12718_s20 }
 0x498   :  { %v15812_v34 = vpop.permute.xlu0 %4360 }
 0x499   :  { %20426 = vst [vmem:[#allocation19_spill] sm:$0xff] %v15812_v34  ;;  %v5937_v29 = vpop.permute.xlu1 %5936  ;;  %v4417_v32 = vsel %vm634_vm0, %v4359_v31, %v15812_v34 }
 0x49a   :  { %6238 = vrot.lane.b32.xlu0 %v15581_v0, %s12721_s24  ;;  %6875 = vmatprep.subr.mxu1 %v4417_v32  ;;  %v6001_v32 = vsel %vm2229_vm2, %v15252_v61, %v5937_v29 }
 0x49b   :  { %6240 = vrot.lane.b32.xlu1 %v15588_v57, %s12721_s24 }
 0x49c   :  { %v15820_v14 = vpop.permute.xlu0 %5938 }
 0x49d   :  { %20427 = vst [vmem:[#allocation20_spill] sm:$0xff] %v15820_v14  ;;  %v4357_v44 = vpop.permute.xlu1 %4356  ;;  %v6002_v63 = vsel %vm2229_vm2, %v5937_v29, %v15820_v14 }
 0x49e   :  { %v4416_v18 = vsel %vm634_vm0, %v4357_v44, %v4359_v31  ;;  %5252 = vrot.lane.b32.xlu0 %v15631_v24, %s12718_s20  ;;  %7030 = vmatprep.subr.mxu0 %v6002_v63  ;;  %v15868_v63 = vld [vmem:[%s20319_s0 + $0x268] sm:$0xff] }
 0x49f   :  { %5254 = vrot.lane.b32.xlu1 %v15638_v56, %s12718_s20  ;;  %6876 = vmatpush2.msra.mxu1 %v4416_v18 }
 0x4a0   :  { %7031 = vmatpush1.msra.mxu0 %v6001_v32  ;;  %v4347_v49 = vpop.permute.xlu0 %4346  ;;  %6878 = vmatmul.mubr.f32.vlgmr.msra.gmra.mxu1 %v6422_v35 }
 0x4a1   :  { %v15834_v14 = vpop.permute.xlu1 %4348  ;;  %v4411_v34 = vsel %vm634_vm0, %v15088_v40, %v4347_v49  ;;  %7019 = vmatprep.mubr.f32.mxu1 %v15538_v8 }
 0x4a2   :  { %6222 = vrot.lane.b32.xlu0 %v15608_v42, %s12721_s24  ;;  %v4412_v31 = vsel %vm634_vm0, %v4347_v49, %v15834_v14 }
 0x4a3   :  { %6224 = vrot.lane.b32.xlu1 %v15613_v54, %s12721_s24  ;;  %6955 = vmatprep.subr.mxu1 %v4412_v31 }
 0x4a4   :  { %6956 = vmatpush1.msra.mxu1 %v4411_v34  ;;  %v5921_v61 = vpop.permute.xlu0 %5920 }
 0x4a5   :  { %v15845_v29 = vpop.permute.xlu1 %5922  ;;  %v5994_v44 = vsel %vm2229_vm2, %v15279_v30, %v5921_v61 }
 0x4a6   :  { %20428 = vst [vmem:[#allocation21_spill] sm:$0xff] %v15845_v29  ;;  %5014 = vrot.lane.b32.xlu0 %v15480_v33, %s12719_s22  ;;  %v5995_v40 = vsel %vm2229_vm2, %v5921_v61, %v15845_v29 }
 0x4a7   :  { %5016 = vrot.lane.b32.xlu1 %v15491_v28, %s12719_s22  ;;  %7032 = vmatprep.subr.mxu0 %v5995_v40 }
 0x4a8   :  { %7033 = vmatpush1.msra.mxu0 %v5994_v44  ;;  %v4331_v8 = vpop.permute.xlu0 %4330 }
 0x4a9   :  { %v15855_v49 = vpop.permute.xlu1 %4332  ;;  %v4404_v34 = vsel %vm634_vm0, %v15104_v16, %v4331_v8  ;;  %v15873_v16 = vld [vmem:[%s20319_s0 + $0x270] sm:$0xff] }
 0x4aa   :  { %6206 = vrot.lane.b32.xlu0 %v15631_v24, %s12721_s24  ;;  %v4405_v30 = vsel %vm634_vm0, %v4331_v8, %v15855_v49  ;;  %v15898_v8 = vld [vmem:[%s20319_s0 + $0x228] sm:$0xff] }
 0x4ab   :  { %6208 = vrot.lane.b32.xlu1 %v15638_v56, %s12721_s24  ;;  %6957 = vmatprep.subr.mxu1 %v4405_v30 }
 0x4ac   :  { %6958 = vmatpush1.msra.mxu1 %v4404_v34  ;;  %v5905_v35 = vpop.permute.xlu0 %5904 }
 0x4ad   :  { %v15875_v18 = vpop.permute.xlu1 %5906  ;;  %v5987_v32 = vsel %vm2229_vm2, %v15306_v3, %v5905_v35 }
 0x4ae   :  { %20429 = vst [vmem:[#allocation22_spill] sm:$0xff] %v15875_v18  ;;  %4350 = vrot.lane.b32.xlu0 %v15868_v63, %s12714_s21  ;;  %v5988_v31 = vsel %vm2229_vm2, %v5905_v35, %v15875_v18 }
 0x4af   :  { %4352 = vrot.lane.b32.xlu1 %v15873_v16, %s12714_s21  ;;  %7034 = vmatprep.subr.mxu0 %v5988_v31 }
 0x4b0   :  { %7035 = vmatpush1.msra.mxu0 %v5987_v32  ;;  %v4315_v61 = vpop.permute.xlu0 %4314 }
 0x4b1   :  { %v15885_v44 = vpop.permute.xlu1 %4316  ;;  %v4397_v40 = vsel %vm634_vm0, %v15120_v2, %v4315_v61  ;;  %v15903_v2 = vld [vmem:[%s20319_s0 + $0x230] sm:$0xff] }
 0x4b2   :  { %4998 = vrot.lane.b32.xlu0 %v15511_v10, %s12719_s22  ;;  %v4398_v3 = vsel %vm634_vm0, %v4315_v61, %v15885_v44 }
 0x4b3   :  { %5000 = vrot.lane.b32.xlu1 %v15518_v25, %s12719_s22  ;;  %6959 = vmatprep.subr.mxu1 %v4398_v3  ;;  %v15928_v3 = vld [vmem:[%s20319_s0 + $0x1e8] sm:$0xff] }
 0x4b4   :  { %6960 = vmatpush1.msra.mxu1 %v4397_v40  ;;  %v5889_v34 = vpop.permute.xlu0 %5888 }
 0x4b5   :  { %v15905_v30 = vpop.permute.xlu1 %5890  ;;  %v5980_v35 = vsel %vm2229_vm2, %v15344_v6, %v5889_v34 }
 0x4b6   :  { %20430 = vst [vmem:[#allocation23_spill] sm:$0xff] %v15905_v30  ;;  %4334 = vrot.lane.b32.xlu0 %v15898_v8, %s12714_s21  ;;  %v5981_v32 = vsel %vm2229_vm2, %v5889_v34, %v15905_v30 }
 0x4b7   :  { %4336 = vrot.lane.b32.xlu1 %v15903_v2, %s12714_s21  ;;  %7036 = vmatprep.subr.mxu0 %v5981_v32 }
 0x4b8   :  { %7037 = vmatpush1.msra.mxu0 %v5980_v35  ;;  %v4299_v31 = vpop.permute.xlu0 %4298 }
 0x4b9   :  { %v15915_v61 = vpop.permute.xlu1 %4300  ;;  %v4390_v40 = vsel %vm634_vm0, %v15136_v15, %v4299_v31  ;;  %v15933_v15 = vld [vmem:[%s20319_s0 + $0x1f0] sm:$0xff] }
 0x4ba   :  { %4982 = vrot.lane.b32.xlu0 %v15550_v9, %s12719_s22  ;;  %v4391_v6 = vsel %vm634_vm0, %v4299_v31, %v15915_v61 }
 0x4bb   :  { %4984 = vrot.lane.b32.xlu1 %v15560_v41, %s12719_s22  ;;  %6961 = vmatprep.subr.mxu1 %v4391_v6 }
 0x4bc   :  { %6962 = vmatpush1.msra.mxu1 %v4390_v40  ;;  %v5651_v34 = vpop.permute.xlu0 %5650 }
 0x4bd   :  { %v15935_v35 = vpop.permute.xlu1 %5652  ;;  %v5697_v32 = vsel %vm1910_vm3, %v15354_v21, %v5651_v34 }
 0x4be   :  { %20431 = vst [vmem:[#allocation24_spill] sm:$0xff] %v15935_v35  ;;  %4318 = vrot.lane.b32.xlu0 %v15928_v3, %s12714_s21  ;;  %v5698_v31 = vsel %vm1910_vm3, %v5651_v34, %v15935_v35  ;;  %v15958_v34 = vld [vmem:[%s20319_s0 + $0x1a8] sm:$0xff] }
 0x4bf   :  { %4320 = vrot.lane.b32.xlu1 %v15933_v15, %s12714_s21  ;;  %7038 = vmatprep.subr.mxu0 %v5698_v31 }
 0x4c0   :  { %7039 = vmatpush1.msra.mxu0 %v5697_v32  ;;  %v4061_v40 = vpop.permute.xlu0 %4060 }
 0x4c1   :  { %v15945_v6 = vpop.permute.xlu1 %4062  ;;  %v4107_v30 = vsel %vm315_vm1, %v15152_v26, %v4061_v40  ;;  %v15963_v26 = vld [vmem:[%s20319_s0 + $0x1b0] sm:$0xff] }
 0x4c2   :  { %4966 = vrot.lane.b32.xlu0 %v15581_v0, %s12719_s22  ;;  %v4108_v21 = vsel %vm315_vm1, %v4061_v40, %v15945_v6 }
 0x4c3   :  { %4968 = vrot.lane.b32.xlu1 %v15588_v57, %s12719_s22  ;;  %6963 = vmatprep.subr.mxu1 %v4108_v21 }
 0x4c4   :  { %6964 = vmatpush1.msra.mxu1 %v4107_v30  ;;  %v5635_v32 = vpop.permute.xlu0 %5634 }
 0x4c5   :  { %v15965_v31 = vpop.permute.xlu1 %5636  ;;  %v5690_v40 = vsel %vm1910_vm3, %v15367_v36, %v5635_v32 }
 0x4c6   :  { %20432 = vst [vmem:[#allocation25_spill] sm:$0xff] %v15965_v31  ;;  %4302 = vrot.lane.b32.xlu0 %v15958_v34, %s12714_s21  ;;  %v5691_v21 = vsel %vm1910_vm3, %v5635_v32, %v15965_v31  ;;  %v15988_v32 = vld [vmem:[%s20319_s0 + $0x2e8] sm:$0xff] }
 0x4c7   :  { %4304 = vrot.lane.b32.xlu1 %v15963_v26, %s12714_s21  ;;  %7040 = vmatprep.subr.mxu0 %v5691_v21 }
 0x4c8   :  { %7041 = vmatpush1.msra.mxu0 %v5690_v40  ;;  %v4045_v30 = vpop.permute.xlu0 %4044 }
 0x4c9   :  { %v15975_v35 = vpop.permute.xlu1 %4046  ;;  %v4100_v18 = vsel %vm315_vm1, %v15168_v55, %v4045_v30  ;;  %v15993_v55 = vld [vmem:[%s20319_s0 + $0x2f0] sm:$0xff] }
 0x4ca   :  { %4950 = vrot.lane.b32.xlu0 %v15608_v42, %s12719_s22  ;;  %v4101_v36 = vsel %vm315_vm1, %v4045_v30, %v15975_v35 }
 0x4cb   :  { %4952 = vrot.lane.b32.xlu1 %v15613_v54, %s12719_s22  ;;  %6965 = vmatprep.subr.mxu1 %v4101_v36 }
 0x4cc   :  { %6966 = vmatpush1.msra.mxu1 %v4100_v18  ;;  %v5619_v40 = vpop.permute.xlu0 %5618 }
 0x4cd   :  { %v15995_v21 = vpop.permute.xlu1 %5620  ;;  %v5683_v30 = vsel %vm1910_vm3, %v15376_v62, %v5619_v40 }
 0x4ce   :  { %20433 = vst [vmem:[#allocation26_spill] sm:$0xff] %v15995_v21  ;;  %4064 = vrot.lane.b32.xlu0 %v15988_v32, %s12715_s28  ;;  %v5684_v36 = vsel %vm1910_vm3, %v5619_v40, %v15995_v21  ;;  %v16018_v40 = vld [vmem:[%s20319_s0 + $0x2a8] sm:$0xff] }
 0x4cf   :  { %4066 = vrot.lane.b32.xlu1 %v15993_v55, %s12715_s28  ;;  %7042 = vmatprep.subr.mxu0 %v5684_v36 }
 0x4d0   :  { %7043 = vmatpush1.msra.mxu0 %v5683_v30  ;;  %v4029_v18 = vpop.permute.xlu0 %4028 }
 0x4d1   :  { %v16005_v31 = vpop.permute.xlu1 %4030  ;;  %v4093_v29 = vsel %vm315_vm1, %v15184_v47, %v4029_v18  ;;  %v16023_v47 = vld [vmem:[%s20319_s0 + $0x2b0] sm:$0xff] }
 0x4d2   :  { %4934 = vrot.lane.b32.xlu0 %v15631_v24, %s12719_s22  ;;  %v4094_v62 = vsel %vm315_vm1, %v4029_v18, %v16005_v31 }
 0x4d3   :  { %4936 = vrot.lane.b32.xlu1 %v15638_v56, %s12719_s22  ;;  %6967 = vmatprep.subr.mxu1 %v4094_v62 }
 0x4d4   :  { %6968 = vmatpush1.msra.mxu1 %v4093_v29  ;;  %v5603_v30 = vpop.permute.xlu0 %5602 }
 0x4d5   :  { %v16025_v36 = vpop.permute.xlu1 %5604  ;;  %v5676_v18 = vsel %vm1910_vm3, %v15399_v4, %v5603_v30 }
 0x4d6   :  { %4048 = vrot.lane.b32.xlu0 %v16018_v40, %s12715_s28  ;;  %v5677_v62 = vsel %vm1910_vm3, %v5603_v30, %v16025_v36 }
 0x4d7   :  { %4050 = vrot.lane.b32.xlu1 %v16023_v47, %s12715_s28  ;;  %7044 = vmatprep.subr.mxu0 %v5677_v62 }
 0x4d8   :  { %7045 = vmatpush1.msra.mxu0 %v5676_v18  ;;  %v4013_v29 = vpop.permute.xlu0 %4012 }
 0x4d9   :  { %v16035_v21 = vpop.permute.xlu1 %4014  ;;  %v4086_v12 = vsel %vm315_vm1, %v15200_v7, %v4013_v29 }
 0x4da   :  { %4696 = vrot.lane.b32.xlu0 %v15480_v33, %s12720_s23  ;;  %v4087_v4 = vsel %vm315_vm1, %v4013_v29, %v16035_v21 }
 0x4db   :  { %4698 = vrot.lane.b32.xlu1 %v15491_v28, %s12720_s23  ;;  %6969 = vmatprep.subr.mxu1 %v4087_v4 }
 0x4dc   :  { %6970 = vmatpush1.msra.mxu1 %v4086_v12  ;;  %v5587_v30 = vpop.permute.xlu0 %5586 }
 0x4dd   :  { %v16045_v62 = vpop.permute.xlu1 %5588  ;;  %v5669_v18 = vsel %vm1910_vm3, %v15422_v51, %v5587_v30 }
 0x4de   :  { %4032 = vrot.lane.b32.xlu0 %v15868_v63, %s12715_s28  ;;  %v5670_v7 = vsel %vm1910_vm3, %v5587_v30, %v16045_v62 }
 0x4df   :  { %4034 = vrot.lane.b32.xlu1 %v15873_v16, %s12715_s28  ;;  %7046 = vmatprep.subr.mxu0 %v5670_v7  ;;  %v16086_v7 = vld [vmem:[%s20319_s0 + $0x2d8] sm:$0xff] }
 0x4e0   :  { %7047 = vmatpush1.msra.mxu0 %v5669_v18  ;;  %v3997_v33 = vpop.permute.xlu0 %3996 }
 0x4e1   :  { %v16055_v28 = vpop.permute.xlu1 %3998  ;;  %v4079_v12 = vsel %vm315_vm1, %v15222_v38, %v3997_v33 }
 0x4e2   :  { %4680 = vrot.lane.b32.xlu0 %v15511_v10, %s12720_s23  ;;  %v4080_v51 = vsel %vm315_vm1, %v3997_v33, %v16055_v28  ;;  %v11603_v33 = vld [vmem:[%s20319_s0 + $0x2d0] sm:$0xff] }
 0x4e3   :  { %4682 = vrot.lane.b32.xlu1 %v15518_v25, %s12720_s23  ;;  %6971 = vmatprep.subr.mxu1 %v4080_v51  ;;  %v16101_v51 = vld [vmem:[%s20319_s0 + $0x298] sm:$0xff] }
 0x4e4   :  { %6972 = vmatpush1.msra.mxu1 %v4079_v12  ;;  %v5571_v29 = vpop.permute.xlu0 %5570 }
 0x4e5   :  { %v16065_v4 = vpop.permute.xlu1 %5572  ;;  %v5662_v30 = vsel %vm1910_vm3, %v15445_v58, %v5571_v29 }
 0x4e6   :  { %4016 = vrot.lane.b32.xlu0 %v15898_v8, %s12715_s28  ;;  %v5663_v38 = vsel %vm1910_vm3, %v5571_v29, %v16065_v4  ;;  %v11596_v29 = vld [vmem:[%s20319_s0 + $0x290] sm:$0xff] }
 0x4e7   :  { %4018 = vrot.lane.b32.xlu1 %v15903_v2, %s12715_s28  ;;  %7048 = vmatprep.subr.mxu0 %v5663_v38 }
 0x4e8   :  { %7049 = vmatpush1.msra.mxu0 %v5662_v30  ;;  %v3981_v10 = vpop.permute.xlu0 %3980 }
 0x4e9   :  { %v16075_v25 = vpop.permute.xlu1 %3982  ;;  %v4072_v18 = vsel %vm315_vm1, %v15244_v50, %v3981_v10 }
 0x4ea   :  { %4664 = vrot.lane.b32.xlu0 %v15550_v9, %s12720_s23  ;;  %v4073_v58 = vsel %vm315_vm1, %v3981_v10, %v16075_v25 }
 0x4eb   :  { %4666 = vrot.lane.b32.xlu1 %v15560_v41, %s12720_s23  ;;  %6973 = vmatprep.subr.mxu1 %v4073_v58 }
 0x4ec   :  { %6974 = vmatpush1.msra.mxu1 %v4072_v18  ;;  %v5333_v50 = vpop.permute.xlu0 %5332  ;;  %v11589_v18 = vld [vmem:[%s20319_s0 + $0x250] sm:$0xff] }
 0x4ed   :  { %v16093_v12 = vpop.permute.xlu1 %5334  ;;  %v5379_v9 = vsel %vm1591_vm4, %v15475_v59, %v5333_v50  ;;  %6975 = vmatprep.subr.mxu1 %v16086_v7  ;;  %v11590_v59 = vld [vmem:[%s20319_s0 + $0x258] sm:$0xff] }
 0x4ee   :  { %4000 = vrot.lane.b32.xlu0 %v15928_v3, %s12715_s28  ;;  %v5380_v41 = vsel %vm1591_vm4, %v5333_v50, %v16093_v12  ;;  %6976 = vmatpush1.msra.mxu1 %v11603_v33  ;;  %v11583_v33 = vld [vmem:[%s20319_s0 + $0x218] sm:$0xff] }
 0x4ef   :  { %4002 = vrot.lane.b32.xlu1 %v15933_v15, %s12715_s28  ;;  %7050 = vmatprep.subr.mxu0 %v5380_v41  ;;  %v11575_v41 = vld [vmem:[%s20319_s0 + $0x1d0] sm:$0xff] }
 0x4f0   :  { %7051 = vmatpush1.msra.mxu0 %v5379_v9  ;;  %v5317_v30 = vpop.permute.xlu0 %5316  ;;  %6977 = vmatprep.subr.mxu1 %v16101_v51 }
 0x4f1   :  { %v16116_v38 = vpop.permute.xlu1 %5318  ;;  %v5372_v10 = vsel %vm1591_vm4, %v15513_v1, %v5317_v30  ;;  %6978 = vmatpush1.msra.mxu1 %v11596_v29  ;;  %v11582_v1 = vld [vmem:[%s20319_s0 + $0x210] sm:$0xff] }
 0x4f2   :  { %4648 = vrot.lane.b32.xlu0 %v15581_v0, %s12720_s23  ;;  %v5373_v58 = vsel %vm1591_vm4, %v5317_v30, %v16116_v38  ;;  %6979 = vmatprep.subr.mxu1 %v11590_v59  ;;  %v11568_v30 = vld [vmem:[%s20319_s0 + $0x190] sm:$0xff] }
 0x4f3   :  { %4650 = vrot.lane.b32.xlu1 %v15588_v57, %s12720_s23  ;;  %7052 = vmatprep.subr.mxu0 %v5373_v58 }
 0x4f4   :  { %7053 = vmatpush1.msra.mxu0 %v5372_v10  ;;  %v5301_v50 = vpop.permute.xlu0 %5300  ;;  %6980 = vmatpush1.msra.mxu1 %v11589_v18 }
 0x4f5   :  { %v16135_v0 = vpop.permute.xlu1 %5302  ;;  %v5365_v9 = vsel %vm1591_vm4, %v15562_v39, %v5301_v50  ;;  %6981 = vmatprep.subr.mxu1 %v11583_v33  ;;  %v16176_v33 = vld [vmem:[%s20319_s0 + $0x2e0] sm:$0xff] }
 0x4f6   :  { %3984 = vrot.lane.b32.xlu0 %v15958_v34, %s12715_s28  ;;  %v5366_v57 = vsel %vm1591_vm4, %v5301_v50, %v16135_v0  ;;  %6982 = vmatpush1.msra.mxu1 %v11582_v1  ;;  %v16191_v50 = vld [vmem:[%s20319_s0 + $0x2a0] sm:$0xff] }
 0x4f7   :  { %3986 = vrot.lane.b32.xlu1 %v15963_v26, %s12715_s28  ;;  %7054 = vmatprep.subr.mxu0 %v5366_v57 }
 0x4f8   :  { %7055 = vmatpush1.msra.mxu0 %v5365_v9  ;;  %v5285_v29 = vpop.permute.xlu0 %5284  ;;  %6983 = vmatprep.subr.mxu1 %v15608_v42 }
 0x4f9   :  { %v16149_v39 = vpop.permute.xlu1 %5286  ;;  %v5358_v59 = vsel %vm1591_vm4, %v15596_v19, %v5285_v29  ;;  %6984 = vmatpush1.msra.mxu1 %v11575_v41 }
 0x4fa   :  { %4632 = vrot.lane.b32.xlu0 %v15608_v42, %s12720_s23  ;;  %v5359_v10 = vsel %vm1591_vm4, %v5285_v29, %v16149_v39  ;;  %6985 = vmatprep.subr.mxu1 %v15631_v24 }
 0x4fb   :  { %4634 = vrot.lane.b32.xlu1 %v15613_v54, %s12720_s23  ;;  %7056 = vmatprep.subr.mxu0 %v5359_v10 }
 0x4fc   :  { %7057 = vmatpush1.msra.mxu0 %v5358_v59  ;;  %v6287_v18 = vpop.permute.xlu0 %6286  ;;  %6986 = vmatpush1.msra.mxu1 %v11568_v30 }
 0x4fd   :  { %v16163_v19 = vpop.permute.xlu1 %6288  ;;  %v6333_v58 = vsel %vm2548_vm8, %v15633_v27, %v6287_v18 }
 0x4fe   :  { %4616 = vrot.lane.b32.xlu0 %v15631_v24, %s12720_s23  ;;  %v6334_v42 = vsel %vm2548_vm8, %v6287_v18, %v16163_v19 }
 0x4ff   :  { %4618 = vrot.lane.b32.xlu1 %v15638_v56, %s12720_s23  ;;  %7078 = vmatprep.subr.mxu0 %v6334_v42 }
 0x500   :  { %7079 = vmatpush2.msra.mxu0 %v6333_v58  ;;  %v6271_v54 = vpop.permute.xlu0 %6270 }
 0x501   :  { %v16178_v1 = vpop.permute.xlu1 %6272  ;;  %v6326_v27 = vsel %vm2548_vm8, %v15660_v5, %v6271_v54 }
 0x502   :  { %4378 = vrot.lane.b32.xlu0 %v16086_v7, %s12714_s21  ;;  %v6327_v24 = vsel %vm2548_vm8, %v6271_v54, %v16178_v1 }
 0x503   :  { %4380 = vrot.lane.b32.xlu1 %v16176_v33, %s12714_s21  ;;  %7080 = vmatprep.subr.mxu0 %v6327_v24 }
 0x504   :  { %7081 = vmatpush2.msra.mxu0 %v6326_v27  ;;  %v6255_v56 = vpop.permute.xlu0 %6254 }
 0x505   :  { %v16193_v9 = vpop.permute.xlu1 %6256  ;;  %v6319_v5 = vsel %vm2548_vm8, %v15682_v46, %v6255_v56 }
 0x506   :  { %4362 = vrot.lane.b32.xlu0 %v16101_v51, %s12714_s21  ;;  %v6320_v7 = vsel %vm2548_vm8, %v6255_v56, %v16193_v9 }
 0x507   :  { %4364 = vrot.lane.b32.xlu1 %v16191_v50, %s12714_s21  ;;  %7082 = vmatprep.subr.mxu0 %v6320_v7 }
 0x508   :  { %7083 = vmatpush2.msra.mxu0 %v6319_v5  ;;  %v5269_v57 = vpop.permute.xlu0 %5268 }
 0x509   :  { %v16203_v41 = vpop.permute.xlu1 %5270  ;;  %v5351_v29 = vsel %vm1591_vm4, %v15391_v23, %v5269_v57 }
 0x50a   :  { %5972 = vrot.lane.b32.xlu0 %v15988_v32, %s12716_s18  ;;  %v5352_v46 = vsel %vm1591_vm4, %v5269_v57, %v16203_v41 }
 0x50b   :  { %5974 = vrot.lane.b32.xlu1 %v15993_v55, %s12716_s18  ;;  %6987 = vmatprep.subr.mxu1 %v5352_v46 }
 0x50c   :  { %6988 = vmatpush2.msra.mxu1 %v5351_v29  ;;  %v6239_v51 = vpop.permute.xlu0 %6238 }
 0x50d   :  { %v16213_v59 = vpop.permute.xlu1 %6240  ;;  %v6312_v30 = vsel %vm2548_vm8, %v15704_v37, %v6239_v51 }
 0x50e   :  { %5956 = vrot.lane.b32.xlu0 %v16018_v40, %s12716_s18  ;;  %v6313_v23 = vsel %vm2548_vm8, %v6239_v51, %v16213_v59 }
 0x50f   :  { %5958 = vrot.lane.b32.xlu1 %v16023_v47, %s12716_s18  ;;  %7084 = vmatprep.subr.mxu0 %v6313_v23  ;;  %v12687_v23 = vld [vmem:[%s20320_s1 + $0x8] sm:$0xff] }
 0x510   :  { %7085 = vmatpush2.msra.mxu0 %v6312_v30  ;;  %v5253_v10 = vpop.permute.xlu0 %5252 }
 0x511   :  { %v16223_v18 = vpop.permute.xlu1 %5254  ;;  %v5344_v58 = vsel %vm1591_vm4, %v15414_v45, %v5253_v10 }
 0x512   :  { %5940 = vrot.lane.b32.xlu0 %v15868_v63, %s12716_s18  ;;  %v5345_v37 = vsel %vm1591_vm4, %v5253_v10, %v16223_v18 }
 0x513   :  { %5942 = vrot.lane.b32.xlu1 %v15873_v16, %s12716_s18  ;;  %6989 = vmatprep.subr.mxu1 %v5345_v37 }
 0x514   :  { %6990 = vmatpush2.msra.mxu1 %v5344_v58  ;;  %v6223_v42 = vpop.permute.xlu0 %6222 }
 0x515   :  { %v16233_v54 = vpop.permute.xlu1 %6224  ;;  %v6305_v27 = vsel %vm2548_vm8, %v15726_v43, %v6223_v42 }
 0x516   :  { %5272 = vrot.lane.b32.xlu0 %v15928_v3, %s12718_s20  ;;  %v6306_v45 = vsel %vm2548_vm8, %v6223_v42, %v16233_v54 }
 0x517   :  { %5274 = vrot.lane.b32.xlu1 %v15933_v15, %s12718_s20  ;;  %7086 = vmatprep.subr.mxu0 %v6306_v45 }
 0x518   :  { %7087 = vmatpush2.msra.mxu0 %v6305_v27  ;;  %v5015_v24 = vpop.permute.xlu0 %5014 }
 0x519   :  { %v16243_v56 = vpop.permute.xlu1 %5016  ;;  %v5061_v5 = vsel %vm1272_vm5, %v15437_v48, %v5015_v24 }
 0x51a   :  { %5924 = vrot.lane.b32.xlu0 %v15898_v8, %s12716_s18  ;;  %v5062_v43 = vsel %vm1272_vm5, %v5015_v24, %v16243_v56 }
 0x51b   :  { %5926 = vrot.lane.b32.xlu1 %v15903_v2, %s12716_s18  ;;  %6991 = vmatprep.subr.mxu1 %v5062_v43 }
 0x51c   :  { %6992 = vmatpush2.msra.mxu1 %v5061_v5  ;;  %v6207_v7 = vpop.permute.xlu0 %6206 }
 0x51d   :  { %v16253_v57 = vpop.permute.xlu1 %6208  ;;  %v6298_v29 = vsel %vm2548_vm8, %v15748_v53, %v6207_v7 }
 0x51e   :  { %5256 = vrot.lane.b32.xlu0 %v15958_v34, %s12718_s20  ;;  %v6299_v48 = vsel %vm2548_vm8, %v6207_v7, %v16253_v57 }
 0x51f   :  { %5258 = vrot.lane.b32.xlu1 %v15963_v26, %s12718_s20  ;;  %7088 = vmatprep.subr.mxu0 %v6299_v48 }
 0x520   :  { %7089 = vmatpush2.msra.mxu0 %v6298_v29  ;;  %v4351_v46 = vpop.permute.xlu0 %4350 }
 0x521   :  { %v16263_v51 = vpop.permute.xlu1 %4352  ;;  %7091 = vmatmul.mubr.f32.vlgmr.msra.gmra.mxu0 %v15760_v60  ;;  %v4413_v30 = vsel %vm634_vm0, %v15834_v14, %v4351_v46 }
 0x522   :  { %5908 = vrot.lane.b32.xlu0 %v15928_v3, %s12716_s18  ;;  %v4414_v53 = vsel %vm634_vm0, %v4351_v46, %v16263_v51  ;;  %7161 = vmatprep.mubr.f32.mxu0 %v12687_v23 }
 0x523   :  { %5910 = vrot.lane.b32.xlu1 %v15933_v15, %s12716_s18  ;;  %7097 = vmatprep.subr.mxu0 %v4414_v53 }
 0x524   :  { %7098 = vmatpush1.msra.mxu0 %v4413_v30  ;;  %v4999_v60 = vpop.permute.xlu0 %4998 }
 0x525   :  { %v16277_v10 = vpop.permute.xlu1 %5000  ;;  %v5054_v14 = vsel %vm1272_vm5, %v15467_v11, %v4999_v60 }
 0x526   :  { %5018 = vrot.lane.b32.xlu0 %v15988_v32, %s12719_s22  ;;  %v5055_v58 = vsel %vm1272_vm5, %v4999_v60, %v16277_v10 }
 0x527   :  { %5020 = vrot.lane.b32.xlu1 %v15993_v55, %s12719_s22  ;;  %6993 = vmatprep.subr.mxu1 %v5055_v58 }
 0x528   :  { %6994 = vmatpush2.msra.mxu1 %v5054_v14  ;;  %v4335_v37 = vpop.permute.xlu0 %4334 }
 0x529   :  { %v16287_v42 = vpop.permute.xlu1 %4336  ;;  %v4406_v27 = vsel %vm634_vm0, %v15855_v49, %v4335_v37 }
 0x52a   :  { %5892 = vrot.lane.b32.xlu0 %v15958_v34, %s12716_s18  ;;  %v4407_v11 = vsel %vm634_vm0, %v4335_v37, %v16287_v42 }
 0x52b   :  { %5894 = vrot.lane.b32.xlu1 %v15963_v26, %s12716_s18  ;;  %7099 = vmatprep.subr.mxu0 %v4407_v11 }
 0x52c   :  { %7100 = vmatpush1.msra.mxu0 %v4406_v27  ;;  %v4983_v45 = vpop.permute.xlu0 %4982 }
 0x52d   :  { %v16297_v24 = vpop.permute.xlu1 %4984  ;;  %v5047_v5 = vsel %vm1272_vm5, %v15498_v13, %v4983_v45 }
 0x52e   :  { %5002 = vrot.lane.b32.xlu0 %v16018_v40, %s12719_s22  ;;  %v5048_v49 = vsel %vm1272_vm5, %v4983_v45, %v16297_v24 }
 0x52f   :  { %5004 = vrot.lane.b32.xlu1 %v16023_v47, %s12719_s22  ;;  %6995 = vmatprep.subr.mxu1 %v5048_v49 }
 0x530   :  { %6996 = vmatpush2.msra.mxu1 %v5047_v5  ;;  %v4319_v43 = vpop.permute.xlu0 %4318 }
 0x531   :  { %v16307_v7 = vpop.permute.xlu1 %4320  ;;  %v4399_v29 = vsel %vm634_vm0, %v15885_v44, %v4319_v43 }
 0x532   :  { %5654 = vrot.lane.b32.xlu0 %v15988_v32, %s12717_s19  ;;  %v4400_v13 = vsel %vm634_vm0, %v4319_v43, %v16307_v7 }
 0x533   :  { %5656 = vrot.lane.b32.xlu1 %v15993_v55, %s12717_s19  ;;  %7101 = vmatprep.subr.mxu0 %v4400_v13 }
 0x534   :  { %7102 = vmatpush1.msra.mxu0 %v4399_v29  ;;  %v4967_v48 = vpop.permute.xlu0 %4966 }
 0x535   :  { %v16317_v46 = vpop.permute.xlu1 %4968  ;;  %v5040_v30 = vsel %vm1272_vm5, %v15545_v22, %v4967_v48 }
 0x536   :  { %4986 = vrot.lane.b32.xlu0 %v15868_v63, %s12719_s22  ;;  %v5041_v44 = vsel %vm1272_vm5, %v4967_v48, %v16317_v46 }
 0x537   :  { %4988 = vrot.lane.b32.xlu1 %v15873_v16, %s12719_s22  ;;  %6997 = vmatprep.subr.mxu1 %v5041_v44 }
 0x538   :  { %6998 = vmatpush2.msra.mxu1 %v5040_v30  ;;  %v4303_v53 = vpop.permute.xlu0 %4302 }
 0x539   :  { %v16327_v23 = vpop.permute.xlu1 %4304  ;;  %v4392_v60 = vsel %vm634_vm0, %v15915_v61, %v4303_v53 }
 0x53a   :  { %5638 = vrot.lane.b32.xlu0 %v16018_v40, %s12717_s19  ;;  %v4393_v22 = vsel %vm634_vm0, %v4303_v53, %v16327_v23 }
 0x53b   :  { %5640 = vrot.lane.b32.xlu1 %v16023_v47, %s12717_s19  ;;  %7103 = vmatprep.subr.mxu0 %v4393_v22 }
 0x53c   :  { %7104 = vmatpush1.msra.mxu0 %v4392_v60  ;;  %v4951_v14 = vpop.permute.xlu0 %4950 }
 0x53d   :  { %v16337_v58 = vpop.permute.xlu1 %4952  ;;  %v5033_v37 = vsel %vm1272_vm5, %v15583_v20, %v4951_v14 }
 0x53e   :  { %4970 = vrot.lane.b32.xlu0 %v15898_v8, %s12719_s22  ;;  %v5034_v61 = vsel %vm1272_vm5, %v4951_v14, %v16337_v58 }
 0x53f   :  { %4972 = vrot.lane.b32.xlu1 %v15903_v2, %s12719_s22  ;;  %6999 = vmatprep.subr.mxu1 %v5034_v61 }
 0x540   :  { %7000 = vmatpush2.msra.mxu1 %v5033_v37  ;;  %v4065_v27 = vpop.permute.xlu0 %4064 }
 0x541   :  { %v16347_v11 = vpop.permute.xlu1 %4066  ;;  %v4109_v45 = vsel %vm315_vm1, %v15945_v6, %v4065_v27 }
 0x542   :  { %5622 = vrot.lane.b32.xlu0 %v15868_v63, %s12717_s19  ;;  %v4110_v20 = vsel %vm315_vm1, %v4065_v27, %v16347_v11  ;;  %v20434_v27 = vld [vmem:[#allocation11_spill] sm:$0xff] }
 0x543   :  { %5624 = vrot.lane.b32.xlu1 %v15873_v16, %s12717_s19  ;;  %7105 = vmatprep.subr.mxu0 %v4110_v20 }
 0x544   :  { %7106 = vmatpush1.msra.mxu0 %v4109_v45  ;;  %v4935_v5 = vpop.permute.xlu0 %4934 }
 0x545   :  { %v16357_v49 = vpop.permute.xlu1 %4936  ;;  %v5026_v43 = vsel %vm1272_vm5, %v15620_v17, %v4935_v5 }
 0x546   :  { %4954 = vrot.lane.b32.xlu0 %v15928_v3, %s12719_s22  ;;  %v5027_v6 = vsel %vm1272_vm5, %v4935_v5, %v16357_v49 }
 0x547   :  { %4956 = vrot.lane.b32.xlu1 %v15933_v15, %s12719_s22  ;;  %7001 = vmatprep.subr.mxu1 %v5027_v6 }
 0x548   :  { %7002 = vmatpush2.msra.mxu1 %v5026_v43  ;;  %v4049_v29 = vpop.permute.xlu0 %4048 }
 0x549   :  { %v16367_v13 = vpop.permute.xlu1 %4050  ;;  %v4102_v48 = vsel %vm315_vm1, %v15975_v35, %v4049_v29 }
 0x54a   :  { %5606 = vrot.lane.b32.xlu0 %v15898_v8, %s12717_s19  ;;  %v4103_v17 = vsel %vm315_vm1, %v4049_v29, %v16367_v13 }
 0x54b   :  { %5608 = vrot.lane.b32.xlu1 %v15903_v2, %s12717_s19  ;;  %7107 = vmatprep.subr.mxu0 %v4103_v17  ;;  %v20435_v17 = vld [vmem:[#allocation12_spill] sm:$0xff] }
 0x54c   :  { %7108 = vmatpush1.msra.mxu0 %v4102_v48  ;;  %v4697_v30 = vpop.permute.xlu0 %4696 }
 0x54d   :  { %v16377_v44 = vpop.permute.xlu1 %4698  ;;  %v4743_v53 = vsel %vm953_vm7, %v15652_v52, %v4697_v30 }
 0x54e   :  { %4938 = vrot.lane.b32.xlu0 %v15958_v34, %s12719_s22  ;;  %v4744_v35 = vsel %vm953_vm7, %v4697_v30, %v16377_v44 }
 0x54f   :  { %4940 = vrot.lane.b32.xlu1 %v15963_v26, %s12719_s22  ;;  %7003 = vmatprep.subr.mxu1 %v4744_v35 }
 0x550   :  { %7004 = vmatpush2.msra.mxu1 %v4743_v53  ;;  %v4033_v60 = vpop.permute.xlu0 %4032 }
 0x551   :  { %v16387_v22 = vpop.permute.xlu1 %4034  ;;  %v4095_v14 = vsel %vm315_vm1, %v16005_v31, %v4033_v60 }
 0x552   :  { %5590 = vrot.lane.b32.xlu0 %v15928_v3, %s12717_s19  ;;  %v4096_v52 = vsel %vm315_vm1, %v4033_v60, %v16387_v22 }
 0x553   :  { %5592 = vrot.lane.b32.xlu1 %v15933_v15, %s12717_s19  ;;  %7109 = vmatprep.subr.mxu0 %v4096_v52 }
 0x554   :  { %7110 = vmatpush1.msra.mxu0 %v4095_v14  ;;  %v4681_v37 = vpop.permute.xlu0 %4680 }
 0x555   :  { %v16397_v61 = vpop.permute.xlu1 %4682  ;;  %v4736_v45 = vsel %vm953_vm7, %v20434_v27, %v4681_v37  ;;  %v20436_v27 = vld [vmem:[#allocation13_spill] sm:$0xff] }
 0x556   :  { %4700 = vrot.lane.b32.xlu0 %v15988_v32, %s12720_s23  ;;  %v4737_v31 = vsel %vm953_vm7, %v4681_v37, %v16397_v61 }
 0x557   :  { %4702 = vrot.lane.b32.xlu1 %v15993_v55, %s12720_s23  ;;  %7005 = vmatprep.subr.mxu1 %v4737_v31 }
 0x558   :  { %7006 = vmatpush2.msra.mxu1 %v4736_v45  ;;  %v4017_v20 = vpop.permute.xlu0 %4016 }
 0x559   :  { %v16407_v5 = vpop.permute.xlu1 %4018  ;;  %v4088_v43 = vsel %vm315_vm1, %v16035_v21, %v4017_v20 }
 0x55a   :  { %5574 = vrot.lane.b32.xlu0 %v15958_v34, %s12717_s19  ;;  %v4089_v6 = vsel %vm315_vm1, %v4017_v20, %v16407_v5 }
 0x55b   :  { %5576 = vrot.lane.b32.xlu1 %v15963_v26, %s12717_s19  ;;  %7111 = vmatprep.subr.mxu0 %v4089_v6 }
 0x55c   :  { %7112 = vmatpush1.msra.mxu0 %v4088_v43  ;;  %v4665_v29 = vpop.permute.xlu0 %4664 }
 0x55d   :  { %v16417_v48 = vpop.permute.xlu1 %4666  ;;  %v4729_v30 = vsel %vm953_vm7, %v20435_v17, %v4665_v29 }
 0x55e   :  { %4684 = vrot.lane.b32.xlu0 %v16018_v40, %s12720_s23  ;;  %v4730_v21 = vsel %vm953_vm7, %v4665_v29, %v16417_v48  ;;  %v20438_v29 = vld [vmem:[#allocation14_spill] sm:$0xff] }
 0x55f   :  { %4686 = vrot.lane.b32.xlu1 %v16023_v47, %s12720_s23  ;;  %7007 = vmatprep.subr.mxu1 %v4730_v21 }
 0x560   :  { %7008 = vmatpush2.msra.mxu1 %v4729_v30  ;;  %v4001_v53 = vpop.permute.xlu0 %4000  ;;  %v16472_v30 = vld [vmem:[%s20319_s0 + $0x268] sm:$0xff] }
 0x561   :  { %v16427_v35 = vpop.permute.xlu1 %4002  ;;  %v4081_v60 = vsel %vm315_vm1, %v16055_v28, %v4001_v53 }
 0x562   :  { %5336 = vrot.lane.b32.xlu0 %v15988_v32, %s12718_s20  ;;  %v4082_v14 = vsel %vm315_vm1, %v4001_v53, %v16427_v35 }
 0x563   :  { %5338 = vrot.lane.b32.xlu1 %v15993_v55, %s12718_s20  ;;  %7113 = vmatprep.subr.mxu0 %v4082_v14 }
 0x564   :  { %7114 = vmatpush1.msra.mxu0 %v4081_v60  ;;  %v4649_v52 = vpop.permute.xlu0 %4648  ;;  %v11591_v60 = vld [vmem:[%s20319_s0 + $0x260] sm:$0xff] }
 0x565   :  { %v16437_v37 = vpop.permute.xlu1 %4650  ;;  %v4722_v45 = vsel %vm953_vm7, %v20436_v27, %v4649_v52  ;;  %v16501_v27 = vld [vmem:[%s20319_s0 + $0x228] sm:$0xff] }
 0x566   :  { %4668 = vrot.lane.b32.xlu0 %v15868_v63, %s12720_s23  ;;  %v4723_v28 = vsel %vm953_vm7, %v4649_v52, %v16437_v37 }
 0x567   :  { %4670 = vrot.lane.b32.xlu1 %v15873_v16, %s12720_s23  ;;  %7009 = vmatprep.subr.mxu1 %v4723_v28  ;;  %v20440_v28 = vld [vmem:[#allocation17_spill] sm:$0xff] }
 0x568   :  { %7010 = vmatpush2.msra.mxu1 %v4722_v45  ;;  %v3985_v31 = vpop.permute.xlu0 %3984 }
 0x569   :  { %v16447_v20 = vpop.permute.xlu1 %3986  ;;  %v4074_v43 = vsel %vm315_vm1, %v16075_v25, %v3985_v31 }
 0x56a   :  { %20437 = vst [vmem:[#allocation11_spill] sm:$0xff] %v16447_v20  ;;  %5320 = vrot.lane.b32.xlu0 %v16018_v40, %s12718_s20  ;;  %v4075_v63 = vsel %vm315_vm1, %v3985_v31, %v16447_v20 }
 0x56b   :  { %5322 = vrot.lane.b32.xlu1 %v16023_v47, %s12718_s20  ;;  %7115 = vmatprep.subr.mxu0 %v4075_v63 }
 0x56c   :  { %7116 = vmatpush1.msra.mxu0 %v4074_v43  ;;  %v4633_v16 = vpop.permute.xlu0 %4632  ;;  %v16511_v43 = vld [vmem:[%s20319_s0 + $0x1e8] sm:$0xff] }
 0x56d   :  { %v16457_v6 = vpop.permute.xlu1 %4634  ;;  %v4715_v17 = vsel %vm953_vm7, %v20438_v29, %v4633_v16  ;;  %7117 = vmatprep.subr.mxu0 %v15988_v32  ;;  %v16525_v29 = vld [vmem:[%s20319_s0 + $0x1a8] sm:$0xff] }
 0x56e   :  { %4652 = vrot.lane.b32.xlu0 %v15898_v8, %s12720_s23  ;;  %v4716_v25 = vsel %vm953_vm7, %v4633_v16, %v16457_v6  ;;  %7118 = vmatpush1.msra.mxu0 %v16176_v33  ;;  %v16477_v8 = vld [vmem:[%s20319_s0 + $0x270] sm:$0xff]  ;;  %v20439_v33 = vld [vmem:[#allocation15_spill] sm:$0xff] }
 0x56f   :  { %4654 = vrot.lane.b32.xlu1 %v15903_v2, %s12720_s23  ;;  %7011 = vmatprep.subr.mxu1 %v4716_v25  ;;  %v11577_v16 = vld [vmem:[%s20319_s0 + $0x1e0] sm:$0xff] }
 0x570   :  { %7012 = vmatpush2.msra.mxu1 %v4715_v17  ;;  %v4617_v21 = vpop.permute.xlu0 %4616  ;;  %7119 = vmatprep.subr.mxu0 %v16018_v40 }
 0x571   :  { %v16480_v53 = vpop.permute.xlu1 %4618  ;;  %v4708_v2 = vsel %vm953_vm7, %v20439_v33, %v4617_v21  ;;  %7120 = vmatpush1.msra.mxu0 %v16191_v50  ;;  %v11584_v50 = vld [vmem:[%s20319_s0 + $0x220] sm:$0xff] }
 0x572   :  { %5304 = vrot.lane.b32.xlu0 %v16472_v30, %s12718_s20  ;;  %v4709_v14 = vsel %vm953_vm7, %v4617_v21, %v16480_v53  ;;  %7121 = vmatprep.subr.mxu0 %v16472_v30  ;;  %v20441_v21 = vld [vmem:[#allocation19_spill] sm:$0xff] }
 0x573   :  { %5306 = vrot.lane.b32.xlu1 %v16477_v8, %s12718_s20  ;;  %7013 = vmatprep.subr.mxu1 %v4709_v14  ;;  %v11570_v33 = vld [vmem:[%s20319_s0 + $0x1a0] sm:$0xff] }
 0x574   :  { %7014 = vmatpush2.msra.mxu1 %v4708_v2  ;;  %v4379_v52 = vpop.permute.xlu0 %4378  ;;  %7122 = vmatpush1.msra.mxu0 %v11591_v60 }
 0x575   :  { %v16503_v45 = vpop.permute.xlu1 %4380  ;;  %v4425_v31 = vsel %vm634_vm0, %v20440_v28, %v4379_v52  ;;  %7123 = vmatprep.subr.mxu0 %v16501_v27 }
 0x576   :  { %4636 = vrot.lane.b32.xlu0 %v15928_v3, %s12720_s23  ;;  %v4426_v63 = vsel %vm634_vm0, %v4379_v52, %v16503_v45  ;;  %7124 = vmatpush1.msra.mxu0 %v11584_v50  ;;  %v16530_v3 = vld [vmem:[%s20319_s0 + $0x230] sm:$0xff]  ;;  %v16552_v50 = vld [vmem:[%s20320_s1] sm:$0xff] }
 0x577   :  { %4638 = vrot.lane.b32.xlu1 %v15933_v15, %s12720_s23  ;;  %7015 = vmatprep.subr.mxu1 %v4426_v63  ;;  %v20442_v52 = vld [vmem:[#allocation16_spill] sm:$0xff]  ;;  %v16564_v63 = vld [vmem:[%s20320_s1 + $0x18] sm:$0xff] }
 0x578   :  { %7016 = vmatpush2.msra.mxu1 %v4425_v31  ;;  %v4363_v17 = vpop.permute.xlu0 %4362  ;;  %7125 = vmatprep.subr.mxu0 %v16511_v43 }
 0x579   :  { %v16533_v25 = vpop.permute.xlu1 %4364  ;;  %v4418_v15 = vsel %vm634_vm0, %v20441_v21, %v4363_v17  ;;  %7126 = vmatpush1.msra.mxu0 %v11577_v16 }
 0x57a   :  { %5288 = vrot.lane.b32.xlu0 %v16501_v27, %s12718_s20  ;;  %v4419_v2 = vsel %vm634_vm0, %v4363_v17, %v16533_v25  ;;  %7127 = vmatprep.subr.mxu0 %v16525_v29 }
 0x57b   :  { %5290 = vrot.lane.b32.xlu1 %v16530_v3, %s12718_s20  ;;  %7017 = vmatprep.subr.mxu1 %v4419_v2 }
 0x57c   :  { %7018 = vmatpush2.msra.mxu1 %v4418_v15  ;;  %v5973_v60 = vpop.permute.xlu0 %5972  ;;  %7128 = vmatpush1.msra.mxu0 %v11570_v33  ;;  %v12723_v33 = vmov 0  }
 0x57d   :  { %v16547_v14 = vpop.permute.xlu1 %5974  ;;  %7020 = vmatmul.mubr.f32.vlgmr.msra.gmra.mxu1 %v16552_v50  ;;  %v6017_v28 = vsel %vm2229_vm2, %v20442_v52, %v5973_v60  ;;  %12669 = vset.pattern.permute.xlu1 %v12723_v33 }
 0x57e   :  { %4620 = vrot.lane.b32.xlu0 %v15958_v34, %s12720_s23  ;;  %v6018_v31 = vsel %vm2229_vm2, %v5973_v60, %v16547_v14  ;;  %11994 = vmatprep.mubr.msk.f32.mxu1 %vm3063_vm6, %v16564_v63  ;;  %v20443_v34 = vld [vmem:[#allocation18_spill] sm:$0xff]  ;;  %v20444_v60 = vld [vmem:[#allocation20_spill] sm:$0xff] }
 0x57f   :  { %4622 = vrot.lane.b32.xlu1 %v15963_v26, %s12720_s23  ;;  %7168 = vmatprep.subr.mxu1 %v6018_v31 }
 0x580   :  { %7169 = vmatpush1.msra.mxu1 %v6017_v28  ;;  %v5957_v16 = vpop.permute.xlu0 %5956  ;;  %12668 = vset.pattern.permute.xlu0 %v12723_v33 }
 0x581   :  { %v16570_v17 = vpop.permute.xlu1 %5958  ;;  %v6010_v21 = vsel %vm2229_vm2, %v20443_v34, %v5957_v16 }
 0x582   :  { %6290 = vrot.lane.b32.xlu0 %v15988_v32, %s12721_s24  ;;  %v6011_v15 = vsel %vm2229_vm2, %v5957_v16, %v16570_v17 }
 0x583   :  { %6292 = vrot.lane.b32.xlu1 %v15993_v55, %s12721_s24  ;;  %7170 = vmatprep.subr.mxu1 %v6011_v15  ;;  %v20445_v15 = vld [vmem:[#allocation21_spill] sm:$0xff] }
 0x584   :  { %7171 = vmatpush1.msra.mxu1 %v6010_v21  ;;  %v5941_v26 = vpop.permute.xlu0 %5940 }
 0x585   :  { %v16580_v2 = vpop.permute.xlu1 %5942  ;;  %v6003_v52 = vsel %vm2229_vm2, %v20444_v60, %v5941_v26 }
 0x586   :  { %4382 = vrot.lane.b32.xlu0 %v15988_v32, %s12714_s21  ;;  %v6004_v28 = vsel %vm2229_vm2, %v5941_v26, %v16580_v2 }
 0x587   :  { %4384 = vrot.lane.b32.xlu1 %v15993_v55, %s12714_s21  ;;  %7172 = vmatprep.subr.mxu1 %v6004_v28 }
 0x588   :  { %7173 = vmatpush1.msra.mxu1 %v6003_v52  ;;  %v5273_v31 = vpop.permute.xlu0 %5272 }
 0x589   :  { %v16590_v16 = vpop.permute.xlu1 %5274  ;;  %v5353_v34 = vsel %vm1591_vm4, %v16203_v41, %v5273_v31 }
 0x58a   :  { %6274 = vrot.lane.b32.xlu0 %v16018_v40, %s12721_s24  ;;  %v5354_v32 = vsel %vm1591_vm4, %v5273_v31, %v16590_v16  ;;  %v20446_v31 = vld [vmem:[#allocation22_spill] sm:$0xff] }
 0x58b   :  { %6276 = vrot.lane.b32.xlu1 %v16023_v47, %s12721_s24  ;;  %7129 = vmatprep.subr.mxu0 %v5354_v32  ;;  %v16635_v32 = vpop.f32.mrf.mxu1 }
 0x58c   :  { %7130 = vmatpush2.msra.mxu0 %v5353_v34  ;;  %v5925_v55 = vpop.permute.xlu0 %5924  ;;  %20447 = vst [vmem:[#allocation12_spill] sm:$0xff] %v16635_v32 }
 0x58d   :  { %v16600_v21 = vpop.permute.xlu1 %5926  ;;  %v5996_v33 = vsel %vm2229_vm2, %v20445_v15, %v5925_v55  ;;  %v16650_v15 = vld [vmem:[%s20319_s0 + $0x1f0] sm:$0xff] }
 0x58e   :  { %4366 = vrot.lane.b32.xlu0 %v16018_v40, %s12714_s21  ;;  %v5997_v41 = vsel %vm2229_vm2, %v5925_v55, %v16600_v21  ;;  %20448 = vst [vmem:[#allocation13_spill] sm:$0xff] %v16650_v15 }
 0x58f   :  { %4368 = vrot.lane.b32.xlu1 %v16023_v47, %s12714_s21  ;;  %7174 = vmatprep.subr.mxu1 %v5997_v41  ;;  %v16652_v41 = vpop.f32.mrf.mxu1 }
 0x590   :  { %7175 = vmatpush1.msra.mxu1 %v5996_v33  ;;  %v5257_v26 = vpop.permute.xlu0 %5256  ;;  %20449 = vst [vmem:[#allocation14_spill] sm:$0xff] %v16652_v41 }
 0x591   :  { %v16610_v60 = vpop.permute.xlu1 %5258  ;;  %v5346_v52 = vsel %vm1591_vm4, %v16223_v18, %v5257_v26 }
 0x592   :  { %6258 = vrot.lane.b32.xlu0 %v16472_v30, %s12721_s24  ;;  %v5347_v40 = vsel %vm1591_vm4, %v5257_v26, %v16610_v60  ;;  %v16633_v30 = vld [vmem:[%s20319_s0 + $0x2f8] sm:$0xff] }
 0x593   :  { %6260 = vrot.lane.b32.xlu1 %v16477_v8, %s12721_s24  ;;  %7131 = vmatprep.subr.mxu0 %v5347_v40 }
 0x594   :  { %7132 = vmatpush2.msra.mxu0 %v5346_v52  ;;  %v5909_v47 = vpop.permute.xlu0 %5908  ;;  %v20450_v52 = vld [vmem:[#allocation23_spill] sm:$0xff] }
 0x595   :  { %v16620_v28 = vpop.permute.xlu1 %5910  ;;  %v5989_v34 = vsel %vm2229_vm2, %v20446_v31, %v5909_v47 }
 0x596   :  { %6242 = vrot.lane.b32.xlu0 %v16501_v27, %s12721_s24  ;;  %v5990_v18 = vsel %vm2229_vm2, %v5909_v47, %v16620_v28  ;;  %v16667_v47 = vpop.f32.mrf.mxu1 }
 0x597   :  { %6244 = vrot.lane.b32.xlu1 %v16530_v3, %s12721_s24  ;;  %7176 = vmatprep.subr.mxu1 %v5990_v18  ;;  %20451 = vst [vmem:[#allocation15_spill] sm:$0xff] %v16667_v47  ;;  %v20457_v47 = vld [vmem:[#allocation25_spill] sm:$0xff] }
 0x598   :  { %7177 = vmatpush1.msra.mxu1 %v5989_v34  ;;  %v5019_v8 = vpop.permute.xlu0 %5018  ;;  %v16674_v34 = vld [vmem:[%s20319_s0 + $0x1b0] sm:$0xff] }
 0x599   :  { %v16637_v55 = vpop.permute.xlu1 %5020  ;;  %v5063_v27 = vsel %vm1272_vm5, %v16243_v56, %v5019_v8  ;;  %v16657_v56 = vld [vmem:[%s20319_s0 + $0x2b8] sm:$0xff]  ;;  %20452 = vst [vmem:[#allocation17_spill] sm:$0xff] %v16674_v34 }
 0x59a   :  { %5976 = vrot.lane.b32.xlu0 %v16633_v30, %s12716_s18  ;;  %v5064_v3 = vsel %vm1272_vm5, %v5019_v8, %v16637_v55 }
 0x59b   :  { %6226 = vrot.lane.b32.xlu1 %v16511_v43, %s12721_s24  ;;  %7133 = vmatprep.subr.mxu0 %v5064_v3  ;;  %v16684_v3 = vpop.f32.mrf.mxu1 }
 0x59c   :  { %7134 = vmatpush2.msra.mxu0 %v5063_v27  ;;  %v5893_v33 = vpop.permute.xlu0 %5892  ;;  %20453 = vst [vmem:[#allocation19_spill] sm:$0xff] %v16684_v3 }
 0x59d   :  { %v16659_v26 = vpop.permute.xlu1 %5894  ;;  %v5982_v43 = vsel %vm2229_vm2, %v20450_v52, %v5893_v33 }
 0x59e   :  { %6228 = vrot.lane.b32.xlu0 %v16650_v15, %s12721_s24  ;;  %v5983_v40 = vsel %vm2229_vm2, %v5893_v33, %v16659_v26  ;;  %v16691_v33 = vld [vmem:[%s20319_s0 + $0x278] sm:$0xff] }
 0x59f   :  { %5960 = vrot.lane.b32.xlu1 %v16657_v56, %s12716_s18  ;;  %7178 = vmatprep.subr.mxu1 %v5983_v40  ;;  %v20455_v40 = vld [vmem:[#allocation24_spill] sm:$0xff] }
 0x5a0   :  { %7179 = vmatpush1.msra.mxu1 %v5982_v43  ;;  %v5003_v31 = vpop.permute.xlu0 %5002 }
 0x5a1   :  { %v16676_v18 = vpop.permute.xlu1 %5004  ;;  %v5056_v8 = vsel %vm1272_vm5, %v16277_v10, %v5003_v31  ;;  %v16696_v10 = vld [vmem:[%s20319_s0 + $0x1f8] sm:$0xff] }
 0x5a2   :  { %6210 = vrot.lane.b32.xlu0 %v16525_v29, %s12721_s24  ;;  %v5057_v27 = vsel %vm1272_vm5, %v5003_v31, %v16676_v18  ;;  %v16698_v29 = vpop.f32.mrf.mxu1 }
 0x5a3   :  { %6212 = vrot.lane.b32.xlu1 %v16674_v34, %s12721_s24  ;;  %7135 = vmatprep.subr.mxu0 %v5057_v27  ;;  %20454 = vst [vmem:[#allocation16_spill] sm:$0xff] %v16698_v29  ;;  %v16713_v29 = vld [vmem:[%s20319_s0 + $0x238] sm:$0xff] }
 0x5a4   :  { %7136 = vmatpush2.msra.mxu0 %v5056_v8  ;;  %v5655_v52 = vpop.permute.xlu0 %5654  ;;  %v16715_v32 = vpop.f32.mrf.mxu1 }
 0x5a5   :  { %v16700_v43 = vpop.permute.xlu1 %5656  ;;  %v5699_v31 = vsel %vm1910_vm3, %v20455_v40, %v5655_v52  ;;  %20456 = vst [vmem:[#allocation18_spill] sm:$0xff] %v16715_v32 }
 0x5a6   :  { %5944 = vrot.lane.b32.xlu0 %v16691_v33, %s12716_s18  ;;  %v5700_v27 = vsel %vm1910_vm3, %v5655_v52, %v16700_v43 }
 0x5a7   :  { %5276 = vrot.lane.b32.xlu1 %v16696_v10, %s12718_s20  ;;  %7180 = vmatprep.subr.mxu1 %v5700_v27  ;;  %v16730_v27 = vld [vmem:[%s20319_s0 + $0x1b8] sm:$0xff] }
 0x5a8   :  { %7181 = vmatpush1.msra.mxu1 %v5699_v31  ;;  %v4987_v8 = vpop.permute.xlu0 %4986  ;;  %v12040_v31 = vpop.f32.mrf.mxu1 }
 0x5a9   :  { %v16717_v40 = vpop.permute.xlu1 %4988  ;;  %v5049_v3 = vsel %vm1272_vm5, %v16297_v24, %v4987_v8 }
 0x5aa   :  { %4354 = vrot.lane.b32.xlu0 %v16691_v33, %s12714_s21  ;;  %v5050_v52 = vsel %vm1272_vm5, %v4987_v8, %v16717_v40  ;;  %v12041_v41 = vpop.f32.mrf.mxu1 }
 0x5ab   :  { %5928 = vrot.lane.b32.xlu1 %v16713_v29, %s12716_s18  ;;  %7137 = vmatprep.subr.mxu0 %v5050_v52  ;;  %v16736_v15 = vadd.f32 %v12041_v41, %v12040_v31 }
 0x5ac   :  { %7138 = vmatpush2.msra.mxu0 %v5049_v3  ;;  %v5639_v32 = vpop.permute.xlu0 %5638 }
 0x5ad   :  { %v16732_v24 = vpop.permute.xlu1 %5640  ;;  %v5692_v34 = vsel %vm1910_vm3, %v20457_v47, %v5639_v32  ;;  %20458 = vst [vmem:[#allocation20_spill] sm:$0xff] %v16736_v15 }
 0x5ae   :  { %5260 = vrot.lane.b32.xlu0 %v16730_v27, %s12718_s20  ;;  %v5693_v8 = vsel %vm1910_vm3, %v5639_v32, %v16732_v24 }
 0x5af   :  { %4338 = vrot.lane.b32.xlu1 %v16713_v29, %s12714_s21  ;;  %7182 = vmatprep.subr.mxu1 %v5693_v8 }
 0x5b0   :  { %7183 = vmatpush1.msra.mxu1 %v5692_v34  ;;  %v4971_v3 = vpop.permute.xlu0 %4970  ;;  %v20459_v34 = vld [vmem:[#allocation26_spill] sm:$0xff] }
 0x5b1   :  { %v16744_v52 = vpop.permute.xlu1 %4972  ;;  %v5042_v20 = vsel %vm1272_vm5, %v16317_v46, %v4971_v3 }
 0x5b2   :  { %5912 = vrot.lane.b32.xlu0 %v16696_v10, %s12716_s18  ;;  %v5043_v41 = vsel %vm1272_vm5, %v4971_v3, %v16744_v52 }
 0x5b3   :  { %5022 = vrot.lane.b32.xlu1 %v16633_v30, %s12719_s22  ;;  %7139 = vmatprep.subr.mxu0 %v5043_v41 }
 0x5b4   :  { %7140 = vmatpush2.msra.mxu0 %v5042_v20  ;;  %v5623_v32 = vpop.permute.xlu0 %5622 }
 0x5b5   :  { %v16754_v47 = vpop.permute.xlu1 %5624  ;;  %v5685_v31 = vsel %vm1910_vm3, %v20459_v34, %v5623_v32 }
 0x5b6   :  { %4322 = vrot.lane.b32.xlu0 %v16696_v10, %s12714_s21  ;;  %v5686_v46 = vsel %vm1910_vm3, %v5623_v32, %v16754_v47 }
 0x5b7   :  { %5896 = vrot.lane.b32.xlu1 %v16730_v27, %s12716_s18  ;;  %7184 = vmatprep.subr.mxu1 %v5686_v46  ;;  %v16784_v46 = vpop.f32.mrf.mxu0  ;;  %s12744_s18 = smov 111  }
 0x5b8   :  { %7185 = vmatpush1.msra.mxu1 %v5685_v31  ;;  %v4955_v8 = vpop.permute.xlu0 %4954  ;;  %20460 = vst [vmem:[#allocation21_spill] sm:$0xff] %v16784_v46 }
 0x5b9   :  { %v16764_v3 = vpop.permute.xlu1 %4956  ;;  %v5035_v20 = vsel %vm1272_vm5, %v16337_v58, %v4955_v8 }
 0x5ba   :  { %5006 = vrot.lane.b32.xlu0 %v16657_v56, %s12719_s22  ;;  %v5036_v41 = vsel %vm1272_vm5, %v4955_v8, %v16764_v3 }
 0x5bb   :  { %4306 = vrot.lane.b32.xlu1 %v16730_v27, %s12714_s21  ;;  %7141 = vmatprep.subr.mxu0 %v5036_v41 }
 0x5bc   :  { %7142 = vmatpush2.msra.mxu0 %v5035_v20  ;;  %v5607_v32 = vpop.permute.xlu0 %5606 }
 0x5bd   :  { %v16774_v34 = vpop.permute.xlu1 %5608  ;;  %v5678_v31 = vsel %vm1910_vm3, %v16025_v36, %v5607_v32 }
 0x5be   :  { %5658 = vrot.lane.b32.xlu0 %v16633_v30, %s12717_s19  ;;  %v5679_v58 = vsel %vm1910_vm3, %v5607_v32, %v16774_v34  ;;  %v16796_v32 = vpop.f32.mrf.mxu0 }
 0x5bf   :  { %4990 = vrot.lane.b32.xlu1 %v16691_v33, %s12719_s22  ;;  %7186 = vmatprep.subr.mxu1 %v5679_v58 }
 0x5c0   :  { %7187 = vmatpush1.msra.mxu1 %v5678_v31  ;;  %v4939_v8 = vpop.permute.xlu0 %4938 }
 0x5c1   :  { %v16786_v20 = vpop.permute.xlu1 %4940  ;;  %v5028_v41 = vsel %vm1272_vm5, %v16357_v49, %v4939_v8 }
 0x5c2   :  { %4068 = vrot.lane.b32.xlu0 %v16633_v30, %s12715_s28  ;;  %v5029_v36 = vsel %vm1272_vm5, %v4939_v8, %v16786_v20  ;;  %v16806_v8 = vpop.f32.mrf.mxu0 }
 0x5c3   :  { %5642 = vrot.lane.b32.xlu1 %v16657_v56, %s12717_s19  ;;  %7143 = vmatprep.subr.mxu0 %v5029_v36  ;;  %20461 = vst [vmem:[#allocation22_spill] sm:$0xff] %v16806_v8 }
 0x5c4   :  { %7144 = vmatpush2.msra.mxu0 %v5028_v41  ;;  %v5591_v31 = vpop.permute.xlu0 %5590 }
 0x5c5   :  { %v16798_v58 = vpop.permute.xlu1 %5592  ;;  %v5671_v15 = vsel %vm1910_vm3, %v16045_v62, %v5591_v31 }
 0x5c6   :  { %4974 = vrot.lane.b32.xlu0 %v16713_v29, %s12719_s22  ;;  %v5672_v49 = vsel %vm1910_vm3, %v5591_v31, %v16798_v58  ;;  %v16818_v31 = vpop.f32.mrf.mxu0 }
 0x5c7   :  { %4052 = vrot.lane.b32.xlu1 %v16657_v56, %s12715_s28  ;;  %7188 = vmatprep.subr.mxu1 %v5672_v49  ;;  %20462 = vst [vmem:[#allocation23_spill] sm:$0xff] %v16818_v31 }
 0x5c8   :  { %7189 = vmatpush1.msra.mxu1 %v5671_v15  ;;  %v4701_v41 = vpop.permute.xlu0 %4700  ;;  %v16822_v49 = vpop.f32.mrf.mxu0 }
 0x5c9   :  { %v16810_v36 = vpop.permute.xlu1 %4702  ;;  %v4745_v46 = vsel %vm953_vm7, %v16377_v44, %v4701_v41  ;;  %20463 = vst [vmem:[#allocation24_spill] sm:$0xff] %v16822_v49 }
 0x5ca   :  { %5626 = vrot.lane.b32.xlu0 %v16691_v33, %s12717_s19  ;;  %v4746_v62 = vsel %vm953_vm7, %v4701_v41, %v16810_v36 }
 0x5cb   :  { %4958 = vrot.lane.b32.xlu1 %v16696_v10, %s12719_s22  ;;  %7145 = vmatprep.subr.mxu0 %v4746_v62  ;;  %v16834_v62 = vpop.f32.mrf.mxu0 }
 0x5cc   :  { %7146 = vmatpush2.msra.mxu0 %v4745_v46  ;;  %v5575_v15 = vpop.permute.xlu0 %5574  ;;  %20464 = vst [vmem:[#allocation25_spill] sm:$0xff] %v16834_v62 }
 0x5cd   :  { %v16824_v8 = vpop.permute.xlu1 %5576  ;;  %v5664_v44 = vsel %vm1910_vm3, %v16065_v4, %v5575_v15 }
 0x5ce   :  { %4036 = vrot.lane.b32.xlu0 %v16691_v33, %s12715_s28  ;;  %v5665_v41 = vsel %vm1910_vm3, %v5575_v15, %v16824_v8  ;;  %v16844_v15 = vpop.f32.mrf.mxu0 }
 0x5cf   :  { %5610 = vrot.lane.b32.xlu1 %v16713_v29, %s12717_s19  ;;  %7190 = vmatprep.subr.mxu1 %v5665_v41 }
 0x5d0   :  { %7191 = vmatpush1.msra.mxu1 %v5664_v44  ;;  %v4685_v46 = vpop.permute.xlu0 %4684  ;;  %v3631_v41 = vpop.f32.mrf.mxu0 }
 0x5d1   :  { %v16836_v49 = vpop.permute.xlu1 %4686  ;;  %v4738_v31 = vsel %vm953_vm7, %v16397_v61, %v4685_v46 }
 0x5d2   :  { %4942 = vrot.lane.b32.xlu0 %v16730_v27, %s12719_s22  ;;  %v4739_v4 = vsel %vm953_vm7, %v4685_v46, %v16836_v49  ;;  %s12728_s22 = smov 59  }
 0x5d3   :  { %4020 = vrot.lane.b32.xlu1 %v16713_v29, %s12715_s28  ;;  %7147 = vmatprep.subr.mxu0 %v4739_v4 }
 0x5d4   :  { %7148 = vmatpush2.msra.mxu0 %v4738_v31  ;;  %v5337_v44 = vpop.permute.xlu0 %5336 }
 0x5d5   :  { %v16848_v62 = vpop.permute.xlu1 %5338  ;;  %v5381_v61 = vsel %vm1591_vm4, %v16093_v12, %v5337_v44 }
 0x5d6   :  { %5594 = vrot.lane.b32.xlu0 %v16696_v10, %s12717_s19  ;;  %v5382_v46 = vsel %vm1591_vm4, %v5337_v44, %v16848_v62 }
 0x5d7   :  { %4704 = vrot.lane.b32.xlu1 %v16633_v30, %s12720_s23  ;;  %7192 = vmatprep.subr.mxu1 %v5382_v46 }
 0x5d8   :  { %7193 = vmatpush1.msra.mxu1 %v5381_v61  ;;  %v4669_v4 = vpop.permute.xlu0 %4668 }
 0x5d9   :  { %v16858_v31 = vpop.permute.xlu1 %4670  ;;  %v4731_v41 = vsel %vm953_vm7, %v16417_v48, %v4669_v4 }
 0x5da   :  { %4004 = vrot.lane.b32.xlu0 %v16696_v10, %s12715_s28  ;;  %v4732_v12 = vsel %vm953_vm7, %v4669_v4, %v16858_v31 }
 0x5db   :  { %5578 = vrot.lane.b32.xlu1 %v16730_v27, %s12717_s19  ;;  %7149 = vmatprep.subr.mxu0 %v4732_v12 }
 0x5dc   :  { %7150 = vmatpush2.msra.mxu0 %v4731_v41  ;;  %v5321_v44 = vpop.permute.xlu0 %5320 }
 0x5dd   :  { %v16868_v46 = vpop.permute.xlu1 %5322  ;;  %v5374_v61 = vsel %vm1591_vm4, %v16116_v38, %v5321_v44 }
 0x5de   :  { %4688 = vrot.lane.b32.xlu0 %v16657_v56, %s12720_s23  ;;  %v5375_v48 = vsel %vm1591_vm4, %v5321_v44, %v16868_v46 }
 0x5df   :  { %3988 = vrot.lane.b32.xlu1 %v16730_v27, %s12715_s28  ;;  %7194 = vmatprep.subr.mxu1 %v5375_v48 }
 0x5e0   :  { %7195 = vmatpush1.msra.mxu1 %v5374_v61  ;;  %v4653_v4 = vpop.permute.xlu0 %4652 }
 0x5e1   :  { %v16878_v12 = vpop.permute.xlu1 %4654  ;;  %v4724_v41 = vsel %vm953_vm7, %v16437_v37, %v4653_v4 }
 0x5e2   :  { %5340 = vrot.lane.b32.xlu0 %v16633_v30, %s12718_s20  ;;  %v4725_v38 = vsel %vm953_vm7, %v4653_v4, %v16878_v12 }
 0x5e3   :  { %4672 = vrot.lane.b32.xlu1 %v16691_v33, %s12720_s23  ;;  %7151 = vmatprep.subr.mxu0 %v4725_v38 }
 0x5e4   :  { %7152 = vmatpush2.msra.mxu0 %v4724_v41  ;;  %v5305_v44 = vpop.permute.xlu0 %5304 }
 0x5e5   :  { %v16888_v48 = vpop.permute.xlu1 %5306  ;;  %v5367_v61 = vsel %vm1591_vm4, %v16135_v0, %v5305_v44 }
 0x5e6   :  { %5324 = vrot.lane.b32.xlu0 %v16657_v56, %s12718_s20  ;;  %v5368_v37 = vsel %vm1591_vm4, %v5305_v44, %v16888_v48 }
 0x5e7   :  { %4656 = vrot.lane.b32.xlu1 %v16713_v29, %s12720_s23  ;;  %7196 = vmatprep.subr.mxu1 %v5368_v37 }
 0x5e8   :  { %7197 = vmatpush1.msra.mxu1 %v5367_v61  ;;  %v4637_v4 = vpop.permute.xlu0 %4636 }
 0x5e9   :  { %v16898_v38 = vpop.permute.xlu1 %4638  ;;  %v4717_v41 = vsel %vm953_vm7, %v16457_v6, %v4637_v4 }
 0x5ea   :  { %5308 = vrot.lane.b32.xlu0 %v16691_v33, %s12718_s20  ;;  %v4718_v0 = vsel %vm953_vm7, %v4637_v4, %v16898_v38 }
 0x5eb   :  { %4640 = vrot.lane.b32.xlu1 %v16696_v10, %s12720_s23  ;;  %7153 = vmatprep.subr.mxu0 %v4718_v0 }
 0x5ec   :  { %7154 = vmatpush2.msra.mxu0 %v4717_v41  ;;  %v5289_v44 = vpop.permute.xlu0 %5288 }
 0x5ed   :  { %v16908_v37 = vpop.permute.xlu1 %5290  ;;  %v5360_v61 = vsel %vm1591_vm4, %v16149_v39, %v5289_v44 }
 0x5ee   :  { %5292 = vrot.lane.b32.xlu0 %v16713_v29, %s12718_s20  ;;  %v5361_v6 = vsel %vm1591_vm4, %v5289_v44, %v16908_v37  ;;  %s12726_s20 = smov 57  }
 0x5ef   :  { %4624 = vrot.lane.b32.xlu1 %v16730_v27, %s12720_s23  ;;  %7198 = vmatprep.subr.mxu1 %v5361_v6 }
 0x5f0   :  { %7199 = vmatpush1.msra.mxu1 %v5360_v61  ;;  %v4621_v4 = vpop.permute.xlu0 %4620 }
 0x5f1   :  { %v16918_v0 = vpop.permute.xlu1 %4622  ;;  %v4710_v41 = vsel %vm953_vm7, %v16480_v53, %v4621_v4 }
 0x5f2   :  { %6294 = vrot.lane.b32.xlu0 %v16633_v30, %s12721_s24  ;;  %v4711_v39 = vsel %vm953_vm7, %v4621_v4, %v16918_v0 }
 0x5f3   :  { %4386 = vrot.lane.b32.xlu1 %v16633_v30, %s12714_s21  ;;  %7155 = vmatprep.subr.mxu0 %v4711_v39 }
 0x5f4   :  { %7156 = vmatpush2.msra.mxu0 %v4710_v41  ;;  %v6291_v44 = vpop.permute.xlu0 %6290 }
 0x5f5   :  { %v16928_v6 = vpop.permute.xlu1 %6292  ;;  %v6335_v61 = vsel %vm2548_vm8, %v16163_v19, %v6291_v44 }
 0x5f6   :  { %6278 = vrot.lane.b32.xlu0 %v16657_v56, %s12721_s24  ;;  %v6336_v53 = vsel %vm2548_vm8, %v6291_v44, %v16928_v6 }
 0x5f7   :  { %4370 = vrot.lane.b32.xlu1 %v16657_v56, %s12714_s21  ;;  %7220 = vmatprep.subr.mxu1 %v6336_v53 }
 0x5f8   :  { %7221 = vmatpush2.msra.mxu1 %v6335_v61  ;;  %v4383_v30 = vpop.permute.xlu0 %4382 }
 0x5f9   :  { %v16938_v4 = vpop.permute.xlu1 %4384  ;;  %v4427_v41 = vsel %vm634_vm0, %v16503_v45, %v4383_v30 }
 0x5fa   :  { %6262 = vrot.lane.b32.xlu0 %v16691_v33, %s12721_s24  ;;  %v4428_v19 = vsel %vm634_vm0, %v4383_v30, %v16938_v4  ;;  %v6804_v33 = vld [vmem:[%s20321_s2] sm:$0xff]  ;;  %s12727_s2 = smov 60  }
 0x5fb   :  { %6246 = vrot.lane.b32.xlu1 %v16713_v29, %s12721_s24  ;;  %7157 = vmatprep.subr.mxu0 %v4428_v19 }
 0x5fc   :  { %7158 = vmatpush2.msra.mxu0 %v4427_v41  ;;  %v6275_v56 = vpop.permute.xlu0 %6274  ;;  %v20465_v41 = vmov 0.0  }
 0x5fd   :  { %v16948_v39 = vpop.permute.xlu1 %6276  ;;  %v6328_v44 = vsel %vm2548_vm8, %v16178_v1, %v6275_v56 }
 0x5fe   :  { %6230 = vrot.lane.b32.xlu0 %v16696_v10, %s12721_s24  ;;  %v6329_v45 = vsel %vm2548_vm8, %v6275_v56, %v16948_v39 }
 0x5ff   :  { %6214 = vrot.lane.b32.xlu1 %v16730_v27, %s12721_s24  ;;  %7222 = vmatprep.subr.mxu1 %v6329_v45  ;;  %s12729_s24 = smov 74  }
 0x600   :  { %7223 = vmatpush2.msra.mxu1 %v6328_v44  ;;  %v4367_v29 = vpop.permute.xlu0 %4366 }
 0x601   :  { %v16961_v61 = vpop.permute.xlu1 %4368  ;;  %v4420_v1 = vsel %vm634_vm0, %v16533_v25, %v4367_v29 }
 0x602   :  { %6807 = vperm.xlu0 %12668, %v6804_v33   ;;  %v4421_v10 = vsel %vm634_vm0, %v4367_v29, %v16961_v61 }
 0x603   :  { %3060 = vperm.xlu1 %12669, %v6804_v33   ;;  %7159 = vmatprep.subr.mxu0 %v4421_v10 }
 0x604   :  { %7160 = vmatpush2.msra.mxu0 %v4420_v1  ;;  %v6259_v27 = vpop.permute.xlu0 %6258 }
 0x605   :  { %v16967_v53 = vpop.permute.xlu1 %6260  ;;  %7162 = vmatmul.mubr.f32.vlgmr.msra.gmra.mxu0 %v16552_v50  ;;  %v6321_v30 = vsel %vm2548_vm8, %v16193_v9, %v6259_v27  ;;  %7309 = vmatprep.subr.mxu0 %v20465_v41 }
 0x606   :  { %v6322_v25 = vsel %vm2548_vm8, %v6259_v27, %v16967_v53  ;;  %11995 = vmatprep.mubr.msk.f32.mxu0 %vm3063_vm6, %v16564_v63  ;;  %vm8580_vm6 = vcmask 629760  }
 0x607   :  { %7224 = vmatprep.subr.mxu1 %v6322_v25 }
 0x608   :  { %7225 = vmatpush2.msra.mxu1 %v6321_v30  ;;  %v6243_v19 = vpop.permute.xlu0 %6242 }
 0x609   :  { %v16977_v56 = vpop.permute.xlu1 %6244  ;;  %v6314_v44 = vsel %vm2548_vm8, %v16213_v59, %v6243_v19 }
 0x60a   :  { %v6315_v45 = vsel %vm2548_vm8, %v6243_v19, %v16977_v56 }
 0x60b   :  { %7226 = vmatprep.subr.mxu1 %v6315_v45  ;;  %v17006_v45 = vld [vmem:[%s20320_s1 + $0x10] sm:$0xff] }
 0x60c   :  { %7227 = vmatpush2.msra.mxu1 %v6314_v44  ;;  %v5977_v9 = vpop.permute.xlu0 %5976 }
 0x60d   :  { %v6019_v33 = vsel %vm2229_vm2, %v16547_v14, %v5977_v9  ;;  %v6227_v29 = vpop.permute.xlu1 %6226  ;;  %v12691_v9 = vld [vmem:[%s20320_s1 + $0x8] sm:$0xff]  ;;  %s12731_s1 = smov 76  }
 0x60e   :  { %7310 = vmatpush1.msra.mxu0 %v6019_v33  ;;  %v6307_v27 = vsel %vm2548_vm8, %v16233_v54, %v6227_v29 }
 0x60f   :  { %7311 = vmatprep.subr.mxu0 %v20465_v41 }
 0x610   :  { %v16986_v63 = vpop.permute.xlu0 %6228 }
 0x611   :  { %v5961_v1 = vpop.permute.xlu1 %5960  ;;  %v6308_v10 = vsel %vm2548_vm8, %v6227_v29, %v16986_v63 }
 0x612   :  { %v6012_v59 = vsel %vm2229_vm2, %v16570_v17, %v5961_v1  ;;  %7228 = vmatprep.subr.mxu1 %v6308_v10 }
 0x613   :  { %7312 = vmatpush1.msra.mxu0 %v6012_v59  ;;  %7229 = vmatpush2.msra.mxu1 %v6307_v27 }
 0x614   :  { %v6211_v14 = vpop.permute.xlu0 %6210  ;;  %7313 = vmatprep.subr.mxu0 %v20465_v41 }
 0x615   :  { %v16995_v30 = vpop.permute.xlu1 %6212  ;;  %v6300_v25 = vsel %vm2548_vm8, %v16253_v57, %v6211_v14 }
 0x616   :  { %v6301_v19 = vsel %vm2548_vm8, %v6211_v14, %v16995_v30 }
 0x617   :  { %7230 = vmatprep.subr.mxu1 %v6301_v19 }
 0x618   :  { %7231 = vmatpush2.msra.mxu1 %v6300_v25  ;;  %v5945_v17 = vpop.permute.xlu0 %5944 }
 0x619   :  { %v6005_v44 = vsel %vm2229_vm2, %v16580_v2, %v5945_v17  ;;  %v5277_v54 = vpop.permute.xlu1 %5276  ;;  %7233 = vmatmul.mubr.f32.vlgmr.msra.gmra.mxu1 %v17006_v45 }
 0x61a   :  { %v5355_v57 = vsel %vm1591_vm4, %v16590_v16, %v5277_v54  ;;  %7314 = vmatpush1.msra.mxu0 %v6005_v44  ;;  %7303 = vmatprep.mubr.f32.mxu1 %v12691_v9 }
 0x61b   :  { %12043 = vmatprep.subr.mxu1 %v5355_v57  ;;  %7315 = vmatprep.subr.mxu0 %v20465_v41 }
 0x61c   :  { %v4355_v2 = vpop.permute.xlu0 %4354 }
 0x61d   :  { %v4415_v33 = vsel %vm634_vm0, %v16263_v51, %v4355_v2  ;;  %v5929_v29 = vpop.permute.xlu1 %5928 }
 0x61e   :  { %v5998_v1 = vsel %vm2229_vm2, %v16600_v21, %v5929_v29  ;;  %12044 = vmatpush3.msra.mxu1 %v4415_v33 }
 0x61f   :  { %7316 = vmatpush1.msra.mxu0 %v5998_v1 }
 0x620   :  { %v5261_v16 = vpop.permute.xlu0 %5260  ;;  %7317 = vmatprep.subr.mxu0 %v20465_v41 }
 0x621   :  { %v4339_v10 = vpop.permute.xlu1 %4338  ;;  %v5348_v59 = vsel %vm1591_vm4, %v16610_v60, %v5261_v16 }
 0x622   :  { %v4408_v27 = vsel %vm634_vm0, %v16287_v42, %v4339_v10  ;;  %12045 = vmatprep.subr.mxu1 %v5348_v59 }
 0x623   :  { %12046 = vmatpush3.msra.mxu1 %v4408_v27 }
 0x624   :  { %v5913_v14 = vpop.permute.xlu0 %5912 }
 0x625   :  { %v5991_v51 = vsel %vm2229_vm2, %v16620_v28, %v5913_v14  ;;  %v5023_v25 = vpop.permute.xlu1 %5022 }
 0x626   :  { %v5065_v21 = vsel %vm1272_vm5, %v16637_v55, %v5023_v25  ;;  %7318 = vmatpush1.msra.mxu0 %v5991_v51 }
 0x627   :  { %12047 = vmatprep.subr.mxu1 %v5065_v21  ;;  %7319 = vmatprep.subr.mxu0 %v20465_v41 }
 0x628   :  { %v4323_v19 = vpop.permute.xlu0 %4322 }
 0x629   :  { %v4401_v60 = vsel %vm634_vm0, %v16307_v7, %v4323_v19  ;;  %v5897_v17 = vpop.permute.xlu1 %5896 }
 0x62a   :  { %v5984_v42 = vsel %vm2229_vm2, %v16659_v26, %v5897_v17  ;;  %12048 = vmatpush3.msra.mxu1 %v4401_v60  ;;  %vm8662_vm2 = vcmask 596992  }
 0x62b   :  { %7320 = vmatpush1.msra.mxu0 %v5984_v42  ;;  %v20466_v42 = vld [vmem:[#allocation11_spill] sm:$0xff] }
 0x62c   :  { %v5007_v44 = vpop.permute.xlu0 %5006  ;;  %7321 = vmatprep.subr.mxu0 %v20465_v41 }
 0x62d   :  { %v4307_v28 = vpop.permute.xlu1 %4306  ;;  %v5058_v55 = vsel %vm1272_vm5, %v16676_v18, %v5007_v44 }
 0x62e   :  { %v4394_v54 = vsel %vm634_vm0, %v16327_v23, %v4307_v28  ;;  %12049 = vmatprep.subr.mxu1 %v5058_v55 }
 0x62f   :  { %12050 = vmatpush3.msra.mxu1 %v4394_v54 }
 0x630   :  { %v5659_v57 = vpop.permute.xlu0 %5658 }
 0x631   :  { %v5701_v7 = vsel %vm1910_vm3, %v16700_v43, %v5659_v57  ;;  %v4991_v9 = vpop.permute.xlu1 %4990 }
 0x632   :  { %v5051_v26 = vsel %vm1272_vm5, %v16717_v40, %v4991_v9  ;;  %7322 = vmatpush1.msra.mxu0 %v5701_v7 }
 0x633   :  { %12051 = vmatprep.subr.mxu1 %v5051_v26  ;;  %7323 = vmatprep.subr.mxu0 %v20465_v41 }
 0x634   :  { %v4069_v2 = vpop.permute.xlu0 %4068 }
 0x635   :  { %v4111_v18 = vsel %vm315_vm1, %v16347_v11, %v4069_v2  ;;  %v5643_v33 = vpop.permute.xlu1 %5642 }
 0x636   :  { %v5694_v23 = vsel %vm1910_vm3, %v16732_v24, %v5643_v33  ;;  %12052 = vmatpush3.msra.mxu1 %v4111_v18 }
 0x637   :  { %7324 = vmatpush1.msra.mxu0 %v5694_v23 }
 0x638   :  { %v4975_v29 = vpop.permute.xlu0 %4974  ;;  %7325 = vmatprep.subr.mxu0 %v20465_v41 }
 0x639   :  { %v4053_v43 = vpop.permute.xlu1 %4052  ;;  %v5044_v40 = vsel %vm1272_vm5, %v16744_v52, %v4975_v29 }
 0x63a   :  { %v4104_v1 = vsel %vm315_vm1, %v16367_v13, %v4053_v43  ;;  %12053 = vmatprep.subr.mxu1 %v5044_v40 }
 0x63b   :  { %12054 = vmatpush3.msra.mxu1 %v4104_v1 }
 0x63c   :  { %v5627_v16 = vpop.permute.xlu0 %5626 }
 0x63d   :  { %v5687_v11 = vsel %vm1910_vm3, %v16754_v47, %v5627_v16  ;;  %v4959_v10 = vpop.permute.xlu1 %4958  ;;  %v20467_v16 = vld [vmem:[#allocation13_spill] sm:$0xff] }
 0x63e   :  { %v5037_v24 = vsel %vm1272_vm5, %v16764_v3, %v4959_v10  ;;  %7326 = vmatpush1.msra.mxu0 %v5687_v11 }
 0x63f   :  { %12055 = vmatprep.subr.mxu1 %v5037_v24  ;;  %7327 = vmatprep.subr.mxu0 %v20465_v41 }
 0x640   :  { %v4037_v59 = vpop.permute.xlu0 %4036 }
 0x641   :  { %v4097_v52 = vsel %vm315_vm1, %v16387_v22, %v4037_v59  ;;  %v5611_v27 = vpop.permute.xlu1 %5610 }
 0x642   :  { %v5680_v13 = vsel %vm1910_vm3, %v16774_v34, %v5611_v27  ;;  %12056 = vmatpush3.msra.mxu1 %v4097_v52 }
 0x643   :  { %7328 = vmatpush1.msra.mxu0 %v5680_v13  ;;  %v6879_v13 = vpop.f32.mrf.mxu1 }
 0x644   :  { %v4943_v14 = vpop.permute.xlu0 %4942  ;;  %7329 = vmatprep.subr.mxu0 %v20465_v41 }
 0x645   :  { %v4021_v47 = vpop.permute.xlu1 %4020  ;;  %v5030_v3 = vsel %vm1272_vm5, %v16786_v20, %v4943_v14  ;;  %vm8558_vm5 = vcmask 736256  }
 0x646   :  { %v4090_v51 = vsel %vm315_vm1, %v16407_v5, %v4021_v47  ;;  %12057 = vmatprep.subr.mxu1 %v5030_v3 }
 0x647   :  { %12058 = vmatpush3.msra.mxu1 %v4090_v51 }
 0x648   :  { %v5595_v25 = vpop.permute.xlu0 %5594 }
 0x649   :  { %v5673_v22 = vsel %vm1910_vm3, %v16798_v58, %v5595_v25  ;;  %v4705_v21 = vpop.permute.xlu1 %4704 }
 0x64a   :  { %v4747_v34 = vsel %vm953_vm7, %v16810_v36, %v4705_v21  ;;  %7330 = vmatpush1.msra.mxu0 %v5673_v22 }
 0x64b   :  { %12059 = vmatprep.subr.mxu1 %v4747_v34  ;;  %7331 = vmatprep.subr.mxu0 %v20465_v41 }
 0x64c   :  { %v4005_v19 = vpop.permute.xlu0 %4004 }
 0x64d   :  { %v4083_v20 = vsel %vm315_vm1, %v16427_v35, %v4005_v19  ;;  %v5579_v60 = vpop.permute.xlu1 %5578 }
 0x64e   :  { %v5666_v5 = vsel %vm1910_vm3, %v16824_v8, %v5579_v60  ;;  %12060 = vmatpush3.msra.mxu1 %v4083_v20  ;;  %v11607_v8 = vld [vmem:[%s20319_s0 + $0x2f0] sm:$0xff] }
 0x64f   :  { %7332 = vmatpush1.msra.mxu0 %v5666_v5  ;;  %v20469_v5 = vld [vmem:[#allocation15_spill] sm:$0xff] }
 0x650   :  { %v4689_v17 = vpop.permute.xlu0 %4688  ;;  %7333 = vmatprep.subr.mxu0 %v20465_v41 }
 0x651   :  { %v3989_v58 = vpop.permute.xlu1 %3988  ;;  %v4740_v36 = vsel %vm953_vm7, %v16836_v49, %v4689_v17 }
 0x652   :  { %v4076_v44 = vsel %vm315_vm1, %v20466_v42, %v3989_v58  ;;  %12061 = vmatprep.subr.mxu1 %v4740_v36 }
 0x653   :  { %12062 = vmatpush3.msra.mxu1 %v4076_v44 }
 0x654   :  { %v5341_v28 = vpop.permute.xlu0 %5340 }
 0x655   :  { %v5383_v35 = vsel %vm1591_vm4, %v16848_v62, %v5341_v28  ;;  %v4673_v55 = vpop.permute.xlu1 %4672  ;;  %v11600_v62 = vld [vmem:[%s20319_s0 + $0x2b0] sm:$0xff] }
 0x656   :  { %v4733_v54 = vsel %vm953_vm7, %v16858_v31, %v4673_v55  ;;  %7334 = vmatpush1.msra.mxu0 %v5383_v35  ;;  %v20470_v55 = vld [vmem:[#allocation22_spill] sm:$0xff] }
 0x657   :  { %12063 = vmatprep.subr.mxu1 %v4733_v54  ;;  %7335 = vmatprep.subr.mxu0 %v20465_v41  ;;  %v20471_v54 = vld [vmem:[#allocation14_spill] sm:$0xff] }
 0x658   :  { %v5325_v49 = vpop.permute.xlu0 %5324  ;;  %12064 = vmatpush3.msra.mxu1 %v11607_v8 }
 0x659   :  { %v5376_v57 = vsel %vm1591_vm4, %v16868_v46, %v5325_v49  ;;  %v4657_v7 = vpop.permute.xlu1 %4656  ;;  %v11593_v46 = vld [vmem:[%s20319_s0 + $0x270] sm:$0xff] }
 0x65a   :  { %v4726_v9 = vsel %vm953_vm7, %v16878_v12, %v4657_v7  ;;  %7336 = vmatpush1.msra.mxu0 %v5376_v57  ;;  %v20472_v57 = vld [vmem:[#allocation19_spill] sm:$0xff] }
 0x65b   :  { %12065 = vmatprep.subr.mxu1 %v4726_v9  ;;  %7337 = vmatprep.subr.mxu0 %v20465_v41  ;;  %v20473_v9 = vld [vmem:[#allocation23_spill] sm:$0xff] }
 0x65c   :  { %v5309_v31 = vpop.permute.xlu0 %5308  ;;  %12066 = vmatpush3.msra.mxu1 %v11600_v62 }
 0x65d   :  { %v5369_v26 = vsel %vm1591_vm4, %v16888_v48, %v5309_v31  ;;  %v4641_v2 = vpop.permute.xlu1 %4640  ;;  %v11586_v48 = vld [vmem:[%s20319_s0 + $0x230] sm:$0xff]  ;;  %s12740_s0 = smov 107  }
 0x65e   :  { %v4719_v18 = vsel %vm953_vm7, %v16898_v38, %v4641_v2  ;;  %7338 = vmatpush1.msra.mxu0 %v5369_v26  ;;  %v20474_v2 = vld [vmem:[#allocation21_spill] sm:$0xff] }
 0x65f   :  { %12067 = vmatprep.subr.mxu1 %v4719_v18  ;;  %7339 = vmatprep.subr.mxu0 %v20465_v41  ;;  %v20475_v18 = vld [vmem:[#allocation12_spill] sm:$0xff] }
 0x660   :  { %v5293_v12 = vpop.permute.xlu0 %5292  ;;  %12068 = vmatpush3.msra.mxu1 %v11593_v46 }
 0x661   :  { %v5362_v33 = vsel %vm1591_vm4, %v16908_v37, %v5293_v12  ;;  %v4625_v23 = vpop.permute.xlu1 %4624  ;;  %vm8621_vm4 = vcmask 613376  }
 0x662   :  { %v4712_v29 = vsel %vm953_vm7, %v16918_v0, %v4625_v23  ;;  %7340 = vmatpush1.msra.mxu0 %v5362_v33 }
 0x663   :  { %12069 = vmatprep.subr.mxu1 %v4712_v29  ;;  %7361 = vmatprep.subr.mxu0 %v20465_v41 }
 0x664   :  { %v6295_v38 = vpop.permute.xlu0 %6294  ;;  %12070 = vmatpush3.msra.mxu1 %v11586_v48 }
 0x665   :  { %v6337_v43 = vsel %vm2548_vm8, %v16928_v6, %v6295_v38  ;;  %v4387_v40 = vpop.permute.xlu1 %4386  ;;  %v20468_v6 = vld [vmem:[#allocation17_spill] sm:$0xff]  ;;  %v20476_v38 = vld [vmem:[#allocation24_spill] sm:$0xff] }
 0x666   :  { %v4429_v37 = vsel %vm634_vm0, %v16938_v4, %v4387_v40  ;;  %7362 = vmatpush2.msra.mxu0 %v6337_v43 }
 0x667   :  { %12071 = vmatprep.subr.mxu1 %v4429_v37  ;;  %7363 = vmatprep.subr.mxu0 %v20465_v41 }
 0x668   :  { %v6279_v1 = vpop.permute.xlu0 %6278  ;;  %12072 = vmatpush3.msra.mxu1 %v20467_v16  ;;  %v20477_v16 = vld [vmem:[#allocation25_spill] sm:$0xff] }
 0x669   :  { %v6330_v0 = vsel %vm2548_vm8, %v16948_v39, %v6279_v1  ;;  %v4371_v11 = vpop.permute.xlu1 %4370 }
 0x66a   :  { %v4422_v10 = vsel %vm634_vm0, %v16961_v61, %v4371_v11  ;;  %7364 = vmatpush2.msra.mxu0 %v6330_v0 }
 0x66b   :  { %12073 = vmatprep.subr.mxu1 %v4422_v10  ;;  %7365 = vmatprep.subr.mxu0 %v20465_v41 }
 0x66c   :  { %12074 = vmatpush3.msra.mxu1 %v20468_v6  ;;  %v6263_v4 = vpop.permute.xlu0 %6262 }
 0x66d   :  { %v6323_v24 = vsel %vm2548_vm8, %v16967_v53, %v6263_v4  ;;  %v6247_v59 = vpop.permute.xlu1 %6246  ;;  %7304 = vmatmul.mubr.f32.vlgmr.msra.gmra.mxu1 %v16552_v50  ;;  %v6950_v50 = vpop.f32.mrf.mxu0  ;;  %v20478_v4 = vld [vmem:[#allocation16_spill] sm:$0xff] }
 0x66e   :  { %7366 = vmatpush2.msra.mxu0 %v6323_v24  ;;  %v6316_v39 = vsel %vm2548_vm8, %v16977_v56, %v6247_v59  ;;  %v6881_v56 = vpop.f32.mrf.mxu1 }
 0x66f   :  { %7367 = vmatprep.subr.mxu0 %v20465_v41  ;;  %v6952_v14 = vpop.f32.mrf.mxu0 }
 0x670   :  { %v6231_v61 = vpop.permute.xlu0 %6230  ;;  %7368 = vmatpush2.msra.mxu0 %v6316_v39  ;;  %v7021_v47 = vpop.f32.mrf.mxu1  ;;  %v20479_v39 = vld [vmem:[#allocation18_spill] sm:$0xff] }
 0x671   :  { %v6309_v52 = vsel %vm2548_vm8, %v16986_v63, %v6231_v61  ;;  %v6215_v27 = vpop.permute.xlu1 %6214  ;;  %7369 = vmatprep.subr.mxu0 %v20465_v41  ;;  %v7092_v3 = vpop.f32.mrf.mxu0 }
 0x672   :  { %7370 = vmatpush2.msra.mxu0 %v6309_v52  ;;  %v6302_v53 = vsel %vm2548_vm8, %v16995_v30, %v6215_v27  ;;  %v7023_v51 = vpop.f32.mrf.mxu1  ;;  %vm8539_vm8 = vcmask 744448  }
 0x673   :  { %7371 = vmatprep.subr.mxu0 %v20465_v41  ;;  %v7094_v25 = vpop.f32.mrf.mxu0 }
 0x674   :  { %7372 = vmatpush2.msra.mxu0 %v6302_v53 }
 0x675   :  { %7374 = vmatmul.mubr.f32.vlgmr.msra.gmra.mxu0 %v17006_v45 }
 0x67d   :  { %v17137_v63 = vpop.permute.xlu0 %6807 }
 0x67e   :  { %v17139_v22 = vpop.permute.xlu1 %3060  ;;  %v6882_v21 = vadd.f32 %v6881_v56, %v17137_v63  ;;  %v7022_v30 = vadd.f32 %v7021_v47, %v17137_v63  ;;  %v7024_v34 = vadd.f32 %v7023_v51, %v17137_v63  ;;  %v6880_v19 = vadd.f32 %v6879_v13, %v17137_v63 }
 0x67f   :  { %v3276_v17 = vadd.f32 %v20469_v5, %v17139_v22  ;;  %v3136_v44 = vadd.f32 %v16796_v32, %v17139_v22  ;;  %v3278_v7 = vadd.f32 %v20472_v57, %v17139_v22  ;;  %v3134_v46 = vadd.f32 %v20474_v2, %v17139_v22  ;;  %v7604_v57 = vld [vmem:[%s20322_s3 + $0x150] sm:$0xff]  ;;  %v7602_v2 = vld [vmem:[%s20322_s3 + $0x140] sm:$0xff] }
 0x680   :  { %v6953_v20 = vadd.f32 %v6952_v14, %v6882_v21  ;;  %v7093_v45 = vadd.f32 %v7092_v3, %v7022_v30  ;;  %v7095_v60 = vadd.f32 %v7094_v25, %v7024_v34  ;;  %v6951_v42 = vadd.f32 %v6950_v50, %v6880_v19 }
 0x681   :  { %v3347_v8 = vadd.f32 %v20470_v55, %v3276_v17  ;;  %v3207_v49 = vadd.f32 %v20471_v54, %v3136_v44  ;;  %v3349_v31 = vadd.f32 %v20473_v9, %v3278_v7  ;;  %v3205_v12 = vadd.f32 %v20475_v18, %v3134_v46  ;;  %v7608_v54 = vld [vmem:[%s20322_s3 + $0x170] sm:$0xff]  ;;  %v7601_v46 = vld [vmem:[%s20322_s3 + $0x138] sm:$0xff]  ;;  %v7599_v18 = vld [vmem:[%s20322_s3 + $0x128] sm:$0xff] }
 0x682   :  { %v17147_v58 = vmax.f32 %v6953_v20, 0.0  ;;  %v17149_v36 = vmax.f32 %v7093_v45, 0.0  ;;  %v17153_v28 = vmax.f32 %v7095_v60, 0.0  ;;  %v17159_v35 = vmax.f32 %v6951_v42, 0.0  ;;  %7850 = vmatprep.subr.mxu1 %v7608_v54  ;;  %v7568_v54 = vld [vmem:[%s20322_s3 + $0x30] sm:$0xff] }
 0x683   :  { %v17169_v32 = vmax.f32 %v3347_v8, 0.0  ;;  %v17171_v62 = vmax.f32 %v3207_v49, 0.0  ;;  %v17178_v26 = vmax.f32 %v3349_v31, 0.0  ;;  %v17191_v33 = vmax.f32 %v3205_v12, 0.0  ;;  %v7605_v49 = vld [vmem:[%s20322_s3 + $0x158] sm:$0xff]  ;;  %v7598_v12 = vld [vmem:[%s20322_s3 + $0x120] sm:$0xff] }
 0x684   :  { %7397 = vrot.lane.b32.xlu0 %v17149_v36, %s12715_s28  ;;  %7395 = vrot.lane.b32.xlu1 %v17147_v58, %s12715_s28  ;;  %v3418_v43 = vadd.f32 %v20476_v38, %v17139_v22  ;;  %v3420_v0 = vadd.f32 %v20477_v16, %v17139_v22 }
 0x686   :  { %v3489_v24 = vadd.f32 %v20478_v4, %v3418_v43  ;;  %v3491_v61 = vadd.f32 %v20479_v39, %v3420_v0  ;;  %v7596_v43 = vld [vmem:[%s20322_s3 + $0x110] sm:$0xff]  ;;  %v7590_v0 = vld [vmem:[%s20322_s3 + $0xe0] sm:$0xff] }
 0x688   :  { %7399 = vrot.lane.b32.xlu1 %v17153_v28, %s12715_s28  ;;  %7393 = vrot.lane.b32.xlu0 %v17159_v35, %s12715_s28  ;;  %v17221_v52 = vmax.f32 %v3489_v24, 0.0  ;;  %v17225_v27 = vmax.f32 %v3491_v61, 0.0  ;;  %v7586_v24 = vld [vmem:[%s20322_s3 + $0xc0] sm:$0xff] }
 0x68c   :  { %3651 = vrot.lane.b32.xlu0 %v17169_v32, %s12715_s28  ;;  %3649 = vrot.lane.b32.xlu1 %v17171_v62, %s12715_s28 }
 0x690   :  { %7429 = vrot.lane.b32.xlu0 %v17147_v58, %s12714_s21  ;;  %3653 = vrot.lane.b32.xlu1 %v17178_v26, %s12715_s28 }
 0x694   :  { %7433 = vrot.lane.b32.xlu0 %v17153_v28, %s12714_s21  ;;  %7431 = vrot.lane.b32.xlu1 %v17149_v36, %s12714_s21 }
 0x698   :  { %7427 = vrot.lane.b32.xlu0 %v17159_v35, %s12714_s21  ;;  %3647 = vrot.lane.b32.xlu1 %v17191_v33, %s12715_s28 }
 0x69c   :  { %3685 = vrot.lane.b32.xlu0 %v17169_v32, %s12714_s21  ;;  %3683 = vrot.lane.b32.xlu1 %v17171_v62, %s12714_s21 }
 0x6a0   :  { %3681 = vrot.lane.b32.xlu0 %v17191_v33, %s12714_s21  ;;  %3687 = vrot.lane.b32.xlu1 %v17178_v26, %s12714_s21 }
 0x6c5   :  { %v7163_v23 = vpop.f32.mrf.mxu0 }
 0x6c6   :  { %v7164_v29 = vadd.f32 %v7163_v23, %v17137_v63 }
 0x6c7   :  { %v7165_v48 = vpop.f32.mrf.mxu0 }
 0x6c8   :  { %v7166_v37 = vadd.f32 %v7165_v48, %v17137_v63 }
 0x6d9   :  { %v7234_v40 = vpop.f32.mrf.mxu1 }
 0x6da   :  { %v7235_v1 = vadd.f32 %v7234_v40, %v7164_v29  ;;  %v7595_v40 = vld [vmem:[%s20322_s3 + $0x108] sm:$0xff] }
 0x6db   :  { %v7236_v11 = vpop.f32.mrf.mxu1 }
 0x6dc   :  { %v17211_v10 = vmax.f32 %v7235_v1, 0.0  ;;  %v7237_v6 = vadd.f32 %v7236_v11, %v7166_v37  ;;  %v7592_v37 = vld [vmem:[%s20322_s3 + $0xf0] sm:$0xff]  ;;  %v7589_v11 = vld [vmem:[%s20322_s3 + $0xd8] sm:$0xff] }
 0x6de   :  { %v17214_v59 = vmax.f32 %v7237_v6, 0.0  ;;  %7401 = vrot.lane.b32.xlu1 %v17211_v10, %s12715_s28  ;;  %v7587_v6 = vld [vmem:[%s20322_s3 + $0xc8] sm:$0xff] }
 0x6e0   :  { %7403 = vrot.lane.b32.xlu0 %v17214_v59, %s12715_s28 }
 0x6e2   :  { %3655 = vrot.lane.b32.xlu1 %v17221_v52, %s12715_s28 }
 0x6e4   :  { %3657 = vrot.lane.b32.xlu0 %v17225_v27, %s12715_s28 }
 0x6e6   :  { %7435 = vrot.lane.b32.xlu1 %v17211_v10, %s12714_s21 }
 0x6e8   :  { %7437 = vrot.lane.b32.xlu0 %v17214_v59, %s12714_s21 }
 0x6ea   :  { %3689 = vrot.lane.b32.xlu1 %v17221_v52, %s12714_s21 }
 0x6ec   :  { %3691 = vrot.lane.b32.xlu0 %v17225_v27, %s12714_s21 }
 0x6f6   :  { %v7398_v13 = vpop.permute.xlu0 %7397  ;;  %v7396_v53 = vpop.permute.xlu1 %7395 }
 0x6f7   :  { %v7408_v25 = vsel %vm315_vm1, %v7396_v53, %v7398_v13 }
 0x6f8   :  { %v7421_v30 = vmax.f32 %v17147_v58, %v7408_v25  ;;  %v7577_v25 = vld [vmem:[%s20322_s3 + $0x78] sm:$0xff] }
 0x6fa   :  { %v17237_v50 = vpop.permute.xlu1 %7399  ;;  %v7394_v56 = vpop.permute.xlu0 %7393 }
 0x6fb   :  { %v7409_v21 = vsel %vm315_vm1, %v7398_v13, %v17237_v50  ;;  %v7407_v45 = vsel %vm315_vm1, %v7394_v56, %v7396_v53  ;;  %v7584_v13 = vld [vmem:[%s20322_s3 + $0xb0] sm:$0xff]  ;;  %v7583_v53 = vld [vmem:[%s20322_s3 + $0xa8] sm:$0xff] }
 0x6fc   :  { %v7422_v34 = vmax.f32 %v17149_v36, %v7409_v21  ;;  %v7420_v44 = vmax.f32 %v17159_v35, %v7407_v45  ;;  %v7607_v35 = vld [vmem:[%s20322_s3 + $0x168] sm:$0xff]  ;;  %v7580_v56 = vld [vmem:[%s20322_s3 + $0x90] sm:$0xff]  ;;  %v7701_v45 = vld [vmem:[%s20322_s3 + $0x458] sm:$0xff] }
 0x6fd   :  { %7851 = vmatpush1.msra.mxu1 %v7607_v35  ;;  %v7704_v21 = vld [vmem:[%s20322_s3 + $0x470] sm:$0xff]  ;;  %v7566_v35 = vld [vmem:[%s20322_s3 + $0x20] sm:$0xff] }
 0x6fe   :  { %v17239_v14 = vpop.permute.xlu0 %3651  ;;  %v17241_v47 = vpop.permute.xlu1 %3649  ;;  %7852 = vmatprep.subr.mxu1 %v7605_v49  ;;  %7921 = vmatprep.subr.mxu0 %v7704_v21  ;;  %v7565_v49 = vld [vmem:[%s20322_s3 + $0x18] sm:$0xff] }
 0x6ff   :  { %7853 = vmatpush1.msra.mxu1 %v7604_v57  ;;  %v7563_v57 = vld [vmem:[%s20322_s3 + $0x8] sm:$0xff] }
 0x700   :  { %7854 = vmatprep.subr.mxu1 %v7602_v2 }
 0x701   :  { %7855 = vmatpush1.msra.mxu1 %v7601_v46  ;;  %v7656_v46 = vld [vmem:[%s20322_s3 + $0x2f0] sm:$0xff] }
 0x702   :  { %v7430_v3 = vpop.permute.xlu0 %7429  ;;  %v17243_v51 = vpop.permute.xlu1 %3653  ;;  %7856 = vmatprep.subr.mxu1 %v7599_v18  ;;  %v7695_v18 = vld [vmem:[%s20322_s3 + $0x428] sm:$0xff] }
 0x703   :  { %v3663_v9 = vsel %vm315_vm1, %v17239_v14, %v17243_v51  ;;  %7857 = vmatpush1.msra.mxu1 %v7598_v12  ;;  %v7655_v12 = vld [vmem:[%s20322_s3 + $0x2e8] sm:$0xff] }
 0x704   :  { %v3676_v23 = vmax.f32 %v17169_v32, %v3663_v9  ;;  %v7593_v32 = vld [vmem:[%s20322_s3 + $0xf8] sm:$0xff]  ;;  %7858 = vmatprep.subr.mxu1 %v7596_v43  ;;  %v7562_v9 = vld [vmem:[%s20322_s3] sm:$0xff] }
 0x705   :  { %7859 = vmatpush1.msra.mxu1 %v7595_v40  ;;  %v7653_v43 = vld [vmem:[%s20322_s3 + $0x2d8] sm:$0xff]  ;;  %v7692_v40 = vld [vmem:[%s20322_s3 + $0x410] sm:$0xff] }
 0x706   :  { %v17250_v19 = vpop.permute.xlu0 %7433  ;;  %v7432_v20 = vpop.permute.xlu1 %7431  ;;  %7860 = vmatprep.subr.mxu1 %v7593_v32 }
 0x707   :  { %v7442_v60 = vsel %vm634_vm0, %v7430_v3, %v7432_v20  ;;  %v7443_v5 = vsel %vm634_vm0, %v7432_v20, %v17250_v19  ;;  %7861 = vmatpush1.msra.mxu1 %v7592_v37  ;;  %v7574_v20 = vld [vmem:[%s20322_s3 + $0x60] sm:$0xff]  ;;  %v7652_v37 = vld [vmem:[%s20322_s3 + $0x2d0] sm:$0xff] }
 0x708   :  { %v17256_v17 = vmax.f32 %v7421_v30, %v7442_v60  ;;  %v17258_v42 = vmax.f32 %v7422_v34, %v7443_v5  ;;  %7862 = vmatprep.subr.mxu1 %v7590_v0  ;;  %v7575_v30 = vld [vmem:[%s20322_s3 + $0x68] sm:$0xff]  ;;  %v7700_v60 = vld [vmem:[%s20322_s3 + $0x450] sm:$0xff]  ;;  %v7689_v0 = vld [vmem:[%s20322_s3 + $0x3f8] sm:$0xff] }
 0x709   :  { %7863 = vmatpush1.msra.mxu1 %v7589_v11  ;;  %v7703_v34 = vld [vmem:[%s20322_s3 + $0x468] sm:$0xff]  ;;  %v7572_v5 = vld [vmem:[%s20322_s3 + $0x50] sm:$0xff]  ;;  %v7649_v11 = vld [vmem:[%s20322_s3 + $0x2b8] sm:$0xff] }
 0x70a   :  { %v7428_v55 = vpop.permute.xlu0 %7427  ;;  %7472 = vrot.lane.b32.xlu0 %v17258_v42, %s12720_s23  ;;  %7470 = vrot.lane.b32.xlu1 %v17256_v17, %s12720_s23  ;;  %v3648_v58 = vpop.permute.xlu1 %3647 }
 0x70b   :  { %v7441_v36 = vsel %vm634_vm0, %v7428_v55, %v7430_v3  ;;  %v3661_v16 = vsel %vm315_vm1, %v3648_v58, %v17241_v47  ;;  %7864 = vmatprep.subr.mxu1 %v7587_v6  ;;  %v7578_v3 = vld [vmem:[%s20322_s3 + $0x80] sm:$0xff]  ;;  %7922 = vmatpush1.msra.mxu0 %v7703_v34  ;;  %v7571_v55 = vld [vmem:[%s20322_s3 + $0x48] sm:$0xff]  ;;  %v7569_v58 = vld [vmem:[%s20322_s3 + $0x38] sm:$0xff] }
 0x70c   :  { %v17266_v8 = vmax.f32 %v7420_v44, %v7441_v36  ;;  %v3674_v39 = vmax.f32 %v17191_v33, %v3661_v16  ;;  %7865 = vmatpush1.msra.mxu1 %v7586_v24  ;;  %v7581_v33 = vld [vmem:[%s20322_s3 + $0x98] sm:$0xff]  ;;  %v7698_v44 = vld [vmem:[%s20322_s3 + $0x440] sm:$0xff]  ;;  %7923 = vmatprep.subr.mxu0 %v7701_v45  ;;  %v7688_v6 = vld [vmem:[%s20322_s3 + $0x3f0] sm:$0xff] }
 0x70d   :  { %7866 = vmatprep.subr.mxu1 %v7584_v13  ;;  %7924 = vmatpush1.msra.mxu0 %v7700_v60  ;;  %v7697_v36 = vld [vmem:[%s20322_s3 + $0x438] sm:$0xff]  ;;  %v7650_v16 = vld [vmem:[%s20322_s3 + $0x2c0] sm:$0xff]  ;;  %v7644_v34 = vld [vmem:[%s20322_s3 + $0x290] sm:$0xff] }
 0x70e   :  { %7468 = vrot.lane.b32.xlu0 %v17266_v8, %s12720_s23  ;;  %v17282_v7 = vpop.permute.xlu1 %3683  ;;  %v17287_v31 = vpop.permute.xlu0 %3685  ;;  %7867 = vmatpush1.msra.mxu1 %v7583_v53  ;;  %v7686_v24 = vld [vmem:[%s20322_s3 + $0x3e0] sm:$0xff]  ;;  %v7685_v53 = vld [vmem:[%s20322_s3 + $0x3d8] sm:$0xff] }
 0x70f   :  { %7868 = vmatprep.subr.mxu1 %v7581_v33  ;;  %7925 = vmatprep.subr.mxu0 %v7698_v44  ;;  %v7646_v13 = vld [vmem:[%s20322_s3 + $0x2a0] sm:$0xff]  ;;  %v3696_v21 = vsel %vm634_vm0, %v17282_v7, %v17287_v31  ;;  %v7679_v44 = vld [vmem:[%s20322_s3 + $0x3a8] sm:$0xff] }
 0x710   :  { %7869 = vmatpush1.msra.mxu1 %v7580_v56  ;;  %7926 = vmatpush1.msra.mxu0 %v7697_v36  ;;  %v20480_v45 = vld [vmem:[#allocation20_spill] sm:$0xff]  ;;  %v7676_v36 = vld [vmem:[%s20322_s3 + $0x390] sm:$0xff] }
 0x711   :  { %7870 = vmatprep.subr.mxu1 %v7578_v3  ;;  %7927 = vmatprep.subr.mxu0 %v7695_v18  ;;  %v3560_v60 = vadd.f32 %v20480_v45, %v17139_v22  ;;  %v7677_v22 = vld [vmem:[%s20322_s3 + $0x398] sm:$0xff]  ;;  %v7670_v18 = vld [vmem:[%s20322_s3 + $0x360] sm:$0xff] }
 0x712   :  { %v17302_v48 = vpop.permute.xlu1 %3687  ;;  %v3682_v1 = vpop.permute.xlu0 %3681  ;;  %7871 = vmatpush1.msra.mxu1 %v7577_v25  ;;  %v7610_v45 = vld [vmem:[%s20322_s3 + $0x180] sm:$0xff] }
 0x713   :  { %v3697_v29 = vsel %vm634_vm0, %v17287_v31, %v17302_v48  ;;  %v3695_v4 = vsel %vm634_vm0, %v3682_v1, %v17282_v7  ;;  %7872 = vmatprep.subr.mxu1 %v7575_v30  ;;  %v7691_v1 = vld [vmem:[%s20322_s3 + $0x408] sm:$0xff]  ;;  %v7641_v7 = vld [vmem:[%s20322_s3 + $0x278] sm:$0xff]  ;;  %v7680_v31 = vld [vmem:[%s20322_s3 + $0x3b0] sm:$0xff] }
 0x714   :  { %v17307_v38 = vmax.f32 %v3676_v23, %v3697_v29  ;;  %v17342_v61 = vmax.f32 %v3674_v39, %v3695_v4  ;;  %7873 = vmatpush1.msra.mxu1 %v7574_v20  ;;  %v7694_v29 = vld [vmem:[%s20322_s3 + $0x420] sm:$0xff]  ;;  %v7647_v4 = vld [vmem:[%s20322_s3 + $0x2a8] sm:$0xff] }
 0x715   :  { %7874 = vmatprep.subr.mxu1 %v7572_v5  ;;  %7928 = vmatpush1.msra.mxu0 %v7694_v29  ;;  %v7640_v5 = vld [vmem:[%s20322_s3 + $0x270] sm:$0xff] }
 0x716   :  { %3726 = vrot.lane.b32.xlu0 %v17307_v38, %s12720_s23  ;;  %7875 = vmatpush1.msra.mxu1 %v7571_v55  ;;  %v7638_v55 = vld [vmem:[%s20322_s3 + $0x260] sm:$0xff]  ;;  %v7668_v29 = vld [vmem:[%s20322_s3 + $0x350] sm:$0xff] }
 0x717   :  { %7876 = vmatprep.subr.mxu1 %v7569_v58  ;;  %7929 = vmatprep.subr.mxu0 %v7692_v40  ;;  %v7637_v58 = vld [vmem:[%s20322_s3 + $0x258] sm:$0xff]  ;;  %v7667_v40 = vld [vmem:[%s20322_s3 + $0x348] sm:$0xff] }
 0x718   :  { %7877 = vmatpush1.msra.mxu1 %v7568_v54  ;;  %7930 = vmatpush1.msra.mxu0 %v7691_v1  ;;  %v7635_v54 = vld [vmem:[%s20322_s3 + $0x248] sm:$0xff]  ;;  %v7625_v1 = vld [vmem:[%s20322_s3 + $0x1f8] sm:$0xff] }
 0x719   :  { %7878 = vmatprep.subr.mxu1 %v7566_v35  ;;  %7931 = vmatprep.subr.mxu0 %v7689_v0  ;;  %v7674_v35 = vld [vmem:[%s20322_s3 + $0x380] sm:$0xff]  ;;  %v7623_v0 = vld [vmem:[%s20322_s3 + $0x1e8] sm:$0xff] }
 0x71a   :  { %7504 = vrot.lane.b32.xlu0 %v17258_v42, %s12717_s19  ;;  %7879 = vmatpush1.msra.mxu1 %v7565_v49  ;;  %v3630_v49 = vadd.f32 %v16844_v15, %v3560_v60  ;;  %v7671_v15 = vld [vmem:[%s20322_s3 + $0x368] sm:$0xff]  ;;  %v7745_v60 = vld [vmem:[%s20322_s3 + $0x5b8] sm:$0xff] }
 0x71b   :  { %7880 = vmatprep.subr.mxu1 %v7563_v57  ;;  %7932 = vmatpush1.msra.mxu0 %v7688_v6  ;;  %v7634_v57 = vld [vmem:[%s20322_s3 + $0x240] sm:$0xff] }
 0x71c   :  { %7881 = vmatpush1.msra.mxu1 %v7562_v9  ;;  %7933 = vmatprep.subr.mxu0 %v7686_v24  ;;  %v7673_v9 = vld [vmem:[%s20322_s3 + $0x378] sm:$0xff]  ;;  %v7622_v6 = vld [vmem:[%s20322_s3 + $0x1e0] sm:$0xff]  ;;  %v7620_v24 = vld [vmem:[%s20322_s3 + $0x1d0] sm:$0xff] }
 0x71d   :  { %7882 = vmatprep.subr.mxu1 %v7656_v46  ;;  %7934 = vmatpush1.msra.mxu0 %v7685_v53  ;;  %v7631_v46 = vld [vmem:[%s20322_s3 + $0x228] sm:$0xff]  ;;  %v7658_v53 = vld [vmem:[%s20322_s3 + $0x300] sm:$0xff] }
 0x71e   :  { %3722 = vrot.lane.b32.xlu0 %v17342_v61, %s12720_s23  ;;  %7883 = vmatpush2.msra.mxu1 %v7655_v12  ;;  %v7629_v12 = vld [vmem:[%s20322_s3 + $0x218] sm:$0xff] }
 0x71f   :  { %7884 = vmatprep.subr.mxu1 %v7653_v43  ;;  %v7628_v43 = vld [vmem:[%s20322_s3 + $0x210] sm:$0xff] }
 0x720   :  { %7885 = vmatpush2.msra.mxu1 %v7652_v37  ;;  %v7665_v37 = vld [vmem:[%s20322_s3 + $0x338] sm:$0xff] }
 0x721   :  { %7886 = vmatprep.subr.mxu1 %v7650_v16  ;;  %v7664_v16 = vld [vmem:[%s20322_s3 + $0x330] sm:$0xff] }
 0x722   :  { %7500 = vrot.lane.b32.xlu0 %v17266_v8, %s12717_s19  ;;  %7887 = vmatpush2.msra.mxu1 %v7649_v11  ;;  %v7662_v11 = vld [vmem:[%s20322_s3 + $0x320] sm:$0xff] }
 0x723   :  { %7888 = vmatprep.subr.mxu1 %v7647_v4  ;;  %v7661_v4 = vld [vmem:[%s20322_s3 + $0x318] sm:$0xff] }
 0x724   :  { %7889 = vmatpush2.msra.mxu1 %v7646_v13  ;;  %v7619_v13 = vld [vmem:[%s20322_s3 + $0x1c8] sm:$0xff] }
 0x725   :  { %7890 = vmatprep.subr.mxu1 %v7644_v34 }
 0x726   :  { %3758 = vrot.lane.b32.xlu0 %v17307_v38, %s12717_s19 }
 0x72a   :  { %3754 = vrot.lane.b32.xlu0 %v17342_v61, %s12717_s19 }
 0x72d   :  { %v12075_v2 = vpop.f32.mrf.mxu1 }
 0x72f   :  { %v12076_v23 = vpop.f32.mrf.mxu1 }
 0x730   :  { %v12077_v32 = vadd.f32 %v12076_v23, %v12075_v2  ;;  %v7632_v2 = vld [vmem:[%s20322_s3 + $0x230] sm:$0xff]  ;;  %v17550_v23 = vmax.f32 %v3630_v49, 0.0 }
 0x732   :  { %v7306_v39 = vadd.f32 %v12077_v32, %v17137_v63  ;;  %v3662_v63 = vsel %vm315_vm1, %v17241_v47, %v17239_v14  ;;  %v7683_v14 = vld [vmem:[%s20322_s3 + $0x3c8] sm:$0xff]  ;;  %v7626_v32 = vld [vmem:[%s20322_s3 + $0x200] sm:$0xff] }
 0x733   :  { %v3675_v30 = vmax.f32 %v17171_v62, %v3662_v63  ;;  %v7643_v47 = vld [vmem:[%s20322_s3 + $0x288] sm:$0xff]  ;;  %7935 = vmatprep.subr.mxu0 %v7683_v14  ;;  %v7682_v62 = vld [vmem:[%s20322_s3 + $0x3c0] sm:$0xff]  ;;  %v7616_v63 = vld [vmem:[%s20322_s3 + $0x1b0] sm:$0xff] }
 0x734   :  { %7891 = vmatpush2.msra.mxu1 %v7643_v47  ;;  %7936 = vmatpush1.msra.mxu0 %v7682_v62  ;;  %v7613_v14 = vld [vmem:[%s20322_s3 + $0x198] sm:$0xff]  ;;  %v7748_v47 = vld [vmem:[%s20322_s3 + $0x5d0] sm:$0xff]  ;;  %v7611_v62 = vld [vmem:[%s20322_s3 + $0x188] sm:$0xff] }
 0x735   :  { %v7375_v33 = vpop.f32.mrf.mxu0  ;;  %v17496_v20 = vmax.f32 %v3675_v30, %v3696_v21  ;;  %7892 = vmatprep.subr.mxu1 %v7641_v7  ;;  %7937 = vmatprep.subr.mxu0 %v7680_v31  ;;  %v7614_v21 = vld [vmem:[%s20322_s3 + $0x1a0] sm:$0xff]  ;;  %v7749_v30 = vld [vmem:[%s20322_s3 + $0x5d8] sm:$0xff] }
 0x736   :  { %v7376_v56 = vadd.f32 %v7375_v33, %v7306_v39  ;;  %7893 = vmatpush2.msra.mxu1 %v7640_v5  ;;  %7938 = vmatpush1.msra.mxu0 %v7679_v44  ;;  %v7659_v39 = vld [vmem:[%s20322_s3 + $0x308] sm:$0xff]  ;;  %v7617_v33 = vld [vmem:[%s20322_s3 + $0x1b8] sm:$0xff]  ;;  %v7746_v7 = vld [vmem:[%s20322_s3 + $0x5c0] sm:$0xff] }
 0x737   :  { %v7377_v3 = vpop.f32.mrf.mxu0  ;;  %7894 = vmatprep.subr.mxu1 %v7638_v55  ;;  %7939 = vmatprep.subr.mxu0 %v7677_v22  ;;  %v7743_v5 = vld [vmem:[%s20322_s3 + $0x5a8] sm:$0xff]  ;;  %v7742_v55 = vld [vmem:[%s20322_s3 + $0x5a0] sm:$0xff] }
 0x738   :  { %v17470_v25 = vmax.f32 %v7376_v56, 0.0  ;;  %7895 = vmatpush2.msra.mxu1 %v7637_v58  ;;  %7940 = vmatpush1.msra.mxu0 %v7676_v36  ;;  %v7752_v56 = vld [vmem:[%s20322_s3 + $0x5f0] sm:$0xff]  ;;  %v7751_v3 = vld [vmem:[%s20322_s3 + $0x5e8] sm:$0xff] }
 0x739   :  { %7896 = vmatprep.subr.mxu1 %v7635_v54  ;;  %7941 = vmatprep.subr.mxu0 %v7674_v35  ;;  %v7740_v58 = vld [vmem:[%s20322_s3 + $0x590] sm:$0xff]  ;;  %v7739_v54 = vld [vmem:[%s20322_s3 + $0x588] sm:$0xff] }
 0x73a   :  { %7405 = vrot.lane.b32.xlu1 %v17470_v25, %s12715_s28  ;;  %7897 = vmatpush2.msra.mxu1 %v7634_v57 }
 0x73b   :  { %7942 = vmatpush1.msra.mxu0 %v7673_v9  ;;  %7898 = vmatprep.subr.mxu1 %v7632_v2  ;;  %v7736_v9 = vld [vmem:[%s20322_s3 + $0x570] sm:$0xff] }
 0x73c   :  { %7943 = vmatprep.subr.mxu0 %v7671_v15  ;;  %7899 = vmatpush2.msra.mxu1 %v7631_v46  ;;  %v7734_v46 = vld [vmem:[%s20322_s3 + $0x560] sm:$0xff] }
 0x73d   :  { %7944 = vmatpush1.msra.mxu0 %v7670_v18  ;;  %7900 = vmatprep.subr.mxu1 %v7629_v12 }
 0x73e   :  { %3724 = vrot.lane.b32.xlu1 %v17496_v20, %s12720_s23  ;;  %7945 = vmatprep.subr.mxu0 %v7668_v29  ;;  %v7733_v29 = vld [vmem:[%s20322_s3 + $0x558] sm:$0xff] }
 0x73f   :  { %7901 = vmatpush2.msra.mxu1 %v7628_v43  ;;  %7946 = vmatpush1.msra.mxu0 %v7667_v40 }
 0x740   :  { %7902 = vmatprep.subr.mxu1 %v7626_v32  ;;  %7947 = vmatprep.subr.mxu0 %v7665_v37  ;;  %v7730_v37 = vld [vmem:[%s20322_s3 + $0x540] sm:$0xff] }
 0x741   :  { %7903 = vmatpush2.msra.mxu1 %v7625_v1  ;;  %7948 = vmatpush1.msra.mxu0 %v7664_v16  ;;  %v7728_v16 = vld [vmem:[%s20322_s3 + $0x530] sm:$0xff] }
 0x742   :  { %7502 = vrot.lane.b32.xlu1 %v17256_v17, %s12717_s19  ;;  %7904 = vmatprep.subr.mxu1 %v7623_v0 }
 0x743   :  { %7949 = vmatprep.subr.mxu0 %v7662_v11  ;;  %7905 = vmatpush2.msra.mxu1 %v7622_v6  ;;  %v7727_v6 = vld [vmem:[%s20322_s3 + $0x528] sm:$0xff] }
 0x744   :  { %7950 = vmatpush1.msra.mxu0 %v7661_v4  ;;  %7906 = vmatprep.subr.mxu1 %v7620_v24  ;;  %v7724_v24 = vld [vmem:[%s20322_s3 + $0x510] sm:$0xff] }
 0x745   :  { %7951 = vmatprep.subr.mxu0 %v7659_v39  ;;  %7907 = vmatpush2.msra.mxu1 %v7619_v13  ;;  %v7722_v39 = vld [vmem:[%s20322_s3 + $0x500] sm:$0xff]  ;;  %v7721_v13 = vld [vmem:[%s20322_s3 + $0x4f8] sm:$0xff] }
 0x746   :  { %3659 = vrot.lane.b32.xlu1 %v17550_v23, %s12715_s28  ;;  %7952 = vmatpush1.msra.mxu0 %v7658_v53  ;;  %v7719_v53 = vld [vmem:[%s20322_s3 + $0x4e8] sm:$0xff] }
 0x747   :  { %7908 = vmatprep.subr.mxu1 %v7617_v33  ;;  %7953 = vmatprep.subr.mxu0 %v7752_v56  ;;  %v7718_v33 = vld [vmem:[%s20322_s3 + $0x4e0] sm:$0xff]  ;;  %v7716_v56 = vld [vmem:[%s20322_s3 + $0x4d0] sm:$0xff] }
 0x748   :  { %7909 = vmatpush2.msra.mxu1 %v7616_v63  ;;  %7954 = vmatpush2.msra.mxu0 %v7751_v3  ;;  %v7715_v63 = vld [vmem:[%s20322_s3 + $0x4c8] sm:$0xff]  ;;  %v7713_v3 = vld [vmem:[%s20322_s3 + $0x4b8] sm:$0xff] }
 0x749   :  { %7910 = vmatprep.subr.mxu1 %v7614_v21  ;;  %7955 = vmatprep.subr.mxu0 %v7749_v30  ;;  %v7712_v21 = vld [vmem:[%s20322_s3 + $0x4b0] sm:$0xff]  ;;  %v7710_v30 = vld [vmem:[%s20322_s3 + $0x4a0] sm:$0xff] }
 0x74a   :  { %7439 = vrot.lane.b32.xlu1 %v17470_v25, %s12714_s21  ;;  %7911 = vmatpush2.msra.mxu1 %v7613_v14  ;;  %v7707_v14 = vld [vmem:[%s20322_s3 + $0x488] sm:$0xff] }
 0x74b   :  { %7956 = vmatpush2.msra.mxu0 %v7748_v47  ;;  %7912 = vmatprep.subr.mxu1 %v7611_v62  ;;  %v7706_v47 = vld [vmem:[%s20322_s3 + $0x480] sm:$0xff]  ;;  %v7657_v62 = vld [vmem:[%s20322_s3 + $0x2f8] sm:$0xff] }
 0x74c   :  { %7957 = vmatprep.subr.mxu0 %v7746_v7  ;;  %7913 = vmatpush2.msra.mxu1 %v7610_v45  ;;  %v7800_v7 = vld [vmem:[%s20322_s3 + $0x770] sm:$0xff] }
 0x74d   :  { %7958 = vmatpush2.msra.mxu0 %v7745_v60  ;;  %7992 = vmatprep.subr.mxu1 %v7800_v7  ;;  %v7790_v7 = vld [vmem:[%s20322_s3 + $0x720] sm:$0xff] }
 0x74e   :  { %3756 = vrot.lane.b32.xlu1 %v17496_v20, %s12717_s19  ;;  %7959 = vmatprep.subr.mxu0 %v7743_v5 }
 0x74f   :  { %7960 = vmatpush2.msra.mxu0 %v7742_v55 }
 0x750   :  { %v7402_v34 = vpop.permute.xlu1 %7401  ;;  %7961 = vmatprep.subr.mxu0 %v7740_v58 }
 0x751   :  { %v7410_v22 = vsel %vm315_vm1, %v17237_v50, %v7402_v34  ;;  %v7737_v50 = vld [vmem:[%s20322_s3 + $0x578] sm:$0xff]  ;;  %7962 = vmatpush2.msra.mxu0 %v7739_v54 }
 0x752   :  { %v17633_v31 = vpop.permute.xlu0 %7403  ;;  %3693 = vrot.lane.b32.xlu1 %v17550_v23, %s12714_s21  ;;  %v7423_v49 = vmax.f32 %v17153_v28, %v7410_v22  ;;  %7963 = vmatprep.subr.mxu0 %v7737_v50 }
 0x753   :  { %v7411_v35 = vsel %vm315_vm1, %v7402_v34, %v17633_v31  ;;  %7964 = vmatpush2.msra.mxu0 %v7736_v9  ;;  %v7709_v34 = vld [vmem:[%s20322_s3 + $0x498] sm:$0xff] }
 0x754   :  { %v3656_v44 = vpop.permute.xlu1 %3655  ;;  %v7424_v18 = vmax.f32 %v17211_v10, %v7411_v35  ;;  %v7731_v10 = vld [vmem:[%s20322_s3 + $0x548] sm:$0xff]  ;;  %7965 = vmatprep.subr.mxu0 %v7734_v46 }
 0x755   :  { %v3664_v2 = vsel %vm315_vm1, %v17243_v51, %v3656_v44  ;;  %7966 = vmatpush2.msra.mxu0 %v7733_v29 }
 0x756   :  { %v17654_v36 = vpop.permute.xlu0 %3657  ;;  %v3677_v43 = vmax.f32 %v17178_v26, %v3664_v2  ;;  %7967 = vmatprep.subr.mxu0 %v7731_v10 }
 0x757   :  { %v3665_v51 = vsel %vm315_vm1, %v3656_v44, %v17654_v36  ;;  %7968 = vmatpush2.msra.mxu0 %v7730_v37 }
 0x758   :  { %v7436_v57 = vpop.permute.xlu1 %7435  ;;  %v3678_v26 = vmax.f32 %v17221_v52, %v3665_v51  ;;  %v7725_v52 = vld [vmem:[%s20322_s3 + $0x518] sm:$0xff]  ;;  %7969 = vmatprep.subr.mxu0 %v7728_v16 }
 0x759   :  { %v7444_v15 = vsel %vm634_vm0, %v17250_v19, %v7436_v57  ;;  %7970 = vmatpush2.msra.mxu0 %v7727_v6 }
 0x75a   :  { %v17676_v28 = vmax.f32 %v7423_v49, %v7444_v15  ;;  %v17678_v12 = vpop.permute.xlu0 %7437  ;;  %7971 = vmatprep.subr.mxu0 %v7725_v52 }
 0x75b   :  { %v7445_v19 = vsel %vm634_vm0, %v7436_v57, %v17678_v12  ;;  %7972 = vmatpush2.msra.mxu0 %v7724_v24 }
 0x75c   :  { %v17691_v40 = vmax.f32 %v7424_v18, %v7445_v19  ;;  %7474 = vrot.lane.b32.xlu1 %v17676_v28, %s12720_s23  ;;  %v3690_v32 = vpop.permute.xlu1 %3689  ;;  %7973 = vmatprep.subr.mxu0 %v7722_v39 }
 0x75d   :  { %v3698_v1 = vsel %vm634_vm0, %v17302_v48, %v3690_v32  ;;  %7974 = vmatpush2.msra.mxu0 %v7721_v13 }
 0x75e   :  { %v17704_v0 = vmax.f32 %v3677_v43, %v3698_v1  ;;  %v17706_v11 = vpop.permute.xlu0 %3691  ;;  %7476 = vrot.lane.b32.xlu0 %v17691_v40, %s12720_s23  ;;  %7975 = vmatprep.subr.mxu0 %v7719_v53 }
 0x75f   :  { %v3699_v48 = vsel %vm634_vm0, %v3690_v32, %v17706_v11  ;;  %7976 = vmatpush2.msra.mxu0 %v7718_v33 }
 0x760   :  { %v17718_v4 = vmax.f32 %v3678_v26, %v3699_v48  ;;  %3728 = vrot.lane.b32.xlu1 %v17704_v0, %s12720_s23  ;;  %7977 = vmatprep.subr.mxu0 %v7716_v56 }
 0x761   :  { %7978 = vmatpush2.msra.mxu0 %v7715_v63 }
 0x762   :  { %3730 = vrot.lane.b32.xlu0 %v17718_v4, %s12720_s23  ;;  %7979 = vmatprep.subr.mxu0 %v7713_v3 }
 0x763   :  { %7980 = vmatpush2.msra.mxu0 %v7712_v21  ;;  %v7796_v21 = vld [vmem:[%s20322_s3 + $0x750] sm:$0xff] }
 0x764   :  { %7506 = vrot.lane.b32.xlu1 %v17676_v28, %s12717_s19  ;;  %7981 = vmatprep.subr.mxu0 %v7710_v30 }
 0x765   :  { %7982 = vmatpush2.msra.mxu0 %v7709_v34  ;;  %v7794_v34 = vld [vmem:[%s20322_s3 + $0x740] sm:$0xff] }
 0x766   :  { %7508 = vrot.lane.b32.xlu0 %v17691_v40, %s12717_s19  ;;  %7983 = vmatprep.subr.mxu0 %v7707_v14  ;;  %v7793_v14 = vld [vmem:[%s20322_s3 + $0x738] sm:$0xff] }
 0x767   :  { %7984 = vmatpush2.msra.mxu0 %v7706_v47 }
 0x768   :  { %3760 = vrot.lane.b32.xlu1 %v17704_v0, %s12717_s19  ;;  %12078 = vmatprep.subr.mxu0 %v7657_v62  ;;  %v7791_v62 = vld [vmem:[%s20322_s3 + $0x728] sm:$0xff] }
 0x76a   :  { %3762 = vrot.lane.b32.xlu0 %v17718_v4, %s12717_s19 }
 0x77c   :  { %v17777_v45 = vpop.permute.xlu0 %7472  ;;  %v7471_v44 = vpop.permute.xlu1 %7470 }
 0x77d   :  { %v7483_v35 = vsel %vm953_vm7, %v7471_v44, %v17777_v45 }
 0x77e   :  { %v7495_v49 = vmax.f32 %v17256_v17, %v7483_v35  ;;  %v7785_v35 = vld [vmem:[%s20322_s3 + $0x6f8] sm:$0xff] }
 0x780   :  { %v7469_v60 = vpop.permute.xlu0 %7468 }
 0x781   :  { %v7482_v50 = vsel %vm953_vm7, %v7469_v60, %v7471_v44  ;;  %v7788_v44 = vld [vmem:[%s20322_s3 + $0x710] sm:$0xff] }
 0x782   :  { %v7494_v57 = vmax.f32 %v17266_v8, %v7482_v50 }
 0x788   :  { %v17779_v5 = vpop.permute.xlu0 %3726 }
 0x78c   :  { %v17781_v55 = vpop.permute.xlu0 %7504 }
 0x790   :  { %v3723_v58 = vpop.permute.xlu0 %3722 }
 0x794   :  { %v7501_v9 = vpop.permute.xlu0 %7500 }
 0x798   :  { %v17793_v32 = vpop.permute.xlu0 %3758 }
 0x7ac   :  { %v7406_v22 = vpop.permute.xlu1 %7405 }
 0x7ad   :  { %v7412_v43 = vsel %vm315_vm1, %v17633_v31, %v7406_v22  ;;  %v7426_v17 = vmax.f32 %v17470_v25, %v7406_v22  ;;  %v3755_v31 = vpop.permute.xlu0 %3754 }
 0x7ae   :  { %v7425_v8 = vmax.f32 %v17214_v59, %v7412_v43 }
 0x7b0   :  { %v3725_v54 = vpop.permute.xlu1 %3724 }
 0x7b1   :  { %v3736_v1 = vsel %vm953_vm7, %v3723_v58, %v3725_v54  ;;  %v3737_v16 = vsel %vm953_vm7, %v3725_v54, %v17779_v5  ;;  %v7787_v58 = vld [vmem:[%s20322_s3 + $0x708] sm:$0xff] }
 0x7b2   :  { %v3748_v52 = vmax.f32 %v17342_v61, %v3736_v1  ;;  %v3749_v25 = vmax.f32 %v17496_v20, %v3737_v16  ;;  %v7775_v1 = vld [vmem:[%s20322_s3 + $0x6a8] sm:$0xff] }
 0x7b4   :  { %v7503_v2 = vpop.permute.xlu1 %7502 }
 0x7b5   :  { %v7514_v15 = vsel %vm1910_vm3, %v7501_v9, %v7503_v2  ;;  %v7515_v46 = vsel %vm1910_vm3, %v7503_v2, %v17781_v55  ;;  %v7782_v9 = vld [vmem:[%s20322_s3 + $0x6e0] sm:$0xff] }
 0x7b6   :  { %v7526_v18 = vmax.f32 %v7494_v57, %v7514_v15  ;;  %v7527_v29 = vmax.f32 %v7495_v49, %v7515_v46  ;;  %v7781_v46 = vld [vmem:[%s20322_s3 + $0x6d8] sm:$0xff] }
 0x7b8   :  { %v7538_v51 = vrot.slane %v7526_v18, 4  ;;  %v7539_v19 = vrot.slane %v7527_v29, 4  ;;  %v3660_v10 = vpop.permute.xlu1 %3659 }
 0x7b9   :  { %v3666_v24 = vsel %vm315_vm1, %v17654_v36, %v3660_v10  ;;  %v3680_v33 = vmax.f32 %v17550_v23, %v3660_v10 }
 0x7ba   :  { %7550 = vst [vmem:[#allocation3 + $0x28] sm:$0xf0] %v7538_v51  ;;  %7551 = vst [vmem:[#allocation3 + $0x10] sm:$0xf0] %v7539_v19  ;;  %v3679_v61 = vmax.f32 %v17225_v27, %v3666_v24  ;;  %v7799_v27 = vld [vmem:[%s20322_s3 + $0x768] sm:$0xff]  ;;  %v7778_v19 = vld [vmem:[%s20322_s3 + $0x6c0] sm:$0xff] }
 0x7bb   :  { %v7779_v51 = vld [vmem:[%s20322_s3 + $0x6c8] sm:$0xff] }
 0x7bc   :  { %v7440_v37 = vpop.permute.xlu1 %7439  ;;  %v7767_v24 = vld [vmem:[%s20322_s3 + $0x668] sm:$0xff] }
 0x7bd   :  { %v7446_v26 = vsel %vm634_vm0, %v17678_v12, %v7440_v37  ;;  %v7460_v6 = vmax.f32 %v7426_v17, %v7440_v37 }
 0x7be   :  { %v17802_v48 = vmax.f32 %v7425_v8, %v7446_v26  ;;  %v7776_v8 = vld [vmem:[%s20322_s3 + $0x6b0] sm:$0xff] }
 0x7bf   :  { %7480 = vrot.lane.b32.xlu0 %v7460_v6, %s12720_s23 }
 0x7c0   :  { %7478 = vrot.lane.b32.xlu1 %v17802_v48, %s12720_s23  ;;  %v3757_v59 = vpop.permute.xlu1 %3756 }
 0x7c1   :  { %v3768_v39 = vsel %vm1910_vm3, %v3755_v31, %v3757_v59  ;;  %v3769_v12 = vsel %vm1910_vm3, %v3757_v59, %v17793_v32  ;;  %v7773_v31 = vld [vmem:[%s20322_s3 + $0x698] sm:$0xff] }
 0x7c2   :  { %v3780_v13 = vmax.f32 %v3748_v52, %v3768_v39  ;;  %v3781_v53 = vmax.f32 %v3749_v25, %v3769_v12  ;;  %v7772_v52 = vld [vmem:[%s20322_s3 + $0x690] sm:$0xff]  ;;  %v7770_v25 = vld [vmem:[%s20322_s3 + $0x680] sm:$0xff]  ;;  %v7769_v59 = vld [vmem:[%s20322_s3 + $0x678] sm:$0xff] }
 0x7c3   :  { %v7766_v39 = vld [vmem:[%s20322_s3 + $0x660] sm:$0xff]  ;;  %v7764_v12 = vld [vmem:[%s20322_s3 + $0x650] sm:$0xff] }
 0x7c4   :  { %3786 = vst [vmem:[#allocation3 + $0x28] sm:$0xf] %v3780_v13  ;;  %3787 = vst [vmem:[#allocation3 + $0x10] sm:$0xf] %v3781_v53  ;;  %v3694_v20 = vpop.permute.xlu1 %3693  ;;  %v7763_v13 = vld [vmem:[%s20322_s3 + $0x648] sm:$0xff]  ;;  %v7761_v53 = vld [vmem:[%s20322_s3 + $0x638] sm:$0xff] }
 0x7c5   :  { %v3700_v56 = vsel %vm634_vm0, %v17706_v11, %v3694_v20  ;;  %v3714_v63 = vmax.f32 %v3680_v33, %v3694_v20  ;;  %v7797_v11 = vld [vmem:[%s20322_s3 + $0x758] sm:$0xff]  ;;  %v7760_v33 = vld [vmem:[%s20322_s3 + $0x630] sm:$0xff] }
 0x7c6   :  { %v17818_v3 = vmax.f32 %v3679_v61, %v3700_v56  ;;  %v7758_v61 = vld [vmem:[%s20322_s3 + $0x620] sm:$0xff]  ;;  %v7609_v56 = vld [vmem:[%s20322_s3 + $0x178] sm:$0xff] }
 0x7c7   :  { %3734 = vrot.lane.b32.xlu0 %v3714_v63, %s12720_s23 }
 0x7c8   :  { %3732 = vrot.lane.b32.xlu1 %v17818_v3, %s12720_s23  ;;  %s12733_s23 = smov 90  }
 0x7cb   :  { %7512 = vrot.lane.b32.xlu0 %v7460_v6, %s12717_s19  ;;  %v17824_v36 = vld [vmem:[#allocation3 + $0x10] sm:$0xff]  ;;  %v17826_v23 = vld [vmem:[#allocation3 + $0x28] sm:$0xff] }
 0x7cc   :  { %7914 = vmatprep.mubr.f32.mxu1 %v17824_v36  ;;  %7510 = vrot.lane.b32.xlu1 %v17802_v48, %s12717_s19 }
 0x7cd   :  { %7915 = vmatmul.mubr.f32.vlgmr.msra.gmra.mxu1 %v17826_v23 }
 0x7ce   :  { %v7475_v30 = vpop.permute.xlu1 %7474  ;;  %7993 = vmatpush1.msra.mxu1 %v7799_v27  ;;  %v7654_v27 = vld [vmem:[%s20322_s3 + $0x2e0] sm:$0xff] }
 0x7cf   :  { %3766 = vrot.lane.b32.xlu0 %v3714_v63, %s12717_s19  ;;  %7994 = vmatprep.subr.mxu1 %v7797_v11  ;;  %v7484_v22 = vsel %vm953_vm7, %v17777_v45, %v7475_v30  ;;  %v7784_v45 = vld [vmem:[%s20322_s3 + $0x6f0] sm:$0xff]  ;;  %v7757_v11 = vld [vmem:[%s20322_s3 + $0x618] sm:$0xff] }
 0x7d0   :  { %v17848_v47 = vpop.permute.xlu0 %7476  ;;  %3764 = vrot.lane.b32.xlu1 %v17818_v3, %s12717_s19  ;;  %7995 = vmatpush1.msra.mxu1 %v7796_v21  ;;  %v7496_v49 = vmax.f32 %v17258_v42, %v7484_v22  ;;  %v7606_v21 = vld [vmem:[%s20322_s3 + $0x160] sm:$0xff]  ;;  %v7845_v22 = vld [vmem:[%s20322_s3 + $0x8d8] sm:$0xff]  ;;  %s12725_s19 = smov 58  }
 0x7d1   :  { %7996 = vmatprep.subr.mxu1 %v7794_v34  ;;  %v7485_v50 = vsel %vm953_vm7, %v7475_v30, %v17848_v47  ;;  %v7755_v30 = vld [vmem:[%s20322_s3 + $0x608] sm:$0xff] }
 0x7d2   :  { %v3729_v60 = vpop.permute.xlu1 %3728  ;;  %7997 = vmatpush1.msra.mxu1 %v7793_v14  ;;  %v7497_v18 = vmax.f32 %v17676_v28, %v7485_v50  ;;  %v7651_v34 = vld [vmem:[%s20322_s3 + $0x2c8] sm:$0xff]  ;;  %v7754_v14 = vld [vmem:[%s20322_s3 + $0x600] sm:$0xff]  ;;  %v7597_v50 = vld [vmem:[%s20322_s3 + $0x118] sm:$0xff] }
 0x7d3   :  { %7998 = vmatprep.subr.mxu1 %v7791_v62  ;;  %v3738_v2 = vsel %vm953_vm7, %v17779_v5, %v3729_v60  ;;  %v7603_v62 = vld [vmem:[%s20322_s3 + $0x148] sm:$0xff] }
 0x7d4   :  { %v17866_v54 = vpop.permute.xlu0 %3730  ;;  %7999 = vmatpush1.msra.mxu1 %v7790_v7  ;;  %v3750_v28 = vmax.f32 %v17307_v38, %v3738_v2  ;;  %v7848_v7 = vld [vmem:[%s20322_s3 + $0x8f0] sm:$0xff]  ;;  %v7839_v2 = vld [vmem:[%s20322_s3 + $0x8a8] sm:$0xff] }
 0x7d5   :  { %8000 = vmatprep.subr.mxu1 %v7788_v44  ;;  %v3739_v5 = vsel %vm953_vm7, %v3729_v60, %v17866_v54  ;;  %v7847_v60 = vld [vmem:[%s20322_s3 + $0x8e8] sm:$0xff]  ;;  %v7600_v44 = vld [vmem:[%s20322_s3 + $0x130] sm:$0xff] }
 0x7d6   :  { %v7507_v57 = vpop.permute.xlu1 %7506  ;;  %8001 = vmatpush1.msra.mxu1 %v7787_v58  ;;  %v3751_v16 = vmax.f32 %v17704_v0, %v3739_v5  ;;  %v7645_v58 = vld [vmem:[%s20322_s3 + $0x298] sm:$0xff]  ;;  %v7835_v5 = vld [vmem:[%s20322_s3 + $0x888] sm:$0xff] }
 0x7d7   :  { %v7516_v15 = vsel %vm1910_vm3, %v17781_v55, %v7507_v57  ;;  %8002 = vmatprep.subr.mxu1 %v7785_v35  ;;  %v7844_v35 = vld [vmem:[%s20322_s3 + $0x8d0] sm:$0xff] }
 0x7d8   :  { %v7528_v42 = vmax.f32 %v7496_v49, %v7516_v15  ;;  %v17888_v29 = vpop.permute.xlu0 %7508  ;;  %8003 = vmatpush1.msra.mxu1 %v7784_v45  ;;  %v7842_v45 = vld [vmem:[%s20322_s3 + $0x8c0] sm:$0xff]  ;;  %v7639_v15 = vld [vmem:[%s20322_s3 + $0x268] sm:$0xff] }
 0x7d9   :  { %v7517_v55 = vsel %vm1910_vm3, %v7507_v57, %v17888_v29  ;;  %8004 = vmatprep.subr.mxu1 %v7782_v9  ;;  %v7642_v49 = vld [vmem:[%s20322_s3 + $0x280] sm:$0xff]  ;;  %v7841_v57 = vld [vmem:[%s20322_s3 + $0x8b8] sm:$0xff] }
 0x7da   :  { %v7540_v10 = vrot.slane %v7528_v42, 4  ;;  %v7529_v43 = vmax.f32 %v7497_v18, %v7517_v55  ;;  %v3761_v17 = vpop.permute.xlu1 %3760  ;;  %8005 = vmatpush1.msra.mxu1 %v7781_v46  ;;  %v7594_v9 = vld [vmem:[%s20322_s3 + $0x100] sm:$0xff]  ;;  %v7591_v18 = vld [vmem:[%s20322_s3 + $0xe8] sm:$0xff]  ;;  %v7836_v42 = vld [vmem:[%s20322_s3 + $0x890] sm:$0xff] }
 0x7db   :  { %v3770_v37 = vsel %vm1910_vm3, %v17793_v32, %v3761_v17  ;;  %8006 = vmatprep.subr.mxu1 %v7779_v51  ;;  %v7838_v46 = vld [vmem:[%s20322_s3 + $0x8a0] sm:$0xff]  ;;  %v7636_v51 = vld [vmem:[%s20322_s3 + $0x250] sm:$0xff] }
 0x7dc   :  { %7552 = vst [vmem:[#allocation3 + $0x8] sm:$0xf0] %v7540_v10  ;;  %v7541_v38 = vrot.slane %v7529_v43, 4  ;;  %v3782_v26 = vmax.f32 %v3750_v28, %v3770_v37  ;;  %v17910_v6 = vpop.permute.xlu0 %3762  ;;  %8007 = vmatpush1.msra.mxu1 %v7778_v19  ;;  %v7588_v55 = vld [vmem:[%s20322_s3 + $0xd0] sm:$0xff]  ;;  %v7833_v19 = vld [vmem:[%s20322_s3 + $0x878] sm:$0xff] }
 0x7dd   :  { %v3771_v32 = vsel %vm1910_vm3, %v3761_v17, %v17910_v6  ;;  %8008 = vmatprep.subr.mxu1 %v7776_v8  ;;  %v7633_v28 = vld [vmem:[%s20322_s3 + $0x238] sm:$0xff]  ;;  %v7832_v10 = vld [vmem:[%s20322_s3 + $0x870] sm:$0xff]  ;;  %v7830_v17 = vld [vmem:[%s20322_s3 + $0x860] sm:$0xff] }
 0x7de   :  { %7553 = vst [vmem:[#allocation3] sm:$0xf0] %v7541_v38  ;;  %3788 = vst [vmem:[#allocation3 + $0x8] sm:$0xf] %v3782_v26  ;;  %v3783_v0 = vmax.f32 %v3751_v16, %v3771_v32  ;;  %8009 = vmatpush1.msra.mxu1 %v7775_v1  ;;  %v7585_v43 = vld [vmem:[%s20322_s3 + $0xb8] sm:$0xff]  ;;  %v7630_v8 = vld [vmem:[%s20322_s3 + $0x220] sm:$0xff] }
 0x7df   :  { %8010 = vmatprep.subr.mxu1 %v7773_v31  ;;  %v7829_v37 = vld [vmem:[%s20322_s3 + $0x858] sm:$0xff]  ;;  %v7582_v1 = vld [vmem:[%s20322_s3 + $0xa0] sm:$0xff]  ;;  %v7827_v16 = vld [vmem:[%s20322_s3 + $0x848] sm:$0xff] }
 0x7e0   :  { %3789 = vst [vmem:[#allocation3] sm:$0xf] %v3783_v0  ;;  %8011 = vmatpush1.msra.mxu1 %v7772_v52  ;;  %v7627_v38 = vld [vmem:[%s20322_s3 + $0x208] sm:$0xff]  ;;  %v7826_v26 = vld [vmem:[%s20322_s3 + $0x840] sm:$0xff]  ;;  %v7824_v32 = vld [vmem:[%s20322_s3 + $0x830] sm:$0xff] }
 0x7e1   :  { %8012 = vmatprep.subr.mxu1 %v7770_v25  ;;  %v7579_v31 = vld [vmem:[%s20322_s3 + $0x88] sm:$0xff]  ;;  %v7624_v52 = vld [vmem:[%s20322_s3 + $0x1f0] sm:$0xff] }
 0x7e2   :  { %8013 = vmatpush1.msra.mxu1 %v7769_v59  ;;  %v7823_v0 = vld [vmem:[%s20322_s3 + $0x828] sm:$0xff]  ;;  %v7576_v25 = vld [vmem:[%s20322_s3 + $0x70] sm:$0xff]  ;;  %v7821_v59 = vld [vmem:[%s20322_s3 + $0x818] sm:$0xff] }
 0x7e3   :  { %8014 = vmatprep.subr.mxu1 %v7767_v24  ;;  %v7621_v24 = vld [vmem:[%s20322_s3 + $0x1d8] sm:$0xff] }
 0x7e4   :  { %8015 = vmatpush1.msra.mxu1 %v7766_v39  ;;  %v7820_v39 = vld [vmem:[%s20322_s3 + $0x810] sm:$0xff] }
 0x7e5   :  { %8016 = vmatprep.subr.mxu1 %v7764_v12  ;;  %v17953_v63 = vld [vmem:[#allocation3 + $0x8] sm:$0xff]  ;;  %v7573_v12 = vld [vmem:[%s20322_s3 + $0x58] sm:$0xff] }
 0x7e6   :  { %8017 = vmatpush1.msra.mxu1 %v7763_v13  ;;  %v7818_v13 = vld [vmem:[%s20322_s3 + $0x800] sm:$0xff] }
 0x7e7   :  { %v17947_v20 = vld [vmem:[#allocation3] sm:$0xff]  ;;  %8018 = vmatprep.subr.mxu1 %v7761_v53 }
 0x7e8   :  { %7985 = vmatprep.mubr.f32.mxu0 %v17947_v20  ;;  %8019 = vmatpush1.msra.mxu1 %v7760_v33  ;;  %v7618_v53 = vld [vmem:[%s20322_s3 + $0x1c0] sm:$0xff]  ;;  %v7817_v33 = vld [vmem:[%s20322_s3 + $0x7f8] sm:$0xff] }
 0x7e9   :  { %7986 = vmatmul.mubr.f32.vlgmr.msra.gmra.mxu0 %v17953_v63  ;;  %8020 = vmatprep.subr.mxu1 %v7758_v61  ;;  %v7570_v61 = vld [vmem:[%s20322_s3 + $0x40] sm:$0xff] }
 0x7ea   :  { %12079 = vmatpush3.msra.mxu0 %v7609_v56  ;;  %8127 = vmatprep.mubr.f32.mxu0 %v17824_v36  ;;  %v7648_v36 = vld [vmem:[%s20322_s3 + $0x2b0] sm:$0xff]  ;;  %v7815_v56 = vld [vmem:[%s20322_s3 + $0x7e8] sm:$0xff] }
 0x7eb   :  { %12080 = vmatprep.subr.mxu0 %v7654_v27  ;;  %8021 = vmatpush1.msra.mxu1 %v7757_v11  ;;  %v7615_v27 = vld [vmem:[%s20322_s3 + $0x1a8] sm:$0xff]  ;;  %v7814_v11 = vld [vmem:[%s20322_s3 + $0x7e0] sm:$0xff] }
 0x7ec   :  { %12081 = vmatpush3.msra.mxu0 %v7606_v21  ;;  %8022 = vmatprep.subr.mxu1 %v7755_v30  ;;  %v7567_v21 = vld [vmem:[%s20322_s3 + $0x28] sm:$0xff]  ;;  %v7812_v30 = vld [vmem:[%s20322_s3 + $0x7d0] sm:$0xff] }
 0x7ed   :  { %12082 = vmatprep.subr.mxu0 %v7651_v34  ;;  %8023 = vmatpush1.msra.mxu1 %v7754_v14  ;;  %v7612_v34 = vld [vmem:[%s20322_s3 + $0x190] sm:$0xff]  ;;  %v7811_v14 = vld [vmem:[%s20322_s3 + $0x7c8] sm:$0xff] }
 0x7ee   :  { %12083 = vmatpush3.msra.mxu0 %v7603_v62  ;;  %8024 = vmatprep.subr.mxu1 %v7848_v7  ;;  %v7564_v62 = vld [vmem:[%s20322_s3 + $0x10] sm:$0xff]  ;;  %v7809_v7 = vld [vmem:[%s20322_s3 + $0x7b8] sm:$0xff] }
 0x7ef   :  { %12084 = vmatprep.subr.mxu0 %v7648_v36  ;;  %8025 = vmatpush2.msra.mxu1 %v7847_v60  ;;  %v7753_v36 = vld [vmem:[%s20322_s3 + $0x5f8] sm:$0xff] }
 0x7f0   :  { %12085 = vmatpush3.msra.mxu0 %v7600_v44  ;;  %8026 = vmatprep.subr.mxu1 %v7845_v22  ;;  %v7705_v60 = vld [vmem:[%s20322_s3 + $0x478] sm:$0xff]  ;;  %v7750_v44 = vld [vmem:[%s20322_s3 + $0x5e0] sm:$0xff]  ;;  %v7808_v22 = vld [vmem:[%s20322_s3 + $0x7b0] sm:$0xff] }
 0x7f1   :  { %12086 = vmatprep.subr.mxu0 %v7645_v58  ;;  %8027 = vmatpush2.msra.mxu1 %v7844_v35  ;;  %v7702_v58 = vld [vmem:[%s20322_s3 + $0x460] sm:$0xff] }
 0x7f2   :  { %12087 = vmatpush3.msra.mxu0 %v7597_v50  ;;  %8028 = vmatprep.subr.mxu1 %v7842_v45  ;;  %v7806_v35 = vld [vmem:[%s20322_s3 + $0x7a0] sm:$0xff]  ;;  %v7747_v50 = vld [vmem:[%s20322_s3 + $0x5c8] sm:$0xff] }
 0x7f3   :  { %12088 = vmatprep.subr.mxu0 %v7642_v49  ;;  %8029 = vmatpush2.msra.mxu1 %v7841_v57  ;;  %v7699_v45 = vld [vmem:[%s20322_s3 + $0x448] sm:$0xff]  ;;  %v7802_v57 = vld [vmem:[%s20322_s3 + $0x780] sm:$0xff] }
 0x7f4   :  { %12089 = vmatpush3.msra.mxu0 %v7594_v9  ;;  %8030 = vmatprep.subr.mxu1 %v7839_v2  ;;  %v7803_v49 = vld [vmem:[%s20322_s3 + $0x788] sm:$0xff]  ;;  %v7696_v9 = vld [vmem:[%s20322_s3 + $0x430] sm:$0xff]  ;;  %v7849_v2 = vld [vmem:[%s20322_s3 + $0x8f8] sm:$0xff] }
 0x7f5   :  { %12090 = vmatprep.subr.mxu0 %v7639_v15  ;;  %8031 = vmatpush2.msra.mxu1 %v7838_v46  ;;  %v7741_v15 = vld [vmem:[%s20322_s3 + $0x598] sm:$0xff] }
 0x7f6   :  { %12091 = vmatpush3.msra.mxu0 %v7591_v18  ;;  %8032 = vmatprep.subr.mxu1 %v7836_v42  ;;  %v7693_v46 = vld [vmem:[%s20322_s3 + $0x418] sm:$0xff]  ;;  %v7738_v18 = vld [vmem:[%s20322_s3 + $0x580] sm:$0xff] }
 0x7f7   :  { %12092 = vmatprep.subr.mxu0 %v7636_v51  ;;  %8033 = vmatpush2.msra.mxu1 %v7835_v5  ;;  %v7690_v42 = vld [vmem:[%s20322_s3 + $0x400] sm:$0xff]  ;;  %v7735_v51 = vld [vmem:[%s20322_s3 + $0x568] sm:$0xff] }
 0x7f8   :  { %12093 = vmatpush3.msra.mxu0 %v7588_v55  ;;  %8034 = vmatprep.subr.mxu1 %v7833_v19  ;;  %v7687_v5 = vld [vmem:[%s20322_s3 + $0x3e8] sm:$0xff]  ;;  %v7732_v55 = vld [vmem:[%s20322_s3 + $0x550] sm:$0xff] }
 0x7f9   :  { %12094 = vmatprep.subr.mxu0 %v7633_v28  ;;  %8035 = vmatpush2.msra.mxu1 %v7832_v10  ;;  %v7684_v19 = vld [vmem:[%s20322_s3 + $0x3d0] sm:$0xff]  ;;  %v7729_v28 = vld [vmem:[%s20322_s3 + $0x538] sm:$0xff] }
 0x7fa   :  { %12095 = vmatpush3.msra.mxu0 %v7585_v43  ;;  %8036 = vmatprep.subr.mxu1 %v7830_v17  ;;  %v7681_v10 = vld [vmem:[%s20322_s3 + $0x3b8] sm:$0xff]  ;;  %v7726_v43 = vld [vmem:[%s20322_s3 + $0x520] sm:$0xff] }
 0x7fb   :  { %12096 = vmatprep.subr.mxu0 %v7630_v8  ;;  %8037 = vmatpush2.msra.mxu1 %v7829_v37  ;;  %v7678_v17 = vld [vmem:[%s20322_s3 + $0x3a0] sm:$0xff]  ;;  %v7723_v8 = vld [vmem:[%s20322_s3 + $0x508] sm:$0xff] }
 0x7fc   :  { %12097 = vmatpush3.msra.mxu0 %v7582_v1  ;;  %8038 = vmatprep.subr.mxu1 %v7827_v16  ;;  %v7675_v37 = vld [vmem:[%s20322_s3 + $0x388] sm:$0xff]  ;;  %v7720_v1 = vld [vmem:[%s20322_s3 + $0x4f0] sm:$0xff] }
 0x7fd   :  { %12098 = vmatprep.subr.mxu0 %v7627_v38  ;;  %8039 = vmatpush2.msra.mxu1 %v7826_v26  ;;  %v7672_v16 = vld [vmem:[%s20322_s3 + $0x370] sm:$0xff]  ;;  %v7717_v38 = vld [vmem:[%s20322_s3 + $0x4d8] sm:$0xff] }
 0x7fe   :  { %12099 = vmatpush3.msra.mxu0 %v7579_v31  ;;  %8040 = vmatprep.subr.mxu1 %v7824_v32  ;;  %v7669_v26 = vld [vmem:[%s20322_s3 + $0x358] sm:$0xff]  ;;  %v7714_v31 = vld [vmem:[%s20322_s3 + $0x4c0] sm:$0xff] }
 0x7ff   :  { %12100 = vmatprep.subr.mxu0 %v7624_v52  ;;  %8041 = vmatpush2.msra.mxu1 %v7823_v0  ;;  %v7666_v32 = vld [vmem:[%s20322_s3 + $0x340] sm:$0xff]  ;;  %v7711_v52 = vld [vmem:[%s20322_s3 + $0x4a8] sm:$0xff] }
 0x800   :  { %12101 = vmatpush3.msra.mxu0 %v7576_v25  ;;  %8042 = vmatprep.subr.mxu1 %v7821_v59  ;;  %v7663_v0 = vld [vmem:[%s20322_s3 + $0x328] sm:$0xff]  ;;  %v7708_v25 = vld [vmem:[%s20322_s3 + $0x490] sm:$0xff] }
 0x801   :  { %12102 = vmatprep.subr.mxu0 %v7621_v24  ;;  %8043 = vmatpush2.msra.mxu1 %v7820_v39  ;;  %v7660_v59 = vld [vmem:[%s20322_s3 + $0x310] sm:$0xff] }
 0x802   :  { %12103 = vmatpush3.msra.mxu0 %v7573_v12  ;;  %8044 = vmatprep.subr.mxu1 %v7818_v13 }
 0x803   :  { %12104 = vmatprep.subr.mxu0 %v7618_v53  ;;  %8045 = vmatpush2.msra.mxu1 %v7817_v33 }
 0x804   :  { %12105 = vmatpush3.msra.mxu0 %v7570_v61  ;;  %8046 = vmatprep.subr.mxu1 %v7815_v56 }
 0x805   :  { %12106 = vmatprep.subr.mxu0 %v7615_v27  ;;  %8047 = vmatpush2.msra.mxu1 %v7814_v11 }
 0x806   :  { %12107 = vmatpush3.msra.mxu0 %v7567_v21  ;;  %8048 = vmatprep.subr.mxu1 %v7812_v30 }
 0x807   :  { %12108 = vmatprep.subr.mxu0 %v7612_v34  ;;  %8049 = vmatpush2.msra.mxu1 %v7811_v14 }
 0x808   :  { %12109 = vmatpush3.msra.mxu0 %v7564_v62  ;;  %8050 = vmatprep.subr.mxu1 %v7809_v7 }
 0x809   :  { %8128 = vmatmul.mubr.f32.vlgmr.msra.gmra.mxu0 %v17826_v23  ;;  %12113 = vmatprep.subr.mxu0 %v7753_v36  ;;  %v7805_v23 = vld [vmem:[%s20322_s3 + $0x798] sm:$0xff] }
 0x80a   :  { %12114 = vmatpush3.msra.mxu0 %v7705_v60  ;;  %8197 = vmatprep.mubr.f32.mxu0 %v17947_v20  ;;  %v7744_v20 = vld [vmem:[%s20322_s3 + $0x5b0] sm:$0xff] }
 0x80b   :  { %12115 = vmatprep.subr.mxu0 %v7750_v44  ;;  %8051 = vmatpush2.msra.mxu1 %v7808_v22 }
 0x80c   :  { %12116 = vmatpush3.msra.mxu0 %v7702_v58  ;;  %8052 = vmatprep.subr.mxu1 %v7806_v35 }
 0x80d   :  { %12117 = vmatprep.subr.mxu0 %v7747_v50  ;;  %8053 = vmatpush2.msra.mxu1 %v7805_v23  ;;  %v7843_v50 = vld [vmem:[%s20322_s3 + $0x8c8] sm:$0xff] }
 0x80e   :  { %12118 = vmatpush3.msra.mxu0 %v7699_v45  ;;  %8054 = vmatprep.subr.mxu1 %v7803_v49  ;;  %v7795_v23 = vld [vmem:[%s20322_s3 + $0x748] sm:$0xff]  ;;  %v7840_v45 = vld [vmem:[%s20322_s3 + $0x8b0] sm:$0xff] }
 0x80f   :  { %12119 = vmatprep.subr.mxu0 %v7744_v20  ;;  %8055 = vmatpush2.msra.mxu1 %v7802_v57  ;;  %v7792_v49 = vld [vmem:[%s20322_s3 + $0x730] sm:$0xff]  ;;  %v7837_v20 = vld [vmem:[%s20322_s3 + $0x898] sm:$0xff] }
 0x810   :  { %12120 = vmatpush3.msra.mxu0 %v7696_v9  ;;  %12148 = vmatprep.subr.mxu1 %v7849_v2  ;;  %v7789_v57 = vld [vmem:[%s20322_s3 + $0x718] sm:$0xff]  ;;  %v7834_v9 = vld [vmem:[%s20322_s3 + $0x880] sm:$0xff] }
 0x811   :  { %12121 = vmatprep.subr.mxu0 %v7741_v15  ;;  %v7786_v2 = vld [vmem:[%s20322_s3 + $0x700] sm:$0xff]  ;;  %v7831_v15 = vld [vmem:[%s20322_s3 + $0x868] sm:$0xff] }
 0x812   :  { %12122 = vmatpush3.msra.mxu0 %v7693_v46  ;;  %v7783_v46 = vld [vmem:[%s20322_s3 + $0x6e8] sm:$0xff] }
 0x813   :  { %12123 = vmatprep.subr.mxu0 %v7738_v18  ;;  %v7828_v18 = vld [vmem:[%s20322_s3 + $0x850] sm:$0xff] }
 0x814   :  { %12124 = vmatpush3.msra.mxu0 %v7690_v42  ;;  %v7780_v42 = vld [vmem:[%s20322_s3 + $0x6d0] sm:$0xff] }
 0x815   :  { %12125 = vmatprep.subr.mxu0 %v7735_v51  ;;  %v7825_v51 = vld [vmem:[%s20322_s3 + $0x838] sm:$0xff] }
 0x816   :  { %12126 = vmatpush3.msra.mxu0 %v7687_v5  ;;  %v7777_v5 = vld [vmem:[%s20322_s3 + $0x6b8] sm:$0xff] }
 0x817   :  { %12127 = vmatprep.subr.mxu0 %v7732_v55  ;;  %v7822_v55 = vld [vmem:[%s20322_s3 + $0x820] sm:$0xff] }
 0x818   :  { %12128 = vmatpush3.msra.mxu0 %v7684_v19  ;;  %v7774_v19 = vld [vmem:[%s20322_s3 + $0x6a0] sm:$0xff] }
 0x819   :  { %12129 = vmatprep.subr.mxu0 %v7729_v28  ;;  %v7819_v28 = vld [vmem:[%s20322_s3 + $0x808] sm:$0xff] }
 0x81a   :  { %12130 = vmatpush3.msra.mxu0 %v7681_v10  ;;  %v7771_v10 = vld [vmem:[%s20322_s3 + $0x688] sm:$0xff] }
 0x81b   :  { %12131 = vmatprep.subr.mxu0 %v7726_v43  ;;  %v7816_v43 = vld [vmem:[%s20322_s3 + $0x7f0] sm:$0xff] }
 0x81c   :  { %12132 = vmatpush3.msra.mxu0 %v7678_v17  ;;  %v7768_v17 = vld [vmem:[%s20322_s3 + $0x670] sm:$0xff] }
 0x81d   :  { %12133 = vmatprep.subr.mxu0 %v7723_v8  ;;  %v7813_v8 = vld [vmem:[%s20322_s3 + $0x7d8] sm:$0xff] }
 0x81e   :  { %12134 = vmatpush3.msra.mxu0 %v7675_v37  ;;  %v7765_v37 = vld [vmem:[%s20322_s3 + $0x658] sm:$0xff] }
 0x81f   :  { %12135 = vmatprep.subr.mxu0 %v7720_v1  ;;  %v7810_v1 = vld [vmem:[%s20322_s3 + $0x7c0] sm:$0xff] }
 0x820   :  { %12136 = vmatpush3.msra.mxu0 %v7672_v16  ;;  %v7762_v16 = vld [vmem:[%s20322_s3 + $0x640] sm:$0xff] }
 0x821   :  { %12137 = vmatprep.subr.mxu0 %v7717_v38  ;;  %v7807_v38 = vld [vmem:[%s20322_s3 + $0x7a8] sm:$0xff] }
 0x822   :  { %12138 = vmatpush3.msra.mxu0 %v7669_v26  ;;  %v7759_v26 = vld [vmem:[%s20322_s3 + $0x628] sm:$0xff] }
 0x823   :  { %12139 = vmatprep.subr.mxu0 %v7714_v31  ;;  %v7804_v31 = vld [vmem:[%s20322_s3 + $0x790] sm:$0xff] }
 0x824   :  { %12140 = vmatpush3.msra.mxu0 %v7666_v32  ;;  %v7756_v32 = vld [vmem:[%s20322_s3 + $0x610] sm:$0xff] }
 0x825   :  { %12141 = vmatprep.subr.mxu0 %v7711_v52 }
 0x826   :  { %12142 = vmatpush3.msra.mxu0 %v7663_v0 }
 0x827   :  { %12143 = vmatprep.subr.mxu0 %v7708_v25 }
 0x828   :  { %12144 = vmatpush3.msra.mxu0 %v7660_v59 }
 0x829   :  { %8198 = vmatmul.mubr.f32.vlgmr.msra.gmra.mxu0 %v17953_v63 }
 0x82a   :  { %9398 = vmatprep.mubr.f32.mxu0 %v20465_v41 }
 0x831   :  { %v7481_v24 = vpop.permute.xlu0 %7480 }
 0x832   :  { %v7479_v39 = vpop.permute.xlu1 %7478 }
 0x833   :  { %v7486_v53 = vsel %vm953_vm7, %v17848_v47, %v7479_v39  ;;  %v7487_v33 = vsel %vm953_vm7, %v7479_v39, %v7481_v24 }
 0x834   :  { %v7498_v56 = vmax.f32 %v17691_v40, %v7486_v53  ;;  %v7499_v27 = vmax.f32 %v17802_v48, %v7487_v33 }
 0x839   :  { %v3735_v12 = vpop.permute.xlu0 %3734 }
 0x83a   :  { %v3733_v13 = vpop.permute.xlu1 %3732 }
 0x83b   :  { %v3740_v63 = vsel %vm953_vm7, %v17866_v54, %v3733_v13  ;;  %v3741_v21 = vsel %vm953_vm7, %v3733_v13, %v3735_v12  ;;  %vm8517_vm7 = vcmask 752640  }
 0x83c   :  { %v3752_v7 = vmax.f32 %v17718_v4, %v3740_v63  ;;  %v3753_v40 = vmax.f32 %v17818_v3, %v3741_v21  ;;  %v7801_v4 = vld [vmem:[%s20322_s3 + $0x778] sm:$0xff]  ;;  %v7846_v3 = vld [vmem:[%s20322_s3 + $0x8e0] sm:$0xff] }
 0x83d   :  { %v7513_v61 = vpop.permute.xlu0 %7512 }
 0x83e   :  { %v7511_v11 = vpop.permute.xlu1 %7510 }
 0x83f   :  { %v7518_v30 = vsel %vm1910_vm3, %v17888_v29, %v7511_v11  ;;  %v7519_v34 = vsel %vm1910_vm3, %v7511_v11, %v7513_v61 }
 0x840   :  { %v7530_v14 = vmax.f32 %v7498_v56, %v7518_v30  ;;  %v7531_v47 = vmax.f32 %v7499_v27, %v7519_v34 }
 0x841   :  { %v3767_v62 = vpop.permute.xlu0 %3766 }
 0x842   :  { %v7542_v36 = vrot.slane %v7530_v14, 4  ;;  %v7543_v48 = vrot.slane %v7531_v47, 4  ;;  %v3765_v60 = vpop.permute.xlu1 %3764 }
 0x843   :  { %v3772_v54 = vsel %vm1910_vm3, %v17910_v6, %v3765_v60  ;;  %v3773_v44 = vsel %vm1910_vm3, %v3765_v60, %v3767_v62  ;;  %v7798_v6 = vld [vmem:[%s20322_s3 + $0x760] sm:$0xff]  ;;  %s12724_s3 = smov 56   ;;  %vm8599_vm3 = vcmask 621568  }
 0x844   :  { %7554 = vst [vmem:[#allocation3 + $0x18] sm:$0xf0] %v7542_v36  ;;  %7555 = vst [vmem:[#allocation3 + $0x20] sm:$0xf0] %v7543_v48  ;;  %v3784_v29 = vmax.f32 %v3752_v7, %v3772_v54  ;;  %v3785_v22 = vmax.f32 %v3753_v40, %v3773_v44 }
 0x846   :  { %3790 = vst [vmem:[#allocation3 + $0x18] sm:$0xf] %v3784_v29  ;;  %3791 = vst [vmem:[#allocation3 + $0x20] sm:$0xf] %v3785_v22 }
 0x84d   :  { %v7561_v58 = vld [vmem:[#allocation3 + $0x20] sm:$0xff]  ;;  %v18271_v35 = vld [vmem:[#allocation3 + $0x18] sm:$0xff] }
 0x84e   :  { %8056 = vmatprep.mubr.f32.mxu1 %v7561_v58 }
 0x84f   :  { %8057 = vmatmul.mubr.f32.vlgmr.msra.gmra.mxu1 %v18271_v35 }
 0x850   :  { %12149 = vmatpush3.msra.mxu1 %v7801_v4  ;;  %8267 = vmatprep.mubr.f32.mxu1 %v7561_v58 }
 0x851   :  { %12150 = vmatprep.subr.mxu1 %v7846_v3 }
 0x852   :  { %12151 = vmatpush3.msra.mxu1 %v7798_v6 }
 0x853   :  { %12152 = vmatprep.subr.mxu1 %v7843_v50 }
 0x854   :  { %12153 = vmatpush3.msra.mxu1 %v7795_v23 }
 0x855   :  { %12154 = vmatprep.subr.mxu1 %v7840_v45 }
 0x856   :  { %12155 = vmatpush3.msra.mxu1 %v7792_v49 }
 0x857   :  { %12156 = vmatprep.subr.mxu1 %v7837_v20 }
 0x858   :  { %12157 = vmatpush3.msra.mxu1 %v7789_v57 }
 0x859   :  { %12158 = vmatprep.subr.mxu1 %v7834_v9 }
 0x85a   :  { %12159 = vmatpush3.msra.mxu1 %v7786_v2 }
 0x85b   :  { %12160 = vmatprep.subr.mxu1 %v7831_v15 }
 0x85c   :  { %12161 = vmatpush3.msra.mxu1 %v7783_v46 }
 0x85d   :  { %12162 = vmatprep.subr.mxu1 %v7828_v18 }
 0x85e   :  { %12163 = vmatpush3.msra.mxu1 %v7780_v42 }
 0x85f   :  { %12164 = vmatprep.subr.mxu1 %v7825_v51 }
 0x860   :  { %12165 = vmatpush3.msra.mxu1 %v7777_v5 }
 0x861   :  { %12166 = vmatprep.subr.mxu1 %v7822_v55 }
 0x862   :  { %12167 = vmatpush3.msra.mxu1 %v7774_v19 }
 0x863   :  { %12168 = vmatprep.subr.mxu1 %v7819_v28 }
 0x864   :  { %12169 = vmatpush3.msra.mxu1 %v7771_v10 }
 0x865   :  { %12170 = vmatprep.subr.mxu1 %v7816_v43 }
 0x866   :  { %12171 = vmatpush3.msra.mxu1 %v7768_v17 }
 0x867   :  { %12172 = vmatprep.subr.mxu1 %v7813_v8 }
 0x868   :  { %12173 = vmatpush3.msra.mxu1 %v7765_v37 }
 0x869   :  { %12174 = vmatprep.subr.mxu1 %v7810_v1 }
 0x86a   :  { %12175 = vmatpush3.msra.mxu1 %v7762_v16 }
 0x86b   :  { %12176 = vmatprep.subr.mxu1 %v7807_v38 }
 0x86c   :  { %12177 = vmatpush3.msra.mxu1 %v7759_v26 }
 0x86d   :  { %12178 = vmatprep.subr.mxu1 %v7804_v31 }
 0x86e   :  { %12179 = vmatpush3.msra.mxu1 %v7756_v32 }
 0x86f   :  { %8268 = vmatmul.mubr.f32.vlgmr.msra.gmra.mxu1 %v18271_v35 }
 0x870   :  { %9475 = vmatprep.mubr.f32.mxu1 %v20465_v41 }
 0x88d   :  { %v7916_v52 = vpop.f32.mrf.mxu1 }
 0x88f   :  { %v7918_v25 = vpop.f32.mrf.mxu1 }
 0x8a9   :  { %v7987_v0 = vpop.f32.mrf.mxu0 }
 0x8aa   :  { %v7988_v24 = vadd.f32 %v7987_v0, %v7916_v52 }
 0x8ab   :  { %v7989_v59 = vpop.f32.mrf.mxu0 }
 0x8ac   :  { %v7990_v12 = vadd.f32 %v7989_v59, %v7918_v25 }
 0x8c9   :  { %v12110_v11 = vpop.f32.mrf.mxu0 }
 0x8cb   :  { %v12111_v21 = vpop.f32.mrf.mxu0 }
 0x8cc   :  { %v12112_v60 = vadd.f32 %v12111_v21, %v12110_v11 }
 0x8e9   :  { %v12145_v30 = vpop.f32.mrf.mxu0 }
 0x8eb   :  { %v12146_v62 = vpop.f32.mrf.mxu0 }
 0x8ec   :  { %v12147_v40 = vadd.f32 %v12146_v62, %v12145_v30 }
 0x8ee   :  { %v8200_v44 = vadd.f32 %v12147_v40, %v12112_v60 }
 0x90f   :  { %v8058_v39 = vpop.f32.mrf.mxu1 }
 0x910   :  { %v8059_v13 = vadd.f32 %v8058_v39, %v7988_v24 }
 0x911   :  { %v8060_v53 = vpop.f32.mrf.mxu1 }
 0x912   :  { %8273 = vst [vmem:[#allocation4] sm:$0xff] %v8059_v13  ;;  %v8061_v33 = vadd.f32 %v8060_v53, %v7990_v12 }
 0x914   :  { %8274 = vst [vmem:[#allocation4 + $0x8] sm:$0xff] %v8061_v33 }
 0x919   :  { %v8751_v63 = vld [vmem:[#allocation4] sm:$0xf]  ;;  %v9188_v4 = vld [vmem:[#allocation4] sm:$0xf0] }
 0x91a   :  { %v8710_v35 = vld [vmem:[#allocation4] sm:$0xf]  ;;  %v9194_v3 = vrot.slane %v9188_v4, 4  ;;  %v9227_v20 = vld [vmem:[#allocation4] sm:$0xf0] }
 0x91b   :  { %v8752_v61 = vld [vmem:[#allocation4 + $0x8] sm:$0xf]  ;;  %v9228_v56 = vld [vmem:[#allocation4 + $0x8] sm:$0xf0]  ;;  %v9233_v2 = vrot.slane %v9227_v20, 4 }
 0x91c   :  { %8759 = vrot.lane.b32.xlu1 %v8752_v61, %s12724_s3  ;;  %v9234_v27 = vrot.slane %v9228_v56, 4  ;;  %v8711_v34 = vld [vmem:[#allocation4 + $0x8] sm:$0xf]  ;;  %v9189_v7 = vld [vmem:[#allocation4 + $0x8] sm:$0xf0] }
 0x91d   :  { %v8730_v14 = vld [vmem:[#allocation4 + $0x8] sm:$0xf]  ;;  %v9195_v36 = vrot.slane %v9189_v7, 4  ;;  %v9210_v22 = vld [vmem:[#allocation4 + $0x8] sm:$0xf0] }
 0x91e   :  { %v8736_v47 = vrot.slane %v8730_v14, 4  ;;  %v8670_v23 = vld [vmem:[#allocation4 + $0x8] sm:$0xf]  ;;  %v9150_v9 = vld [vmem:[#allocation4 + $0x8] sm:$0xf0] }
 0x91f   :  { %v8689_v45 = vld [vmem:[#allocation4 + $0x8] sm:$0xf]  ;;  %v9156_v15 = vrot.slane %v9150_v9, 4  ;;  %v9171_v42 = vld [vmem:[#allocation4 + $0x8] sm:$0xf0] }
 0x920   :  { %9238 = vrot.lane.b32.xlu1 %v9234_v27, %s12724_s3  ;;  %v8695_v57 = vrot.slane %v8689_v45, 4  ;;  %v8669_v55 = vld [vmem:[#allocation4] sm:$0xf]  ;;  %v9149_v19 = vld [vmem:[#allocation4] sm:$0xf0] }
 0x921   :  { %v9155_v10 = vrot.slane %v9149_v19, 4  ;;  %v8729_v17 = vld [vmem:[#allocation4] sm:$0xf]  ;;  %v8629_v8 = vld [vmem:[#allocation4 + $0x8] sm:$0xf] }
 0x922   :  { %v8648_v37 = vld [vmem:[#allocation4 + $0x8] sm:$0xf]  ;;  %v8735_v1 = vrot.slane %v8729_v17, 4  ;;  %v9111_v38 = vld [vmem:[#allocation4 + $0x8] sm:$0xf0] }
 0x923   :  { %v8654_v16 = vrot.slane %v8648_v37, 4  ;;  %v9209_v26 = vld [vmem:[#allocation4] sm:$0xf0]  ;;  %v9117_v31 = vrot.slane %v9111_v38, 4  ;;  %v8277_v32 = vld [vmem:[#allocation4 + $0x8] sm:$0xf] }
 0x924   :  { %8757 = vrot.lane.b32.xlu1 %v8751_v63, %s12724_s3  ;;  %8279 = vst [vmem:[#allocation5 + $0xf8] sm:$0xf] %v8277_v32  ;;  %v8276_v52 = vld [vmem:[#allocation4] sm:$0xf]  ;;  %v8771_v0 = vld [vmem:[#allocation4 + $0x8] sm:$0xf0] }
 0x925   :  { %v8770_v25 = vld [vmem:[#allocation4] sm:$0xf0]  ;;  %8278 = vst [vmem:[#allocation5 + $0x20] sm:$0xf] %v8276_v52  ;;  %v8775_v59 = vrot.slane %v8771_v0, 4 }
 0x926   :  { %v8774_v24 = vrot.slane %v8770_v25, 4  ;;  %v9132_v13 = vld [vmem:[#allocation4 + $0x8] sm:$0xf0]  ;;  %v8628_v61 = vld [vmem:[#allocation4] sm:$0xf] }
 0x927   :  { %8779 = vst [vmem:[#allocation5 + $0x188] sm:$0xf] %v8775_v59  ;;  %v9110_v56 = vld [vmem:[#allocation4] sm:$0xf0]  ;;  %v8688_v21 = vld [vmem:[#allocation4] sm:$0xf] }
 0x928   :  { %8718 = vrot.lane.b32.xlu1 %v8711_v34, %s12725_s19  ;;  %8778 = vst [vmem:[#allocation5 + $0x198] sm:$0xf] %v8774_v24  ;;  %v9116_v11 = vrot.slane %v9110_v56, 4  ;;  %v8588_v30 = vld [vmem:[#allocation4 + $0x8] sm:$0xf]  ;;  %v8694_v14 = vrot.slane %v8688_v21, 4 }
 0x929   :  { %v8607_v34 = vld [vmem:[#allocation4 + $0x8] sm:$0xf]  ;;  %v9072_v62 = vld [vmem:[#allocation4 + $0x8] sm:$0xf0]  ;;  %v9170_v7 = vld [vmem:[#allocation4] sm:$0xf0] }
 0x92a   :  { %v9078_v40 = vrot.slane %v9072_v62, 4  ;;  %v9093_v60 = vld [vmem:[#allocation4 + $0x8] sm:$0xf0]  ;;  %v9131_v20 = vld [vmem:[#allocation4] sm:$0xf0] }
 0x92b   :  { %v8546_v19 = vld [vmem:[#allocation4] sm:$0xf]  ;;  %v8525_v38 = vld [vmem:[#allocation4 + $0x8] sm:$0xf]  ;;  %v8994_v52 = vld [vmem:[#allocation4 + $0x8] sm:$0xf0] }
 0x92c   :  { %8740 = vrot.lane.b32.xlu1 %v8736_v47, %s12726_s20  ;;  %v8613_v47 = vrot.slane %v8607_v34, 4  ;;  %v8606_v37 = vld [vmem:[#allocation4] sm:$0xf]  ;;  %v8531_v32 = vrot.slane %v8525_v38, 4  ;;  %v9092_v0 = vld [vmem:[#allocation4] sm:$0xf0] }
 0x92d   :  { %v9000_v59 = vrot.slane %v8994_v52, 4 }
 0x92f   :  { %v12180_v48 = vpop.f32.mrf.mxu1 }
 0x930   :  { %9199 = vrot.lane.b32.xlu1 %v9195_v36, %s12725_s19 }
 0x931   :  { %v12181_v54 = vpop.f32.mrf.mxu1 }
 0x932   :  { %v12182_v29 = vadd.f32 %v12181_v54, %v12180_v48 }
 0x934   :  { %v8270_v58 = vadd.f32 %v12182_v29, %v8200_v44  ;;  %9217 = vrot.lane.b32.xlu1 %v9210_v22, %s12726_s20  ;;  %v8587_v29 = vld [vmem:[#allocation4] sm:$0xf]  ;;  %v9071_v22 = vld [vmem:[#allocation4] sm:$0xf0] }
 0x936   :  { %8275 = vst [vmem:[#allocation4 + $0x10] sm:$0xff] %v8270_v58 }
 0x938   :  { %8716 = vrot.lane.b32.xlu1 %v8710_v35, %s12725_s19  ;;  %v9077_v35 = vrot.slane %v9071_v22, 4 }
 0x93c   :  { %9197 = vrot.lane.b32.xlu1 %v9194_v3, %s12725_s19  ;;  %v8647_v3 = vld [vmem:[#allocation4] sm:$0xf] }
 0x93d   :  { %v8753_v6 = vld [vmem:[#allocation4 + $0x10] sm:$0xf]  ;;  %v9229_v50 = vld [vmem:[#allocation4 + $0x10] sm:$0xf0] }
 0x93e   :  { %8761 = vrot.lane.b32.xlu0 %v8753_v6, %s12724_s3  ;;  %v9235_v49 = vrot.slane %v9229_v50, 4  ;;  %v8712_v46 = vld [vmem:[#allocation4 + $0x10] sm:$0xf]  ;;  %v9190_v5 = vld [vmem:[#allocation4 + $0x10] sm:$0xf0] }
 0x93f   :  { %v8731_v18 = vld [vmem:[#allocation4 + $0x10] sm:$0xf]  ;;  %v9196_v28 = vrot.slane %v9190_v5, 4  ;;  %v9211_v43 = vld [vmem:[#allocation4 + $0x10] sm:$0xf0] }
 0x940   :  { %8677 = vrot.lane.b32.xlu1 %v8670_v23, %s12727_s2  ;;  %v8737_v51 = vrot.slane %v8731_v18, 4  ;;  %v8671_v39 = vld [vmem:[#allocation4 + $0x10] sm:$0xf]  ;;  %v9151_v33 = vld [vmem:[#allocation4 + $0x10] sm:$0xf0]  ;;  %v8653_v23 = vrot.slane %v8647_v3, 4 }
 0x941   :  { %v8690_v12 = vld [vmem:[#allocation4 + $0x10] sm:$0xf]  ;;  %v9157_v27 = vrot.slane %v9151_v33, 4  ;;  %v9172_v63 = vld [vmem:[#allocation4 + $0x10] sm:$0xf0] }
 0x942   :  { %9240 = vrot.lane.b32.xlu0 %v9235_v49, %s12724_s3  ;;  %v8696_v53 = vrot.slane %v8690_v12, 4  ;;  %v8630_v36 = vld [vmem:[#allocation4 + $0x10] sm:$0xf]  ;;  %v9112_v44 = vld [vmem:[#allocation4 + $0x10] sm:$0xf0] }
 0x943   :  { %v8649_v48 = vld [vmem:[#allocation4 + $0x10] sm:$0xf]  ;;  %v9118_v58 = vrot.slane %v9112_v44, 4  ;;  %v9133_v4 = vld [vmem:[#allocation4 + $0x10] sm:$0xf0] }
 0x944   :  { %8699 = vrot.lane.b32.xlu1 %v8695_v57, %s12728_s22  ;;  %v8655_v54 = vrot.slane %v8649_v48, 4  ;;  %v8547_v6 = vld [vmem:[#allocation4 + $0x8] sm:$0xf]  ;;  %v9033_v49 = vld [vmem:[#allocation4 + $0x8] sm:$0xf0] }
 0x945   :  { %v8566_v50 = vld [vmem:[#allocation4 + $0x8] sm:$0xf]  ;;  %v9039_v9 = vrot.slane %v9033_v49, 4  ;;  %v9054_v18 = vld [vmem:[#allocation4 + $0x8] sm:$0xf0] }
 0x946   :  { %9236 = vrot.lane.b32.xlu0 %v9233_v2, %s12724_s3  ;;  %v8572_v45 = vrot.slane %v8566_v50, 4  ;;  %v8589_v2 = vld [vmem:[#allocation4 + $0x10] sm:$0xf]  ;;  %v9053_v49 = vld [vmem:[#allocation4] sm:$0xf0]  ;;  %s12745_s3 = smov 125  }
 0x947   :  { %v8548_v24 = vld [vmem:[#allocation4 + $0x10] sm:$0xf] }
 0x948   :  { %9160 = vrot.lane.b32.xlu1 %v9156_v15, %s12727_s2  ;;  %v8608_v15 = vld [vmem:[#allocation4 + $0x10] sm:$0xf] }
 0x94a   :  { %8720 = vrot.lane.b32.xlu0 %v8712_v46, %s12725_s19 }
 0x94c   :  { %9178 = vrot.lane.b32.xlu1 %v9171_v42, %s12728_s22  ;;  %v8614_v42 = vrot.slane %v8608_v15, 4 }
 0x94e   :  { %8742 = vrot.lane.b32.xlu0 %v8737_v51, %s12726_s20  ;;  %v9073_v51 = vld [vmem:[#allocation4 + $0x10] sm:$0xf0] }
 0x950   :  { %8675 = vrot.lane.b32.xlu1 %v8669_v55, %s12727_s2 }
 0x952   :  { %9201 = vrot.lane.b32.xlu0 %v9196_v28, %s12725_s19  ;;  %v9032_v28 = vld [vmem:[#allocation4] sm:$0xf0] }
 0x953   :  { %v9038_v17 = vrot.slane %v9032_v28, 4 }
 0x954   :  { %9158 = vrot.lane.b32.xlu1 %v9155_v10, %s12727_s2  ;;  %v9079_v10 = vrot.slane %v9073_v51, 4 }
 0x956   :  { %9219 = vrot.lane.b32.xlu0 %v9211_v43, %s12726_s20 }
 0x958   :  { %8636 = vrot.lane.b32.xlu1 %v8629_v8, %s12729_s24  ;;  %v9094_v8 = vld [vmem:[#allocation4 + $0x10] sm:$0xf0] }
 0x95a   :  { %8738 = vrot.lane.b32.xlu0 %v8735_v1, %s12726_s20 }
 0x95c   :  { %8658 = vrot.lane.b32.xlu1 %v8654_v16, %s12730_s16  ;;  %v8506_v16 = vld [vmem:[#allocation4 + $0x8] sm:$0xf] }
 0x95e   :  { %9215 = vrot.lane.b32.xlu0 %v9209_v26, %s12726_s20  ;;  %v8612_v26 = vrot.slane %v8606_v37, 4  ;;  %v8954_v37 = vld [vmem:[#allocation4] sm:$0xf0] }
 0x95f   :  { %v8960_v52 = vrot.slane %v8954_v37, 4  ;;  %v8877_v37 = vld [vmem:[#allocation4 + $0x8] sm:$0xf0] }
 0x960   :  { %9121 = vrot.lane.b32.xlu1 %v9117_v31, %s12729_s24 }
 0x962   :  { %8679 = vrot.lane.b32.xlu0 %v8671_v39, %s12727_s2  ;;  %v8567_v39 = vld [vmem:[#allocation4 + $0x10] sm:$0xf] }
 0x963   :  { %v8573_v33 = vrot.slane %v8567_v39, 4  ;;  %v8524_v39 = vld [vmem:[#allocation4] sm:$0xf] }
 0x964   :  { %9139 = vrot.lane.b32.xlu1 %v9132_v13, %s12730_s16 }
 0x966   :  { %8701 = vrot.lane.b32.xlu0 %v8696_v53, %s12728_s22  ;;  %v9015_v53 = vld [vmem:[#allocation4 + $0x8] sm:$0xf0] }
 0x968   :  { %8634 = vrot.lane.b32.xlu1 %v8628_v61, %s12729_s24  ;;  %v9034_v61 = vld [vmem:[#allocation4 + $0x10] sm:$0xf0] }
 0x96a   :  { %9162 = vrot.lane.b32.xlu0 %v9157_v27, %s12727_s2  ;;  %s12747_s2 = smov 64  }
 0x96c   :  { %9119 = vrot.lane.b32.xlu1 %v9116_v11, %s12729_s24  ;;  %v8505_v11 = vld [vmem:[#allocation4] sm:$0xf] }
 0x96e   :  { %9180 = vrot.lane.b32.xlu0 %v9172_v63, %s12728_s22  ;;  %v8993_v63 = vld [vmem:[#allocation4] sm:$0xf0] }
 0x970   :  { %8595 = vrot.lane.b32.xlu1 %v8588_v30, %s12731_s1  ;;  %v9040_v30 = vrot.slane %v9034_v61, 4  ;;  %v8530_v61 = vrot.slane %v8524_v39, 4  ;;  %v8425_v39 = vld [vmem:[#allocation4 + $0x10] sm:$0xf] }
 0x972   :  { %8697 = vrot.lane.b32.xlu0 %v8694_v14, %s12728_s22 }
 0x974   :  { %8617 = vrot.lane.b32.xlu1 %v8613_v47, %s12732_s17  ;;  %v8999_v47 = vrot.slane %v8993_v63, 4  ;;  %v8916_v63 = vld [vmem:[#allocation4 + $0x8] sm:$0xf0] }
 0x976   :  { %9176 = vrot.lane.b32.xlu0 %v9170_v7, %s12728_s22 }
 0x978   :  { %9082 = vrot.lane.b32.xlu1 %v9078_v40, %s12731_s1  ;;  %v9055_v40 = vld [vmem:[#allocation4 + $0x10] sm:$0xf0] }
 0x97a   :  { %8638 = vrot.lane.b32.xlu0 %v8630_v36, %s12729_s24  ;;  %v8565_v36 = vld [vmem:[#allocation4] sm:$0xf] }
 0x97c   :  { %9100 = vrot.lane.b32.xlu1 %v9093_v60, %s12732_s17  ;;  %v8465_v60 = vld [vmem:[#allocation4 + $0x8] sm:$0xf] }
 0x97e   :  { %8660 = vrot.lane.b32.xlu0 %v8655_v54, %s12730_s16  ;;  %v8484_v54 = vld [vmem:[#allocation4 + $0x8] sm:$0xf] }
 0x97f   :  { %v8490_v3 = vrot.slane %v8484_v54, 4 }
 0x980   :  { %8593 = vrot.lane.b32.xlu1 %v8587_v29, %s12731_s1  ;;  %v8571_v29 = vrot.slane %v8565_v36, 4 }
 0x982   :  { %9123 = vrot.lane.b32.xlu0 %v9118_v58, %s12729_s24 }
 0x984   :  { %9080 = vrot.lane.b32.xlu1 %v9077_v35, %s12731_s1 }
 0x986   :  { %9141 = vrot.lane.b32.xlu0 %v9133_v4, %s12730_s16 }
 0x988   :  { %8554 = vrot.lane.b32.xlu1 %v8547_v6, %s12733_s23  ;;  %v8955_v6 = vld [vmem:[#allocation4 + $0x8] sm:$0xf0] }
 0x98a   :  { %8656 = vrot.lane.b32.xlu0 %v8653_v23, %s12730_s16 }
 0x98c   :  { %8576 = vrot.lane.b32.xlu1 %v8572_v45, %s12734_s25 }
 0x98e   :  { %9137 = vrot.lane.b32.xlu0 %v9131_v20, %s12730_s16  ;;  %v18419_v57 = vpop.permute.xlu1 %8759 }
 0x990   :  { %9043 = vrot.lane.b32.xlu1 %v9039_v9, %s12733_s23 }
 0x992   :  { %8597 = vrot.lane.b32.xlu0 %v8589_v2, %s12731_s1  ;;  %v18423_v46 = vpop.permute.xlu1 %9238 }
 0x994   :  { %9061 = vrot.lane.b32.xlu1 %v9054_v18, %s12734_s25  ;;  %v8526_v18 = vld [vmem:[#allocation4 + $0x10] sm:$0xf] }
 0x996   :  { %8619 = vrot.lane.b32.xlu0 %v8614_v42, %s12732_s17  ;;  %v8758_v5 = vpop.permute.xlu1 %8757 }
 0x997   :  { %v8764_v55 = vsel %vm8763_vm9, %v8758_v5, %v18419_v57  ;;  %v8976_v5 = vld [vmem:[#allocation4 + $0x8] sm:$0xf0] }
 0x998   :  { %8768 = vst [vmem:[#allocation5 + $0xc8] sm:$0xf] %v8764_v55  ;;  %8552 = vrot.lane.b32.xlu1 %v8546_v19, %s12733_s23  ;;  %v8532_v19 = vrot.slane %v8526_v18, 4 }
 0x99a   :  { %9084 = vrot.lane.b32.xlu0 %v9079_v10, %s12731_s1  ;;  %v18431_v43 = vpop.permute.xlu1 %8718  ;;  %v8995_v10 = vld [vmem:[#allocation4 + $0x10] sm:$0xf0] }
 0x99b   :  { %v9001_v38 = vrot.slane %v8995_v10, 4 }
 0x99c   :  { %9041 = vrot.lane.b32.xlu1 %v9038_v17, %s12733_s23 }
 0x99e   :  { %9102 = vrot.lane.b32.xlu0 %v9094_v8, %s12732_s17  ;;  %v18435_v1 = vpop.permute.xlu1 %8740  ;;  %v8464_v8 = vld [vmem:[#allocation4] sm:$0xf] }
 0x99f   :  { %v9298_v35 = vld [vmem:[#allocation5 + $0xc8] sm:$0xf] }
 0x9a0   :  { %8513 = vrot.lane.b32.xlu1 %v8506_v16, %s12735_s26 }
 0x9a2   :  { %8615 = vrot.lane.b32.xlu0 %v8612_v26, %s12732_s17  ;;  %v18439_v31 = vpop.permute.xlu1 %9199 }
 0x9a4   :  { %8535 = vrot.lane.b32.xlu1 %v8531_v32, %s12736_s27 }
 0x9a6   :  { %9098 = vrot.lane.b32.xlu0 %v9092_v0, %s12732_s17  ;;  %v18443_v25 = vpop.permute.xlu1 %9217 }
 0x9a8   :  { %9004 = vrot.lane.b32.xlu1 %v9000_v59, %s12735_s26 }
 0x9aa   :  { %8556 = vrot.lane.b32.xlu0 %v8548_v24, %s12733_s23  ;;  %v8717_v12 = vpop.permute.xlu1 %8716  ;;  %v9016_v24 = vld [vmem:[#allocation4 + $0x10] sm:$0xf0] }
 0x9ab   :  { %v8723_v13 = vsel %vm8722_vm10, %v8717_v12, %v18431_v43 }
 0x9ac   :  { %8727 = vst [vmem:[#allocation5 + $0xd8] sm:$0xf] %v8723_v13  ;;  %9022 = vrot.lane.b32.xlu1 %v9015_v53, %s12736_s27  ;;  %v8424_v13 = vld [vmem:[#allocation4 + $0x8] sm:$0xf] }
 0x9ad   :  { %v8443_v53 = vld [vmem:[#allocation4 + $0x8] sm:$0xf] }
 0x9ae   :  { %8578 = vrot.lane.b32.xlu0 %v8573_v33, %s12734_s25  ;;  %v9198_v56 = vpop.permute.xlu1 %9197 }
 0x9af   :  { %v9203_v27 = vsel %vm8722_vm10, %v9198_v56, %v18439_v31 }
 0x9b0   :  { %9207 = vst [vmem:[#allocation5 + $0x68] sm:$0xf] %v9203_v27  ;;  %v8762_v21 = vpop.permute.xlu0 %8761  ;;  %8511 = vrot.lane.b32.xlu1 %v8505_v11, %s12735_s26  ;;  %v8449_v11 = vrot.slane %v8443_v53, 4 }
 0x9b1   :  { %v8765_v34 = vsel %vm8763_vm9, %v18419_v57, %v8762_v21  ;;  %v8961_v57 = vrot.slane %v8955_v6, 4 }
 0x9b2   :  { %8769 = vst [vmem:[#allocation5 + $0x90] sm:$0xf] %v8765_v34  ;;  %9045 = vrot.lane.b32.xlu0 %v9040_v30, %s12733_s23  ;;  %v18457_v14 = vpop.permute.xlu1 %8677 }
 0x9b4   :  { %v9241_v62 = vpop.permute.xlu0 %9240  ;;  %9002 = vrot.lane.b32.xlu1 %v8999_v47, %s12735_s26  ;;  %v9014_v47 = vld [vmem:[#allocation4] sm:$0xf0] }
 0x9b5   :  { %v9243_v7 = vsel %vm8763_vm9, %v18423_v46, %v9241_v62  ;;  %v8922_v62 = vrot.slane %v8916_v63, 4 }
 0x9b6   :  { %9247 = vst [vmem:[#allocation5 + $0x60] sm:$0xf] %v9243_v7  ;;  %9063 = vrot.lane.b32.xlu0 %v9055_v40, %s12734_s25  ;;  %v18463_v48 = vpop.permute.xlu1 %8699 }
 0x9b8   :  { %v9237_v44 = vpop.permute.xlu0 %9236  ;;  %8472 = vrot.lane.b32.xlu1 %v8465_v60, %s12737_s29  ;;  %v8466_v60 = vld [vmem:[#allocation4 + $0x10] sm:$0xf] }
 0x9b9   :  { %v9242_v22 = vsel %vm8763_vm9, %v9237_v44, %v18423_v46  ;;  %v9299_v58 = vld [vmem:[#allocation5 + $0x90] sm:$0xf]  ;;  %v8507_v46 = vld [vmem:[#allocation4 + $0x10] sm:$0xf]  ;;  %vm8476_vm9 = vcmask 769024  }
 0x9ba   :  { %9246 = vst [vmem:[#allocation5 + $0xf0] sm:$0xf] %v9242_v22  ;;  %11996 = vmatprep.subr.msk.mxu0 %vm9321_vm11, %v9299_v58  ;;  %8574 = vrot.lane.b32.xlu0 %v8571_v29, %s12734_s25  ;;  %v18470_v4 = vpop.permute.xlu1 %9160  ;;  %v8937_v29 = vld [vmem:[#allocation4 + $0x8] sm:$0xf0] }
 0x9bb   :  { %11997 = vmatpush1.msk.msra.mxu0 %vm9321_vm11, %v9298_v35 }
 0x9bc   :  { %v8721_v50 = vpop.permute.xlu0 %8720  ;;  %8494 = vrot.lane.b32.xlu1 %v8490_v3, %s12738_s30  ;;  %v8956_v3 = vld [vmem:[#allocation4 + $0x10] sm:$0xf0] }
 0x9bd   :  { %v8724_v23 = vsel %vm8722_vm10, %v18431_v43, %v8721_v50  ;;  %v9301_v45 = vld [vmem:[#allocation5 + $0x60] sm:$0xf] }
 0x9be   :  { %8728 = vst [vmem:[#allocation5 + $0x108] sm:$0xf] %v8724_v23  ;;  %12000 = vmatprep.subr.msk.mxu1 %vm9321_vm11, %v9301_v45  ;;  %9059 = vrot.lane.b32.xlu0 %v9053_v49, %s12734_s25  ;;  %v18478_v20 = vpop.permute.xlu1 %9178  ;;  %v8423_v23 = vld [vmem:[#allocation4] sm:$0xf]  ;;  %v8915_v45 = vld [vmem:[#allocation4] sm:$0xf0] }
 0x9c0   :  { %v8743_v9 = vpop.permute.xlu0 %8742  ;;  %8965 = vrot.lane.b32.xlu1 %v8961_v57, %s12737_s29  ;;  %v8962_v57 = vrot.slane %v8956_v3, 4 }
 0x9c1   :  { %v8746_v2 = vsel %vm8744_vm12, %v18435_v1, %v8743_v9  ;;  %v9300_v15 = vld [vmem:[#allocation5 + $0xf0] sm:$0xf] }
 0x9c2   :  { %8750 = vst [vmem:[#allocation5 + $0x108] sm:$0xf0] %v8746_v2  ;;  %12001 = vmatpush1.msk.msra.mxu1 %vm9321_vm11, %v9300_v15  ;;  %8515 = vrot.lane.b32.xlu0 %v8507_v46, %s12735_s26  ;;  %v8676_v42 = vpop.permute.xlu1 %8675  ;;  %v8921_v15 = vrot.slane %v8915_v45, 4  ;;  %v8838_v45 = vld [vmem:[#allocation4 + $0x8] sm:$0xf0]  ;;  %vm8435_vm11 = vcmask 883712  }
 0x9c3   :  { %v8682_v51 = vsel %vm8681_vm13, %v8676_v42, %v18457_v14  ;;  %v8977_v42 = vld [vmem:[#allocation4 + $0x10] sm:$0xf0] }
 0x9c4   :  { %8686 = vst [vmem:[#allocation5 + $0x140] sm:$0xf] %v8682_v51  ;;  %v9202_v55 = vpop.permute.xlu0 %9201  ;;  %8983 = vrot.lane.b32.xlu1 %v8976_v5, %s12738_s30  ;;  %v8483_v51 = vld [vmem:[#allocation4] sm:$0xf] }
 0x9c5   :  { %v9204_v28 = vsel %vm8722_vm10, %v18439_v31, %v9202_v55  ;;  %v8383_v55 = vld [vmem:[#allocation4 + $0x8] sm:$0xf]  ;;  %v8489_v10 = vrot.slane %v8483_v51, 4  ;;  %v8384_v51 = vld [vmem:[#allocation4 + $0x10] sm:$0xf]  ;;  %vm8498_vm10 = vcmask 760832  }
 0x9c6   :  { %9208 = vst [vmem:[#allocation5 + $0xa0] sm:$0xf] %v9204_v28  ;;  %8537 = vrot.lane.b32.xlu0 %v8532_v19, %s12736_s27  ;;  %v9159_v43 = vpop.permute.xlu1 %9158  ;;  %v8402_v19 = vld [vmem:[#allocation4 + $0x8] sm:$0xf] }
 0x9c7   :  { %v9164_v17 = vsel %vm8681_vm13, %v9159_v43, %v18470_v4 }
 0x9c8   :  { %9168 = vst [vmem:[#allocation5 + $0x178] sm:$0xf] %v9164_v17  ;;  %v9220_v16 = vpop.permute.xlu0 %9219  ;;  %8470 = vrot.lane.b32.xlu1 %v8464_v8, %s12737_s29  ;;  %v8408_v8 = vrot.slane %v8402_v19, 4 }
 0x9c9   :  { %v9222_v26 = vsel %vm8744_vm12, %v18443_v25, %v9220_v16  ;;  %v9295_v32 = vld [vmem:[#allocation5 + $0x108] sm:$0xff] }
 0x9ca   :  { %9226 = vst [vmem:[#allocation5 + $0xa0] sm:$0xf0] %v9222_v26  ;;  %9342 = vmatprep.subr.mxu0 %v9295_v32  ;;  %9006 = vrot.lane.b32.xlu0 %v9001_v38, %s12735_s26  ;;  %v18497_v31 = vpop.permute.xlu1 %8636  ;;  %v8975_v32 = vld [vmem:[#allocation4] sm:$0xf0] }
 0x9cc   :  { %v8739_v0 = vpop.permute.xlu0 %8738  ;;  %8963 = vrot.lane.b32.xlu1 %v8960_v52, %s12737_s29  ;;  %v8883_v52 = vrot.slane %v8877_v37, 4 }
 0x9cd   :  { %v8745_v59 = vsel %vm8744_vm12, %v8739_v0, %v18435_v1 }
 0x9ce   :  { %8749 = vst [vmem:[#allocation5 + $0xd8] sm:$0xf0] %v8745_v59  ;;  %9024 = vrot.lane.b32.xlu0 %v9016_v24, %s12736_s27  ;;  %v18503_v12 = vpop.permute.xlu1 %8658 }
 0x9d0   :  { %v9216_v33 = vpop.permute.xlu0 %9215  ;;  %8431 = vrot.lane.b32.xlu1 %v8424_v13, %s12739_s12 }
 0x9d1   :  { %v9221_v56 = vsel %vm8744_vm12, %v9216_v33, %v18443_v25  ;;  %v9297_v27 = vld [vmem:[#allocation5 + $0xa0] sm:$0xff]  ;;  %v8898_v33 = vld [vmem:[#allocation4 + $0x8] sm:$0xf0]  ;;  %vm8457_vm12 = vcmask 875520  }
 0x9d2   :  { %9225 = vst [vmem:[#allocation5 + $0x68] sm:$0xf0] %v9221_v56  ;;  %9419 = vmatprep.subr.mxu1 %v9297_v27  ;;  %8533 = vrot.lane.b32.xlu0 %v8530_v61, %s12736_s27  ;;  %v18509_v1 = vpop.permute.xlu1 %9121 }
 0x9d4   :  { %v8680_v21 = vpop.permute.xlu0 %8679  ;;  %8453 = vrot.lane.b32.xlu1 %v8449_v11, %s12740_s0  ;;  %v8917_v11 = vld [vmem:[#allocation4 + $0x10] sm:$0xf0] }
 0x9d5   :  { %v8683_v30 = vsel %vm8681_vm13, %v18457_v14, %v8680_v21  ;;  %v9294_v34 = vld [vmem:[#allocation5 + $0xd8] sm:$0xff] }
 0x9d6   :  { %8687 = vst [vmem:[#allocation5 + $0x158] sm:$0xf] %v8683_v30  ;;  %9343 = vmatpush1.msra.mxu0 %v9294_v34  ;;  %9020 = vrot.lane.b32.xlu0 %v9014_v47, %s12736_s27  ;;  %v18515_v25 = vpop.permute.xlu1 %9139  ;;  %v8485_v14 = vld [vmem:[#allocation4 + $0x10] sm:$0xf]  ;;  %v8382_v30 = vld [vmem:[#allocation4] sm:$0xf] }
 0x9d7   :  { %v8491_v58 = vrot.slane %v8485_v14, 4  ;;  %v8876_v34 = vld [vmem:[#allocation4] sm:$0xf0] }
 0x9d8   :  { %v8702_v7 = vpop.permute.xlu0 %8701  ;;  %8926 = vrot.lane.b32.xlu1 %v8922_v62, %s12739_s12  ;;  %v8923_v62 = vrot.slane %v8917_v11, 4 }
 0x9d9   :  { %v8705_v40 = vsel %vm8703_vm14, %v18463_v48, %v8702_v7  ;;  %v9296_v36 = vld [vmem:[#allocation5 + $0x68] sm:$0xff] }
 0x9da   :  { %8709 = vst [vmem:[#allocation5 + $0x158] sm:$0xf0] %v8705_v40  ;;  %9420 = vmatpush1.msra.mxu1 %v9296_v36  ;;  %8474 = vrot.lane.b32.xlu0 %v8466_v60, %s12737_s29  ;;  %v8635_v54 = vpop.permute.xlu1 %8634  ;;  %v8882_v36 = vrot.slane %v8876_v34, 4  ;;  %v8799_v34 = vld [vmem:[#allocation4 + $0x8] sm:$0xf0] }
 0x9db   :  { %v8641_v44 = vsel %vm8640_vm15, %v8635_v54, %v18497_v31  ;;  %v8938_v54 = vld [vmem:[#allocation4 + $0x10] sm:$0xf0] }
 0x9dc   :  { %8645 = vst [vmem:[#allocation5 + $0xb0] sm:$0xf] %v8641_v44  ;;  %v9163_v22 = vpop.permute.xlu0 %9162  ;;  %8944 = vrot.lane.b32.xlu1 %v8937_v29, %s12740_s0  ;;  %v8442_v44 = vld [vmem:[#allocation4] sm:$0xf] }
 0x9dd   :  { %v9165_v35 = vsel %vm8681_vm13, %v18470_v4, %v9163_v22  ;;  %v8342_v22 = vld [vmem:[#allocation4 + $0x8] sm:$0xf]  ;;  %v8448_v3 = vrot.slane %v8442_v44, 4  ;;  %v8343_v44 = vld [vmem:[#allocation4 + $0x10] sm:$0xf]  ;;  %vm8394_vm13 = vcmask 900096  }
 0x9de   :  { %9169 = vst [vmem:[#allocation5 + $0x130] sm:$0xf] %v9165_v35  ;;  %8496 = vrot.lane.b32.xlu0 %v8491_v58, %s12738_s30  ;;  %v9120_v6 = vpop.permute.xlu1 %9119  ;;  %v8361_v58 = vld [vmem:[#allocation4 + $0x8] sm:$0xf] }
 0x9df   :  { %v9125_v50 = vsel %vm8640_vm15, %v9120_v6, %v18509_v1 }
 0x9e0   :  { %9129 = vst [vmem:[#allocation5 + $0x160] sm:$0xf] %v9125_v50  ;;  %v9181_v49 = vpop.permute.xlu0 %9180  ;;  %8429 = vrot.lane.b32.xlu1 %v8423_v23, %s12739_s12  ;;  %v8367_v23 = vrot.slane %v8361_v58, 4 }
 0x9e1   :  { %v9183_v9 = vsel %vm8703_vm14, %v18478_v20, %v9181_v49  ;;  %v9291_v2 = vld [vmem:[#allocation5 + $0x158] sm:$0xff] }
 0x9e2   :  { %9187 = vst [vmem:[#allocation5 + $0x130] sm:$0xf0] %v9183_v9  ;;  %9344 = vmatprep.subr.mxu0 %v9291_v2  ;;  %8967 = vrot.lane.b32.xlu0 %v8962_v57, %s12737_s29  ;;  %v18533_v4 = vpop.permute.xlu1 %8595  ;;  %v8936_v2 = vld [vmem:[#allocation4] sm:$0xf0] }
 0x9e4   :  { %v8698_v46 = vpop.permute.xlu0 %8697  ;;  %8924 = vrot.lane.b32.xlu1 %v8921_v15, %s12739_s12  ;;  %v8844_v15 = vrot.slane %v8838_v45, 4 }
 0x9e5   :  { %v8704_v18 = vsel %vm8703_vm14, %v8698_v46, %v18463_v48 }
 0x9e6   :  { %8708 = vst [vmem:[#allocation5 + $0x140] sm:$0xf0] %v8704_v18  ;;  %8985 = vrot.lane.b32.xlu0 %v8977_v42, %s12738_s30  ;;  %v18539_v5 = vpop.permute.xlu1 %8617 }
 0x9e8   :  { %v9177_v28 = vpop.permute.xlu0 %9176  ;;  %8390 = vrot.lane.b32.xlu1 %v8383_v55, %s12741_s13 }
 0x9e9   :  { %v9182_v43 = vsel %vm8703_vm14, %v9177_v28, %v18478_v20  ;;  %v9293_v17 = vld [vmem:[#allocation5 + $0x130] sm:$0xff]  ;;  %vm8416_vm14 = vcmask 891904  }
 0x9ea   :  { %9186 = vst [vmem:[#allocation5 + $0x178] sm:$0xf0] %v9182_v43  ;;  %9421 = vmatprep.subr.mxu1 %v9293_v17  ;;  %8492 = vrot.lane.b32.xlu0 %v8489_v10, %s12738_s30  ;;  %v18545_v48 = vpop.permute.xlu1 %9082  ;;  %v8859_v28 = vld [vmem:[#allocation4 + $0x8] sm:$0xf0] }
 0x9ec   :  { %v8639_v16 = vpop.permute.xlu0 %8638  ;;  %8412 = vrot.lane.b32.xlu1 %v8408_v8, %s12742_s14  ;;  %v8878_v8 = vld [vmem:[#allocation4 + $0x10] sm:$0xf0] }
 0x9ed   :  { %v8642_v38 = vsel %vm8640_vm15, %v18497_v31, %v8639_v16  ;;  %v9290_v26 = vld [vmem:[#allocation5 + $0x140] sm:$0xff]  ;;  %v8444_v31 = vld [vmem:[#allocation4 + $0x10] sm:$0xf] }
 0x9ee   :  { %8646 = vst [vmem:[#allocation5 + $0x50] sm:$0xf] %v8642_v38  ;;  %9345 = vmatpush1.msra.mxu0 %v9290_v26  ;;  %8981 = vrot.lane.b32.xlu0 %v8975_v32, %s12738_s30  ;;  %v18551_v20 = vpop.permute.xlu1 %9100  ;;  %v8450_v56 = vrot.slane %v8444_v31, 4  ;;  %v8341_v38 = vld [vmem:[#allocation4] sm:$0xf] }
 0x9ef   :  { %v8837_v26 = vld [vmem:[#allocation4] sm:$0xf0] }
 0x9f0   :  { %v8661_v0 = vpop.permute.xlu0 %8660  ;;  %8887 = vrot.lane.b32.xlu1 %v8883_v52, %s12741_s13  ;;  %v8884_v52 = vrot.slane %v8878_v8, 4 }
 0x9f1   :  { %v8664_v59 = vsel %vm8662_vm2, %v18503_v12, %v8661_v0  ;;  %v9292_v24 = vld [vmem:[#allocation5 + $0x178] sm:$0xff] }
 0x9f2   :  { %8668 = vst [vmem:[#allocation5 + $0x50] sm:$0xf0] %v8664_v59  ;;  %9422 = vmatpush1.msra.mxu1 %v9292_v24  ;;  %8433 = vrot.lane.b32.xlu0 %v8425_v39, %s12739_s12  ;;  %v8594_v13 = vpop.permute.xlu1 %8593  ;;  %v8843_v24 = vrot.slane %v8837_v26, 4  ;;  %v8280_v26 = vld [vmem:[#allocation4] sm:$0xf] }
 0x9f3   :  { %v8600_v53 = vsel %vm8599_vm3, %v8594_v13, %v18533_v4  ;;  %v8899_v13 = vld [vmem:[#allocation4 + $0x10] sm:$0xf0] }
 0x9f4   :  { %8604 = vst [vmem:[#allocation5 + $0xd0] sm:$0xf] %v8600_v53  ;;  %v9124_v61 = vpop.permute.xlu0 %9123  ;;  %8905 = vrot.lane.b32.xlu1 %v8898_v33, %s12742_s14  ;;  %v8401_v53 = vld [vmem:[#allocation4] sm:$0xf] }
 0x9f5   :  { %v9126_v27 = vsel %vm8640_vm15, %v18509_v1, %v9124_v61  ;;  %v8302_v61 = vld [vmem:[#allocation4 + $0x8] sm:$0xf]  ;;  %v8407_v11 = vrot.slane %v8401_v53, 4  ;;  %vm8353_vm15 = vcmask 1014784  }
 0x9f6   :  { %9130 = vst [vmem:[#allocation5 + $0x190] sm:$0xf] %v9126_v27  ;;  %8455 = vrot.lane.b32.xlu0 %v8450_v56, %s12740_s0  ;;  %v9081_v63 = vpop.permute.xlu1 %9080  ;;  %v8320_v56 = vld [vmem:[#allocation4 + $0x8] sm:$0xf] }
 0x9f7   :  { %v9086_v21 = vsel %vm8599_vm3, %v9081_v63, %v18545_v48 }
 0x9f8   :  { %9090 = vst [vmem:[#allocation5 + $0x58] sm:$0xf] %v9086_v21  ;;  %v9142_v47 = vpop.permute.xlu0 %9141  ;;  %8388 = vrot.lane.b32.xlu1 %v8382_v30, %s12741_s13  ;;  %v8326_v30 = vrot.slane %v8320_v56, 4 }
 0x9f9   :  { %v9144_v7 = vsel %vm8662_vm2, %v18515_v25, %v9142_v47  ;;  %v9287_v40 = vld [vmem:[#allocation5 + $0x50] sm:$0xff] }
 0x9fa   :  { %9148 = vst [vmem:[#allocation5 + $0x190] sm:$0xf0] %v9144_v7  ;;  %9346 = vmatprep.subr.mxu0 %v9287_v40  ;;  %8928 = vrot.lane.b32.xlu0 %v8923_v62, %s12739_s12  ;;  %v18569_v1 = vpop.permute.xlu1 %8554  ;;  %v8897_v40 = vld [vmem:[#allocation4] sm:$0xf0] }
 0x9fc   :  { %v8657_v60 = vpop.permute.xlu0 %8656  ;;  %8885 = vrot.lane.b32.xlu1 %v8882_v36, %s12741_s13  ;;  %v8805_v36 = vrot.slane %v8799_v34, 4 }
 0x9fd   :  { %v8663_v14 = vsel %vm8662_vm2, %v8657_v60, %v18503_v12 }
 0x9fe   :  { %8667 = vst [vmem:[#allocation5 + $0xb0] sm:$0xf0] %v8663_v14  ;;  %8946 = vrot.lane.b32.xlu0 %v8938_v54, %s12740_s0  ;;  %v18575_v29 = vpop.permute.xlu1 %8576 }
 0xa00   :  { %v9138_v35 = vpop.permute.xlu0 %9137  ;;  %8349 = vrot.lane.b32.xlu1 %v8342_v22, %s12743_s15 }
 0xa01   :  { %v9143_v6 = vsel %vm8662_vm2, %v9138_v35, %v18515_v25  ;;  %v9289_v50 = vld [vmem:[#allocation5 + $0x190] sm:$0xff]  ;;  %vm8375_vm2 = vcmask 908288  }
 0xa02   :  { %9147 = vst [vmem:[#allocation5 + $0x160] sm:$0xf0] %v9143_v6  ;;  %9423 = vmatprep.subr.mxu1 %v9289_v50  ;;  %8451 = vrot.lane.b32.xlu0 %v8448_v3, %s12740_s0  ;;  %v18581_v12 = vpop.permute.xlu1 %9043  ;;  %v8820_v35 = vld [vmem:[#allocation4 + $0x8] sm:$0xf0] }
 0xa04   :  { %v8598_v49 = vpop.permute.xlu0 %8597  ;;  %8371 = vrot.lane.b32.xlu1 %v8367_v23, %s12744_s18  ;;  %v8839_v23 = vld [vmem:[#allocation4 + $0x10] sm:$0xf0] }
 0xa05   :  { %v8601_v57 = vsel %vm8599_vm3, %v18533_v4, %v8598_v49  ;;  %v9286_v9 = vld [vmem:[#allocation5 + $0xb0] sm:$0xff]  ;;  %v8403_v4 = vld [vmem:[#allocation4 + $0x10] sm:$0xf] }
 0xa06   :  { %8605 = vst [vmem:[#allocation5 + $0x168] sm:$0xf] %v8601_v57  ;;  %9347 = vmatpush1.msra.mxu0 %v9286_v9  ;;  %8942 = vrot.lane.b32.xlu0 %v8936_v2, %s12740_s0  ;;  %v18587_v25 = vpop.permute.xlu1 %9061  ;;  %v8409_v43 = vrot.slane %v8403_v4, 4  ;;  %v8301_v57 = vld [vmem:[#allocation4] sm:$0xf] }
 0xa07   :  { %v8798_v9 = vld [vmem:[#allocation4] sm:$0xf0] }
 0xa08   :  { %v8620_v46 = vpop.permute.xlu0 %8619  ;;  %8848 = vrot.lane.b32.xlu1 %v8844_v15, %s12743_s15  ;;  %v8845_v15 = vrot.slane %v8839_v23, 4 }
 0xa09   :  { %v8623_v18 = vsel %vm8621_vm4, %v18539_v5, %v8620_v46  ;;  %v9288_v42 = vld [vmem:[#allocation5 + $0x160] sm:$0xff] }
 0xa0a   :  { %8627 = vst [vmem:[#allocation5 + $0x168] sm:$0xf0] %v8623_v18  ;;  %9424 = vmatpush1.msra.mxu1 %v9288_v42  ;;  %8392 = vrot.lane.b32.xlu0 %v8384_v51, %s12741_s13  ;;  %v8553_v55 = vpop.permute.xlu1 %8552  ;;  %v8804_v42 = vrot.slane %v8798_v9, 4  ;;  %v8281_v51 = vld [vmem:[#allocation4 + $0x8] sm:$0xf] }
 0xa0b   :  { %v8559_v19 = vsel %vm8558_vm5, %v8553_v55, %v18569_v1 }
 0xa0c   :  { %8563 = vst [vmem:[#allocation5 + $0x150] sm:$0xf] %v8559_v19  ;;  %v9085_v10 = vpop.permute.xlu0 %9084  ;;  %8866 = vrot.lane.b32.xlu1 %v8859_v28, %s12744_s18  ;;  %v8860_v19 = vld [vmem:[#allocation4 + $0x10] sm:$0xf0]  ;;  %v8360_v28 = vld [vmem:[#allocation4] sm:$0xf] }
 0xa0d   :  { %v9087_v17 = vsel %vm8599_vm3, %v18545_v48, %v9085_v10  ;;  %v8366_v8 = vrot.slane %v8360_v28, 4  ;;  %vm8334_vm3 = vcmask 1022976  }
 0xa0e   :  { %9091 = vst [vmem:[#allocation5 + $0x40] sm:$0xf] %v9087_v17  ;;  %8414 = vrot.lane.b32.xlu0 %v8409_v43, %s12742_s14  ;;  %v9042_v37 = vpop.permute.xlu1 %9041  ;;  %v8287_v43 = vrot.slane %v8281_v51, 4  ;;  %v8782_v51 = vld [vmem:[#allocation4 + $0x10] sm:$0xf0] }
 0xa0f   :  { %v9047_v16 = vsel %vm8558_vm5, %v9042_v37, %v18581_v12 }
 0xa10   :  { %9051 = vst [vmem:[#allocation5 + $0x120] sm:$0xf] %v9047_v16  ;;  %v9103_v32 = vpop.permute.xlu0 %9102  ;;  %8347 = vrot.lane.b32.xlu1 %v8341_v38, %s12743_s15  ;;  %v8781_v38 = vld [vmem:[#allocation4 + $0x8] sm:$0xf0] }
 0xa11   :  { %v9105_v0 = vsel %vm8621_vm4, %v18551_v20, %v9103_v32  ;;  %v9283_v59 = vld [vmem:[#allocation5 + $0x168] sm:$0xff] }
 0xa12   :  { %9109 = vst [vmem:[#allocation5 + $0x40] sm:$0xf0] %v9105_v0  ;;  %9348 = vmatprep.subr.mxu0 %v9283_v59  ;;  %8889 = vrot.lane.b32.xlu0 %v8884_v52, %s12741_s13  ;;  %v18605_v48 = vpop.permute.xlu1 %8513  ;;  %v8858_v59 = vld [vmem:[#allocation4] sm:$0xf0] }
 0xa14   :  { %v8616_v39 = vpop.permute.xlu0 %8615  ;;  %8846 = vrot.lane.b32.xlu1 %v8843_v24, %s12743_s15  ;;  %v8286_v24 = vrot.slane %v8280_v26, 4 }
 0xa15   :  { %v8622_v31 = vsel %vm8621_vm4, %v8616_v39, %v18539_v5 }
 0xa16   :  { %8626 = vst [vmem:[#allocation5 + $0xd0] sm:$0xf0] %v8622_v31  ;;  %8907 = vrot.lane.b32.xlu0 %v8899_v13, %s12742_s14  ;;  %v18611_v33 = vpop.permute.xlu1 %8535  ;;  %v8303_v31 = vld [vmem:[#allocation4 + $0x10] sm:$0xf] }
 0xa18   :  { %v9099_v27 = vpop.permute.xlu0 %9098  ;;  %8309 = vrot.lane.b32.xlu1 %v8302_v61, %s12714_s21  ;;  %v8321_v61 = vld [vmem:[#allocation4 + $0x10] sm:$0xf] }
 0xa19   :  { %v9104_v63 = vsel %vm8621_vm4, %v9099_v27, %v18551_v20  ;;  %v9285_v21 = vld [vmem:[#allocation5 + $0x40] sm:$0xff]  ;;  %vm9314_vm4 = vcmask 818176  }
 0xa1a   :  { %9108 = vst [vmem:[#allocation5 + $0x58] sm:$0xf0] %v9104_v63  ;;  %9425 = vmatprep.subr.mxu1 %v9285_v21  ;;  %8410 = vrot.lane.b32.xlu0 %v8407_v11, %s12742_s14  ;;  %v18617_v5 = vpop.permute.xlu1 %9004  ;;  %v8327_v63 = vrot.slane %v8321_v61, 4 }
 0xa1c   :  { %v8557_v47 = vpop.permute.xlu0 %8556  ;;  %8330 = vrot.lane.b32.xlu1 %v8326_v30, %s12745_s3  ;;  %v8800_v30 = vld [vmem:[#allocation4 + $0x10] sm:$0xf0] }
 0xa1d   :  { %v8560_v62 = vsel %vm8558_vm5, %v18569_v1, %v8557_v47  ;;  %v9282_v7 = vld [vmem:[#allocation5 + $0xd0] sm:$0xff]  ;;  %v8362_v1 = vld [vmem:[#allocation4 + $0x10] sm:$0xf] }
 0xa1e   :  { %8564 = vst [vmem:[#allocation5 + $0x170] sm:$0xf] %v8560_v62  ;;  %9349 = vmatpush1.msra.mxu0 %v9282_v7  ;;  %8903 = vrot.lane.b32.xlu0 %v8897_v40, %s12742_s14  ;;  %v18623_v20 = vpop.permute.xlu1 %9022  ;;  %v8368_v6 = vrot.slane %v8362_v1, 4  ;;  %v8806_v7 = vrot.slane %v8800_v30, 4 }
 0xa20   :  { %v8579_v60 = vpop.permute.xlu0 %8578  ;;  %8809 = vrot.lane.b32.xlu1 %v8805_v36, %s12714_s21 }
 0xa21   :  { %v8582_v14 = vsel %vm8580_vm6, %v18575_v29, %v8579_v60  ;;  %v9284_v54 = vld [vmem:[#allocation5 + $0x58] sm:$0xff] }
 0xa22   :  { %8586 = vst [vmem:[#allocation5 + $0x170] sm:$0xf0] %v8582_v14  ;;  %9426 = vmatpush1.msra.mxu1 %v9284_v54  ;;  %8351 = vrot.lane.b32.xlu0 %v8343_v44, %s12743_s15  ;;  %v8512_v22 = vpop.permute.xlu1 %8511  ;;  %v8821_v54 = vld [vmem:[#allocation4 + $0x10] sm:$0xf0]  ;;  %v8319_v44 = vld [vmem:[#allocation4] sm:$0xf] }
 0xa23   :  { %v8518_v58 = vsel %vm8517_vm7, %v8512_v22, %v18605_v48 }
 0xa24   :  { %8522 = vst [vmem:[#allocation5 + $0x78] sm:$0xf] %v8518_v58  ;;  %v9046_v3 = vpop.permute.xlu0 %9045  ;;  %8827 = vrot.lane.b32.xlu1 %v8820_v35, %s12745_s3  ;;  %v8325_v58 = vrot.slane %v8319_v44, 4 }
 0xa25   :  { %v9048_v50 = vsel %vm8558_vm5, %v18581_v12, %v9046_v3 }
 0xa26   :  { %9052 = vst [vmem:[#allocation5 + $0x128] sm:$0xf] %v9048_v50  ;;  %8373 = vrot.lane.b32.xlu0 %v8368_v6, %s12744_s18  ;;  %v9003_v45 = vpop.permute.xlu1 %9002 }
 0xa27   :  { %v9008_v49 = vsel %vm8517_vm7, %v9003_v45, %v18617_v5  ;;  %v8819_v45 = vld [vmem:[#allocation4] sm:$0xf0] }
 0xa28   :  { %9012 = vst [vmem:[#allocation5 + $0x80] sm:$0xf] %v9008_v49  ;;  %v9064_v2 = vpop.permute.xlu0 %9063  ;;  %8307 = vrot.lane.b32.xlu1 %v8301_v57, %s12714_s21  ;;  %v8282_v49 = vld [vmem:[#allocation4 + $0x10] sm:$0xf] }
 0xa29   :  { %v9066_v46 = vsel %vm8580_vm6, %v18587_v25, %v9064_v2  ;;  %v9279_v18 = vld [vmem:[#allocation5 + $0x170] sm:$0xff]  ;;  %v8288_v9 = vrot.slane %v8282_v49, 4 }
 0xa2a   :  { %9070 = vst [vmem:[#allocation5 + $0x128] sm:$0xf0] %v9066_v46  ;;  %9350 = vmatprep.subr.mxu0 %v9279_v18  ;;  %8850 = vrot.lane.b32.xlu0 %v8845_v15, %s12743_s15  ;;  %v18641_v12 = vpop.permute.xlu1 %8472 }
 0xa2c   :  { %v8575_v4 = vpop.permute.xlu0 %8574  ;;  %8807 = vrot.lane.b32.xlu1 %v8804_v42, %s12714_s21 }
 0xa2d   :  { %v8581_v55 = vsel %vm8580_vm6, %v8575_v4, %v18575_v29 }
 0xa2e   :  { %8585 = vst [vmem:[#allocation5 + $0x150] sm:$0xf0] %v8581_v55  ;;  %8868 = vrot.lane.b32.xlu0 %v8860_v19, %s12744_s18  ;;  %v18647_v10 = vpop.permute.xlu1 %8494 }
 0xa30   :  { %v9060_v17 = vpop.permute.xlu0 %9059  ;;  %8291 = vrot.lane.b32.xlu1 %v8287_v43, %s12715_s28 }
 0xa31   :  { %v9065_v37 = vsel %vm8580_vm6, %v9060_v17, %v18587_v25  ;;  %v9281_v16 = vld [vmem:[#allocation5 + $0x128] sm:$0xff]  ;;  %vm9622_vm6 = vcmask 523264  }
 0xa32   :  { %9069 = vst [vmem:[#allocation5 + $0x120] sm:$0xf0] %v9065_v37  ;;  %9427 = vmatprep.subr.mxu1 %v9281_v16  ;;  %8369 = vrot.lane.b32.xlu0 %v8366_v8, %s12744_s18  ;;  %v18653_v29 = vpop.permute.xlu1 %8965  ;;  %v8780_v17 = vld [vmem:[#allocation4] sm:$0xf0] }
 0xa34   :  { %v8516_v32 = vpop.permute.xlu0 %8515  ;;  %8788 = vrot.lane.b32.xlu1 %v8781_v38, %s12715_s28 }
 0xa35   :  { %v8519_v52 = vsel %vm8517_vm7, %v18605_v48, %v8516_v32  ;;  %v9278_v0 = vld [vmem:[#allocation5 + $0x150] sm:$0xff]  ;;  %v9302_v48 = vld [vmem:[%s20324_s5] sm:$0xff] }
 0xa36   :  { %8523 = vst [vmem:[#allocation5 + $0x88] sm:$0xf] %v8519_v52  ;;  %9351 = vmatpush1.msra.mxu0 %v9278_v0  ;;  %8864 = vrot.lane.b32.xlu0 %v8858_v59, %s12744_s18  ;;  %v18659_v25 = vpop.permute.xlu1 %8983 }
 0xa38   :  { %v8538_v39 = vpop.permute.xlu0 %8537  ;;  %8289 = vrot.lane.b32.xlu1 %v8286_v24, %s12715_s28 }
 0xa39   :  { %v8541_v13 = vsel %vm8539_vm8, %v18611_v33, %v8538_v39  ;;  %v9280_v53 = vld [vmem:[#allocation5 + $0x120] sm:$0xff] }
 0xa3a   :  { %8545 = vst [vmem:[#allocation5 + $0x88] sm:$0xf0] %v8541_v13  ;;  %9428 = vmatpush1.msra.mxu1 %v9280_v53  ;;  %8311 = vrot.lane.b32.xlu0 %v8303_v31, %s12714_s21  ;;  %v8471_v56 = vpop.permute.xlu1 %8470 }
 0xa3b   :  { %v8477_v27 = vsel %vm8476_vm9, %v8471_v56, %v18641_v12 }
 0xa3c   :  { %8481 = vst [vmem:[#allocation5 + $0x110] sm:$0xf] %v8477_v27  ;;  %v9007_v11 = vpop.permute.xlu0 %9006  ;;  %9306 = vperm.xlu1 %12669, %v9302_v48  }
 0xa3d   :  { %v9009_v21 = vsel %vm8517_vm7, %v18617_v5, %v9007_v11 }
 0xa3e   :  { %9013 = vst [vmem:[#allocation5 + $0xa8] sm:$0xf] %v9009_v21  ;;  %8332 = vrot.lane.b32.xlu0 %v8327_v63, %s12745_s3  ;;  %v8964_v34 = vpop.permute.xlu1 %8963 }
 0xa3f   :  { %v8969_v47 = vsel %vm8476_vm9, %v8964_v34, %v18653_v29 }
 0xa40   :  { %8973 = vst [vmem:[#allocation5 + $0x28] sm:$0xf] %v8969_v47  ;;  %v9025_v62 = vpop.permute.xlu0 %9024 }
 0xa41   :  { %v9027_v40 = vsel %vm8539_vm8, %v18623_v20, %v9025_v62  ;;  %v9275_v36 = vld [vmem:[#allocation5 + $0x88] sm:$0xff] }
 0xa42   :  { %9031 = vst [vmem:[#allocation5 + $0xa8] sm:$0xf0] %v9027_v40  ;;  %9352 = vmatprep.subr.mxu0 %v9275_v36  ;;  %8811 = vrot.lane.b32.xlu0 %v8806_v7, %s12714_s21  ;;  %v18678_v5 = vpop.permute.xlu1 %8431 }
 0xa44   :  { %v8534_v60 = vpop.permute.xlu0 %8533 }
 0xa45   :  { %v8540_v14 = vsel %vm8539_vm8, %v8534_v60, %v18611_v33 }
 0xa46   :  { %8544 = vst [vmem:[#allocation5 + $0x78] sm:$0xf0] %v8540_v14  ;;  %8829 = vrot.lane.b32.xlu0 %v8821_v54, %s12745_s3  ;;  %v18683_v1 = vpop.permute.xlu1 %8453 }
 0xa48   :  { %v9021_v22 = vpop.permute.xlu0 %9020 }
 0xa49   :  { %v9026_v35 = vsel %vm8539_vm8, %v9021_v22, %v18623_v20  ;;  %v9277_v3 = vld [vmem:[#allocation5 + $0xa8] sm:$0xff]  ;;  %vm11420_vm8 = vcmask 517120  }
 0xa4a   :  { %9030 = vst [vmem:[#allocation5 + $0x80] sm:$0xf0] %v9026_v35  ;;  %9429 = vmatprep.subr.mxu1 %v9277_v3  ;;  %8328 = vrot.lane.b32.xlu0 %v8325_v58, %s12745_s3  ;;  %v18688_v6 = vpop.permute.xlu1 %8926 }
 0xa4c   :  { %v8475_v33 = vpop.permute.xlu0 %8474 }
 0xa4d   :  { %v8478_v50 = vsel %vm8476_vm9, %v18641_v12, %v8475_v33  ;;  %v9274_v23 = vld [vmem:[#allocation5 + $0x78] sm:$0xff] }
 0xa4e   :  { %8482 = vst [vmem:[#allocation5 + $0x70] sm:$0xf] %v8478_v50  ;;  %9353 = vmatpush1.msra.mxu0 %v9274_v23  ;;  %8825 = vrot.lane.b32.xlu0 %v8819_v45, %s12745_s3  ;;  %v18693_v57 = vpop.permute.xlu1 %8944 }
 0xa50   :  { %v8497_v20 = vpop.permute.xlu0 %8496 }
 0xa51   :  { %v8500_v2 = vsel %vm8498_vm10, %v18647_v10, %v8497_v20  ;;  %v9276_v15 = vld [vmem:[#allocation5 + $0x80] sm:$0xff] }
 0xa52   :  { %8504 = vst [vmem:[#allocation5 + $0x70] sm:$0xf0] %v8500_v2  ;;  %9430 = vmatpush1.msra.mxu1 %v9276_v15  ;;  %8293 = vrot.lane.b32.xlu0 %v8288_v9, %s12715_s28  ;;  %v8430_v46 = vpop.permute.xlu1 %8429 }
 0xa53   :  { %v8436_v18 = vsel %vm8435_vm11, %v8430_v46, %v18678_v5 }
 0xa54   :  { %8440 = vst [vmem:[#allocation5 + $0x48] sm:$0xf] %v8436_v18  ;;  %v8968_v12 = vpop.permute.xlu0 %8967 }
 0xa55   :  { %v8970_v42 = vsel %vm8476_vm9, %v18653_v29, %v8968_v12 }
 0xa56   :  { %8974 = vst [vmem:[#allocation5 + $0xb8] sm:$0xf] %v8970_v42  ;;  %8790 = vrot.lane.b32.xlu0 %v8782_v51, %s12715_s28  ;;  %v8925_v4 = vpop.permute.xlu1 %8924 }
 0xa57   :  { %v8930_v55 = vsel %vm8435_vm11, %v8925_v4, %v18688_v6 }
 0xa58   :  { %8934 = vst [vmem:[#allocation5 + $0xe8] sm:$0xf] %v8930_v55  ;;  %v8986_v19 = vpop.permute.xlu0 %8985 }
 0xa59   :  { %v8988_v28 = vsel %vm8498_vm10, %v18659_v25, %v8986_v19  ;;  %v9271_v43 = vld [vmem:[#allocation5 + $0x70] sm:$0xff] }
 0xa5a   :  { %8992 = vst [vmem:[#allocation5 + $0xb8] sm:$0xf0] %v8988_v28  ;;  %9354 = vmatprep.subr.mxu0 %v9271_v43  ;;  %8786 = vrot.lane.b32.xlu0 %v8780_v17, %s12715_s28  ;;  %v8391_v8 = vpop.permute.xlu1 %8390 }
 0xa5c   :  { %v8493_v37 = vpop.permute.xlu0 %8492 }
 0xa5d   :  { %v8499_v16 = vsel %vm8498_vm10, %v8493_v37, %v18647_v10 }
 0xa5e   :  { %8503 = vst [vmem:[#allocation5 + $0x110] sm:$0xf0] %v8499_v16  ;;  %v18710_v29 = vpop.permute.xlu1 %8412 }
 0xa60   :  { %v8982_v38 = vpop.permute.xlu0 %8981 }
 0xa61   :  { %v8987_v26 = vsel %vm8498_vm10, %v8982_v38, %v18659_v25  ;;  %v9273_v32 = vld [vmem:[#allocation5 + $0xb8] sm:$0xff] }
 0xa62   :  { %8991 = vst [vmem:[#allocation5 + $0x28] sm:$0xf0] %v8987_v26  ;;  %9431 = vmatprep.subr.mxu1 %v9273_v32  ;;  %v8888_v52 = vpop.permute.xlu1 %8887 }
 0xa64   :  { %v8434_v0 = vpop.permute.xlu0 %8433 }
 0xa65   :  { %v8437_v59 = vsel %vm8435_vm11, %v18678_v5, %v8434_v0  ;;  %v9270_v24 = vld [vmem:[#allocation5 + $0x110] sm:$0xff] }
 0xa66   :  { %8441 = vst [vmem:[#allocation5 + $0x148] sm:$0xf] %v8437_v59  ;;  %9355 = vmatpush1.msra.mxu0 %v9270_v24  ;;  %v18716_v39 = vpop.permute.xlu1 %8905 }
 0xa68   :  { %v8456_v10 = vpop.permute.xlu0 %8455 }
 0xa69   :  { %v8459_v31 = vsel %vm8457_vm12, %v18683_v1, %v8456_v10  ;;  %v9272_v25 = vld [vmem:[#allocation5 + $0x28] sm:$0xff] }
 0xa6a   :  { %8463 = vst [vmem:[#allocation5 + $0x148] sm:$0xf0] %v8459_v31  ;;  %9432 = vmatpush1.msra.mxu1 %v9272_v25  ;;  %v8389_v13 = vpop.permute.xlu1 %8388 }
 0xa6b   :  { %v8395_v53 = vsel %vm8394_vm13, %v8389_v13, %v8391_v8 }
 0xa6c   :  { %8399 = vst [vmem:[#allocation5 + $0x98] sm:$0xf] %v8395_v53  ;;  %v8929_v48 = vpop.permute.xlu0 %8928 }
 0xa6d   :  { %v8931_v61 = vsel %vm8435_vm11, %v18688_v6, %v8929_v48 }
 0xa6e   :  { %8935 = vst [vmem:[#allocation5] sm:$0xf] %v8931_v61  ;;  %v8886_v56 = vpop.permute.xlu1 %8885 }
 0xa6f   :  { %v8891_v27 = vsel %vm8394_vm13, %v8886_v56, %v8888_v52 }
 0xa70   :  { %8895 = vst [vmem:[#allocation5 + $0x138] sm:$0xf] %v8891_v27  ;;  %v8947_v11 = vpop.permute.xlu0 %8946 }
 0xa71   :  { %v8949_v63 = vsel %vm8457_vm12, %v18693_v57, %v8947_v11  ;;  %v9267_v21 = vld [vmem:[#allocation5 + $0x148] sm:$0xff] }
 0xa72   :  { %8953 = vst [vmem:[#allocation5] sm:$0xf0] %v8949_v63  ;;  %9356 = vmatprep.subr.mxu0 %v9267_v21  ;;  %v8350_v30 = vpop.permute.xlu1 %8349 }
 0xa74   :  { %v8452_v34 = vpop.permute.xlu0 %8451 }
 0xa75   :  { %v8458_v47 = vsel %vm8457_vm12, %v8452_v34, %v18683_v1 }
 0xa76   :  { %8462 = vst [vmem:[#allocation5 + $0x48] sm:$0xf0] %v8458_v47  ;;  %v18728_v62 = vpop.permute.xlu1 %8371 }
 0xa78   :  { %v8943_v7 = vpop.permute.xlu0 %8942 }
 0xa79   :  { %v8948_v40 = vsel %vm8457_vm12, %v8943_v7, %v18693_v57  ;;  %v9269_v36 = vld [vmem:[#allocation5] sm:$0xff] }
 0xa7a   :  { %8952 = vst [vmem:[#allocation5 + $0xe8] sm:$0xf0] %v8948_v40  ;;  %9433 = vmatprep.subr.mxu1 %v9269_v36  ;;  %v8849_v5 = vpop.permute.xlu1 %8848 }
 0xa7c   :  { %v8393_v60 = vpop.permute.xlu0 %8392 }
 0xa7d   :  { %v8396_v14 = vsel %vm8394_vm13, %v8391_v8, %v8393_v60  ;;  %v9266_v54 = vld [vmem:[#allocation5 + $0x48] sm:$0xff] }
 0xa7e   :  { %8400 = vst [vmem:[#allocation5 + $0x10] sm:$0xf] %v8396_v14  ;;  %9357 = vmatpush1.msra.mxu0 %v9266_v54  ;;  %v18733_v44 = vpop.permute.xlu1 %8866 }
 0xa80   :  { %v8415_v1 = vpop.permute.xlu0 %8414 }
 0xa81   :  { %v8418_v22 = vsel %vm8416_vm14, %v18710_v29, %v8415_v1  ;;  %v9268_v58 = vld [vmem:[#allocation5 + $0xe8] sm:$0xff] }
 0xa82   :  { %8422 = vst [vmem:[#allocation5 + $0x10] sm:$0xf0] %v8418_v22  ;;  %9434 = vmatpush1.msra.mxu1 %v9268_v58  ;;  %v8348_v35 = vpop.permute.xlu1 %8347 }
 0xa83   :  { %v8354_v3 = vsel %vm8353_vm15, %v8348_v35, %v8350_v30 }
 0xa84   :  { %8358 = vst [vmem:[#allocation5 + $0xc0] sm:$0xf] %v8354_v3  ;;  %v8890_v6 = vpop.permute.xlu0 %8889 }
 0xa85   :  { %v8892_v33 = vsel %vm8394_vm13, %v8888_v52, %v8890_v6 }
 0xa86   :  { %8896 = vst [vmem:[#allocation5 + $0x100] sm:$0xf] %v8892_v33  ;;  %v8847_v50 = vpop.permute.xlu1 %8846 }
 0xa87   :  { %v8852_v23 = vsel %vm8353_vm15, %v8847_v50, %v8849_v5  ;;  %v9248_v50 = vld [vmem:[%s20323_s4] sm:$0xff] }
 0xa88   :  { %8856 = vst [vmem:[#allocation5 + $0xe0] sm:$0xf] %v8852_v23  ;;  %v8908_v45 = vpop.permute.xlu0 %8907 }
 0xa89   :  { %v8910_v49 = vsel %vm8416_vm14, %v18716_v39, %v8908_v45  ;;  %v9263_v57 = vld [vmem:[#allocation5 + $0x10] sm:$0xff] }
 0xa8a   :  { %8914 = vst [vmem:[#allocation5 + $0x100] sm:$0xf0] %v8910_v49  ;;  %9358 = vmatprep.subr.mxu0 %v9263_v57  ;;  %v8310_v20 = vpop.permute.xlu1 %8309  ;;  %v9249_v49 = vld [vmem:[%s20323_s4 + $0x8] sm:$0xff] }
 0xa8c   :  { %v8411_v9 = vpop.permute.xlu0 %8410 }
 0xa8d   :  { %v8417_v2 = vsel %vm8416_vm14, %v8411_v9, %v18710_v29 }
 0xa8e   :  { %8421 = vst [vmem:[#allocation5 + $0x98] sm:$0xf0] %v8417_v2  ;;  %v18744_v15 = vpop.permute.xlu1 %8330 }
 0xa90   :  { %v8904_v46 = vpop.permute.xlu0 %8903 }
 0xa91   :  { %v8909_v18 = vsel %vm8416_vm14, %v8904_v46, %v18716_v39  ;;  %v9265_v12 = vld [vmem:[#allocation5 + $0x100] sm:$0xff] }
 0xa92   :  { %8913 = vst [vmem:[#allocation5 + $0x138] sm:$0xf0] %v8909_v18  ;;  %9435 = vmatprep.subr.mxu1 %v9265_v12  ;;  %v8810_v42 = vpop.permute.xlu1 %8809 }
 0xa94   :  { %v8352_v51 = vpop.permute.xlu0 %8351 }
 0xa95   :  { %v8355_v4 = vsel %vm8353_vm15, %v8350_v30, %v8352_v51  ;;  %v9262_v55 = vld [vmem:[#allocation5 + $0x98] sm:$0xff] }
 0xa96   :  { %8359 = vst [vmem:[#allocation5 + $0x38] sm:$0xf] %v8355_v4  ;;  %9359 = vmatpush1.msra.mxu0 %v9262_v55  ;;  %v8828_v19 = vpop.permute.xlu1 %8827 }
 0xa98   :  { %v8374_v28 = vpop.permute.xlu0 %8373 }
 0xa99   :  { %v8377_v43 = vsel %vm8375_vm2, %v18728_v62, %v8374_v28  ;;  %v9264_v17 = vld [vmem:[#allocation5 + $0x138] sm:$0xff] }
 0xa9a   :  { %8381 = vst [vmem:[#allocation5 + $0x38] sm:$0xf0] %v8377_v43  ;;  %9436 = vmatpush1.msra.mxu1 %v9264_v17  ;;  %v8308_v8 = vpop.permute.xlu1 %8307  ;;  %v9303_v43 = vld [vmem:[%s20324_s5 + $0x8] sm:$0xff] }
 0xa9b   :  { %v8313_v37 = vsel %vm634_vm0, %v8308_v8, %v8310_v20 }
 0xa9c   :  { %8317 = vst [vmem:[#allocation5 + $0x18] sm:$0xf] %v8313_v37  ;;  %v8851_v16 = vpop.permute.xlu0 %8850 }
 0xa9d   :  { %v8853_v29 = vsel %vm8353_vm15, %v8849_v5, %v8851_v16 }
 0xa9e   :  { %8857 = vst [vmem:[#allocation5 + $0x118] sm:$0xf] %v8853_v29  ;;  %v8808_v38 = vpop.permute.xlu1 %8807 }
 0xa9f   :  { %v8813_v26 = vsel %vm634_vm0, %v8808_v38, %v8810_v42 }
 0xaa0   :  { %8817 = vst [vmem:[#allocation5 + $0x180] sm:$0xf] %v8813_v26  ;;  %v8869_v32 = vpop.permute.xlu0 %8868 }
 0xaa1   :  { %v8871_v52 = vsel %vm8375_vm2, %v18733_v44, %v8869_v32  ;;  %v9259_v0 = vld [vmem:[#allocation5 + $0x38] sm:$0xff] }
 0xaa2   :  { %8875 = vst [vmem:[#allocation5 + $0x118] sm:$0xf0] %v8871_v52  ;;  %9360 = vmatprep.subr.mxu0 %v9259_v0  ;;  %v8292_v59 = vpop.permute.xlu1 %8291 }
 0xaa4   :  { %v8370_v24 = vpop.permute.xlu0 %8369 }
 0xaa5   :  { %v8376_v39 = vsel %vm8375_vm2, %v8370_v24, %v18728_v62 }
 0xaa6   :  { %8380 = vst [vmem:[#allocation5 + $0xc0] sm:$0xf0] %v8376_v39  ;;  %v8789_v10 = vpop.permute.xlu1 %8788 }
 0xaa8   :  { %v8865_v31 = vpop.permute.xlu0 %8864 }
 0xaa9   :  { %v8870_v25 = vsel %vm8375_vm2, %v8865_v31, %v18733_v44  ;;  %v9261_v13 = vld [vmem:[#allocation5 + $0x118] sm:$0xff] }
 0xaaa   :  { %8874 = vst [vmem:[#allocation5 + $0xe0] sm:$0xf0] %v8870_v25  ;;  %9437 = vmatprep.subr.mxu1 %v9261_v13  ;;  %v8290_v53 = vpop.permute.xlu1 %8289 }
 0xaab   :  { %v8295_v48 = vsel %vm315_vm1, %v8290_v53, %v8292_v59 }
 0xaac   :  { %8299 = vst [vmem:[#allocation5 + $0x20] sm:$0xf0] %v8295_v48  ;;  %v8312_v61 = vpop.permute.xlu0 %8311 }
 0xaad   :  { %v8314_v56 = vsel %vm634_vm0, %v8310_v20, %v8312_v61  ;;  %v9258_v27 = vld [vmem:[#allocation5 + $0xc0] sm:$0xff] }
 0xaae   :  { %8318 = vst [vmem:[#allocation5 + $0x30] sm:$0xf] %v8314_v56  ;;  %9361 = vmatpush1.msra.mxu0 %v9258_v27 }
 0xab0   :  { %v8333_v11 = vpop.permute.xlu0 %8332 }
 0xab1   :  { %v8336_v63 = vsel %vm8334_vm3, %v18744_v15, %v8333_v11  ;;  %v9260_v21 = vld [vmem:[#allocation5 + $0xe0] sm:$0xff] }
 0xab2   :  { %8340 = vst [vmem:[#allocation5 + $0x30] sm:$0xf0] %v8336_v63  ;;  %9438 = vmatpush1.msra.mxu1 %v9260_v21 }
 0xab3   :  { %v9250_v23 = vld [vmem:[#allocation5 + $0x20] sm:$0xff] }
 0xab4   :  { %v8812_v30 = vpop.permute.xlu0 %8811 }
 0xab5   :  { %v8814_v34 = vsel %vm634_vm0, %v8810_v42, %v8812_v30 }
 0xab6   :  { %8818 = vst [vmem:[#allocation5 + $0x8] sm:$0xf] %v8814_v34 }
 0xab7   :  { %v9307_v20 = vpop.permute.xlu1 %9306 }
 0xab8   :  { %v8830_v47 = vpop.permute.xlu0 %8829 }
 0xab9   :  { %v8832_v62 = vsel %vm8334_vm3, %v8828_v19, %v8830_v47  ;;  %v9255_v7 = vld [vmem:[#allocation5 + $0x30] sm:$0xff] }
 0xaba   :  { %8836 = vst [vmem:[#allocation5 + $0x8] sm:$0xf0] %v8832_v62  ;;  %9362 = vmatprep.subr.mxu0 %v9255_v7 }
 0xabc   :  { %v8329_v40 = vpop.permute.xlu0 %8328 }
 0xabd   :  { %v8335_v36 = vsel %vm8334_vm3, %v8329_v40, %v18744_v15 }
 0xabe   :  { %8339 = vst [vmem:[#allocation5 + $0x18] sm:$0xf0] %v8335_v36 }
 0xac0   :  { %v8826_v5 = vpop.permute.xlu0 %8825 }
 0xac1   :  { %v8831_v60 = vsel %vm8334_vm3, %v8826_v5, %v8828_v19  ;;  %v9257_v14 = vld [vmem:[#allocation5 + $0x8] sm:$0xff] }
 0xac2   :  { %8835 = vst [vmem:[#allocation5 + $0x180] sm:$0xf0] %v8831_v60  ;;  %9439 = vmatprep.subr.mxu1 %v9257_v14  ;;  %v10084_v60 = vld [vmem:[%s20325_s6 + $0xf8] sm:$0xff] }
 0xac3   :  { %v10068_v14 = vld [vmem:[%s20325_s6 + $0x78] sm:$0xff] }
 0xac4   :  { %v8294_v54 = vpop.permute.xlu0 %8293 }
 0xac5   :  { %v8296_v44 = vsel %vm315_vm1, %v8292_v59, %v8294_v54  ;;  %v9254_v1 = vld [vmem:[#allocation5 + $0x18] sm:$0xff]  ;;  %v10083_v54 = vld [vmem:[%s20325_s6 + $0xf0] sm:$0xff] }
 0xac6   :  { %8300 = vst [vmem:[#allocation5 + $0xf8] sm:$0xf0] %v8296_v44  ;;  %9363 = vmatpush1.msra.mxu0 %v9254_v1  ;;  %v10116_v44 = vld [vmem:[%s20325_s6 + $0x1f8] sm:$0xff]  ;;  %v10067_v1 = vld [vmem:[%s20325_s6 + $0x70] sm:$0xff] }
 0xac8   :  { %v8791_v22 = vpop.permute.xlu0 %8790 }
 0xac9   :  { %v8793_v58 = vsel %vm315_vm1, %v8789_v10, %v8791_v22  ;;  %v9256_v35 = vld [vmem:[#allocation5 + $0x180] sm:$0xff]  ;;  %v10100_v22 = vld [vmem:[%s20325_s6 + $0x178] sm:$0xff] }
 0xaca   :  { %8797 = vst [vmem:[#allocation5 + $0x188] sm:$0xf0] %v8793_v58  ;;  %9440 = vmatpush1.msra.mxu1 %v9256_v35  ;;  %v10082_v58 = vld [vmem:[%s20325_s6 + $0xe8] sm:$0xff]  ;;  %v10115_v35 = vld [vmem:[%s20325_s6 + $0x1f0] sm:$0xff] }
 0xacc   :  { %v8787_v3 = vpop.permute.xlu0 %8786 }
 0xacd   :  { %v8792_v6 = vsel %vm315_vm1, %v8787_v3, %v8789_v10  ;;  %v9251_v33 = vld [vmem:[#allocation5 + $0xf8] sm:$0xff]  ;;  %v10066_v3 = vld [vmem:[%s20325_s6 + $0x68] sm:$0xff] }
 0xace   :  { %8796 = vst [vmem:[#allocation5 + $0x198] sm:$0xf0] %v8792_v6  ;;  %9364 = vmatprep.subr.mxu0 %v9251_v33  ;;  %v10099_v6 = vld [vmem:[%s20325_s6 + $0x170] sm:$0xff]  ;;  %v10114_v33 = vld [vmem:[%s20325_s6 + $0x1e8] sm:$0xff] }
 0xacf   :  { %9365 = vmatpush1.msra.mxu0 %v9250_v23  ;;  %v10098_v23 = vld [vmem:[%s20325_s6 + $0x168] sm:$0xff] }
 0xad0   :  { %11998 = vmatmul.mubr.msk.f32.vlgmr.msra.gmra.mxu0 %vm9314_vm4, %v9248_v50  ;;  %12183 = vmatprep.subr.mxu0 %v10084_v60 }
 0xad1   :  { %v9253_v45 = vld [vmem:[#allocation5 + $0x188] sm:$0xff]  ;;  %9404 = vmatprep.mubr.f32.mxu0 %v20465_v41  ;;  %12184 = vmatpush3.msra.mxu0 %v10068_v14 }
 0xad2   :  { %9441 = vmatprep.subr.mxu1 %v9253_v45  ;;  %12185 = vmatprep.subr.mxu0 %v10083_v54  ;;  %v10065_v45 = vld [vmem:[%s20325_s6 + $0x60] sm:$0xff]  ;;  %v10060_v54 = vld [vmem:[%s20325_s6 + $0x38] sm:$0xff] }
 0xad3   :  { %12186 = vmatpush3.msra.mxu0 %v10067_v1  ;;  %v10075_v1 = vld [vmem:[%s20325_s6 + $0xb0] sm:$0xff] }
 0xad4   :  { %11999 = vmatmul.mubr.msk.f32.gmra.mxu0 %vm9314_vm4, %v9249_v49  ;;  %12187 = vmatprep.subr.mxu0 %v10082_v58  ;;  %v10108_v58 = vld [vmem:[%s20325_s6 + $0x1b8] sm:$0xff] }
 0xad5   :  { %v9252_v57 = vld [vmem:[#allocation5 + $0x198] sm:$0xff]  ;;  %12188 = vmatpush3.msra.mxu0 %v10066_v3  ;;  %v10092_v3 = vld [vmem:[%s20325_s6 + $0x138] sm:$0xff] }
 0xad6   :  { %9442 = vmatpush1.msra.mxu1 %v9252_v57  ;;  %v10080_v57 = vld [vmem:[%s20325_s6 + $0xd8] sm:$0xff] }
 0xad7   :  { %12002 = vmatmul.mubr.msk.f32.vlgmr.msra.gmra.mxu1 %vm9314_vm4, %v9248_v50  ;;  %12218 = vmatprep.subr.mxu1 %v10116_v44  ;;  %v10081_v50 = vld [vmem:[%s20325_s6 + $0xe0] sm:$0xff] }
 0xad8   :  { %9481 = vmatprep.mubr.f32.mxu1 %v20465_v41  ;;  %12219 = vmatpush3.msra.mxu1 %v10100_v22  ;;  %v10093_v44 = vld [vmem:[%s20325_s6 + $0x140] sm:$0xff] }
 0xad9   :  { %12220 = vmatprep.subr.mxu1 %v10115_v35  ;;  %12189 = vmatprep.subr.mxu0 %v10081_v50  ;;  %v10059_v35 = vld [vmem:[%s20325_s6 + $0x30] sm:$0xff] }
 0xada   :  { %12221 = vmatpush3.msra.mxu1 %v10099_v6  ;;  %12190 = vmatpush3.msra.mxu0 %v10065_v45 }
 0xadb   :  { %12003 = vmatmul.mubr.msk.f32.gmra.mxu1 %vm9314_vm4, %v9249_v49  ;;  %v10113_v49 = vld [vmem:[%s20325_s6 + $0x1e0] sm:$0xff]  ;;  %12222 = vmatprep.subr.mxu1 %v10114_v33 }
 0xadc   :  { %12223 = vmatpush3.msra.mxu1 %v10098_v23  ;;  %12191 = vmatprep.subr.mxu0 %v10080_v57  ;;  %v10074_v57 = vld [vmem:[%s20325_s6 + $0xa8] sm:$0xff] }
 0xadd   :  { %12224 = vmatprep.subr.mxu1 %v10113_v49  ;;  %v10125_v49 = vld [vmem:[%s20325_s6 + $0x240] sm:$0xff] }
 0xb90   :  { %v9400_v9 = vpop.f32.mrf.mxu0 }
 0xb91   :  { %v9401_v2 = vadd.f32 %v9400_v9, %v9307_v20  ;;  %v10064_v9 = vld [vmem:[%s20325_s6 + $0x58] sm:$0xff] }
 0xb92   :  { %v9402_v15 = vpop.f32.mrf.mxu0  ;;  %12192 = vmatpush3.msra.mxu0 %v10064_v9 }
 0xb93   :  { %v9488_v46 = vmax.f32 %v9401_v2, 0.0  ;;  %v9403_v18 = vadd.f32 %v9402_v15, %v9307_v20  ;;  %v10112_v2 = vld [vmem:[%s20325_s6 + $0x1d8] sm:$0xff]  ;;  %v10079_v15 = vld [vmem:[%s20325_s6 + $0xd0] sm:$0xff] }
 0xb94   :  { %v9406_v56 = vpop.f32.mrf.mxu0  ;;  %12193 = vmatprep.subr.mxu0 %v10079_v15 }
 0xb95   :  { %v9489_v12 = vmax.f32 %v9403_v18, 0.0  ;;  %9512 = vrot.lane.b32.xlu0 %v9488_v46, %s12715_s28  ;;  %v10063_v18 = vld [vmem:[%s20325_s6 + $0x50] sm:$0xff] }
 0xb96   :  { %v9408_v11 = vpop.f32.mrf.mxu0  ;;  %12194 = vmatpush3.msra.mxu0 %v10063_v18  ;;  %v10091_v18 = vld [vmem:[%s20325_s6 + $0x130] sm:$0xff] }
 0xb97   :  { %v9477_v42 = vpop.f32.mrf.mxu1  ;;  %9514 = vrot.lane.b32.xlu1 %v9489_v12, %s12715_s28 }
 0xb98   :  { %v9478_v51 = vadd.f32 %v9477_v42, %v9307_v20  ;;  %v10078_v42 = vld [vmem:[%s20325_s6 + $0xc8] sm:$0xff] }
 0xb99   :  { %v9479_v4 = vpop.f32.mrf.mxu1  ;;  %12195 = vmatprep.subr.mxu0 %v10078_v42 }
 0xb9a   :  { %v9490_v55 = vmax.f32 %v9478_v51, 0.0  ;;  %v9480_v19 = vadd.f32 %v9479_v4, %v9307_v20  ;;  %v10097_v20 = vld [vmem:[%s20325_s6 + $0x160] sm:$0xff] }
 0xb9b   :  { %v9483_v27 = vpop.f32.mrf.mxu1  ;;  %12225 = vmatpush3.msra.mxu1 %v10097_v20  ;;  %v10107_v20 = vld [vmem:[%s20325_s6 + $0x1b0] sm:$0xff] }
 0xb9c   :  { %v9491_v28 = vmax.f32 %v9480_v19, 0.0  ;;  %9787 = vrot.lane.b32.xlu0 %v9490_v55, %s12715_s28  ;;  %12226 = vmatprep.subr.mxu1 %v10112_v2 }
 0xb9d   :  { %v9485_v63 = vpop.f32.mrf.mxu1 }
 0xb9e   :  { %9789 = vrot.lane.b32.xlu1 %v9491_v28, %s12715_s28 }
 0xba0   :  { %9530 = vrot.lane.b32.xlu0 %v9488_v46, %s12714_s21 }
 0xba2   :  { %9532 = vrot.lane.b32.xlu1 %v9489_v12, %s12714_s21 }
 0xba4   :  { %9805 = vrot.lane.b32.xlu0 %v9490_v55, %s12714_s21 }
 0xba6   :  { %9807 = vrot.lane.b32.xlu1 %v9491_v28, %s12714_s21 }
 0xba8   :  { %9311 = vperm.xlu0 %12668, %v9303_v43  }
 0xc07   :  { %v9513_v17 = vpop.permute.xlu0 %9512 }
 0xc09   :  { %v9515_v8 = vpop.permute.xlu1 %9514 }
 0xc0a   :  { %v9520_v29 = vsel %vm315_vm1, %v9513_v17, %v9515_v8  ;;  %v9527_v26 = vmax.f32 %v9489_v12, %v9515_v8  ;;  %v10111_v12 = vld [vmem:[%s20325_s6 + $0x1d0] sm:$0xff] }
 0xc0b   :  { %v9526_v32 = vmax.f32 %v9488_v46, %v9520_v29  ;;  %v10096_v46 = vld [vmem:[%s20325_s6 + $0x158] sm:$0xff] }
 0xc0c   :  { %12227 = vmatpush3.msra.mxu1 %v10096_v46  ;;  %v10058_v46 = vld [vmem:[%s20325_s6 + $0x28] sm:$0xff] }
 0xc0d   :  { %12228 = vmatprep.subr.mxu1 %v10111_v12 }
 0xc0e   :  { %v9788_v37 = vpop.permute.xlu0 %9787 }
 0xc10   :  { %v9790_v16 = vpop.permute.xlu1 %9789 }
 0xc11   :  { %v9795_v0 = vsel %vm315_vm1, %v9788_v37, %v9790_v16  ;;  %v9802_v10 = vmax.f32 %v9491_v28, %v9790_v16  ;;  %v9594_v28 = vlaneseq }
 0xc12   :  { %v9531_v38 = vpop.permute.xlu0 %9530  ;;  %v9801_v31 = vmax.f32 %v9490_v55, %v9795_v0  ;;  %v12746_v55 = vmov 1966171168  }
 0xc13   :  { %v9592_v19 = vunpack.c.l.s4 %v12746_v55  ;;  %v18917_v16 = vshrl.u32 %v9594_v28, 7  ;;  %vm18976_vm5 = vcmp.lt.s32.totalorder %v9594_v28, 192 }
 0xc14   :  { %v9533_v52 = vpop.permute.xlu1 %9532 }
 0xc15   :  { %v9538_v59 = vsel %vm634_vm0, %v9531_v38, %v9533_v52  ;;  %v18794_v24 = vmax.f32 %v9527_v26, %v9533_v52  ;;  %v9593_v37 = vunpack.c.0.s8 %v9592_v19 }
 0xc16   :  { %v18796_v39 = vmax.f32 %v9526_v32, %v9538_v59  ;;  %v9806_v25 = vpop.permute.xlu0 %9805 }
 0xc17   :  { %9554 = vrot.lane.b32.xlu0 %v18794_v24, %s12744_s18 }
 0xc18   :  { %v9808_v13 = vpop.permute.xlu1 %9807  ;;  %9552 = vrot.lane.b32.xlu1 %v18796_v39, %s12744_s18 }
 0xc19   :  { %v9813_v53 = vsel %vm634_vm0, %v9806_v25, %v9808_v13  ;;  %v18803_v48 = vmax.f32 %v9802_v10, %v9808_v13  ;;  %v18924_v10 = vsub.s32 %v9593_v37, %v18917_v16  ;;  %v10062_v25 = vld [vmem:[%s20325_s6 + $0x48] sm:$0xff]  ;;  %v10057_v37 = vld [vmem:[%s20325_s6 + $0x20] sm:$0xff] }
 0xc1a   :  { %v18805_v61 = vmax.f32 %v9801_v31, %v9813_v53  ;;  %12196 = vmatpush3.msra.mxu0 %v10062_v25  ;;  %v10089_v25 = vld [vmem:[%s20325_s6 + $0x120] sm:$0xff] }
 0xc1b   :  { %9829 = vrot.lane.b32.xlu0 %v18803_v48, %s12744_s18 }
 0xc1c   :  { %9827 = vrot.lane.b32.xlu1 %v18805_v61, %s12744_s18 }
 0xc1f   :  { %9572 = vrot.lane.b32.xlu0 %v18794_v24, %s12737_s29 }
 0xc20   :  { %9570 = vrot.lane.b32.xlu1 %v18796_v39, %s12737_s29 }
 0xc23   :  { %9847 = vrot.lane.b32.xlu0 %v18803_v48, %s12737_s29  ;;  %v9312_v21 = vpop.permute.xlu0 %9311 }
 0xc24   :  { %v9407_v30 = vadd.f32 %v9406_v56, %v9312_v21  ;;  %v9409_v34 = vadd.f32 %v9408_v11, %v9312_v21  ;;  %9845 = vrot.lane.b32.xlu1 %v18805_v61, %s12737_s29  ;;  %v9484_v47 = vadd.f32 %v9483_v27, %v9312_v21  ;;  %v9486_v62 = vadd.f32 %v9485_v63, %v9312_v21  ;;  %v10110_v56 = vld [vmem:[%s20325_s6 + $0x1c8] sm:$0xff]  ;;  %v10061_v27 = vld [vmem:[%s20325_s6 + $0x40] sm:$0xff] }
 0xc25   :  { %v10094_v11 = vld [vmem:[%s20325_s6 + $0x148] sm:$0xff] }
 0xc26   :  { %v18819_v7 = vmax.f32 %v9407_v30, 0.0  ;;  %v18821_v40 = vmax.f32 %v9409_v34, 0.0  ;;  %v18827_v36 = vmax.f32 %v9484_v47, 0.0  ;;  %v18829_v5 = vmax.f32 %v9486_v62, 0.0  ;;  %v10076_v34 = vld [vmem:[%s20325_s6 + $0xb8] sm:$0xff]  ;;  %v10109_v47 = vld [vmem:[%s20325_s6 + $0x1c0] sm:$0xff] }
 0xc28   :  { %9518 = vrot.lane.b32.xlu0 %v18821_v40, %s12715_s28  ;;  %9516 = vrot.lane.b32.xlu1 %v18819_v7, %s12715_s28 }
 0xc2c   :  { %9793 = vrot.lane.b32.xlu0 %v18829_v5, %s12715_s28  ;;  %9791 = vrot.lane.b32.xlu1 %v18827_v36, %s12715_s28 }
 0xc30   :  { %9536 = vrot.lane.b32.xlu0 %v18821_v40, %s12714_s21  ;;  %9534 = vrot.lane.b32.xlu1 %v18819_v7, %s12714_s21 }
 0xc34   :  { %9811 = vrot.lane.b32.xlu0 %v18829_v5, %s12714_s21  ;;  %9809 = vrot.lane.b32.xlu1 %v18827_v36, %s12714_s21 }
 0xc89   :  { %v9555_v51 = vpop.permute.xlu0 %9554 }
 0xc8a   :  { %v9553_v4 = vpop.permute.xlu1 %9552  ;;  %v9567_v38 = vmax.f32 %v18794_v24, %v9555_v51  ;;  %v10095_v24 = vld [vmem:[%s20325_s6 + $0x150] sm:$0xff] }
 0xc8b   :  { %v9560_v8 = vsel %vm8375_vm2, %v9553_v4, %v9555_v51  ;;  %12229 = vmatpush3.msra.mxu1 %v10095_v24  ;;  %v10073_v51 = vld [vmem:[%s20325_s6 + $0xa0] sm:$0xff] }
 0xc8c   :  { %v9566_v26 = vmax.f32 %v18796_v39, %v9560_v8  ;;  %v10077_v39 = vld [vmem:[%s20325_s6 + $0xc0] sm:$0xff]  ;;  %12230 = vmatprep.subr.mxu1 %v10110_v56  ;;  %v10106_v8 = vld [vmem:[%s20325_s6 + $0x1a8] sm:$0xff] }
 0xc8d   :  { %v9830_v43 = vpop.permute.xlu0 %9829  ;;  %12197 = vmatprep.subr.mxu0 %v10077_v39  ;;  %12231 = vmatpush3.msra.mxu1 %v10094_v11  ;;  %v10104_v11 = vld [vmem:[%s20325_s6 + $0x198] sm:$0xff] }
 0xc8e   :  { %v9828_v17 = vpop.permute.xlu1 %9827  ;;  %v9842_v13 = vmax.f32 %v18803_v48, %v9830_v43  ;;  %12198 = vmatpush3.msra.mxu0 %v10061_v27  ;;  %12232 = vmatprep.subr.mxu1 %v10109_v47  ;;  %v10071_v27 = vld [vmem:[%s20325_s6 + $0x90] sm:$0xff] }
 0xc8f   :  { %v9835_v52 = vsel %vm8375_vm2, %v9828_v17, %v9830_v43  ;;  %12199 = vmatprep.subr.mxu0 %v10076_v34  ;;  %12233 = vmatpush3.msra.mxu1 %v10093_v44  ;;  %v10088_v34 = vld [vmem:[%s20325_s6 + $0x118] sm:$0xff] }
 0xc90   :  { %v9841_v63 = vmax.f32 %v18805_v61, %v9835_v52  ;;  %12200 = vmatpush3.msra.mxu0 %v10060_v54  ;;  %12234 = vmatprep.subr.mxu1 %v10108_v58  ;;  %v10072_v52 = vld [vmem:[%s20325_s6 + $0x98] sm:$0xff]  ;;  %v10087_v58 = vld [vmem:[%s20325_s6 + $0x110] sm:$0xff] }
 0xc91   :  { %v9573_v29 = vpop.permute.xlu0 %9572  ;;  %12201 = vmatprep.subr.mxu0 %v10075_v1  ;;  %12235 = vmatpush3.msra.mxu1 %v10092_v3  ;;  %v10102_v3 = vld [vmem:[%s20325_s6 + $0x188] sm:$0xff] }
 0xc92   :  { %v9571_v32 = vpop.permute.xlu1 %9570  ;;  %v9585_v59 = vmax.f32 %v9567_v38, %v9573_v29  ;;  %12202 = vmatpush3.msra.mxu0 %v10059_v35  ;;  %12236 = vmatprep.subr.mxu1 %v10107_v20  ;;  %v10090_v38 = vld [vmem:[%s20325_s6 + $0x128] sm:$0xff]  ;;  %v10069_v35 = vld [vmem:[%s20325_s6 + $0x80] sm:$0xff]  ;;  %v10180_v20 = vld [vmem:[%s20325_s6 + $0x3f8] sm:$0xff] }
 0xc93   :  { %v9578_v0 = vsel %vm8476_vm9, %v9571_v32, %v9573_v29  ;;  %12203 = vmatprep.subr.mxu0 %v10074_v57  ;;  %12237 = vmatpush3.msra.mxu1 %v10091_v18 }
 0xc94   :  { %v9584_v31 = vmax.f32 %v9566_v26, %v9578_v0  ;;  %12204 = vmatpush3.msra.mxu0 %v10058_v46  ;;  %v10105_v0 = vld [vmem:[%s20325_s6 + $0x1a0] sm:$0xff]  ;;  %12238 = vmatprep.subr.mxu1 %v10106_v8 }
 0xc95   :  { %v9848_v53 = vpop.permute.xlu0 %9847  ;;  %12205 = vmatprep.subr.mxu0 %v10073_v51  ;;  %12239 = vmatpush3.msra.mxu1 %v10090_v38  ;;  %v10370_v51 = vld [vmem:[%s20325_s6 + $0x9e8] sm:$0xff] }
 0xc96   :  { %v9590_v21 = vcombine.low %v9584_v31, %v9585_v59  ;;  %v9642_v30 = vcombine.high %v9584_v31, %v9585_v59  ;;  %v9846_v48 = vpop.permute.xlu1 %9845  ;;  %v9860_v61 = vmax.f32 %v9842_v13, %v9848_v53  ;;  %12206 = vmatpush3.msra.mxu0 %v10057_v37  ;;  %v10056_v31 = vld [vmem:[%s20325_s6 + $0x18] sm:$0xff]  ;;  %12240 = vmatprep.subr.mxu1 %v10105_v0 }
 0xc97   :  { %v9853_v62 = vsel %vm8476_vm9, %v9846_v48, %v9848_v53  ;;  %12207 = vmatprep.subr.mxu0 %v10072_v52  ;;  %12241 = vmatpush3.msra.mxu1 %v10089_v25  ;;  %v10055_v48 = vld [vmem:[%s20325_s6 + $0x10] sm:$0xff] }
 0xc98   :  { %v9597_v60 = vrot.slane %v9590_v21, %v18924_v10  ;;  %v9859_v14 = vmax.f32 %v9841_v63, %v9853_v62  ;;  %v18964_v22 = vrot.slane %v9642_v30, %v18924_v10  ;;  %12208 = vmatpush3.msra.mxu0 %v10056_v31  ;;  %12242 = vmatprep.subr.mxu1 %v10104_v11  ;;  %v10070_v62 = vld [vmem:[%s20325_s6 + $0x88] sm:$0xff] }
 0xc99   :  { %12209 = vmatprep.subr.mxu0 %v10071_v27  ;;  %12243 = vmatpush3.msra.mxu1 %v10088_v34 }
 0xc9a   :  { %v9611_v6 = vcombine.high %v9597_v60, %v9597_v60  ;;  %v9865_v33 = vcombine.low %v9859_v14, %v9860_v61  ;;  %v9910_v50 = vcombine.high %v9859_v14, %v9860_v61  ;;  %v9517_v23 = vpop.permute.xlu1 %9516  ;;  %v9519_v45 = vpop.permute.xlu0 %9518  ;;  %v9604_v9 = vrot.slane %v9597_v60, %v18924_v10  ;;  %v10103_v60 = vld [vmem:[%s20325_s6 + $0x190] sm:$0xff]  ;;  %12210 = vmatpush3.msra.mxu0 %v10055_v48 }
 0xc9b   :  { %v9656_v4 = vrot.slane %v18964_v22, %v18924_v10  ;;  %v9521_v29 = vsel %vm315_vm1, %v9517_v23, %v9519_v45  ;;  %v9529_v59 = vmax.f32 %v18821_v40, %v9519_v45  ;;  %12211 = vmatprep.subr.mxu0 %v10070_v62  ;;  %12244 = vmatprep.subr.mxu1 %v10103_v60  ;;  %v10148_v23 = vld [vmem:[%s20325_s6 + $0x2f8] sm:$0xff]  ;;  %v10085_v45 = vld [vmem:[%s20325_s6 + $0x100] sm:$0xff] }
 0xc9c   :  { %v9872_v2 = vrot.slane %v9865_v33, %v18924_v10  ;;  %v18989_v15 = vrot.slane %v9611_v6, %v18924_v10  ;;  %v18998_v12 = vrot.slane %v9910_v50, %v18924_v10  ;;  %9610 = vst.msk [vmem:[#allocation7] ss:$2 sm:$0x3] %vm18976_vm5, %v9604_v9  ;;  %v9630_v42 = vcombine.high %v9604_v9, %v9604_v9  ;;  %v10053_v6 = vld [vmem:[%s20325_s6] sm:$0xff]  ;;  %v10086_v33 = vld [vmem:[%s20325_s6 + $0x108] sm:$0xff] }
 0xc9d   :  { %9659 = vst.msk [vmem:[#allocation7 + $0xc] ss:$2 sm:$0x3] %vm18976_vm5, %v9656_v4  ;;  %v9675_v39 = vcombine.high %v9656_v4, %v9656_v4  ;;  %v9528_v13 = vmax.f32 %v18819_v7, %v9521_v29  ;;  %12245 = vmatpush3.msra.mxu1 %v10087_v58  ;;  %v10101_v50 = vld [vmem:[%s20325_s6 + $0x180] sm:$0xff]  ;;  %v9660_v57 = vcombine.high %v18964_v22, %v18964_v22  ;;  %v10164_v58 = vld [vmem:[%s20325_s6 + $0x378] sm:$0xff] }
 0xc9e   :  { %v9883_v55 = vcombine.high %v9872_v2, %v9872_v2  ;;  %v9792_v19 = vpop.permute.xlu1 %9791  ;;  %9619 = vrot.lane.b32.xlu1 %v18989_v15, %s12747_s2  ;;  %v9794_v43 = vpop.permute.xlu0 %9793  ;;  %v9879_v17 = vrot.slane %v9872_v2, %v18924_v10  ;;  %9633 = vst.msk [vmem:[#allocation7 + $0x6] ss:$2 sm:$0x3] %vm18976_vm5, %v9630_v42  ;;  %v9924_v24 = vrot.slane %v18998_v12, %v18924_v10 }
 0xc9f   :  { %v9796_v53 = vsel %vm315_vm1, %v9792_v19, %v9794_v43  ;;  %9678 = vst.msk [vmem:[#allocation7 + $0x12] ss:$2 sm:$0x3] %vm18976_vm5, %v9675_v39  ;;  %v9804_v47 = vmax.f32 %v18829_v5, %v9794_v43  ;;  %12246 = vmatprep.subr.mxu1 %v10102_v3  ;;  %v9928_v9 = vcombine.high %v18998_v12, %v18998_v12  ;;  %vm9626_vm1 = vcmp.lt.s32.totalorder %v9594_v28, 256  ;;  %v10179_v3 = vld [vmem:[%s20325_s6 + $0x3f0] sm:$0xff] }
 0xca0   :  { %v19025_v26 = vrot.slane %v9883_v55, %v18924_v10  ;;  %9882 = vst.msk [vmem:[#allocation7 + $0x1] ss:$2 sm:$0x3] %vm18976_vm5, %v9879_v17  ;;  %v9898_v32 = vcombine.high %v9879_v17, %v9879_v17  ;;  %9927 = vst.msk [vmem:[#allocation7 + $0xd] ss:$2 sm:$0x3] %vm18976_vm5, %v9924_v24  ;;  %v9943_v21 = vcombine.high %v9924_v24, %v9924_v24  ;;  %12247 = vmatpush3.msra.mxu1 %v10086_v33 }
 0xca1   :  { %v9803_v61 = vmax.f32 %v18827_v36, %v9796_v53  ;;  %v10054_v36 = vld [vmem:[%s20325_s6 + $0x8] sm:$0xff]  ;;  %12248 = vmatprep.subr.mxu1 %v10101_v50  ;;  %v9667_v2 = vrot.slane %v9660_v57, %v18924_v10  ;;  %v9634_v22 = vcombine.high %v18989_v15, %v18989_v15  ;;  %v9935_v46 = vrot.slane %v9928_v9, %v18924_v10 }
 0xca2   :  { %v9535_v56 = vpop.permute.xlu1 %9534  ;;  %9891 = vrot.lane.b32.xlu0 %v19025_v26, %s12747_s2  ;;  %v9537_v40 = vpop.permute.xlu0 %9536  ;;  %9901 = vst.msk [vmem:[#allocation7 + $0x7] ss:$2 sm:$0x3] %vm18976_vm5, %v9898_v32  ;;  %9946 = vst.msk [vmem:[#allocation7 + $0x13] ss:$2 sm:$0x3] %vm18976_vm5, %v9943_v21  ;;  %12212 = vmatpush3.msra.mxu0 %v10054_v36  ;;  %v9902_v18 = vcombine.high %v19025_v26, %v19025_v26 }
 0xca3   :  { %v9539_v7 = vsel %vm634_vm0, %v9535_v56, %v9537_v40  ;;  %v19057_v63 = vmax.f32 %v9529_v59, %v9537_v40  ;;  %12213 = vmatprep.subr.mxu0 %v10069_v35  ;;  %12249 = vmatpush3.msra.mxu1 %v10085_v45  ;;  %v9947_v42 = vcombine.high %v9935_v46, %v9935_v46  ;;  %v12748_v43 = vmov 1983009808   ;;  %v10146_v35 = vld [vmem:[%s20325_s6 + $0x2e8] sm:$0xff] }
 0xca4   :  { %v19063_v30 = vmax.f32 %v9528_v13, %v9539_v7  ;;  %12214 = vmatpush3.msra.mxu0 %v10053_v6  ;;  %12288 = vmatprep.subr.mxu1 %v10180_v20  ;;  %v9679_v12 = vcombine.high %v9667_v2, %v9667_v2  ;;  %v10452_v17 = vunpack.c.l.s4 %v12748_v43  ;;  %v10130_v6 = vld [vmem:[%s20325_s6 + $0x268] sm:$0xff]  ;;  %v10163_v20 = vld [vmem:[%s20325_s6 + $0x370] sm:$0xff] }
 0xca5   :  { %12253 = vmatprep.subr.mxu0 %v10148_v23 }
 0xca6   :  { %v9810_v14 = vpop.permute.xlu1 %9809  ;;  %9558 = vrot.lane.b32.xlu0 %v19057_v63, %s12744_s18  ;;  %9556 = vrot.lane.b32.xlu1 %v19063_v30, %s12744_s18  ;;  %v9812_v5 = vpop.permute.xlu0 %9811  ;;  %v10453_v38 = vunpack.c.0.s8 %v10452_v17 }
 0xca7   :  { %v9814_v54 = vsel %vm634_vm0, %v9810_v14, %v9812_v5  ;;  %v19086_v44 = vmax.f32 %v9804_v47, %v9812_v5  ;;  %vm9625_vm0 = vcmp.ge.s32.totalorder %v9594_v28, 64 }
 0xca8   :  { %v19088_v1 = vmax.f32 %v9803_v61, %v9814_v54  ;;  %vm19150_vm7 = vmand %vm9625_vm0, %vm9626_vm1  ;;  %v19161_v52 = vsub.s32 %v10453_v38, %v18917_v16  ;;  %v10147_v61 = vld [vmem:[%s20325_s6 + $0x2f0] sm:$0xff] }
 0xca9   :  { %v10131_v54 = vld [vmem:[%s20325_s6 + $0x270] sm:$0xff] }
 0xcaa   :  { %9833 = vrot.lane.b32.xlu0 %v19086_v44, %s12744_s18  ;;  %9831 = vrot.lane.b32.xlu1 %v19088_v1, %s12744_s18 }
 0xcae   :  { %9576 = vrot.lane.b32.xlu0 %v19057_v63, %s12737_s29  ;;  %9574 = vrot.lane.b32.xlu1 %v19063_v30, %s12737_s29 }
 0xcb2   :  { %9851 = vrot.lane.b32.xlu0 %v19086_v44, %s12737_s29  ;;  %9849 = vrot.lane.b32.xlu1 %v19088_v1, %s12737_s29 }
 0xcb6   :  { %9668 = vrot.lane.b32.xlu0 %v9667_v2, %s12747_s2  ;;  %9635 = vrot.lane.b32.xlu1 %v9634_v22, %s12747_s2 }
 0xcba   :  { %9936 = vrot.lane.b32.xlu0 %v9935_v46, %s12747_s2  ;;  %9903 = vrot.lane.b32.xlu1 %v9902_v18, %s12747_s2  ;;  %v10145_v18 = vld [vmem:[%s20325_s6 + $0x2e0] sm:$0xff] }
 0xcbe   :  { %9948 = vrot.lane.b32.xlu0 %v9947_v42, %s12747_s2  ;;  %9680 = vrot.lane.b32.xlu1 %v9679_v12, %s12747_s2  ;;  %v10178_v42 = vld [vmem:[%s20325_s6 + $0x3e8] sm:$0xff]  ;;  %v10129_v12 = vld [vmem:[%s20325_s6 + $0x260] sm:$0xff] }
 0xd10   :  { %v9620_v15 = vpop.permute.xlu1 %9619 }
 0xd11   :  { %v9621_v4 = vrot.slane %v9620_v15, 7 }
 0xd13   :  { %v9623_v55 = vsel %vm9622_vm6, %v9621_v4, %v9620_v15 }
 0xd14   :  { %9629 = vst.msk [vmem:[#allocation7 + $0x2] ss:$2 sm:$0x3] %vm19150_vm7, %v9623_v55  ;;  %v9892_v19 = vpop.permute.xlu0 %9891 }
 0xd15   :  { %v9893_v8 = vrot.slane %v9892_v19, 7 }
 0xd17   :  { %v9894_v37 = vsel %vm9622_vm6, %v9893_v8, %v9892_v19  ;;  %v10162_v8 = vld [vmem:[%s20325_s6 + $0x368] sm:$0xff] }
 0xd18   :  { %9897 = vst.msk [vmem:[#allocation7 + $0x3] ss:$2 sm:$0x3] %vm19150_vm7, %v9894_v37  ;;  %v9557_v28 = vpop.permute.xlu1 %9556  ;;  %v9559_v29 = vpop.permute.xlu0 %9558  ;;  %v10144_v37 = vld [vmem:[%s20325_s6 + $0x2d8] sm:$0xff] }
 0xd19   :  { %v9561_v0 = vsel %vm8375_vm2, %v9557_v28, %v9559_v29  ;;  %v9569_v59 = vmax.f32 %v19057_v63, %v9559_v29  ;;  %v10132_v63 = vld [vmem:[%s20325_s6 + $0x278] sm:$0xff]  ;;  %v10177_v29 = vld [vmem:[%s20325_s6 + $0x3e0] sm:$0xff] }
 0xd1a   :  { %v9568_v25 = vmax.f32 %v19063_v30, %v9561_v0 }
 0xd1c   :  { %v9832_v26 = vpop.permute.xlu1 %9831  ;;  %v9834_v32 = vpop.permute.xlu0 %9833 }
 0xd1d   :  { %v9836_v56 = vsel %vm8375_vm2, %v9832_v26, %v9834_v32  ;;  %v9844_v21 = vmax.f32 %v19086_v44, %v9834_v32 }
 0xd1e   :  { %v9843_v30 = vmax.f32 %v19088_v1, %v9836_v56  ;;  %v10127_v56 = vld [vmem:[%s20325_s6 + $0x250] sm:$0xff] }
 0xd1f   :  { %v10047_v31 = vld [vmem:[#allocation7] sm:$0xff] }
 0xd20   :  { %v9575_v24 = vpop.permute.xlu1 %9574  ;;  %v9577_v39 = vpop.permute.xlu0 %9576  ;;  %v10457_v13 = vrot.slane %v10047_v31, %v19161_v52  ;;  %v10450_v53 = vcombine.high %v10047_v31, %v10047_v31  ;;  %v10128_v31 = vld [vmem:[%s20325_s6 + $0x258] sm:$0xff] }
 0xd21   :  { %v9579_v40 = vsel %vm8476_vm9, %v9575_v24, %v9577_v39  ;;  %v9587_v27 = vmax.f32 %v9569_v59, %v9577_v39 }
 0xd22   :  { %v9586_v11 = vmax.f32 %v9568_v25, %v9579_v40  ;;  %v10465_v16 = vcombine.high %v10457_v13, %v10457_v13  ;;  %v10464_v7 = vrot.slane %v10450_v53, %v19161_v52  ;;  %v10161_v25 = vld [vmem:[%s20325_s6 + $0x360] sm:$0xff]  ;;  %v10176_v53 = vld [vmem:[%s20325_s6 + $0x3d8] sm:$0xff] }
 0xd23   :  { %v10160_v40 = vld [vmem:[%s20325_s6 + $0x358] sm:$0xff] }
 0xd24   :  { %v9689_v48 = vcombine.low %v9586_v11, %v9587_v27  ;;  %v9734_v34 = vcombine.high %v9586_v11, %v9587_v27  ;;  %v9850_v47 = vpop.permute.xlu1 %9849  ;;  %10640 = vmatprep.mubr.f32.mxu0 %v10465_v16  ;;  %v9852_v62 = vpop.permute.xlu0 %9851  ;;  %v10466_v60 = vcombine.high %v10464_v7, %v10464_v7 }
 0xd25   :  { %v9854_v14 = vsel %vm8476_vm9, %v9850_v47, %v9852_v62  ;;  %v9862_v5 = vmax.f32 %v9844_v21, %v9852_v62  ;;  %10641 = vmatmul.mubr.f32.vlgmr.msra.gmra.mxu0 %v10457_v13  ;;  %v10143_v13 = vld [vmem:[%s20325_s6 + $0x2d0] sm:$0xff]  ;;  %vm12749_vm9 = vmmov 0  }
 0xd26   :  { %v9696_v44 = vrot.slane %v9689_v48, %v18924_v10  ;;  %v19184_v1 = vrot.slane %v9734_v34, %v18924_v10  ;;  %v9861_v36 = vmax.f32 %v9843_v30, %v9854_v14  ;;  %12254 = vmatpush3.msra.mxu0 %v10132_v63  ;;  %10710 = vmatprep.mubr.f32.mxu1 %v10466_v60  ;;  %v10142_v63 = vld [vmem:[%s20325_s6 + $0x2c8] sm:$0xff]  ;;  %v10175_v30 = vld [vmem:[%s20325_s6 + $0x3d0] sm:$0xff] }
 0xd27   :  { %12255 = vmatprep.subr.mxu0 %v10147_v61  ;;  %10711 = vmatmul.mubr.f32.vlgmr.msra.gmra.mxu1 %v10464_v7  ;;  %v10126_v61 = vld [vmem:[%s20325_s6 + $0x248] sm:$0xff]  ;;  %v10159_v14 = vld [vmem:[%s20325_s6 + $0x350] sm:$0xff] }
 0xd28   :  { %v9703_v33 = vrot.slane %v9696_v44, %v18924_v10  ;;  %v9707_v50 = vcombine.high %v9696_v44, %v9696_v44  ;;  %v9748_v23 = vrot.slane %v19184_v1, %v18924_v10  ;;  %12256 = vmatpush3.msra.mxu0 %v10131_v54  ;;  %v9636_v45 = vpop.permute.xlu1 %9635  ;;  %v9669_v57 = vpop.permute.xlu0 %9668  ;;  %v9957_v9 = vcombine.low %v9861_v36, %v9862_v5 }
 0xd29   :  { %v10002_v2 = vcombine.high %v9861_v36, %v9862_v5  ;;  %12289 = vmatpush3.msra.mxu1 %v10164_v58  ;;  %v9637_v22 = vrot.slane %v9636_v45, 7  ;;  %12257 = vmatprep.subr.mxu0 %v10146_v35  ;;  %v9670_v46 = vrot.slane %v9669_v57, 7  ;;  %v9752_v5 = vcombine.high %v19184_v1, %v19184_v1  ;;  %v10141_v36 = vld [vmem:[%s20325_s6 + $0x2c0] sm:$0xff]  ;;  %v10174_v58 = vld [vmem:[%s20325_s6 + $0x3c8] sm:$0xff]  ;;  %v10140_v35 = vld [vmem:[%s20325_s6 + $0x2b8] sm:$0xff] }
 0xd2a   :  { %9706 = vst.msk [vmem:[#allocation7 + $0x18] ss:$2 sm:$0x3] %vm18976_vm5, %v9703_v33  ;;  %9751 = vst.msk [vmem:[#allocation7 + $0x24] ss:$2 sm:$0x3] %vm18976_vm5, %v9748_v23  ;;  %12290 = vmatprep.subr.mxu1 %v10179_v3  ;;  %12258 = vmatpush3.msra.mxu0 %v10130_v6  ;;  %v19218_v15 = vrot.slane %v9707_v50, %v18924_v10  ;;  %v9722_v4 = vcombine.high %v9703_v33, %v9703_v33 }
 0xd2b   :  { %v9964_v55 = vrot.slane %v9957_v9, %v18924_v10  ;;  %v19222_v19 = vrot.slane %v10002_v2, %v18924_v10  ;;  %v9638_v43 = vsel %vm9622_vm6, %v9637_v22, %v9636_v45  ;;  %v9671_v17 = vsel %vm9622_vm6, %v9670_v46, %v9669_v57  ;;  %12291 = vmatpush3.msra.mxu1 %v10163_v20  ;;  %v10158_v1 = vld [vmem:[%s20325_s6 + $0x348] sm:$0xff]  ;;  %v10173_v3 = vld [vmem:[%s20325_s6 + $0x3c0] sm:$0xff]  ;;  %v10124_v50 = vld [vmem:[%s20325_s6 + $0x238] sm:$0xff] }
 0xd2c   :  { %9641 = vst.msk [vmem:[#allocation7 + $0x8] ss:$2 sm:$0x3] %vm19150_vm7, %v9638_v43  ;;  %9674 = vst.msk [vmem:[#allocation7 + $0xe] ss:$2 sm:$0x3] %vm19150_vm7, %v9671_v17  ;;  %12259 = vmatprep.subr.mxu0 %v10145_v18  ;;  %12292 = vmatprep.subr.mxu1 %v10178_v42  ;;  %v9904_v28 = vpop.permute.xlu1 %9903  ;;  %v9937_v38 = vpop.permute.xlu0 %9936  ;;  %v9767_v26 = vcombine.high %v9748_v23, %v9748_v23  ;;  %v9726_v60 = vcombine.high %v19218_v15, %v19218_v15 }
 0xd2d   :  { %9725 = vst.msk [vmem:[#allocation7 + $0x1e] ss:$2 sm:$0x3] %vm18976_vm5, %v9722_v4  ;;  %v9971_v32 = vrot.slane %v9964_v55, %v18924_v10  ;;  %v9975_v0 = vcombine.high %v9964_v55, %v9964_v55  ;;  %v10016_v59 = vrot.slane %v19222_v19, %v18924_v10  ;;  %12260 = vmatpush3.msra.mxu0 %v10129_v12  ;;  %v9905_v24 = vrot.slane %v9904_v28, 7  ;;  %v10157_v23 = vld [vmem:[%s20325_s6 + $0x340] sm:$0xff]  ;;  %v10139_v57 = vld [vmem:[%s20325_s6 + $0x2b0] sm:$0xff] }
 0xd2e   :  { %12293 = vmatpush3.msra.mxu1 %v10162_v8  ;;  %12261 = vmatprep.subr.mxu0 %v10144_v37  ;;  %v9938_v39 = vrot.slane %v9937_v38, 7  ;;  %9770 = vst.msk [vmem:[#allocation7 + $0x2a] ss:$2 sm:$0x3] %vm18976_vm5, %v9767_v26  ;;  %v9759_v6 = vrot.slane %v9752_v5, %v18924_v10  ;;  %v10020_v45 = vcombine.high %v19222_v19, %v19222_v19  ;;  %v10172_v20 = vld [vmem:[%s20325_s6 + $0x3b8] sm:$0xff]  ;;  %v10123_v2 = vld [vmem:[%s20325_s6 + $0x230] sm:$0xff] }
 0xd2f   :  { %9974 = vst.msk [vmem:[#allocation7 + $0x19] ss:$2 sm:$0x3] %vm18976_vm5, %v9971_v32  ;;  %10019 = vst.msk [vmem:[#allocation7 + $0x25] ss:$2 sm:$0x3] %vm18976_vm5, %v10016_v59  ;;  %12294 = vmatprep.subr.mxu1 %v10177_v29  ;;  %9715 = vrot.lane.b32.xlu1 %v19218_v15, %s12747_s2  ;;  %v9982_v27 = vrot.slane %v9975_v0, %v18924_v10  ;;  %v9990_v11 = vcombine.high %v9971_v32, %v9971_v32 }
 0xd30   :  { %v9906_v16 = vsel %vm9622_vm6, %v9905_v24, %v9904_v28  ;;  %v9939_v7 = vsel %vm9622_vm6, %v9938_v39, %v9937_v38  ;;  %12262 = vmatpush3.msra.mxu0 %v10128_v31  ;;  %12295 = vmatpush3.msra.mxu1 %v10161_v25  ;;  %v9681_v21 = vpop.permute.xlu1 %9680  ;;  %v9949_v48 = vpop.permute.xlu0 %9948  ;;  %v10035_v34 = vcombine.high %v10016_v59, %v10016_v59  ;;  %v10156_v22 = vld [vmem:[%s20325_s6 + $0x338] sm:$0xff]  ;;  %v10138_v46 = vld [vmem:[%s20325_s6 + $0x2a8] sm:$0xff]  ;;  %v10171_v18 = vld [vmem:[%s20325_s6 + $0x3b0] sm:$0xff] }
 0xd31   :  { %9909 = vst.msk [vmem:[#allocation7 + $0x9] ss:$2 sm:$0x3] %vm19150_vm7, %v9906_v16  ;;  %9942 = vst.msk [vmem:[#allocation7 + $0xf] ss:$2 sm:$0x3] %vm19150_vm7, %v9939_v7  ;;  %12263 = vmatprep.subr.mxu0 %v10143_v13  ;;  %12296 = vmatprep.subr.mxu1 %v10176_v53  ;;  %v9994_v33 = vcombine.high %v9982_v27, %v9982_v27  ;;  %v10027_v15 = vrot.slane %v10020_v45, %v18924_v10 }
 0xd32   :  { %v9682_v47 = vrot.slane %v9681_v21, 7  ;;  %v9950_v62 = vrot.slane %v9949_v48, 7  ;;  %9993 = vst.msk [vmem:[#allocation7 + $0x1f] ss:$2 sm:$0x3] %vm18976_vm5, %v9990_v11  ;;  %12264 = vmatpush3.msra.mxu0 %v10127_v56  ;;  %12297 = vmatpush3.msra.mxu1 %v10160_v40  ;;  %v9771_v4 = vcombine.high %v9759_v6, %v9759_v6  ;;  %v10122_v55 = vld [vmem:[%s20325_s6 + $0x228] sm:$0xff] }
 0xd33   :  { %10038 = vst.msk [vmem:[#allocation7 + $0x2b] ss:$2 sm:$0x3] %vm18976_vm5, %v10035_v34  ;;  %12265 = vmatprep.subr.mxu0 %v10142_v63  ;;  %12298 = vmatprep.subr.mxu1 %v10175_v30  ;;  %v10155_v19 = vld [vmem:[%s20325_s6 + $0x330] sm:$0xff]  ;;  %v10137_v43 = vld [vmem:[%s20325_s6 + $0x2a0] sm:$0xff]  ;;  %v10170_v17 = vld [vmem:[%s20325_s6 + $0x3a8] sm:$0xff]  ;;  %v10039_v26 = vcombine.high %v10027_v15, %v10027_v15 }
 0xd34   :  { %v9683_v54 = vsel %vm9622_vm6, %v9682_v47, %v9681_v21  ;;  %v9951_v44 = vsel %vm9622_vm6, %v9950_v62, %v9949_v48  ;;  %9727 = vrot.lane.b32.xlu1 %v9726_v60, %s12747_s2  ;;  %9983 = vrot.lane.b32.xlu0 %v9982_v27, %s12747_s2  ;;  %v10121_v10 = vld [vmem:[%s20325_s6 + $0x220] sm:$0xff]  ;;  %v10154_v8 = vld [vmem:[%s20325_s6 + $0x328] sm:$0xff] }
 0xd35   :  { %9686 = vst.msk [vmem:[#allocation7 + $0x14] ss:$2 sm:$0x3] %vm19150_vm7, %v9683_v54  ;;  %9954 = vst.msk [vmem:[#allocation7 + $0x15] ss:$2 sm:$0x3] %vm19150_vm7, %v9951_v44  ;;  %12266 = vmatpush3.msra.mxu0 %v10126_v61  ;;  %12299 = vmatpush3.msra.mxu1 %v10159_v14 }
 0xd36   :  { %12267 = vmatprep.subr.mxu0 %v10141_v36  ;;  %12300 = vmatprep.subr.mxu1 %v10174_v58  ;;  %v10136_v28 = vld [vmem:[%s20325_s6 + $0x298] sm:$0xff]  ;;  %v10169_v29 = vld [vmem:[%s20325_s6 + $0x3a0] sm:$0xff]  ;;  %v10135_v59 = vld [vmem:[%s20325_s6 + $0x290] sm:$0xff] }
 0xd37   :  { %12268 = vmatpush3.msra.mxu0 %v10125_v49  ;;  %12301 = vmatpush3.msra.mxu1 %v10158_v1  ;;  %v10120_v32 = vld [vmem:[%s20325_s6 + $0x218] sm:$0xff]  ;;  %v10153_v0 = vld [vmem:[%s20325_s6 + $0x320] sm:$0xff]  ;;  %v10119_v24 = vld [vmem:[%s20325_s6 + $0x210] sm:$0xff] }
 0xd38   :  { %12269 = vmatprep.subr.mxu0 %v10140_v35  ;;  %12302 = vmatprep.subr.mxu1 %v10173_v3  ;;  %v10048_v9 = vld [vmem:[#allocation7 + $0x8] sm:$0xff]  ;;  %v10168_v31 = vld [vmem:[%s20325_s6 + $0x398] sm:$0xff]  ;;  %v10134_v13 = vld [vmem:[%s20325_s6 + $0x288] sm:$0xff] }
 0xd39   :  { %9760 = vrot.lane.b32.xlu0 %v9759_v6, %s12747_s2  ;;  %9995 = vrot.lane.b32.xlu1 %v9994_v33, %s12747_s2  ;;  %v10467_v42 = vcombine.high %v10048_v9, %v10048_v9  ;;  %v19353_v12 = vrot.slane %v10048_v9, %v19161_v52  ;;  %v10152_v39 = vld [vmem:[%s20325_s6 + $0x318] sm:$0xff]  ;;  %v10167_v56 = vld [vmem:[%s20325_s6 + $0x390] sm:$0xff] }
 0xd3a   :  { %12270 = vmatpush3.msra.mxu0 %v10124_v50  ;;  %12303 = vmatpush3.msra.mxu1 %v10157_v23  ;;  %v10118_v40 = vld [vmem:[%s20325_s6 + $0x208] sm:$0xff]  ;;  %v10151_v27 = vld [vmem:[%s20325_s6 + $0x310] sm:$0xff]  ;;  %v10133_v11 = vld [vmem:[%s20325_s6 + $0x280] sm:$0xff] }
 0xd3b   :  { %12271 = vmatprep.subr.mxu0 %v10139_v57  ;;  %12304 = vmatprep.subr.mxu1 %v10172_v20  ;;  %v19377_v37 = vrot.slane %v10467_v42, %v19161_v52  ;;  %v10482_v38 = vcombine.high %v19353_v12, %v19353_v12  ;;  %v10166_v16 = vld [vmem:[%s20325_s6 + $0x388] sm:$0xff]  ;;  %v10117_v7 = vld [vmem:[%s20325_s6 + $0x200] sm:$0xff]  ;;  %v10212_v34 = vld [vmem:[%s20325_s6 + $0x4f8] sm:$0xff] }
 0xd3c   :  { %12272 = vmatpush3.msra.mxu0 %v10123_v2  ;;  %12305 = vmatpush3.msra.mxu1 %v10156_v22  ;;  %v10049_v53 = vld [vmem:[#allocation7 + $0x10] sm:$0xff]  ;;  %v10150_v63 = vld [vmem:[%s20325_s6 + $0x308] sm:$0xff]  ;;  %v10165_v48 = vld [vmem:[%s20325_s6 + $0x380] sm:$0xff] }
 0xd3d   :  { %12273 = vmatprep.subr.mxu0 %v10138_v46  ;;  %12306 = vmatprep.subr.mxu1 %v10171_v18  ;;  %v10483_v25 = vcombine.high %v19377_v37, %v19377_v37  ;;  %v10484_v21 = vcombine.high %v10049_v53, %v10049_v53  ;;  %v19433_v30 = vrot.slane %v10049_v53, %v19161_v52  ;;  %v10149_v47 = vld [vmem:[%s20325_s6 + $0x300] sm:$0xff]  ;;  %v10196_v62 = vld [vmem:[%s20325_s6 + $0x478] sm:$0xff]  ;;  %v10211_v14 = vld [vmem:[%s20325_s6 + $0x4f0] sm:$0xff] }
 0xd3e   :  { %10028 = vrot.lane.b32.xlu0 %v10027_v15, %s12747_s2  ;;  %9772 = vrot.lane.b32.xlu1 %v9771_v4, %s12747_s2  ;;  %v10244_v5 = vld [vmem:[%s20325_s6 + $0x5f8] sm:$0xff]  ;;  %v10195_v54 = vld [vmem:[%s20325_s6 + $0x470] sm:$0xff] }
 0xd3f   :  { %12274 = vmatpush3.msra.mxu0 %v10122_v55  ;;  %12307 = vmatpush3.msra.mxu1 %v10155_v19  ;;  %v19449_v60 = vrot.slane %v10484_v21, %v19161_v52  ;;  %v10499_v61 = vcombine.high %v19433_v30, %v19433_v30  ;;  %v10228_v44 = vld [vmem:[%s20325_s6 + $0x578] sm:$0xff]  ;;  %v10210_v36 = vld [vmem:[%s20325_s6 + $0x4e8] sm:$0xff]  ;;  %v10243_v49 = vld [vmem:[%s20325_s6 + $0x5f0] sm:$0xff] }
 0xd40   :  { %12275 = vmatprep.subr.mxu0 %v10137_v43  ;;  %12308 = vmatprep.subr.mxu1 %v10170_v17  ;;  %v10194_v1 = vld [vmem:[%s20325_s6 + $0x468] sm:$0xff]  ;;  %v10227_v35 = vld [vmem:[%s20325_s6 + $0x570] sm:$0xff]  ;;  %v10209_v3 = vld [vmem:[%s20325_s6 + $0x4e0] sm:$0xff] }
 0xd41   :  { %12276 = vmatpush3.msra.mxu0 %v10121_v10  ;;  %12309 = vmatpush3.msra.mxu1 %v10154_v8  ;;  %v10500_v58 = vcombine.high %v19449_v60, %v19449_v60  ;;  %v10242_v6 = vld [vmem:[%s20325_s6 + $0x5e8] sm:$0xff]  ;;  %v10193_v33 = vld [vmem:[%s20325_s6 + $0x460] sm:$0xff]  ;;  %v10208_v23 = vld [vmem:[%s20325_s6 + $0x4d8] sm:$0xff] }
 0xd42   :  { %12277 = vmatprep.subr.mxu0 %v10136_v28  ;;  %12310 = vmatprep.subr.mxu1 %v10169_v29  ;;  %v10226_v50 = vld [vmem:[%s20325_s6 + $0x568] sm:$0xff]  ;;  %v10241_v45 = vld [vmem:[%s20325_s6 + $0x5e0] sm:$0xff]  ;;  %v10192_v57 = vld [vmem:[%s20325_s6 + $0x458] sm:$0xff] }
 0xd43   :  { %10040 = vrot.lane.b32.xlu0 %v10039_v26, %s12747_s2  ;;  %10780 = vmatprep.mubr.f32.mxu0 %v10482_v38  ;;  %v10225_v20 = vld [vmem:[%s20325_s6 + $0x560] sm:$0xff]  ;;  %v10207_v9 = vld [vmem:[%s20325_s6 + $0x4d0] sm:$0xff]  ;;  %v10240_v2 = vld [vmem:[%s20325_s6 + $0x5d8] sm:$0xff] }
 0xd44   :  { %12278 = vmatpush3.msra.mxu0 %v10120_v32  ;;  %12311 = vmatpush3.msra.mxu1 %v10153_v0  ;;  %v10191_v22 = vld [vmem:[%s20325_s6 + $0x450] sm:$0xff]  ;;  %v10224_v46 = vld [vmem:[%s20325_s6 + $0x558] sm:$0xff]  ;;  %v10206_v18 = vld [vmem:[%s20325_s6 + $0x4c8] sm:$0xff] }
 0xd45   :  { %12279 = vmatprep.subr.mxu0 %v10135_v59  ;;  %12312 = vmatprep.subr.mxu1 %v10168_v31  ;;  %v10239_v42 = vld [vmem:[%s20325_s6 + $0x5d0] sm:$0xff]  ;;  %v10205_v4 = vld [vmem:[%s20325_s6 + $0x4c0] sm:$0xff]  ;;  %v10238_v55 = vld [vmem:[%s20325_s6 + $0x5c8] sm:$0xff] }
 0xd46   :  { %10850 = vmatprep.mubr.f32.mxu1 %v10483_v25  ;;  %12280 = vmatpush3.msra.mxu0 %v10119_v24  ;;  %v10223_v15 = vld [vmem:[%s20325_s6 + $0x550] sm:$0xff]  ;;  %v10189_v19 = vld [vmem:[%s20325_s6 + $0x440] sm:$0xff]  ;;  %v10222_v43 = vld [vmem:[%s20325_s6 + $0x548] sm:$0xff] }
 0xd47   :  { %12313 = vmatpush3.msra.mxu1 %v10152_v39  ;;  %12281 = vmatprep.subr.mxu0 %v10134_v13  ;;  %v10204_v17 = vld [vmem:[%s20325_s6 + $0x4b8] sm:$0xff]  ;;  %v10237_v10 = vld [vmem:[%s20325_s6 + $0x5c0] sm:$0xff]  ;;  %v10203_v28 = vld [vmem:[%s20325_s6 + $0x4b0] sm:$0xff] }
 0xd48   :  { %12314 = vmatprep.subr.mxu1 %v10167_v56  ;;  %12282 = vmatpush3.msra.mxu0 %v10118_v40  ;;  %v10188_v8 = vld [vmem:[%s20325_s6 + $0x438] sm:$0xff]  ;;  %v10187_v38 = vld [vmem:[%s20325_s6 + $0x430] sm:$0xff]  ;;  %v10202_v32 = vld [vmem:[%s20325_s6 + $0x4a8] sm:$0xff] }
 0xd49   :  { %12315 = vmatpush3.msra.mxu1 %v10151_v27  ;;  %12283 = vmatprep.subr.mxu0 %v10133_v11  ;;  %v10236_v29 = vld [vmem:[%s20325_s6 + $0x5b8] sm:$0xff]  ;;  %v10235_v0 = vld [vmem:[%s20325_s6 + $0x5b0] sm:$0xff]  ;;  %v10186_v59 = vld [vmem:[%s20325_s6 + $0x428] sm:$0xff] }
 0xd4a   :  { %12316 = vmatprep.subr.mxu1 %v10166_v16  ;;  %12284 = vmatpush3.msra.mxu0 %v10117_v7  ;;  %v10220_v26 = vld [vmem:[%s20325_s6 + $0x538] sm:$0xff]  ;;  %v10219_v31 = vld [vmem:[%s20325_s6 + $0x530] sm:$0xff]  ;;  %v10201_v25 = vld [vmem:[%s20325_s6 + $0x4a0] sm:$0xff] }
 0xd4b   :  { %12317 = vmatpush3.msra.mxu1 %v10150_v63  ;;  %10781 = vmatmul.mubr.f32.vlgmr.msra.gmra.mxu0 %v19353_v12  ;;  %v10190_v12 = vld [vmem:[%s20325_s6 + $0x448] sm:$0xff]  ;;  %v10185_v39 = vld [vmem:[%s20325_s6 + $0x420] sm:$0xff]  ;;  %v10200_v53 = vld [vmem:[%s20325_s6 + $0x498] sm:$0xff] }
 0xd4c   :  { %12318 = vmatprep.subr.mxu1 %v10165_v48  ;;  %12323 = vmatprep.subr.mxu0 %v10212_v34  ;;  %v10234_v24 = vld [vmem:[%s20325_s6 + $0x5a8] sm:$0xff]  ;;  %v10233_v56 = vld [vmem:[%s20325_s6 + $0x5a0] sm:$0xff]  ;;  %v10184_v40 = vld [vmem:[%s20325_s6 + $0x418] sm:$0xff] }
 0xd4d   :  { %12319 = vmatpush3.msra.mxu1 %v10149_v47  ;;  %12324 = vmatpush3.msra.mxu0 %v10196_v62  ;;  %v10218_v13 = vld [vmem:[%s20325_s6 + $0x528] sm:$0xff]  ;;  %v10217_v27 = vld [vmem:[%s20325_s6 + $0x520] sm:$0xff]  ;;  %v10199_v11 = vld [vmem:[%s20325_s6 + $0x490] sm:$0xff] }
 0xd4e   :  { %10920 = vmatprep.mubr.f32.mxu0 %v10499_v61  ;;  %10851 = vmatmul.mubr.f32.vlgmr.msra.gmra.mxu1 %v19377_v37  ;;  %v10221_v37 = vld [vmem:[%s20325_s6 + $0x540] sm:$0xff]  ;;  %v10232_v16 = vld [vmem:[%s20325_s6 + $0x598] sm:$0xff]  ;;  %v10183_v7 = vld [vmem:[%s20325_s6 + $0x410] sm:$0xff] }
 0xd4f   :  { %12325 = vmatprep.subr.mxu0 %v10211_v14  ;;  %12358 = vmatprep.subr.mxu1 %v10244_v5  ;;  %v10216_v21 = vld [vmem:[%s20325_s6 + $0x518] sm:$0xff]  ;;  %v10198_v63 = vld [vmem:[%s20325_s6 + $0x488] sm:$0xff]  ;;  %v10231_v48 = vld [vmem:[%s20325_s6 + $0x590] sm:$0xff] }
 0xd50   :  { %12326 = vmatpush3.msra.mxu0 %v10195_v54  ;;  %12359 = vmatpush3.msra.mxu1 %v10228_v44  ;;  %v10182_v34 = vld [vmem:[%s20325_s6 + $0x408] sm:$0xff]  ;;  %v10215_v47 = vld [vmem:[%s20325_s6 + $0x510] sm:$0xff]  ;;  %v10197_v62 = vld [vmem:[%s20325_s6 + $0x480] sm:$0xff] }
 0xd51   :  { %10990 = vmatprep.mubr.f32.mxu1 %v10500_v58  ;;  %12327 = vmatprep.subr.mxu0 %v10210_v36  ;;  %v10230_v61 = vld [vmem:[%s20325_s6 + $0x588] sm:$0xff]  ;;  %v10181_v14 = vld [vmem:[%s20325_s6 + $0x400] sm:$0xff]  ;;  %v10276_v44 = vld [vmem:[%s20325_s6 + $0x6f8] sm:$0xff] }
 0xd52   :  { %12360 = vmatprep.subr.mxu1 %v10243_v49  ;;  %12328 = vmatpush3.msra.mxu0 %v10194_v1  ;;  %v10214_v5 = vld [vmem:[%s20325_s6 + $0x508] sm:$0xff]  ;;  %v10229_v54 = vld [vmem:[%s20325_s6 + $0x580] sm:$0xff]  ;;  %v10260_v58 = vld [vmem:[%s20325_s6 + $0x678] sm:$0xff] }
 0xd53   :  { %12361 = vmatpush3.msra.mxu1 %v10227_v35  ;;  %12329 = vmatprep.subr.mxu0 %v10209_v3  ;;  %v10213_v36 = vld [vmem:[%s20325_s6 + $0x500] sm:$0xff]  ;;  %v10275_v49 = vld [vmem:[%s20325_s6 + $0x6f0] sm:$0xff]  ;;  %v10308_v1 = vld [vmem:[%s20325_s6 + $0x7f8] sm:$0xff] }
 0xd54   :  { %12362 = vmatprep.subr.mxu1 %v10242_v6  ;;  %12330 = vmatpush3.msra.mxu0 %v10193_v33  ;;  %v10259_v35 = vld [vmem:[%s20325_s6 + $0x670] sm:$0xff]  ;;  %v10274_v3 = vld [vmem:[%s20325_s6 + $0x6e8] sm:$0xff] }
 0xd55   :  { %12363 = vmatpush3.msra.mxu1 %v10226_v50  ;;  %12331 = vmatprep.subr.mxu0 %v10208_v23  ;;  %v10307_v6 = vld [vmem:[%s20325_s6 + $0x7f0] sm:$0xff]  ;;  %v10258_v33 = vld [vmem:[%s20325_s6 + $0x668] sm:$0xff]  ;;  %v10273_v23 = vld [vmem:[%s20325_s6 + $0x6e0] sm:$0xff] }
 0xd56   :  { %12364 = vmatprep.subr.mxu1 %v10241_v45  ;;  %12332 = vmatpush3.msra.mxu0 %v10192_v57  ;;  %v10291_v50 = vld [vmem:[%s20325_s6 + $0x770] sm:$0xff]  ;;  %v10257_v45 = vld [vmem:[%s20325_s6 + $0x660] sm:$0xff]  ;;  %v10290_v57 = vld [vmem:[%s20325_s6 + $0x768] sm:$0xff] }
 0xd57   :  { %12365 = vmatpush3.msra.mxu1 %v10225_v20  ;;  %12333 = vmatprep.subr.mxu0 %v10207_v9  ;;  %v10272_v20 = vld [vmem:[%s20325_s6 + $0x6d8] sm:$0xff]  ;;  %v10305_v9 = vld [vmem:[%s20325_s6 + $0x7e0] sm:$0xff] }
 0xd58   :  { %12366 = vmatprep.subr.mxu1 %v10240_v2  ;;  %12334 = vmatpush3.msra.mxu0 %v10191_v22  ;;  %v10256_v2 = vld [vmem:[%s20325_s6 + $0x658] sm:$0xff]  ;;  %v10289_v22 = vld [vmem:[%s20325_s6 + $0x760] sm:$0xff] }
 0xd59   :  { %12367 = vmatpush3.msra.mxu1 %v10224_v46  ;;  %12335 = vmatprep.subr.mxu0 %v10206_v18  ;;  %v10271_v46 = vld [vmem:[%s20325_s6 + $0x6d0] sm:$0xff]  ;;  %v10304_v18 = vld [vmem:[%s20325_s6 + $0x7d8] sm:$0xff] }
 0xd5a   :  { %12368 = vmatprep.subr.mxu1 %v10239_v42  ;;  %12336 = vmatpush3.msra.mxu0 %v10190_v12  ;;  %v10255_v42 = vld [vmem:[%s20325_s6 + $0x650] sm:$0xff]  ;;  %v10288_v12 = vld [vmem:[%s20325_s6 + $0x758] sm:$0xff] }
 0xd5b   :  { %12369 = vmatpush3.msra.mxu1 %v10223_v15  ;;  %12337 = vmatprep.subr.mxu0 %v10205_v4  ;;  %v10270_v15 = vld [vmem:[%s20325_s6 + $0x6c8] sm:$0xff]  ;;  %v10303_v4 = vld [vmem:[%s20325_s6 + $0x7d0] sm:$0xff] }
 0xd5c   :  { %12370 = vmatprep.subr.mxu1 %v10238_v55  ;;  %12338 = vmatpush3.msra.mxu0 %v10189_v19  ;;  %v10254_v55 = vld [vmem:[%s20325_s6 + $0x648] sm:$0xff]  ;;  %v10287_v19 = vld [vmem:[%s20325_s6 + $0x750] sm:$0xff] }
 0xd5d   :  { %12371 = vmatpush3.msra.mxu1 %v10222_v43  ;;  %12339 = vmatprep.subr.mxu0 %v10204_v17  ;;  %v10269_v43 = vld [vmem:[%s20325_s6 + $0x6c0] sm:$0xff]  ;;  %v10302_v17 = vld [vmem:[%s20325_s6 + $0x7c8] sm:$0xff] }
 0xd5e   :  { %12372 = vmatprep.subr.mxu1 %v10237_v10  ;;  %12340 = vmatpush3.msra.mxu0 %v10188_v8  ;;  %v10253_v10 = vld [vmem:[%s20325_s6 + $0x640] sm:$0xff]  ;;  %v10286_v8 = vld [vmem:[%s20325_s6 + $0x748] sm:$0xff] }
 0xd5f   :  { %12373 = vmatpush3.msra.mxu1 %v10221_v37  ;;  %12341 = vmatprep.subr.mxu0 %v10203_v28  ;;  %v10268_v37 = vld [vmem:[%s20325_s6 + $0x6b8] sm:$0xff]  ;;  %v10301_v28 = vld [vmem:[%s20325_s6 + $0x7c0] sm:$0xff] }
 0xd60   :  { %12374 = vmatprep.subr.mxu1 %v10236_v29  ;;  %12342 = vmatpush3.msra.mxu0 %v10187_v38  ;;  %v10252_v29 = vld [vmem:[%s20325_s6 + $0x638] sm:$0xff]  ;;  %v10285_v38 = vld [vmem:[%s20325_s6 + $0x740] sm:$0xff] }
 0xd61   :  { %12375 = vmatpush3.msra.mxu1 %v10220_v26  ;;  %12343 = vmatprep.subr.mxu0 %v10202_v32  ;;  %v10267_v26 = vld [vmem:[%s20325_s6 + $0x6b0] sm:$0xff]  ;;  %v10300_v32 = vld [vmem:[%s20325_s6 + $0x7b8] sm:$0xff] }
 0xd62   :  { %12376 = vmatprep.subr.mxu1 %v10235_v0  ;;  %12344 = vmatpush3.msra.mxu0 %v10186_v59  ;;  %v10251_v0 = vld [vmem:[%s20325_s6 + $0x630] sm:$0xff]  ;;  %v10284_v59 = vld [vmem:[%s20325_s6 + $0x738] sm:$0xff] }
 0xd63   :  { %12377 = vmatpush3.msra.mxu1 %v10219_v31  ;;  %12345 = vmatprep.subr.mxu0 %v10201_v25  ;;  %v10266_v31 = vld [vmem:[%s20325_s6 + $0x6a8] sm:$0xff]  ;;  %v10299_v25 = vld [vmem:[%s20325_s6 + $0x7b0] sm:$0xff] }
 0xd64   :  { %12378 = vmatprep.subr.mxu1 %v10234_v24  ;;  %12346 = vmatpush3.msra.mxu0 %v10185_v39  ;;  %v10250_v24 = vld [vmem:[%s20325_s6 + $0x628] sm:$0xff]  ;;  %v10283_v39 = vld [vmem:[%s20325_s6 + $0x730] sm:$0xff] }
 0xd65   :  { %12379 = vmatpush3.msra.mxu1 %v10218_v13  ;;  %12347 = vmatprep.subr.mxu0 %v10200_v53  ;;  %v10265_v13 = vld [vmem:[%s20325_s6 + $0x6a0] sm:$0xff]  ;;  %v10298_v53 = vld [vmem:[%s20325_s6 + $0x7a8] sm:$0xff] }
 0xd66   :  { %12380 = vmatprep.subr.mxu1 %v10233_v56  ;;  %12348 = vmatpush3.msra.mxu0 %v10184_v40  ;;  %v10249_v56 = vld [vmem:[%s20325_s6 + $0x620] sm:$0xff]  ;;  %v10282_v40 = vld [vmem:[%s20325_s6 + $0x728] sm:$0xff] }
 0xd67   :  { %12381 = vmatpush3.msra.mxu1 %v10217_v27  ;;  %12349 = vmatprep.subr.mxu0 %v10199_v11  ;;  %v10264_v27 = vld [vmem:[%s20325_s6 + $0x698] sm:$0xff]  ;;  %v10297_v11 = vld [vmem:[%s20325_s6 + $0x7a0] sm:$0xff] }
 0xd68   :  { %12382 = vmatprep.subr.mxu1 %v10232_v16  ;;  %12350 = vmatpush3.msra.mxu0 %v10183_v7  ;;  %v10248_v16 = vld [vmem:[%s20325_s6 + $0x618] sm:$0xff]  ;;  %v10281_v7 = vld [vmem:[%s20325_s6 + $0x720] sm:$0xff] }
 0xd69   :  { %12383 = vmatpush3.msra.mxu1 %v10216_v21  ;;  %12351 = vmatprep.subr.mxu0 %v10198_v63  ;;  %v10263_v21 = vld [vmem:[%s20325_s6 + $0x690] sm:$0xff]  ;;  %v10296_v63 = vld [vmem:[%s20325_s6 + $0x798] sm:$0xff] }
 0xd6a   :  { %12384 = vmatprep.subr.mxu1 %v10231_v48  ;;  %12352 = vmatpush3.msra.mxu0 %v10182_v34  ;;  %v10247_v48 = vld [vmem:[%s20325_s6 + $0x610] sm:$0xff]  ;;  %v10280_v34 = vld [vmem:[%s20325_s6 + $0x718] sm:$0xff] }
 0xd6b   :  { %12385 = vmatpush3.msra.mxu1 %v10215_v47  ;;  %12353 = vmatprep.subr.mxu0 %v10197_v62  ;;  %v10262_v47 = vld [vmem:[%s20325_s6 + $0x688] sm:$0xff]  ;;  %v10295_v62 = vld [vmem:[%s20325_s6 + $0x790] sm:$0xff] }
 0xd6c   :  { %12386 = vmatprep.subr.mxu1 %v10230_v61  ;;  %12354 = vmatpush3.msra.mxu0 %v10181_v14  ;;  %v10246_v61 = vld [vmem:[%s20325_s6 + $0x608] sm:$0xff]  ;;  %v10279_v14 = vld [vmem:[%s20325_s6 + $0x710] sm:$0xff] }
 0xd6d   :  { %12387 = vmatpush3.msra.mxu1 %v10214_v5  ;;  %10921 = vmatmul.mubr.f32.vlgmr.msra.gmra.mxu0 %v19433_v30  ;;  %v10292_v30 = vld [vmem:[%s20325_s6 + $0x778] sm:$0xff]  ;;  %v10261_v5 = vld [vmem:[%s20325_s6 + $0x680] sm:$0xff] }
 0xd6e   :  { %12388 = vmatprep.subr.mxu1 %v10229_v54  ;;  %12393 = vmatprep.subr.mxu0 %v10276_v44  ;;  %v10294_v54 = vld [vmem:[%s20325_s6 + $0x788] sm:$0xff]  ;;  %v10245_v44 = vld [vmem:[%s20325_s6 + $0x600] sm:$0xff] }
 0xd6f   :  { %12389 = vmatpush3.msra.mxu1 %v10213_v36  ;;  %12394 = vmatpush3.msra.mxu0 %v10260_v58  ;;  %v10278_v36 = vld [vmem:[%s20325_s6 + $0x708] sm:$0xff]  ;;  %v10340_v58 = vld [vmem:[%s20325_s6 + $0x8f8] sm:$0xff] }
 0xd70   :  { %10991 = vmatmul.mubr.f32.vlgmr.msra.gmra.mxu1 %v19449_v60  ;;  %12395 = vmatprep.subr.mxu0 %v10275_v49  ;;  %v10306_v60 = vld [vmem:[%s20325_s6 + $0x7e8] sm:$0xff]  ;;  %v10293_v49 = vld [vmem:[%s20325_s6 + $0x780] sm:$0xff] }
 0xd71   :  { %12428 = vmatprep.subr.mxu1 %v10308_v1  ;;  %12396 = vmatpush3.msra.mxu0 %v10259_v35  ;;  %v10277_v1 = vld [vmem:[%s20325_s6 + $0x700] sm:$0xff]  ;;  %v10372_v35 = vld [vmem:[%s20325_s6 + $0x9f8] sm:$0xff] }
 0xd72   :  { %12429 = vmatpush3.msra.mxu1 %v10292_v30  ;;  %12397 = vmatprep.subr.mxu0 %v10274_v3 }
 0xd73   :  { %12430 = vmatprep.subr.mxu1 %v10307_v6  ;;  %12398 = vmatpush3.msra.mxu0 %v10258_v33 }
 0xd74   :  { %12431 = vmatpush3.msra.mxu1 %v10291_v50  ;;  %12399 = vmatprep.subr.mxu0 %v10273_v23 }
 0xd75   :  { %12432 = vmatprep.subr.mxu1 %v10306_v60  ;;  %12400 = vmatpush3.msra.mxu0 %v10257_v45 }
 0xd76   :  { %12433 = vmatpush3.msra.mxu1 %v10290_v57  ;;  %12401 = vmatprep.subr.mxu0 %v10272_v20 }
 0xd77   :  { %12434 = vmatprep.subr.mxu1 %v10305_v9  ;;  %12402 = vmatpush3.msra.mxu0 %v10256_v2 }
 0xd78   :  { %12435 = vmatpush3.msra.mxu1 %v10289_v22  ;;  %12403 = vmatprep.subr.mxu0 %v10271_v46 }
 0xd79   :  { %12436 = vmatprep.subr.mxu1 %v10304_v18  ;;  %12404 = vmatpush3.msra.mxu0 %v10255_v42 }
 0xd7a   :  { %12437 = vmatpush3.msra.mxu1 %v10288_v12  ;;  %12405 = vmatprep.subr.mxu0 %v10270_v15 }
 0xd7b   :  { %12438 = vmatprep.subr.mxu1 %v10303_v4  ;;  %12406 = vmatpush3.msra.mxu0 %v10254_v55 }
 0xd7c   :  { %12439 = vmatpush3.msra.mxu1 %v10287_v19  ;;  %12407 = vmatprep.subr.mxu0 %v10269_v43 }
 0xd7d   :  { %12440 = vmatprep.subr.mxu1 %v10302_v17  ;;  %12408 = vmatpush3.msra.mxu0 %v10253_v10 }
 0xd7e   :  { %12441 = vmatpush3.msra.mxu1 %v10286_v8  ;;  %12409 = vmatprep.subr.mxu0 %v10268_v37 }
 0xd7f   :  { %12442 = vmatprep.subr.mxu1 %v10301_v28  ;;  %12410 = vmatpush3.msra.mxu0 %v10252_v29  ;;  %v10324_v29 = vld [vmem:[%s20325_s6 + $0x878] sm:$0xff] }
 0xd80   :  { %12443 = vmatpush3.msra.mxu1 %v10285_v38  ;;  %12411 = vmatprep.subr.mxu0 %v10267_v26 }
 0xd81   :  { %12444 = vmatprep.subr.mxu1 %v10300_v32  ;;  %12412 = vmatpush3.msra.mxu0 %v10251_v0  ;;  %v10339_v32 = vld [vmem:[%s20325_s6 + $0x8f0] sm:$0xff] }
 0xd82   :  { %12445 = vmatpush3.msra.mxu1 %v10284_v59  ;;  %12413 = vmatprep.subr.mxu0 %v10266_v31  ;;  %v10323_v0 = vld [vmem:[%s20325_s6 + $0x870] sm:$0xff]  ;;  %v10356_v59 = vld [vmem:[%s20325_s6 + $0x978] sm:$0xff] }
 0xd83   :  { %12446 = vmatprep.subr.mxu1 %v10299_v25  ;;  %12414 = vmatpush3.msra.mxu0 %v10250_v24  ;;  %v10338_v25 = vld [vmem:[%s20325_s6 + $0x8e8] sm:$0xff]  ;;  %v10371_v24 = vld [vmem:[%s20325_s6 + $0x9f0] sm:$0xff] }
 0xd84   :  { %12447 = vmatpush3.msra.mxu1 %v10283_v39  ;;  %12415 = vmatprep.subr.mxu0 %v10265_v13  ;;  %v10322_v39 = vld [vmem:[%s20325_s6 + $0x868] sm:$0xff]  ;;  %v10355_v13 = vld [vmem:[%s20325_s6 + $0x970] sm:$0xff] }
 0xd85   :  { %12448 = vmatprep.subr.mxu1 %v10298_v53  ;;  %12416 = vmatpush3.msra.mxu0 %v10249_v56  ;;  %v10337_v53 = vld [vmem:[%s20325_s6 + $0x8e0] sm:$0xff] }
 0xd86   :  { %12449 = vmatpush3.msra.mxu1 %v10282_v40  ;;  %12417 = vmatprep.subr.mxu0 %v10264_v27  ;;  %v10321_v56 = vld [vmem:[%s20325_s6 + $0x860] sm:$0xff]  ;;  %v10354_v40 = vld [vmem:[%s20325_s6 + $0x968] sm:$0xff] }
 0xd87   :  { %12450 = vmatprep.subr.mxu1 %v10297_v11  ;;  %12418 = vmatpush3.msra.mxu0 %v10248_v16  ;;  %v10336_v11 = vld [vmem:[%s20325_s6 + $0x8d8] sm:$0xff] }
 0xd88   :  { %12451 = vmatpush3.msra.mxu1 %v10281_v7  ;;  %12419 = vmatprep.subr.mxu0 %v10263_v21  ;;  %v10369_v7 = vld [vmem:[%s20325_s6 + $0x9e0] sm:$0xff] }
 0xd89   :  { %12452 = vmatprep.subr.mxu1 %v10296_v63  ;;  %12420 = vmatpush3.msra.mxu0 %v10247_v48  ;;  %v10320_v63 = vld [vmem:[%s20325_s6 + $0x858] sm:$0xff] }
 0xd8a   :  { %12453 = vmatpush3.msra.mxu1 %v10280_v34  ;;  %12421 = vmatprep.subr.mxu0 %v10262_v47  ;;  %v10353_v34 = vld [vmem:[%s20325_s6 + $0x960] sm:$0xff]  ;;  %v10335_v47 = vld [vmem:[%s20325_s6 + $0x8d0] sm:$0xff] }
 0xd8b   :  { %12454 = vmatprep.subr.mxu1 %v10295_v62  ;;  %12422 = vmatpush3.msra.mxu0 %v10246_v61  ;;  %v10368_v61 = vld [vmem:[%s20325_s6 + $0x9d8] sm:$0xff] }
 0xd8c   :  { %12455 = vmatpush3.msra.mxu1 %v10279_v14  ;;  %12423 = vmatprep.subr.mxu0 %v10261_v5  ;;  %v10319_v5 = vld [vmem:[%s20325_s6 + $0x850] sm:$0xff] }
 0xd8d   :  { %12456 = vmatprep.subr.mxu1 %v10294_v54  ;;  %12424 = vmatpush3.msra.mxu0 %v10245_v44  ;;  %v10352_v54 = vld [vmem:[%s20325_s6 + $0x958] sm:$0xff]  ;;  %v10334_v44 = vld [vmem:[%s20325_s6 + $0x8c8] sm:$0xff] }
 0xd8e   :  { %12457 = vmatpush3.msra.mxu1 %v10278_v36  ;;  %12463 = vmatprep.subr.mxu0 %v10340_v58  ;;  %v10367_v36 = vld [vmem:[%s20325_s6 + $0x9d0] sm:$0xff]  ;;  %v10318_v58 = vld [vmem:[%s20325_s6 + $0x848] sm:$0xff] }
 0xd8f   :  { %12458 = vmatprep.subr.mxu1 %v10293_v49  ;;  %v10351_v49 = vld [vmem:[%s20325_s6 + $0x950] sm:$0xff] }
 0xd90   :  { %12459 = vmatpush3.msra.mxu1 %v10277_v1  ;;  %v10333_v1 = vld [vmem:[%s20325_s6 + $0x8c0] sm:$0xff] }
 0xd91   :  { %12498 = vmatprep.subr.mxu1 %v10372_v35  ;;  %v10366_v35 = vld [vmem:[%s20325_s6 + $0x9c8] sm:$0xff] }
 0xda1   :  { %v9716_v30 = vpop.permute.xlu1 %9715 }
 0xda2   :  { %v9717_v3 = vrot.slane %v9716_v30, 7 }
 0xda4   :  { %v9718_v6 = vsel %vm9622_vm6, %v9717_v3, %v9716_v30  ;;  %v10317_v30 = vld [vmem:[%s20325_s6 + $0x840] sm:$0xff]  ;;  %v10350_v3 = vld [vmem:[%s20325_s6 + $0x948] sm:$0xff] }
 0xda5   :  { %9721 = vst.msk [vmem:[#allocation7 + $0x1a] ss:$2 sm:$0x3] %vm19150_vm7, %v9718_v6  ;;  %v10332_v6 = vld [vmem:[%s20325_s6 + $0x8b8] sm:$0xff] }
 0xda6   :  { %v9728_v33 = vpop.permute.xlu1 %9727  ;;  %v9984_v50 = vpop.permute.xlu0 %9983 }
 0xda7   :  { %v9729_v23 = vrot.slane %v9728_v33, 7  ;;  %v9985_v60 = vrot.slane %v9984_v50, 7 }
 0xda9   :  { %v9730_v45 = vsel %vm9622_vm6, %v9729_v23, %v9728_v33  ;;  %v9986_v57 = vsel %vm9622_vm6, %v9985_v60, %v9984_v50  ;;  %v10365_v33 = vld [vmem:[%s20325_s6 + $0x9c0] sm:$0xff]  ;;  %v10316_v50 = vld [vmem:[%s20325_s6 + $0x838] sm:$0xff]  ;;  %v10331_v60 = vld [vmem:[%s20325_s6 + $0x8b0] sm:$0xff] }
 0xdaa   :  { %9733 = vst.msk [vmem:[#allocation7 + $0x20] ss:$2 sm:$0x3] %vm19150_vm7, %v9730_v45  ;;  %9989 = vst.msk [vmem:[#allocation7 + $0x1b] ss:$2 sm:$0x3] %vm19150_vm7, %v9986_v57 }
 0xdab   :  { %v9996_v20 = vpop.permute.xlu1 %9995  ;;  %v9761_v9 = vpop.permute.xlu0 %9760  ;;  %v10349_v23 = vld [vmem:[%s20325_s6 + $0x940] sm:$0xff]  ;;  %v10364_v45 = vld [vmem:[%s20325_s6 + $0x9b8] sm:$0xff]  ;;  %v10315_v57 = vld [vmem:[%s20325_s6 + $0x830] sm:$0xff] }
 0xdac   :  { %v9997_v2 = vrot.slane %v9996_v20, 7  ;;  %v9762_v22 = vrot.slane %v9761_v9, 7 }
 0xdae   :  { %v9998_v46 = vsel %vm9622_vm6, %v9997_v2, %v9996_v20  ;;  %v9763_v18 = vsel %vm9622_vm6, %v9762_v22, %v9761_v9  ;;  %v10348_v20 = vld [vmem:[%s20325_s6 + $0x938] sm:$0xff]  ;;  %v10330_v9 = vld [vmem:[%s20325_s6 + $0x8a8] sm:$0xff]  ;;  %v10363_v2 = vld [vmem:[%s20325_s6 + $0x9b0] sm:$0xff] }
 0xdaf   :  { %10001 = vst.msk [vmem:[#allocation7 + $0x21] ss:$2 sm:$0x3] %vm19150_vm7, %v9998_v46  ;;  %9766 = vst.msk [vmem:[#allocation7 + $0x26] ss:$2 sm:$0x3] %vm19150_vm7, %v9763_v18 }
 0xdb0   :  { %v9773_v42 = vpop.permute.xlu1 %9772  ;;  %v10029_v12 = vpop.permute.xlu0 %10028  ;;  %v10314_v22 = vld [vmem:[%s20325_s6 + $0x828] sm:$0xff]  ;;  %v10347_v46 = vld [vmem:[%s20325_s6 + $0x930] sm:$0xff]  ;;  %v10329_v18 = vld [vmem:[%s20325_s6 + $0x8a0] sm:$0xff] }
 0xdb1   :  { %v9774_v15 = vrot.slane %v9773_v42, 7  ;;  %v10030_v4 = vrot.slane %v10029_v12, 7  ;;  %v10050_v55 = vld [vmem:[#allocation7 + $0x18] sm:$0xff] }
 0xdb2   :  { %v10508_v19 = vrot.slane %v10050_v55, %v19161_v52  ;;  %v10501_v43 = vcombine.high %v10050_v55, %v10050_v55  ;;  %v10361_v55 = vld [vmem:[%s20325_s6 + $0x9a0] sm:$0xff] }
 0xdb3   :  { %v9775_v17 = vsel %vm9622_vm6, %v9774_v15, %v9773_v42  ;;  %v10031_v10 = vsel %vm9622_vm6, %v10030_v4, %v10029_v12  ;;  %v10362_v42 = vld [vmem:[%s20325_s6 + $0x9a8] sm:$0xff]  ;;  %v10313_v12 = vld [vmem:[%s20325_s6 + $0x820] sm:$0xff]  ;;  %v10328_v4 = vld [vmem:[%s20325_s6 + $0x898] sm:$0xff] }
 0xdb4   :  { %9778 = vst.msk [vmem:[#allocation7 + $0x2c] ss:$2 sm:$0x3] %vm19150_vm7, %v9775_v17  ;;  %10034 = vst.msk [vmem:[#allocation7 + $0x27] ss:$2 sm:$0x3] %vm19150_vm7, %v10031_v10  ;;  %v10516_v8 = vcombine.high %v10508_v19, %v10508_v19  ;;  %v10515_v37 = vrot.slane %v10501_v43, %v19161_v52 }
 0xdb5   :  { %v10041_v28 = vpop.permute.xlu0 %10040  ;;  %v10346_v15 = vld [vmem:[%s20325_s6 + $0x928] sm:$0xff]  ;;  %v10345_v43 = vld [vmem:[%s20325_s6 + $0x920] sm:$0xff]  ;;  %v10327_v17 = vld [vmem:[%s20325_s6 + $0x890] sm:$0xff] }
 0xdb6   :  { %v10042_v38 = vrot.slane %v10041_v28, 7  ;;  %11060 = vmatprep.mubr.f32.mxu0 %v10516_v8  ;;  %v10517_v26 = vcombine.high %v10515_v37, %v10515_v37  ;;  %v10360_v10 = vld [vmem:[%s20325_s6 + $0x998] sm:$0xff]  ;;  %v10311_v8 = vld [vmem:[%s20325_s6 + $0x810] sm:$0xff] }
 0xdb7   :  { %11061 = vmatmul.mubr.f32.vlgmr.msra.gmra.mxu0 %v10508_v19  ;;  %v10312_v19 = vld [vmem:[%s20325_s6 + $0x818] sm:$0xff] }
 0xdb8   :  { %v10043_v31 = vsel %vm9622_vm6, %v10042_v38, %v10041_v28  ;;  %12464 = vmatpush3.msra.mxu0 %v10324_v29  ;;  %11130 = vmatprep.mubr.f32.mxu1 %v10517_v26  ;;  %v10326_v29 = vld [vmem:[%s20325_s6 + $0x888] sm:$0xff]  ;;  %v10359_v38 = vld [vmem:[%s20325_s6 + $0x990] sm:$0xff] }
 0xdb9   :  { %10046 = vst.msk [vmem:[#allocation7 + $0x2d] ss:$2 sm:$0x3] %vm19150_vm7, %v10043_v31  ;;  %12465 = vmatprep.subr.mxu0 %v10339_v32  ;;  %11131 = vmatmul.mubr.f32.vlgmr.msra.gmra.mxu1 %v10515_v37  ;;  %v10344_v37 = vld [vmem:[%s20325_s6 + $0x918] sm:$0xff]  ;;  %v10310_v26 = vld [vmem:[%s20325_s6 + $0x808] sm:$0xff]  ;;  %v10343_v32 = vld [vmem:[%s20325_s6 + $0x910] sm:$0xff] }
 0xdba   :  { %12466 = vmatpush3.msra.mxu0 %v10323_v0  ;;  %12499 = vmatpush3.msra.mxu1 %v10356_v59  ;;  %v10325_v0 = vld [vmem:[%s20325_s6 + $0x880] sm:$0xff]  ;;  %v10358_v59 = vld [vmem:[%s20325_s6 + $0x988] sm:$0xff] }
 0xdbb   :  { %12467 = vmatprep.subr.mxu0 %v10338_v25  ;;  %12500 = vmatprep.subr.mxu1 %v10371_v24  ;;  %v10051_v27 = vld [vmem:[#allocation7 + $0x20] sm:$0xff]  ;;  %v10309_v25 = vld [vmem:[%s20325_s6 + $0x800] sm:$0xff] }
 0xdbc   :  { %12468 = vmatpush3.msra.mxu0 %v10322_v39  ;;  %12501 = vmatpush3.msra.mxu1 %v10355_v13  ;;  %v19908_v16 = vrot.slane %v10051_v27, %v19161_v52  ;;  %v10518_v21 = vcombine.high %v10051_v27, %v10051_v27  ;;  %v10342_v24 = vld [vmem:[%s20325_s6 + $0x908] sm:$0xff]  ;;  %v10357_v13 = vld [vmem:[%s20325_s6 + $0x980] sm:$0xff] }
 0xdbd   :  { %12469 = vmatprep.subr.mxu0 %v10337_v53  ;;  %12502 = vmatprep.subr.mxu1 %v10370_v51  ;;  %v10404_v53 = vld [vmem:[%s20325_s6 + $0xaf8] sm:$0xff]  ;;  %v10341_v51 = vld [vmem:[%s20325_s6 + $0x900] sm:$0xff] }
 0xdbe   :  { %12470 = vmatpush3.msra.mxu0 %v10321_v56  ;;  %12503 = vmatpush3.msra.mxu1 %v10354_v40  ;;  %v10533_v48 = vcombine.high %v19908_v16, %v19908_v16  ;;  %v19925_v62 = vrot.slane %v10518_v21, %v19161_v52  ;;  %v10388_v56 = vld [vmem:[%s20325_s6 + $0xa78] sm:$0xff] }
 0xdbf   :  { %12471 = vmatprep.subr.mxu0 %v10336_v11  ;;  %12504 = vmatprep.subr.mxu1 %v10369_v7  ;;  %v10403_v11 = vld [vmem:[%s20325_s6 + $0xaf0] sm:$0xff]  ;;  %v10436_v7 = vld [vmem:[%s20325_s6 + $0xbf8] sm:$0xff] }
 0xdc0   :  { %11200 = vmatprep.mubr.f32.mxu0 %v10533_v48  ;;  %12472 = vmatpush3.msra.mxu0 %v10320_v63  ;;  %v10534_v14 = vcombine.high %v19925_v62, %v19925_v62  ;;  %v10052_v28 = vld [vmem:[#allocation7 + $0x28] sm:$0xff]  ;;  %v10402_v63 = vld [vmem:[%s20325_s6 + $0xae8] sm:$0xff] }
 0xdc1   :  { %12505 = vmatpush3.msra.mxu1 %v10353_v34  ;;  %12473 = vmatprep.subr.mxu0 %v10335_v47  ;;  %v10535_v31 = vcombine.high %v10052_v28, %v10052_v28  ;;  %v20059_v39 = vrot.slane %v10052_v28, %v19161_v52  ;;  %v10435_v48 = vld [vmem:[%s20325_s6 + $0xbf0] sm:$0xff]  ;;  %v10386_v34 = vld [vmem:[%s20325_s6 + $0xa68] sm:$0xff]  ;;  %v10425_v28 = vld [vmem:[%s20325_s6 + $0xba0] sm:$0xff] }
 0xdc2   :  { %12506 = vmatprep.subr.mxu1 %v10368_v61  ;;  %11270 = vmatprep.mubr.f32.mxu1 %v10534_v14  ;;  %v10419_v47 = vld [vmem:[%s20325_s6 + $0xb70] sm:$0xff]  ;;  %v10434_v61 = vld [vmem:[%s20325_s6 + $0xbe8] sm:$0xff]  ;;  %v10385_v14 = vld [vmem:[%s20325_s6 + $0xa60] sm:$0xff] }
 0xdc3   :  { %12474 = vmatpush3.msra.mxu0 %v10319_v5  ;;  %12507 = vmatpush3.msra.mxu1 %v10352_v54  ;;  %v20074_v40 = vrot.slane %v10535_v31, %v19161_v52  ;;  %v10550_v27 = vcombine.high %v20059_v39, %v20059_v39  ;;  %v10387_v52 = vld [vmem:[%s20325_s6 + $0xa70] sm:$0xff]  ;;  %v10418_v5 = vld [vmem:[%s20325_s6 + $0xb68] sm:$0xff]  ;;  %v10400_v54 = vld [vmem:[%s20325_s6 + $0xad8] sm:$0xff] }
 0xdc4   :  { %12475 = vmatprep.subr.mxu0 %v10334_v44  ;;  %12508 = vmatprep.subr.mxu1 %v10367_v36  ;;  %v10433_v44 = vld [vmem:[%s20325_s6 + $0xbe0] sm:$0xff]  ;;  %v10384_v36 = vld [vmem:[%s20325_s6 + $0xa58] sm:$0xff]  ;;  %v10390_v31 = vld [vmem:[%s20325_s6 + $0xa88] sm:$0xff] }
 0xdc5   :  { %12476 = vmatpush3.msra.mxu0 %v10318_v58  ;;  %12509 = vmatpush3.msra.mxu1 %v10351_v49  ;;  %v10551_v21 = vcombine.high %v20074_v40, %v20074_v40  ;;  %v10417_v58 = vld [vmem:[%s20325_s6 + $0xb60] sm:$0xff]  ;;  %v10399_v49 = vld [vmem:[%s20325_s6 + $0xad0] sm:$0xff] }
 0xdc6   :  { %12477 = vmatprep.subr.mxu0 %v10333_v1  ;;  %12510 = vmatprep.subr.mxu1 %v10366_v35  ;;  %v10432_v1 = vld [vmem:[%s20325_s6 + $0xbd8] sm:$0xff]  ;;  %v10383_v35 = vld [vmem:[%s20325_s6 + $0xa50] sm:$0xff] }
 0xdc7   :  { %12478 = vmatpush3.msra.mxu0 %v10317_v30  ;;  %12511 = vmatpush3.msra.mxu1 %v10350_v3  ;;  %v10416_v30 = vld [vmem:[%s20325_s6 + $0xb58] sm:$0xff]  ;;  %v10398_v3 = vld [vmem:[%s20325_s6 + $0xac8] sm:$0xff] }
 0xdc8   :  { %12479 = vmatprep.subr.mxu0 %v10332_v6  ;;  %12512 = vmatprep.subr.mxu1 %v10365_v33  ;;  %v10431_v6 = vld [vmem:[%s20325_s6 + $0xbd0] sm:$0xff]  ;;  %v10382_v33 = vld [vmem:[%s20325_s6 + $0xa48] sm:$0xff] }
 0xdc9   :  { %12480 = vmatpush3.msra.mxu0 %v10316_v50  ;;  %12513 = vmatpush3.msra.mxu1 %v10349_v23  ;;  %v10415_v50 = vld [vmem:[%s20325_s6 + $0xb50] sm:$0xff]  ;;  %v10397_v23 = vld [vmem:[%s20325_s6 + $0xac0] sm:$0xff] }
 0xdca   :  { %12481 = vmatprep.subr.mxu0 %v10331_v60  ;;  %12514 = vmatprep.subr.mxu1 %v10364_v45  ;;  %v10430_v60 = vld [vmem:[%s20325_s6 + $0xbc8] sm:$0xff]  ;;  %v10381_v45 = vld [vmem:[%s20325_s6 + $0xa40] sm:$0xff] }
 0xdcb   :  { %12482 = vmatpush3.msra.mxu0 %v10315_v57  ;;  %12515 = vmatpush3.msra.mxu1 %v10348_v20  ;;  %v10414_v57 = vld [vmem:[%s20325_s6 + $0xb48] sm:$0xff]  ;;  %v10396_v20 = vld [vmem:[%s20325_s6 + $0xab8] sm:$0xff] }
 0xdcc   :  { %12483 = vmatprep.subr.mxu0 %v10330_v9  ;;  %12516 = vmatprep.subr.mxu1 %v10363_v2  ;;  %v10429_v9 = vld [vmem:[%s20325_s6 + $0xbc0] sm:$0xff]  ;;  %v10380_v2 = vld [vmem:[%s20325_s6 + $0xa38] sm:$0xff] }
 0xdcd   :  { %12484 = vmatpush3.msra.mxu0 %v10314_v22  ;;  %12517 = vmatpush3.msra.mxu1 %v10347_v46  ;;  %v10413_v22 = vld [vmem:[%s20325_s6 + $0xb40] sm:$0xff]  ;;  %v10395_v46 = vld [vmem:[%s20325_s6 + $0xab0] sm:$0xff] }
 0xdce   :  { %12485 = vmatprep.subr.mxu0 %v10329_v18  ;;  %12518 = vmatprep.subr.mxu1 %v10362_v42  ;;  %v10428_v18 = vld [vmem:[%s20325_s6 + $0xbb8] sm:$0xff]  ;;  %v10379_v42 = vld [vmem:[%s20325_s6 + $0xa30] sm:$0xff] }
 0xdcf   :  { %12486 = vmatpush3.msra.mxu0 %v10313_v12  ;;  %12519 = vmatpush3.msra.mxu1 %v10346_v15  ;;  %v10412_v12 = vld [vmem:[%s20325_s6 + $0xb38] sm:$0xff]  ;;  %v10394_v15 = vld [vmem:[%s20325_s6 + $0xaa8] sm:$0xff] }
 0xdd0   :  { %12487 = vmatprep.subr.mxu0 %v10328_v4  ;;  %12520 = vmatprep.subr.mxu1 %v10361_v55  ;;  %v10427_v4 = vld [vmem:[%s20325_s6 + $0xbb0] sm:$0xff]  ;;  %v10378_v55 = vld [vmem:[%s20325_s6 + $0xa28] sm:$0xff] }
 0xdd1   :  { %12488 = vmatpush3.msra.mxu0 %v10312_v19  ;;  %12521 = vmatpush3.msra.mxu1 %v10345_v43  ;;  %v10411_v19 = vld [vmem:[%s20325_s6 + $0xb30] sm:$0xff]  ;;  %v10393_v43 = vld [vmem:[%s20325_s6 + $0xaa0] sm:$0xff] }
 0xdd2   :  { %12489 = vmatprep.subr.mxu0 %v10327_v17  ;;  %12522 = vmatprep.subr.mxu1 %v10360_v10  ;;  %v10426_v17 = vld [vmem:[%s20325_s6 + $0xba8] sm:$0xff]  ;;  %v10377_v10 = vld [vmem:[%s20325_s6 + $0xa20] sm:$0xff] }
 0xdd3   :  { %12490 = vmatpush3.msra.mxu0 %v10311_v8  ;;  %12523 = vmatpush3.msra.mxu1 %v10344_v37  ;;  %v10410_v8 = vld [vmem:[%s20325_s6 + $0xb28] sm:$0xff]  ;;  %v10392_v37 = vld [vmem:[%s20325_s6 + $0xa98] sm:$0xff] }
 0xdd4   :  { %12491 = vmatprep.subr.mxu0 %v10326_v29  ;;  %12524 = vmatprep.subr.mxu1 %v10359_v38  ;;  %v10376_v29 = vld [vmem:[%s20325_s6 + $0xa18] sm:$0xff]  ;;  %v10409_v38 = vld [vmem:[%s20325_s6 + $0xb20] sm:$0xff] }
 0xdd5   :  { %12492 = vmatpush3.msra.mxu0 %v10310_v26  ;;  %12525 = vmatpush3.msra.mxu1 %v10343_v32  ;;  %v10391_v26 = vld [vmem:[%s20325_s6 + $0xa90] sm:$0xff]  ;;  %v10424_v32 = vld [vmem:[%s20325_s6 + $0xb98] sm:$0xff] }
 0xdd6   :  { %12493 = vmatprep.subr.mxu0 %v10325_v0  ;;  %12526 = vmatprep.subr.mxu1 %v10358_v59  ;;  %v10375_v0 = vld [vmem:[%s20325_s6 + $0xa10] sm:$0xff]  ;;  %v10408_v59 = vld [vmem:[%s20325_s6 + $0xb18] sm:$0xff] }
 0xdd7   :  { %12494 = vmatpush3.msra.mxu0 %v10309_v25  ;;  %12527 = vmatpush3.msra.mxu1 %v10342_v24  ;;  %v10423_v25 = vld [vmem:[%s20325_s6 + $0xb90] sm:$0xff]  ;;  %v10374_v24 = vld [vmem:[%s20325_s6 + $0xa08] sm:$0xff] }
 0xdd8   :  { %11201 = vmatmul.mubr.f32.vlgmr.msra.gmra.mxu0 %v19908_v16  ;;  %12528 = vmatprep.subr.mxu1 %v10357_v13  ;;  %v10420_v16 = vld [vmem:[%s20325_s6 + $0xb78] sm:$0xff]  ;;  %v10407_v13 = vld [vmem:[%s20325_s6 + $0xb10] sm:$0xff] }
 0xdd9   :  { %12533 = vmatprep.subr.mxu0 %v10404_v53  ;;  %12529 = vmatpush3.msra.mxu1 %v10341_v51  ;;  %v10389_v53 = vld [vmem:[%s20325_s6 + $0xa80] sm:$0xff]  ;;  %v10422_v51 = vld [vmem:[%s20325_s6 + $0xb88] sm:$0xff] }
 0xdda   :  { %12534 = vmatpush3.msra.mxu0 %v10388_v56  ;;  %11340 = vmatprep.mubr.f32.mxu0 %v10550_v27  ;;  %v10373_v56 = vld [vmem:[%s20325_s6 + $0xa00] sm:$0xff]  ;;  %v10406_v27 = vld [vmem:[%s20325_s6 + $0xb08] sm:$0xff] }
 0xddb   :  { %11271 = vmatmul.mubr.f32.vlgmr.msra.gmra.mxu1 %v19925_v62  ;;  %12535 = vmatprep.subr.mxu0 %v10403_v11  ;;  %v10401_v62 = vld [vmem:[%s20325_s6 + $0xae0] sm:$0xff] }
 0xddc   :  { %12568 = vmatprep.subr.mxu1 %v10436_v7  ;;  %12536 = vmatpush3.msra.mxu0 %v10387_v52  ;;  %v10421_v11 = vld [vmem:[%s20325_s6 + $0xb80] sm:$0xff] }
 0xddd   :  { %12569 = vmatpush3.msra.mxu1 %v10420_v16  ;;  %11410 = vmatprep.mubr.f32.mxu1 %v10551_v21  ;;  %v10405_v7 = vld [vmem:[%s20325_s6 + $0xb00] sm:$0xff] }
 0xdde   :  { %12537 = vmatprep.subr.mxu0 %v10402_v63  ;;  %12570 = vmatprep.subr.mxu1 %v10435_v48 }
 0xddf   :  { %12538 = vmatpush3.msra.mxu0 %v10386_v34  ;;  %12571 = vmatpush3.msra.mxu1 %v10419_v47  ;;  %v12004_v34 = vld [vmem:[%s20326_s7] ss:$0 sm:$0xff] }
 0xde0   :  { %12539 = vmatprep.subr.mxu0 %v10401_v62  ;;  %12572 = vmatprep.subr.mxu1 %v10434_v61 }
 0xde1   :  { %12540 = vmatpush3.msra.mxu0 %v10385_v14  ;;  %12573 = vmatpush3.msra.mxu1 %v10418_v5 }
 0xde2   :  { %12541 = vmatprep.subr.mxu0 %v10400_v54  ;;  %12574 = vmatprep.subr.mxu1 %v10433_v44 }
 0xde3   :  { %12542 = vmatpush3.msra.mxu0 %v10384_v36  ;;  %12575 = vmatpush3.msra.mxu1 %v10417_v58 }
 0xde4   :  { %12543 = vmatprep.subr.mxu0 %v10399_v49  ;;  %12576 = vmatprep.subr.mxu1 %v10432_v1 }
 0xde5   :  { %12544 = vmatpush3.msra.mxu0 %v10383_v35  ;;  %12577 = vmatpush3.msra.mxu1 %v10416_v30  ;;  %v12215_v52 = vpop.f32.mrf.mxu0 }
 0xde6   :  { %12545 = vmatprep.subr.mxu0 %v10398_v3  ;;  %12578 = vmatprep.subr.mxu1 %v10431_v6 }
 0xde7   :  { %12546 = vmatpush3.msra.mxu0 %v10382_v33  ;;  %12579 = vmatpush3.msra.mxu1 %v10415_v50  ;;  %v12216_v16 = vpop.f32.mrf.mxu0  ;;  %v12250_v21 = vpop.f32.mrf.mxu1 }
 0xde8   :  { %12547 = vmatprep.subr.mxu0 %v10397_v23  ;;  %12580 = vmatprep.subr.mxu1 %v10430_v60  ;;  %v12217_v48 = vadd.f32 %v12216_v16, %v12215_v52  ;;  %v11454_v52 = vld [vmem:[%s20329_s10 + $0x18] sm:$0xff]  ;;  %v11453_v16 = vld [vmem:[%s20329_s10 + $0x10] sm:$0xff] }
 0xde9   :  { %12548 = vmatpush3.msra.mxu0 %v10381_v45  ;;  %12581 = vmatpush3.msra.mxu1 %v10414_v57  ;;  %v12251_v47 = vpop.f32.mrf.mxu1 }
 0xdea   :  { %12549 = vmatprep.subr.mxu0 %v10396_v20  ;;  %12582 = vmatprep.subr.mxu1 %v10429_v9  ;;  %v10643_v14 = vadd.f32 %v12217_v48, %v12004_v34 }
 0xdeb   :  { %12550 = vmatpush3.msra.mxu0 %v10380_v2  ;;  %12583 = vmatpush3.msra.mxu1 %v10413_v22 }
 0xdec   :  { %12551 = vmatprep.subr.mxu0 %v10395_v46  ;;  %12584 = vmatprep.subr.mxu1 %v10428_v18 }
 0xded   :  { %12552 = vmatpush3.msra.mxu0 %v10379_v42  ;;  %12585 = vmatpush3.msra.mxu1 %v10412_v12 }
 0xdee   :  { %12553 = vmatprep.subr.mxu0 %v10394_v15  ;;  %12586 = vmatprep.subr.mxu1 %v10427_v4 }
 0xdef   :  { %12554 = vmatpush3.msra.mxu0 %v10378_v55  ;;  %12587 = vmatpush3.msra.mxu1 %v10411_v19 }
 0xdf0   :  { %12555 = vmatprep.subr.mxu0 %v10393_v43  ;;  %12588 = vmatprep.subr.mxu1 %v10426_v17 }
 0xdf1   :  { %12556 = vmatpush3.msra.mxu0 %v10377_v10  ;;  %12589 = vmatpush3.msra.mxu1 %v10410_v8 }
 0xdf2   :  { %12557 = vmatprep.subr.mxu0 %v10392_v37  ;;  %12590 = vmatprep.subr.mxu1 %v10425_v28 }
 0xdf3   :  { %12558 = vmatpush3.msra.mxu0 %v10376_v29  ;;  %12591 = vmatpush3.msra.mxu1 %v10409_v38 }
 0xdf4   :  { %12559 = vmatprep.subr.mxu0 %v10391_v26  ;;  %12592 = vmatprep.subr.mxu1 %v10424_v32 }
 0xdf5   :  { %12560 = vmatpush3.msra.mxu0 %v10375_v0  ;;  %12593 = vmatpush3.msra.mxu1 %v10408_v59 }
 0xdf6   :  { %12561 = vmatprep.subr.mxu0 %v10390_v31  ;;  %12594 = vmatprep.subr.mxu1 %v10423_v25 }
 0xdf7   :  { %12562 = vmatpush3.msra.mxu0 %v10374_v24  ;;  %12595 = vmatpush3.msra.mxu1 %v10407_v13 }
 0xdf8   :  { %12563 = vmatprep.subr.mxu0 %v10389_v53  ;;  %12596 = vmatprep.subr.mxu1 %v10422_v51 }
 0xdf9   :  { %12564 = vmatpush3.msra.mxu0 %v10373_v56  ;;  %12597 = vmatpush3.msra.mxu1 %v10406_v27  ;;  %v11458_v56 = vld [vmem:[%s20329_s10 + $0x38] sm:$0xff]  ;;  %v11457_v27 = vld [vmem:[%s20329_s10 + $0x30] sm:$0xff] }
 0xdfa   :  { %11341 = vmatmul.mubr.f32.vlgmr.msra.gmra.mxu0 %v20059_v39  ;;  %12598 = vmatprep.subr.mxu1 %v10421_v11  ;;  %v12252_v39 = vadd.f32 %v12251_v47, %v12250_v21  ;;  %v11456_v11 = vld [vmem:[%s20329_s10 + $0x28] sm:$0xff] }
 0xdfb   :  { %12599 = vmatpush3.msra.mxu1 %v10405_v7  ;;  %12612 = vmatprep.subr.mxu0 %v20465_v41  ;;  %v11455_v7 = vld [vmem:[%s20329_s10 + $0x20] sm:$0xff]  ;;  %v11452_v21 = vld [vmem:[%s20329_s10 + $0x8] sm:$0xff] }
 0xdfc   :  { %11411 = vmatmul.mubr.f32.vlgmr.msra.gmra.mxu1 %v20074_v40  ;;  %v10713_v36 = vadd.f32 %v12252_v39, %v10643_v14  ;;  %12613 = vmatpush3.msra.mxu0 %v11458_v56  ;;  %v12006_v39 = vld [vmem:[%s20328_s9] ss:$0 sm:$0xff] }
 0xdfd   :  { %12628 = vmatprep.mubr.msk.f32.mxu0 %vm12749_vm9, %v20465_v41  ;;  %12614 = vmatprep.subr.mxu0 %v20465_v41 }
 0xdfe   :  { %12615 = vmatpush3.msra.mxu0 %v11457_v27 }
 0xdff   :  { %12616 = vmatprep.subr.mxu0 %v20465_v41 }
 0xe00   :  { %12617 = vmatpush3.msra.mxu0 %v11456_v11 }
 0xe01   :  { %12618 = vmatprep.subr.mxu0 %v20465_v41 }
 0xe02   :  { %12619 = vmatpush3.msra.mxu0 %v11455_v7 }
 0xe03   :  { %12620 = vmatprep.subr.mxu0 %v20465_v41 }
 0xe04   :  { %12621 = vmatpush3.msra.mxu0 %v11454_v52 }
 0xe05   :  { %12622 = vmatprep.subr.mxu0 %v20465_v41 }
 0xe06   :  { %12623 = vmatpush3.msra.mxu0 %v11453_v16 }
 0xe07   :  { %12624 = vmatprep.subr.mxu0 %v20465_v41 }
 0xe08   :  { %12625 = vmatpush3.msra.mxu0 %v11452_v21 }
 0xe09   :  { %12626 = vmatprep.subr.mxu0 %v20465_v41 }
 0xe0b   :  { %v12285_v63 = vpop.f32.mrf.mxu0 }
 0xe0d   :  { %v12286_v62 = vpop.f32.mrf.mxu0 }
 0xe0e   :  { %v12320_v61 = vpop.f32.mrf.mxu1  ;;  %v12287_v54 = vadd.f32 %v12286_v62, %v12285_v63  ;;  %v11451_v63 = vld [vmem:[%s20329_s10] sm:$0xff] }
 0xe0f   :  { %12627 = vmatpush3.msra.mxu0 %v11451_v63 }
 0xe10   :  { %v12321_v44 = vpop.f32.mrf.mxu1  ;;  %v10783_v49 = vadd.f32 %v12287_v54, %v10713_v36 }
 0xe11   :  { %v12322_v1 = vadd.f32 %v12321_v44, %v12320_v61  ;;  %v12005_v61 = vld [vmem:[%s20327_s8] ss:$0 sm:$0xff]  ;;  %s12750_s8 = smov [#allocation8]  }
 0xe12   :  { %s11554_s9 = sshll.u32 %s12750_s8, 4  ;;  %s11555_s9 = int_to_ptr.vmem [resolvable:$true] %s11554_s9 }
 0xe13   :  { %v10853_v6 = vadd.f32 %v12322_v1, %v10783_v49  ;;  %s12692_s10 = scalar_lea.vmem %s11555_s9, 32  ;;  %p12697_p1 = scmp.lt.s32.totalorder %s11555_s9, %s11555_s9 }
 0xe14   :  { %p12693_p0 = scmp.ne.s32.totalorder %s11555_s9, %s12692_s10  ;;  %p12698_p2 = scmp.lt.s32.totalorder %s12692_s10, %s12692_s10 }
 0xe16   :  { %p12699_p3 = por %p12698_p2, %p12697_p1 }
 0xe18   :  { %p12700_p4 = pnand %p12699_p3, %p12693_p0 }
 0xe2d   :  { %v12355_v5 = vpop.f32.mrf.mxu0 }
 0xe2f   :  { %v12356_v58 = vpop.f32.mrf.mxu0 }
 0xe30   :  { %v12390_v40 = vpop.f32.mrf.mxu1  ;;  %v12357_v30 = vadd.f32 %v12356_v58, %v12355_v5 }
 0xe32   :  { %v12391_v3 = vpop.f32.mrf.mxu1  ;;  %v10923_v23 = vadd.f32 %v12357_v30, %v10853_v6 }
 0xe33   :  { %v12392_v60 = vadd.f32 %v12391_v3, %v12390_v40 }
 0xe35   :  { %v10993_v9 = vadd.f32 %v12392_v60, %v10923_v23 }
 0xe77   :  { %v12425_v35 = vpop.f32.mrf.mxu0 }
 0xe79   :  { %v12426_v33 = vpop.f32.mrf.mxu0  ;;  %v12460_v50 = vpop.f32.mrf.mxu1 }
 0xe7a   :  { %v12427_v57 = vadd.f32 %v12426_v33, %v12425_v35 }
 0xe7b   :  { %v12461_v20 = vpop.f32.mrf.mxu1 }
 0xe7c   :  { %v11063_v46 = vadd.f32 %v12427_v57, %v10993_v9  ;;  %v12462_v18 = vadd.f32 %v12461_v20, %v12460_v50 }
 0xe7e   :  { %v11133_v15 = vadd.f32 %v12462_v18, %v11063_v46 }
 0xe98   :  { %v12495_v45 = vpop.f32.mrf.mxu0 }
 0xe9a   :  { %v12496_v2 = vpop.f32.mrf.mxu0 }
 0xe9b   :  { %v12530_v22 = vpop.f32.mrf.mxu1  ;;  %v12497_v42 = vadd.f32 %v12496_v2, %v12495_v45 }
 0xe9d   :  { %v12531_v12 = vpop.f32.mrf.mxu1  ;;  %v11203_v4 = vadd.f32 %v12497_v42, %v11133_v15 }
 0xe9e   :  { %v12532_v55 = vadd.f32 %v12531_v12, %v12530_v22 }
 0xea0   :  { %v11273_v10 = vadd.f32 %v12532_v55, %v11203_v4 }
 0xeba   :  { %v12565_v19 = vpop.f32.mrf.mxu0 }
 0xebc   :  { %v12566_v43 = vpop.f32.mrf.mxu0  ;;  %v12600_v17 = vpop.f32.mrf.mxu1 }
 0xebd   :  { %v12567_v8 = vadd.f32 %v12566_v43, %v12565_v19 }
 0xebe   :  { %v12601_v37 = vpop.f32.mrf.mxu1 }
 0xebf   :  { %v11343_v28 = vadd.f32 %v12567_v8, %v11273_v10  ;;  %v12602_v29 = vadd.f32 %v12601_v37, %v12600_v17 }
 0xec1   :  { %v11413_v38 = vadd.f32 %v12602_v29, %v11343_v28 }
 0xec3   :  { %v11416_v26 = vmul.f32 0.5, %v11413_v38 }
 0xec5   :  { %12675 = vtanh.f32 %v11416_v26 }
 0xed2   :  { %v12676_v32 = vpop.eup %12675 }
 0xed3   :  { %v11418_v0 = vadd.f32 1.0, %v12676_v32 }
 0xed5   :  { %v11419_v59 = vmul.f32 0.5, %v11418_v0 }
 0xed7   :  { %v11421_v31 = vsel %vm11420_vm8, %v11419_v59, 0.0 }
 0xed8   :  { %11422 = vadd.xlane.f32.xlu1 %v11421_v31 }
 0xf61   :  { %v11423_v25 = vpop.xlane.xlu1 %11422 }
 0xf62   :  { %v11425_v24 = vmul.f32 0.015625, %v11423_v25 }
 0xf64   :  { %v11426_v13 = vsub.f32 %v11419_v59, %v11425_v24 }
 0xf66   :  { %v11427_v53 = vmul.f32 %v11426_v13, %v11426_v13 }
 0xf68   :  { %v11428_v51 = vsel %vm11420_vm8, %v11427_v53, 0.0 }
 0xf69   :  { %11429 = vadd.xlane.f32.xlu0 %v11428_v51 }
 0xff2   :  { %v11430_v48 = vpop.xlane.xlu0 %11429 }
 0xff3   :  { %v11431_v34 = vmul.f32 0.015625, %v11430_v48 }
 0xff5   :  { %v11432_v47 = vadd.f32 1e-05, %v11431_v34 }
 0xff7   :  { %12677 = vrsqrt.f32 %v11432_v47 }
0x1004   :  { %v12678_v62 = vpop.eup %12677 }
0x1005   :  { %v11434_v14 = vmul.f32 %v12678_v62, %v11426_v13 }
0x1007   :  { %v11442_v5 = vmul.f32 %v12005_v61, %v11434_v14 }
0x1009   :  { %v11450_v54 = vadd.f32 %v12006_v39, %v11442_v5 }
0x100b   :  { %12629 = vmatmul.mubr.msk.f32.vlgmr.msra.gmra.mxu0 %vm9622_vm6, %v11450_v54  ;;  %v11532_v41 = vmul.f32 %v11450_v54, %v11450_v54 }
0x100d   :  { %v11533_v44 = vsel %vm11420_vm8, %v11532_v41, 0.0 }
0x100e   :  { %11534 = vadd.xlane.f32.xlu0 %v11533_v44 }
0x1097   :  { %v11535_v36 = vpop.xlane.xlu0 %11534 }
0x1098   :  { %12679 = vrsqrt.f32 %v11535_v36  ;;  %vm11538_vm10 = vcmp.eq.f32.partialorder %v11535_v36, inf  ;;  %v11541_v1 = vand.u32 2147483648, %v11535_v36  ;;  %vm11540_vm11 = vcmp.eq.f32.partialorder %v11535_v36, 0.0 }
0x10a5   :  { %v12680_v58 = vpop.eup %12679 }
0x10a6   :  { %v11537_v40 = vmul.f32 %v12680_v58, %v11535_v36 }
0x10a8   :  { %v11539_v49 = vsel %vm11538_vm10, %v11535_v36, %v11537_v40 }
0x10a9   :  { %v11542_v35 = vsel %vm11540_vm11, %v11541_v1, %v11539_v49 }
0x10aa   :  { %v11543_v30 = vmax.f32 %v11542_v35, 1e-08 }
0x10ac   :  { %12681 = vrcp.f32 %v11543_v30 }
0x10b9   :  { %v12682_v3 = vpop.eup %12681 }
0x10cb   :  { %v11528_v6 = vpop.f32.mrf.mxu0 }
0x10cc   :  { %v11545_v33 = vmul.f32 %v12682_v3, %v11528_v6 }
0x10cd   :  { %v12630_v50 = vpop.f32.mrf.mxu0 }
0x10ce   :  { %v11546_v23 = vmul.f32 3.0, %v11545_v33 }
0x10d0   :  { %11547 = vst [vmem:[#allocation8] sm:$0x3] %v11546_v23 }
0x10d1   :  { %12703 = shalt.err (!%p12700_p4)
}
0x10d2   :  { %11557 = dma.vmem_to_hbm [thread:$0]  %s11555_s9, 32, %s20330_s11, [#allocation9]  }
0x10d3   :  { %12712 = dma.done.wait [#allocation9], 32  }
0x10d4   :  { %12713 = vsyncadd [#allocation9], 4294967264 }
0x10d5   :  { %11561 = vsyncpa [#allocation9], 1 }

</bundles_post_ra>
